<compile_context>
chip_gen: v6e
topology: v6e:2x2x1
jax: 0.10.0
libtpu: 0.0.40
codegen_flags: <defaults>
</compile_context>

<pallas_src>
import numpy as np
import jax
import jax.numpy as jnp
from jax.experimental import pallas as pl
from jax.experimental.pallas import tpu as pltpu


# ---------------------------------------------------------------------------
# The fused kernel (runs once per batch tile; all weights stay VMEM-resident)
# ---------------------------------------------------------------------------
def _lenet5_kernel(x6_ref, band1_ref, b1_ref, band2_ref, b2_ref,
                   wfc1_ref, bfc1_ref, wfc2_ref, bfc2_ref, wfc3_ref, bfc3_ref,
                   o_ref, h1_ref, z_ref):
    f32 = jnp.float32
    bf16 = jnp.bfloat16

    band1 = band1_ref[...]          # (192, 512) bf16  conv1 band matrix
    band2 = band2_ref[...]          # (768, 512) bf16  conv2 band matrix
    b1 = b1_ref[...]                # (1, 128)  f32    conv1 bias (tiled/padded)
    b2 = b2_ref[...]                # (1, 128)  f32    conv2 bias (tiled/padded)

    def pool4(r):                   # max over the four 128-lane corner blocks
        return jnp.maximum(jnp.maximum(r[:, 0:128], r[:, 128:256]),
                           jnp.maximum(r[:, 256:384], r[:, 384:512]))

    # ---- conv1 (5x5, pad 2) + bias + 2x2 max-pool + relu --------------------
    # One (B,192)@(192,512) dot per pool row; columns = alpha*256+beta*128+q*6+c
    for u in range(14):
        r = jnp.dot(x6_ref[u], band1, preferred_element_type=f32)   # (B, 512)
        h1_ref[:, u * 128:(u + 1) * 128] = (
            jnp.maximum(pool4(r) + b1, 0.0).astype(bf16))

    # ---- conv2 (5x5) + bias + 2x2 max-pool + relu ----------------------------
    # LHS per pool row e is the lane-aligned slice of 6 conv1 pool rows.
    for e in range(5):
        lhs = h1_ref[:, e * 256:e * 256 + 768]                       # (B, 768)
        r = jnp.dot(lhs, band2, preferred_element_type=f32)          # (B, 512)
        z_ref[:, e * 128:(e + 1) * 128] = (
            jnp.maximum(pool4(r) + b2, 0.0).astype(bf16))

    # ---- fc1 + relu, fc2 + relu, fc3 (batch-wide dots, one block store) ------
    h = jnp.dot(z_ref[...], wfc1_ref[...], preferred_element_type=f32)
    h = jnp.maximum(h + bfc1_ref[...], 0.0).astype(bf16)             # (B, 120)
    h = jnp.dot(h, wfc2_ref[...], preferred_element_type=f32)
    h = jnp.maximum(h + bfc2_ref[...], 0.0).astype(bf16)             # (B, 84)
    out = jnp.dot(h, wfc3_ref[...], preferred_element_type=f32) + bfc3_ref[...]
    o_ref[...] = out.astype(o_ref.dtype)                             # (B, 10)


# ---------------------------------------------------------------------------
# Parameter preparation (runs once; nothing is rearranged in the hot path)
# ---------------------------------------------------------------------------
def prepare_params(p):
    f32 = np.float32
    w1 = np.asarray(p["conv1_w"], f32)          # (6, 1, 5, 5)
    b1 = np.asarray(p["conv1_b"], f32)          # (6,)
    w2 = np.asarray(p["conv2_w"], f32)          # (16, 6, 5, 5)
    b2 = np.asarray(p["conv2_b"], f32)          # (16,)
    fc1w = np.asarray(p["fc1_w"], f32)          # (120, 400)
    fc2w = np.asarray(p["fc2_w"], f32)          # (84, 120)
    fc3w = np.asarray(p["fc3_w"], f32)          # (10, 84)

    # conv1 band (192, 512):
    #   rows:    i*32 + col          (i: padded-row offset in the 6-row window)
    #   columns: alpha*256 + beta*128 + q*6 + c   (pool corners, pool col, chan)
    band1 = np.zeros((192, 512), f32)
    for alpha in range(2):
        for ti in range(5):                      # tap row i'
            i = alpha + ti
            for beta in range(2):
                for q in range(14):
                    for tj in range(5):          # tap col j
                        col = 2 * q + beta + tj
                        cb = alpha * 256 + beta * 128 + q * 6
                        band1[i * 32 + col, cb:cb + 6] = w1[:, 0, ti, tj]

    # conv2 band (768, 512):
    #   rows:    i*128 + q*6 + c     (i: h1 pool-row offset in the 6-row window)
    #   columns: a*256 + b*128 + f*16 + oc
    band2 = np.zeros((768, 512), f32)
    for a in range(2):
        for ti in range(5):
            i = a + ti
            for b in range(2):
                for f in range(5):
                    for tj in range(5):
                        q = 2 * f + b + tj
                        rb = i * 128 + q * 6
                        cb = a * 256 + b * 128 + f * 16
                        band2[rb:rb + 6, cb:cb + 16] = w2[:, :, ti, tj].T

    # Biases tiled/padded to the 128-lane pooled-output layouts.
    b1pad = np.zeros((1, 128), f32)
    for q in range(14):
        b1pad[0, q * 6:q * 6 + 6] = b1
    b2pad = np.zeros((1, 128), f32)
    for f in range(5):
        b2pad[0, f * 16:f * 16 + 16] = b2

    # fc1 weight permuted to the kernel's z layout: z[n, e*128 + f*16 + oc].
    w1r = np.zeros((640, 120), f32)
    fr = fc1w.reshape(120, 16, 5, 5)             # (o, oc, e, f)
    for e in range(5):
        for f in range(5):
            w1r[e * 128 + f * 16:e * 128 + f * 16 + 16, :] = fr[:, :, e, f].T

    bf16 = jnp.bfloat16
    return {
        "band1": jnp.asarray(band1, bf16),
        "b1pad": jnp.asarray(b1pad, jnp.float32),
        "band2": jnp.asarray(band2, bf16),
        "b2pad": jnp.asarray(b2pad, jnp.float32),
        "w1r": jnp.asarray(w1r, bf16),
        "fc1b": jnp.asarray(np.asarray(p["fc1_b"], f32).reshape(1, 120)),
        "fc2w": jnp.asarray(fc2w.T, bf16),       # (120, 84)
        "fc2b": jnp.asarray(np.asarray(p["fc2_b"], f32).reshape(1, 84)),
        "fc3w": jnp.asarray(fc3w.T, bf16),       # (84, 10)
        "fc3b": jnp.asarray(np.asarray(p["fc3_b"], f32).reshape(1, 10)),
    }


# ---------------------------------------------------------------------------
# Forward pass: single pallas_call, batch tiled onto a parallel grid axis
# ---------------------------------------------------------------------------
def _round_up(v, m):
    return (v + m - 1) // m * m


@jax.jit
def lenet5_forward(kparams, x):
    """x: (N, 1, 28, 28) float32 -> logits (N, 10) float32."""
    n = x.shape[0]
    b_tile = min(256, _round_up(max(n, 1), 8))
    n_pad = _round_up(n, b_tile)

    xpad = jnp.pad(x[:, 0].astype(jnp.float32),
                   ((0, n_pad - n), (2, 2), (2, 2)))            # (n_pad, 32, 32)
    # x6[u, n, i*32 + col] = xpad[n, 2u + i, col]  (u: pool row, i: 0..5)
    x6 = jnp.stack([xpad[:, 2 * u:2 * u + 6, :].reshape(n_pad, 192)
                    for u in range(14)], axis=0).astype(jnp.bfloat16)

    weights = [kparams["band1"], kparams["b1pad"], kparams["band2"],
               kparams["b2pad"], kparams["w1r"], kparams["fc1b"],
               kparams["fc2w"], kparams["fc2b"], kparams["fc3w"],
               kparams["fc3b"]]

    def _resident(arr):          # same block every grid step -> stays in VMEM
        nd = arr.ndim
        return pl.BlockSpec(arr.shape, lambda i, _nd=nd: (0,) * _nd)

    out = pl.pallas_call(
        _lenet5_kernel,
        out_shape=jax.ShapeDtypeStruct((n_pad, 10), jnp.float32),
        grid_spec=pltpu.PrefetchScalarGridSpec(
            num_scalar_prefetch=0,
            grid=(n_pad // b_tile,),
            in_specs=[pl.BlockSpec((14, b_tile, 192), lambda i: (0, i, 0))]
                     + [_resident(w) for w in weights],
            out_specs=pl.BlockSpec((b_tile, 10), lambda i: (i, 0)),
            scratch_shapes=[pltpu.VMEM((b_tile, 14 * 128), jnp.bfloat16),
                            pltpu.VMEM((b_tile, 5 * 128), jnp.bfloat16)]),
        compiler_params=pltpu.CompilerParams(
            dimension_semantics=("parallel",)),
    )(x6, *weights)
    return out[:n]


# ---------------------------------------------------------------------------
# Parameters (deterministic, PyTorch-like uniform(-1/sqrt(fan_in), +))
# ---------------------------------------------------------------------------
def init_params(key):
    def uniform(key, shape, fan_in):
        bound = 1.0 / jnp.sqrt(jnp.float32(fan_in))
        return jax.random.uniform(key, shape, jnp.float32, -bound, bound)

    keys = jax.random.split(key, 10)
    return {
        "conv1_w": uniform(keys[0], (6, 1, 5, 5), 1 * 5 * 5),
        "conv1_b": uniform(keys[1], (6,), 1 * 5 * 5),
        "conv2_w": uniform(keys[2], (16, 6, 5, 5), 6 * 5 * 5),
        "conv2_b": uniform(keys[3], (16,), 6 * 5 * 5),
        "fc1_w":   uniform(keys[4], (120, 400), 400),
        "fc1_b":   uniform(keys[5], (120,), 400),
        "fc2_w":   uniform(keys[6], (84, 120), 120),
        "fc2_b":   uniform(keys[7], (84,), 120),
        "fc3_w":   uniform(keys[8], (10, 84), 84),
        "fc3_b":   uniform(keys[9], (10,), 84),
    }


# Pure-JAX reference for a correctness sanity check.
def lenet5_reference(params, x):
    dn = jax.lax.conv_dimension_numbers(x.shape, params["conv1_w"].shape,
                                        ("NCHW", "OIHW", "NCHW"))
    y = jax.lax.conv_general_dilated(x, params["conv1_w"], (1, 1),
                                     [(2, 2), (2, 2)], dimension_numbers=dn)
    y = y + params["conv1_b"][None, :, None, None]
    y = jax.nn.relu(jax.lax.reduce_window(y, -jnp.inf, jax.lax.max,
                                          (1, 1, 2, 2), (1, 1, 2, 2), "VALID"))
    dn2 = jax.lax.conv_dimension_numbers(y.shape, params["conv2_w"].shape,
                                         ("NCHW", "OIHW", "NCHW"))
    y = jax.lax.conv_general_dilated(y, params["conv2_w"], (1, 1),
                                     [(0, 0), (0, 0)], dimension_numbers=dn2)
    y = y + params["conv2_b"][None, :, None, None]
    y = jax.nn.relu(jax.lax.reduce_window(y, -jnp.inf, jax.lax.max,
                                          (1, 1, 2, 2), (1, 1, 2, 2), "VALID"))
    y = y.reshape(y.shape[0], -1)
    y = jax.nn.relu(y @ params["fc1_w"].T + params["fc1_b"])
    y = jax.nn.relu(y @ params["fc2_w"].T + params["fc2_b"])
    return y @ params["fc3_w"].T + params["fc3_b"]


if __name__ == "__main__":
    key = jax.random.PRNGKey(0)
    # LeNet5 forward implies 1-channel 28x28 inputs (-> 16*5*5 = 400 flatten).
    x = jax.random.normal(key, (2, 1, 28, 28), dtype=jnp.float32)
    params = init_params(jax.random.PRNGKey(42))
    kparams = prepare_params(params)              # one-time weight rearrangement

    out = jax.block_until_ready(lenet5_forward(kparams, x))
    assert out.shape == (2, 10), out.shape

    ref = jax.block_until_ready(lenet5_reference(params, x))
    err = jnp.max(jnp.abs(out - ref))
    assert jnp.allclose(out, ref, rtol=1e-2, atol=1e-2), (
        f"Pallas output diverges from JAX reference, max abs err = {err}")

    print("KERNEL_OK")
</pallas_src>

<mosaic_0001>
module attributes {stable_mosaic.version = 11 : i64} {
  func.func @_lenet5_kernel(%arg0: i32, %arg1: memref<14x8x192xbf16, #tpu.memory_space<vmem>>, %arg2: memref<192x512xbf16, #tpu.memory_space<vmem>>, %arg3: memref<1x128xf32, #tpu.memory_space<vmem>>, %arg4: memref<768x512xbf16, #tpu.memory_space<vmem>>, %arg5: memref<1x128xf32, #tpu.memory_space<vmem>>, %arg6: memref<640x120xbf16, #tpu.memory_space<vmem>>, %arg7: memref<1x120xf32, #tpu.memory_space<vmem>>, %arg8: memref<120x84xbf16, #tpu.memory_space<vmem>>, %arg9: memref<1x84xf32, #tpu.memory_space<vmem>>, %arg10: memref<84x10xbf16, #tpu.memory_space<vmem>>, %arg11: memref<1x10xf32, #tpu.memory_space<vmem>>, %arg12: memref<8x10xf32, #tpu.memory_space<vmem>>, %arg13: memref<8x1792xbf16, #tpu.memory_space<vmem>>, %arg14: memref<8x640xbf16, #tpu.memory_space<vmem>>) attributes {dimension_semantics = [#tpu.dimension_semantics<parallel>], iteration_bounds = array<i64: 1>, scalar_prefetch = 0 : i64, scratch_operands = 2 : i64, tpu.core_type = #tpu.core_type<tc>, window_params = [{transform_indices = @transform_0, window_bounds = array<i64: 14, 8, 192>}, {pipeline_mode = #tpu.pipeline_mode<synchronous>, transform_indices = @transform_1, window_bounds = array<i64: 192, 512>}, {pipeline_mode = #tpu.pipeline_mode<synchronous>, transform_indices = @transform_2, window_bounds = array<i64: 1, 128>}, {pipeline_mode = #tpu.pipeline_mode<synchronous>, transform_indices = @transform_3, window_bounds = array<i64: 768, 512>}, {pipeline_mode = #tpu.pipeline_mode<synchronous>, transform_indices = @transform_4, window_bounds = array<i64: 1, 128>}, {pipeline_mode = #tpu.pipeline_mode<synchronous>, transform_indices = @transform_5, window_bounds = array<i64: 640, 120>}, {pipeline_mode = #tpu.pipeline_mode<synchronous>, transform_indices = @transform_6, window_bounds = array<i64: 1, 120>}, {pipeline_mode = #tpu.pipeline_mode<synchronous>, transform_indices = @transform_7, window_bounds = array<i64: 120, 84>}, {pipeline_mode = #tpu.pipeline_mode<synchronous>, transform_indices = @transform_8, window_bounds = array<i64: 1, 84>}, {pipeline_mode = #tpu.pipeline_mode<synchronous>, transform_indices = @transform_9, window_bounds = array<i64: 84, 10>}, {pipeline_mode = #tpu.pipeline_mode<synchronous>, transform_indices = @transform_10, window_bounds = array<i64: 1, 10>}, {transform_indices = @transform_11, window_bounds = array<i64: 8, 10>}]} {
    %c0 = arith.constant 0 : index
    %c0_0 = arith.constant 0 : index
    %0 = vector.load %arg2[%c0, %c0_0] : memref<192x512xbf16, #tpu.memory_space<vmem>>, vector<192x512xbf16>
    %c0_1 = arith.constant 0 : index
    %c0_2 = arith.constant 0 : index
    %1 = vector.load %arg4[%c0_1, %c0_2] : memref<768x512xbf16, #tpu.memory_space<vmem>>, vector<768x512xbf16>
    %c0_3 = arith.constant 0 : index
    %c0_4 = arith.constant 0 : index
    %2 = vector.load %arg3[%c0_3, %c0_4] : memref<1x128xf32, #tpu.memory_space<vmem>>, vector<1x128xf32>
    %c0_5 = arith.constant 0 : index
    %c0_6 = arith.constant 0 : index
    %3 = vector.load %arg5[%c0_5, %c0_6] : memref<1x128xf32, #tpu.memory_space<vmem>>, vector<1x128xf32>
    %c0_7 = arith.constant 0 : index
    %c0_8 = arith.constant 0 : index
    %c0_9 = arith.constant 0 : index
    %4 = vector.load %arg1[%c0_7, %c0_8, %c0_9] : memref<14x8x192xbf16, #tpu.memory_space<vmem>>, vector<1x8x192xbf16>
    %5 = vector.shape_cast %4 : vector<1x8x192xbf16> to vector<8x192xbf16>
    %cst = arith.constant dense<0.000000e+00> : vector<8x512xf32>
    %6 = tpu.matmul %5, %0, %cst {dimension_numbers = #tpu.dot_dimension_numbers<[1], [0], [0], [1], [0, 0, 1, 1], [], []>} : vector<8x192xbf16>, vector<192x512xbf16>, vector<8x512xf32> -> vector<8x512xf32>
    %7 = vector.extract_strided_slice %6 {offsets = [0, 0], sizes = [8, 128], strides = [1, 1]} : vector<8x512xf32> to vector<8x128xf32>
    %8 = vector.extract_strided_slice %6 {offsets = [0, 128], sizes = [8, 128], strides = [1, 1]} : vector<8x512xf32> to vector<8x128xf32>
    %9 = arith.maximumf %7, %8 : vector<8x128xf32>
    %10 = vector.extract_strided_slice %6 {offsets = [0, 256], sizes = [8, 128], strides = [1, 1]} : vector<8x512xf32> to vector<8x128xf32>
    %11 = vector.extract_strided_slice %6 {offsets = [0, 384], sizes = [8, 128], strides = [1, 1]} : vector<8x512xf32> to vector<8x128xf32>
    %12 = arith.maximumf %10, %11 : vector<8x128xf32>
    %13 = arith.maximumf %9, %12 : vector<8x128xf32>
    %14 = vector.broadcast %2 : vector<1x128xf32> to vector<8x128xf32>
    %15 = arith.addf %13, %14 : vector<8x128xf32>
    %cst_10 = arith.constant 0.000000e+00 : f32
    %16 = vector.broadcast %cst_10 : f32 to vector<8x128xf32>
    %17 = arith.maximumf %15, %16 : vector<8x128xf32>
    %18 = arith.truncf %17 : vector<8x128xf32> to vector<8x128xbf16>
    %c0_11 = arith.constant 0 : index
    %c0_12 = arith.constant 0 : index
    %19 = vector.load %arg13[%c0_11, %c0_12] : memref<8x1792xbf16, #tpu.memory_space<vmem>>, vector<8x128xbf16>
    tpu.vector_store %arg13[%c0_11, %c0_12], %18 {strides = array<i32>} : memref<8x1792xbf16, #tpu.memory_space<vmem>>, vector<8x128xbf16>,
    %c1 = arith.constant 1 : index
    %c0_13 = arith.constant 0 : index
    %c0_14 = arith.constant 0 : index
    %20 = vector.load %arg1[%c1, %c0_13, %c0_14] : memref<14x8x192xbf16, #tpu.memory_space<vmem>>, vector<1x8x192xbf16>
    %21 = vector.shape_cast %20 : vector<1x8x192xbf16> to vector<8x192xbf16>
    %cst_15 = arith.constant dense<0.000000e+00> : vector<8x512xf32>
    %22 = tpu.matmul %21, %0, %cst_15 {dimension_numbers = #tpu.dot_dimension_numbers<[1], [0], [0], [1], [0, 0, 1, 1], [], []>} : vector<8x192xbf16>, vector<192x512xbf16>, vector<8x512xf32> -> vector<8x512xf32>
    %23 = vector.extract_strided_slice %22 {offsets = [0, 0], sizes = [8, 128], strides = [1, 1]} : vector<8x512xf32> to vector<8x128xf32>
    %24 = vector.extract_strided_slice %22 {offsets = [0, 128], sizes = [8, 128], strides = [1, 1]} : vector<8x512xf32> to vector<8x128xf32>
    %25 = arith.maximumf %23, %24 : vector<8x128xf32>
    %26 = vector.extract_strided_slice %22 {offsets = [0, 256], sizes = [8, 128], strides = [1, 1]} : vector<8x512xf32> to vector<8x128xf32>
    %27 = vector.extract_strided_slice %22 {offsets = [0, 384], sizes = [8, 128], strides = [1, 1]} : vector<8x512xf32> to vector<8x128xf32>
    %28 = arith.maximumf %26, %27 : vector<8x128xf32>
    %29 = arith.maximumf %25, %28 : vector<8x128xf32>
    %30 = vector.broadcast %2 : vector<1x128xf32> to vector<8x128xf32>
    %31 = arith.addf %29, %30 : vector<8x128xf32>
    %cst_16 = arith.constant 0.000000e+00 : f32
    %32 = vector.broadcast %cst_16 : f32 to vector<8x128xf32>
    %33 = arith.maximumf %31, %32 : vector<8x128xf32>
    %34 = arith.truncf %33 : vector<8x128xf32> to vector<8x128xbf16>
    %c0_17 = arith.constant 0 : index
    %c128 = arith.constant 128 : index
    %35 = vector.load %arg13[%c0_17, %c128] : memref<8x1792xbf16, #tpu.memory_space<vmem>>, vector<8x128xbf16>
    tpu.vector_store %arg13[%c0_17, %c128], %34 {strides = array<i32>} : memref<8x1792xbf16, #tpu.memory_space<vmem>>, vector<8x128xbf16>,
    %c2 = arith.constant 2 : index
    %c0_18 = arith.constant 0 : index
    %c0_19 = arith.constant 0 : index
    %36 = vector.load %arg1[%c2, %c0_18, %c0_19] : memref<14x8x192xbf16, #tpu.memory_space<vmem>>, vector<1x8x192xbf16>
    %37 = vector.shape_cast %36 : vector<1x8x192xbf16> to vector<8x192xbf16>
    %cst_20 = arith.constant dense<0.000000e+00> : vector<8x512xf32>
    %38 = tpu.matmul %37, %0, %cst_20 {dimension_numbers = #tpu.dot_dimension_numbers<[1], [0], [0], [1], [0, 0, 1, 1], [], []>} : vector<8x192xbf16>, vector<192x512xbf16>, vector<8x512xf32> -> vector<8x512xf32>
    %39 = vector.extract_strided_slice %38 {offsets = [0, 0], sizes = [8, 128], strides = [1, 1]} : vector<8x512xf32> to vector<8x128xf32>
    %40 = vector.extract_strided_slice %38 {offsets = [0, 128], sizes = [8, 128], strides = [1, 1]} : vector<8x512xf32> to vector<8x128xf32>
    %41 = arith.maximumf %39, %40 : vector<8x128xf32>
    %42 = vector.extract_strided_slice %38 {offsets = [0, 256], sizes = [8, 128], strides = [1, 1]} : vector<8x512xf32> to vector<8x128xf32>
    %43 = vector.extract_strided_slice %38 {offsets = [0, 384], sizes = [8, 128], strides = [1, 1]} : vector<8x512xf32> to vector<8x128xf32>
    %44 = arith.maximumf %42, %43 : vector<8x128xf32>
    %45 = arith.maximumf %41, %44 : vector<8x128xf32>
    %46 = vector.broadcast %2 : vector<1x128xf32> to vector<8x128xf32>
    %47 = arith.addf %45, %46 : vector<8x128xf32>
    %cst_21 = arith.constant 0.000000e+00 : f32
    %48 = vector.broadcast %cst_21 : f32 to vector<8x128xf32>
    %49 = arith.maximumf %47, %48 : vector<8x128xf32>
    %50 = arith.truncf %49 : vector<8x128xf32> to vector<8x128xbf16>
    %c0_22 = arith.constant 0 : index
    %c256 = arith.constant 256 : index
    %51 = vector.load %arg13[%c0_22, %c256] : memref<8x1792xbf16, #tpu.memory_space<vmem>>, vector<8x128xbf16>
    tpu.vector_store %arg13[%c0_22, %c256], %50 {strides = array<i32>} : memref<8x1792xbf16, #tpu.memory_space<vmem>>, vector<8x128xbf16>,
    %c3 = arith.constant 3 : index
    %c0_23 = arith.constant 0 : index
    %c0_24 = arith.constant 0 : index
    %52 = vector.load %arg1[%c3, %c0_23, %c0_24] : memref<14x8x192xbf16, #tpu.memory_space<vmem>>, vector<1x8x192xbf16>
    %53 = vector.shape_cast %52 : vector<1x8x192xbf16> to vector<8x192xbf16>
    %cst_25 = arith.constant dense<0.000000e+00> : vector<8x512xf32>
    %54 = tpu.matmul %53, %0, %cst_25 {dimension_numbers = #tpu.dot_dimension_numbers<[1], [0], [0], [1], [0, 0, 1, 1], [], []>} : vector<8x192xbf16>, vector<192x512xbf16>, vector<8x512xf32> -> vector<8x512xf32>
    %55 = vector.extract_strided_slice %54 {offsets = [0, 0], sizes = [8, 128], strides = [1, 1]} : vector<8x512xf32> to vector<8x128xf32>
    %56 = vector.extract_strided_slice %54 {offsets = [0, 128], sizes = [8, 128], strides = [1, 1]} : vector<8x512xf32> to vector<8x128xf32>
    %57 = arith.maximumf %55, %56 : vector<8x128xf32>
    %58 = vector.extract_strided_slice %54 {offsets = [0, 256], sizes = [8, 128], strides = [1, 1]} : vector<8x512xf32> to vector<8x128xf32>
    %59 = vector.extract_strided_slice %54 {offsets = [0, 384], sizes = [8, 128], strides = [1, 1]} : vector<8x512xf32> to vector<8x128xf32>
    %60 = arith.maximumf %58, %59 : vector<8x128xf32>
    %61 = arith.maximumf %57, %60 : vector<8x128xf32>
    %62 = vector.broadcast %2 : vector<1x128xf32> to vector<8x128xf32>
    %63 = arith.addf %61, %62 : vector<8x128xf32>
    %cst_26 = arith.constant 0.000000e+00 : f32
    %64 = vector.broadcast %cst_26 : f32 to vector<8x128xf32>
    %65 = arith.maximumf %63, %64 : vector<8x128xf32>
    %66 = arith.truncf %65 : vector<8x128xf32> to vector<8x128xbf16>
    %c0_27 = arith.constant 0 : index
    %c384 = arith.constant 384 : index
    %67 = vector.load %arg13[%c0_27, %c384] : memref<8x1792xbf16, #tpu.memory_space<vmem>>, vector<8x128xbf16>
    tpu.vector_store %arg13[%c0_27, %c384], %66 {strides = array<i32>} : memref<8x1792xbf16, #tpu.memory_space<vmem>>, vector<8x128xbf16>,
    %c4 = arith.constant 4 : index
    %c0_28 = arith.constant 0 : index
    %c0_29 = arith.constant 0 : index
    %68 = vector.load %arg1[%c4, %c0_28, %c0_29] : memref<14x8x192xbf16, #tpu.memory_space<vmem>>, vector<1x8x192xbf16>
    %69 = vector.shape_cast %68 : vector<1x8x192xbf16> to vector<8x192xbf16>
    %cst_30 = arith.constant dense<0.000000e+00> : vector<8x512xf32>
    %70 = tpu.matmul %69, %0, %cst_30 {dimension_numbers = #tpu.dot_dimension_numbers<[1], [0], [0], [1], [0, 0, 1, 1], [], []>} : vector<8x192xbf16>, vector<192x512xbf16>, vector<8x512xf32> -> vector<8x512xf32>
    %71 = vector.extract_strided_slice %70 {offsets = [0, 0], sizes = [8, 128], strides = [1, 1]} : vector<8x512xf32> to vector<8x128xf32>
    %72 = vector.extract_strided_slice %70 {offsets = [0, 128], sizes = [8, 128], strides = [1, 1]} : vector<8x512xf32> to vector<8x128xf32>
    %73 = arith.maximumf %71, %72 : vector<8x128xf32>
    %74 = vector.extract_strided_slice %70 {offsets = [0, 256], sizes = [8, 128], strides = [1, 1]} : vector<8x512xf32> to vector<8x128xf32>
    %75 = vector.extract_strided_slice %70 {offsets = [0, 384], sizes = [8, 128], strides = [1, 1]} : vector<8x512xf32> to vector<8x128xf32>
    %76 = arith.maximumf %74, %75 : vector<8x128xf32>
    %77 = arith.maximumf %73, %76 : vector<8x128xf32>
    %78 = vector.broadcast %2 : vector<1x128xf32> to vector<8x128xf32>
    %79 = arith.addf %77, %78 : vector<8x128xf32>
    %cst_31 = arith.constant 0.000000e+00 : f32
    %80 = vector.broadcast %cst_31 : f32 to vector<8x128xf32>
    %81 = arith.maximumf %79, %80 : vector<8x128xf32>
    %82 = arith.truncf %81 : vector<8x128xf32> to vector<8x128xbf16>
    %c0_32 = arith.constant 0 : index
    %c512 = arith.constant 512 : index
    %83 = vector.load %arg13[%c0_32, %c512] : memref<8x1792xbf16, #tpu.memory_space<vmem>>, vector<8x128xbf16>
    tpu.vector_store %arg13[%c0_32, %c512], %82 {strides = array<i32>} : memref<8x1792xbf16, #tpu.memory_space<vmem>>, vector<8x128xbf16>,
    %c5 = arith.constant 5 : index
    %c0_33 = arith.constant 0 : index
    %c0_34 = arith.constant 0 : index
    %84 = vector.load %arg1[%c5, %c0_33, %c0_34] : memref<14x8x192xbf16, #tpu.memory_space<vmem>>, vector<1x8x192xbf16>
    %85 = vector.shape_cast %84 : vector<1x8x192xbf16> to vector<8x192xbf16>
    %cst_35 = arith.constant dense<0.000000e+00> : vector<8x512xf32>
    %86 = tpu.matmul %85, %0, %cst_35 {dimension_numbers = #tpu.dot_dimension_numbers<[1], [0], [0], [1], [0, 0, 1, 1], [], []>} : vector<8x192xbf16>, vector<192x512xbf16>, vector<8x512xf32> -> vector<8x512xf32>
    %87 = vector.extract_strided_slice %86 {offsets = [0, 0], sizes = [8, 128], strides = [1, 1]} : vector<8x512xf32> to vector<8x128xf32>
    %88 = vector.extract_strided_slice %86 {offsets = [0, 128], sizes = [8, 128], strides = [1, 1]} : vector<8x512xf32> to vector<8x128xf32>
    %89 = arith.maximumf %87, %88 : vector<8x128xf32>
    %90 = vector.extract_strided_slice %86 {offsets = [0, 256], sizes = [8, 128], strides = [1, 1]} : vector<8x512xf32> to vector<8x128xf32>
    %91 = vector.extract_strided_slice %86 {offsets = [0, 384], sizes = [8, 128], strides = [1, 1]} : vector<8x512xf32> to vector<8x128xf32>
    %92 = arith.maximumf %90, %91 : vector<8x128xf32>
    %93 = arith.maximumf %89, %92 : vector<8x128xf32>
    %94 = vector.broadcast %2 : vector<1x128xf32> to vector<8x128xf32>
    %95 = arith.addf %93, %94 : vector<8x128xf32>
    %cst_36 = arith.constant 0.000000e+00 : f32
    %96 = vector.broadcast %cst_36 : f32 to vector<8x128xf32>
    %97 = arith.maximumf %95, %96 : vector<8x128xf32>
    %98 = arith.truncf %97 : vector<8x128xf32> to vector<8x128xbf16>
    %c0_37 = arith.constant 0 : index
    %c640 = arith.constant 640 : index
    %99 = vector.load %arg13[%c0_37, %c640] : memref<8x1792xbf16, #tpu.memory_space<vmem>>, vector<8x128xbf16>
    tpu.vector_store %arg13[%c0_37, %c640], %98 {strides = array<i32>} : memref<8x1792xbf16, #tpu.memory_space<vmem>>, vector<8x128xbf16>,
    %c6 = arith.constant 6 : index
    %c0_38 = arith.constant 0 : index
    %c0_39 = arith.constant 0 : index
    %100 = vector.load %arg1[%c6, %c0_38, %c0_39] : memref<14x8x192xbf16, #tpu.memory_space<vmem>>, vector<1x8x192xbf16>
    %101 = vector.shape_cast %100 : vector<1x8x192xbf16> to vector<8x192xbf16>
    %cst_40 = arith.constant dense<0.000000e+00> : vector<8x512xf32>
    %102 = tpu.matmul %101, %0, %cst_40 {dimension_numbers = #tpu.dot_dimension_numbers<[1], [0], [0], [1], [0, 0, 1, 1], [], []>} : vector<8x192xbf16>, vector<192x512xbf16>, vector<8x512xf32> -> vector<8x512xf32>
    %103 = vector.extract_strided_slice %102 {offsets = [0, 0], sizes = [8, 128], strides = [1, 1]} : vector<8x512xf32> to vector<8x128xf32>
    %104 = vector.extract_strided_slice %102 {offsets = [0, 128], sizes = [8, 128], strides = [1, 1]} : vector<8x512xf32> to vector<8x128xf32>
    %105 = arith.maximumf %103, %104 : vector<8x128xf32>
    %106 = vector.extract_strided_slice %102 {offsets = [0, 256], sizes = [8, 128], strides = [1, 1]} : vector<8x512xf32> to vector<8x128xf32>
    %107 = vector.extract_strided_slice %102 {offsets = [0, 384], sizes = [8, 128], strides = [1, 1]} : vector<8x512xf32> to vector<8x128xf32>
    %108 = arith.maximumf %106, %107 : vector<8x128xf32>
    %109 = arith.maximumf %105, %108 : vector<8x128xf32>
    %110 = vector.broadcast %2 : vector<1x128xf32> to vector<8x128xf32>
    %111 = arith.addf %109, %110 : vector<8x128xf32>
    %cst_41 = arith.constant 0.000000e+00 : f32
    %112 = vector.broadcast %cst_41 : f32 to vector<8x128xf32>
    %113 = arith.maximumf %111, %112 : vector<8x128xf32>
    %114 = arith.truncf %113 : vector<8x128xf32> to vector<8x128xbf16>
    %c0_42 = arith.constant 0 : index
    %c768 = arith.constant 768 : index
    %115 = vector.load %arg13[%c0_42, %c768] : memref<8x1792xbf16, #tpu.memory_space<vmem>>, vector<8x128xbf16>
    tpu.vector_store %arg13[%c0_42, %c768], %114 {strides = array<i32>} : memref<8x1792xbf16, #tpu.memory_space<vmem>>, vector<8x128xbf16>,
    %c7 = arith.constant 7 : index
    %c0_43 = arith.constant 0 : index
    %c0_44 = arith.constant 0 : index
    %116 = vector.load %arg1[%c7, %c0_43, %c0_44] : memref<14x8x192xbf16, #tpu.memory_space<vmem>>, vector<1x8x192xbf16>
    %117 = vector.shape_cast %116 : vector<1x8x192xbf16> to vector<8x192xbf16>
    %cst_45 = arith.constant dense<0.000000e+00> : vector<8x512xf32>
    %118 = tpu.matmul %117, %0, %cst_45 {dimension_numbers = #tpu.dot_dimension_numbers<[1], [0], [0], [1], [0, 0, 1, 1], [], []>} : vector<8x192xbf16>, vector<192x512xbf16>, vector<8x512xf32> -> vector<8x512xf32>
    %119 = vector.extract_strided_slice %118 {offsets = [0, 0], sizes = [8, 128], strides = [1, 1]} : vector<8x512xf32> to vector<8x128xf32>
    %120 = vector.extract_strided_slice %118 {offsets = [0, 128], sizes = [8, 128], strides = [1, 1]} : vector<8x512xf32> to vector<8x128xf32>
    %121 = arith.maximumf %119, %120 : vector<8x128xf32>
    %122 = vector.extract_strided_slice %118 {offsets = [0, 256], sizes = [8, 128], strides = [1, 1]} : vector<8x512xf32> to vector<8x128xf32>
    %123 = vector.extract_strided_slice %118 {offsets = [0, 384], sizes = [8, 128], strides = [1, 1]} : vector<8x512xf32> to vector<8x128xf32>
    %124 = arith.maximumf %122, %123 : vector<8x128xf32>
    %125 = arith.maximumf %121, %124 : vector<8x128xf32>
    %126 = vector.broadcast %2 : vector<1x128xf32> to vector<8x128xf32>
    %127 = arith.addf %125, %126 : vector<8x128xf32>
    %cst_46 = arith.constant 0.000000e+00 : f32
    %128 = vector.broadcast %cst_46 : f32 to vector<8x128xf32>
    %129 = arith.maximumf %127, %128 : vector<8x128xf32>
    %130 = arith.truncf %129 : vector<8x128xf32> to vector<8x128xbf16>
    %c0_47 = arith.constant 0 : index
    %c896 = arith.constant 896 : index
    %131 = vector.load %arg13[%c0_47, %c896] : memref<8x1792xbf16, #tpu.memory_space<vmem>>, vector<8x128xbf16>
    tpu.vector_store %arg13[%c0_47, %c896], %130 {strides = array<i32>} : memref<8x1792xbf16, #tpu.memory_space<vmem>>, vector<8x128xbf16>,
    %c8 = arith.constant 8 : index
    %c0_48 = arith.constant 0 : index
    %c0_49 = arith.constant 0 : index
    %132 = vector.load %arg1[%c8, %c0_48, %c0_49] : memref<14x8x192xbf16, #tpu.memory_space<vmem>>, vector<1x8x192xbf16>
    %133 = vector.shape_cast %132 : vector<1x8x192xbf16> to vector<8x192xbf16>
    %cst_50 = arith.constant dense<0.000000e+00> : vector<8x512xf32>
    %134 = tpu.matmul %133, %0, %cst_50 {dimension_numbers = #tpu.dot_dimension_numbers<[1], [0], [0], [1], [0, 0, 1, 1], [], []>} : vector<8x192xbf16>, vector<192x512xbf16>, vector<8x512xf32> -> vector<8x512xf32>
    %135 = vector.extract_strided_slice %134 {offsets = [0, 0], sizes = [8, 128], strides = [1, 1]} : vector<8x512xf32> to vector<8x128xf32>
    %136 = vector.extract_strided_slice %134 {offsets = [0, 128], sizes = [8, 128], strides = [1, 1]} : vector<8x512xf32> to vector<8x128xf32>
    %137 = arith.maximumf %135, %136 : vector<8x128xf32>
    %138 = vector.extract_strided_slice %134 {offsets = [0, 256], sizes = [8, 128], strides = [1, 1]} : vector<8x512xf32> to vector<8x128xf32>
    %139 = vector.extract_strided_slice %134 {offsets = [0, 384], sizes = [8, 128], strides = [1, 1]} : vector<8x512xf32> to vector<8x128xf32>
    %140 = arith.maximumf %138, %139 : vector<8x128xf32>
    %141 = arith.maximumf %137, %140 : vector<8x128xf32>
    %142 = vector.broadcast %2 : vector<1x128xf32> to vector<8x128xf32>
    %143 = arith.addf %141, %142 : vector<8x128xf32>
    %cst_51 = arith.constant 0.000000e+00 : f32
    %144 = vector.broadcast %cst_51 : f32 to vector<8x128xf32>
    %145 = arith.maximumf %143, %144 : vector<8x128xf32>
    %146 = arith.truncf %145 : vector<8x128xf32> to vector<8x128xbf16>
    %c0_52 = arith.constant 0 : index
    %c1024 = arith.constant 1024 : index
    %147 = vector.load %arg13[%c0_52, %c1024] : memref<8x1792xbf16, #tpu.memory_space<vmem>>, vector<8x128xbf16>
    tpu.vector_store %arg13[%c0_52, %c1024], %146 {strides = array<i32>} : memref<8x1792xbf16, #tpu.memory_space<vmem>>, vector<8x128xbf16>,
    %c9 = arith.constant 9 : index
    %c0_53 = arith.constant 0 : index
    %c0_54 = arith.constant 0 : index
    %148 = vector.load %arg1[%c9, %c0_53, %c0_54] : memref<14x8x192xbf16, #tpu.memory_space<vmem>>, vector<1x8x192xbf16>
    %149 = vector.shape_cast %148 : vector<1x8x192xbf16> to vector<8x192xbf16>
    %cst_55 = arith.constant dense<0.000000e+00> : vector<8x512xf32>
    %150 = tpu.matmul %149, %0, %cst_55 {dimension_numbers = #tpu.dot_dimension_numbers<[1], [0], [0], [1], [0, 0, 1, 1], [], []>} : vector<8x192xbf16>, vector<192x512xbf16>, vector<8x512xf32> -> vector<8x512xf32>
    %151 = vector.extract_strided_slice %150 {offsets = [0, 0], sizes = [8, 128], strides = [1, 1]} : vector<8x512xf32> to vector<8x128xf32>
    %152 = vector.extract_strided_slice %150 {offsets = [0, 128], sizes = [8, 128], strides = [1, 1]} : vector<8x512xf32> to vector<8x128xf32>
    %153 = arith.maximumf %151, %152 : vector<8x128xf32>
    %154 = vector.extract_strided_slice %150 {offsets = [0, 256], sizes = [8, 128], strides = [1, 1]} : vector<8x512xf32> to vector<8x128xf32>
    %155 = vector.extract_strided_slice %150 {offsets = [0, 384], sizes = [8, 128], strides = [1, 1]} : vector<8x512xf32> to vector<8x128xf32>
    %156 = arith.maximumf %154, %155 : vector<8x128xf32>
    %157 = arith.maximumf %153, %156 : vector<8x128xf32>
    %158 = vector.broadcast %2 : vector<1x128xf32> to vector<8x128xf32>
    %159 = arith.addf %157, %158 : vector<8x128xf32>
    %cst_56 = arith.constant 0.000000e+00 : f32
    %160 = vector.broadcast %cst_56 : f32 to vector<8x128xf32>
    %161 = arith.maximumf %159, %160 : vector<8x128xf32>
    %162 = arith.truncf %161 : vector<8x128xf32> to vector<8x128xbf16>
    %c0_57 = arith.constant 0 : index
    %c1152 = arith.constant 1152 : index
    %163 = vector.load %arg13[%c0_57, %c1152] : memref<8x1792xbf16, #tpu.memory_space<vmem>>, vector<8x128xbf16>
    tpu.vector_store %arg13[%c0_57, %c1152], %162 {strides = array<i32>} : memref<8x1792xbf16, #tpu.memory_space<vmem>>, vector<8x128xbf16>,
    %c10 = arith.constant 10 : index
    %c0_58 = arith.constant 0 : index
    %c0_59 = arith.constant 0 : index
    %164 = vector.load %arg1[%c10, %c0_58, %c0_59] : memref<14x8x192xbf16, #tpu.memory_space<vmem>>, vector<1x8x192xbf16>
    %165 = vector.shape_cast %164 : vector<1x8x192xbf16> to vector<8x192xbf16>
    %cst_60 = arith.constant dense<0.000000e+00> : vector<8x512xf32>
    %166 = tpu.matmul %165, %0, %cst_60 {dimension_numbers = #tpu.dot_dimension_numbers<[1], [0], [0], [1], [0, 0, 1, 1], [], []>} : vector<8x192xbf16>, vector<192x512xbf16>, vector<8x512xf32> -> vector<8x512xf32>
    %167 = vector.extract_strided_slice %166 {offsets = [0, 0], sizes = [8, 128], strides = [1, 1]} : vector<8x512xf32> to vector<8x128xf32>
    %168 = vector.extract_strided_slice %166 {offsets = [0, 128], sizes = [8, 128], strides = [1, 1]} : vector<8x512xf32> to vector<8x128xf32>
    %169 = arith.maximumf %167, %168 : vector<8x128xf32>
    %170 = vector.extract_strided_slice %166 {offsets = [0, 256], sizes = [8, 128], strides = [1, 1]} : vector<8x512xf32> to vector<8x128xf32>
    %171 = vector.extract_strided_slice %166 {offsets = [0, 384], sizes = [8, 128], strides = [1, 1]} : vector<8x512xf32> to vector<8x128xf32>
    %172 = arith.maximumf %170, %171 : vector<8x128xf32>
    %173 = arith.maximumf %169, %172 : vector<8x128xf32>
    %174 = vector.broadcast %2 : vector<1x128xf32> to vector<8x128xf32>
    %175 = arith.addf %173, %174 : vector<8x128xf32>
    %cst_61 = arith.constant 0.000000e+00 : f32
    %176 = vector.broadcast %cst_61 : f32 to vector<8x128xf32>
    %177 = arith.maximumf %175, %176 : vector<8x128xf32>
    %178 = arith.truncf %177 : vector<8x128xf32> to vector<8x128xbf16>
    %c0_62 = arith.constant 0 : index
    %c1280 = arith.constant 1280 : index
    %179 = vector.load %arg13[%c0_62, %c1280] : memref<8x1792xbf16, #tpu.memory_space<vmem>>, vector<8x128xbf16>
    tpu.vector_store %arg13[%c0_62, %c1280], %178 {strides = array<i32>} : memref<8x1792xbf16, #tpu.memory_space<vmem>>, vector<8x128xbf16>,
    %c11 = arith.constant 11 : index
    %c0_63 = arith.constant 0 : index
    %c0_64 = arith.constant 0 : index
    %180 = vector.load %arg1[%c11, %c0_63, %c0_64] : memref<14x8x192xbf16, #tpu.memory_space<vmem>>, vector<1x8x192xbf16>
    %181 = vector.shape_cast %180 : vector<1x8x192xbf16> to vector<8x192xbf16>
    %cst_65 = arith.constant dense<0.000000e+00> : vector<8x512xf32>
    %182 = tpu.matmul %181, %0, %cst_65 {dimension_numbers = #tpu.dot_dimension_numbers<[1], [0], [0], [1], [0, 0, 1, 1], [], []>} : vector<8x192xbf16>, vector<192x512xbf16>, vector<8x512xf32> -> vector<8x512xf32>
    %183 = vector.extract_strided_slice %182 {offsets = [0, 0], sizes = [8, 128], strides = [1, 1]} : vector<8x512xf32> to vector<8x128xf32>
    %184 = vector.extract_strided_slice %182 {offsets = [0, 128], sizes = [8, 128], strides = [1, 1]} : vector<8x512xf32> to vector<8x128xf32>
    %185 = arith.maximumf %183, %184 : vector<8x128xf32>
    %186 = vector.extract_strided_slice %182 {offsets = [0, 256], sizes = [8, 128], strides = [1, 1]} : vector<8x512xf32> to vector<8x128xf32>
    %187 = vector.extract_strided_slice %182 {offsets = [0, 384], sizes = [8, 128], strides = [1, 1]} : vector<8x512xf32> to vector<8x128xf32>
    %188 = arith.maximumf %186, %187 : vector<8x128xf32>
    %189 = arith.maximumf %185, %188 : vector<8x128xf32>
    %190 = vector.broadcast %2 : vector<1x128xf32> to vector<8x128xf32>
    %191 = arith.addf %189, %190 : vector<8x128xf32>
    %cst_66 = arith.constant 0.000000e+00 : f32
    %192 = vector.broadcast %cst_66 : f32 to vector<8x128xf32>
    %193 = arith.maximumf %191, %192 : vector<8x128xf32>
    %194 = arith.truncf %193 : vector<8x128xf32> to vector<8x128xbf16>
    %c0_67 = arith.constant 0 : index
    %c1408 = arith.constant 1408 : index
    %195 = vector.load %arg13[%c0_67, %c1408] : memref<8x1792xbf16, #tpu.memory_space<vmem>>, vector<8x128xbf16>
    tpu.vector_store %arg13[%c0_67, %c1408], %194 {strides = array<i32>} : memref<8x1792xbf16, #tpu.memory_space<vmem>>, vector<8x128xbf16>,
    %c12 = arith.constant 12 : index
    %c0_68 = arith.constant 0 : index
    %c0_69 = arith.constant 0 : index
    %196 = vector.load %arg1[%c12, %c0_68, %c0_69] : memref<14x8x192xbf16, #tpu.memory_space<vmem>>, vector<1x8x192xbf16>
    %197 = vector.shape_cast %196 : vector<1x8x192xbf16> to vector<8x192xbf16>
    %cst_70 = arith.constant dense<0.000000e+00> : vector<8x512xf32>
    %198 = tpu.matmul %197, %0, %cst_70 {dimension_numbers = #tpu.dot_dimension_numbers<[1], [0], [0], [1], [0, 0, 1, 1], [], []>} : vector<8x192xbf16>, vector<192x512xbf16>, vector<8x512xf32> -> vector<8x512xf32>
    %199 = vector.extract_strided_slice %198 {offsets = [0, 0], sizes = [8, 128], strides = [1, 1]} : vector<8x512xf32> to vector<8x128xf32>
    %200 = vector.extract_strided_slice %198 {offsets = [0, 128], sizes = [8, 128], strides = [1, 1]} : vector<8x512xf32> to vector<8x128xf32>
    %201 = arith.maximumf %199, %200 : vector<8x128xf32>
    %202 = vector.extract_strided_slice %198 {offsets = [0, 256], sizes = [8, 128], strides = [1, 1]} : vector<8x512xf32> to vector<8x128xf32>
    %203 = vector.extract_strided_slice %198 {offsets = [0, 384], sizes = [8, 128], strides = [1, 1]} : vector<8x512xf32> to vector<8x128xf32>
    %204 = arith.maximumf %202, %203 : vector<8x128xf32>
    %205 = arith.maximumf %201, %204 : vector<8x128xf32>
    %206 = vector.broadcast %2 : vector<1x128xf32> to vector<8x128xf32>
    %207 = arith.addf %205, %206 : vector<8x128xf32>
    %cst_71 = arith.constant 0.000000e+00 : f32
    %208 = vector.broadcast %cst_71 : f32 to vector<8x128xf32>
    %209 = arith.maximumf %207, %208 : vector<8x128xf32>
    %210 = arith.truncf %209 : vector<8x128xf32> to vector<8x128xbf16>
    %c0_72 = arith.constant 0 : index
    %c1536 = arith.constant 1536 : index
    %211 = vector.load %arg13[%c0_72, %c1536] : memref<8x1792xbf16, #tpu.memory_space<vmem>>, vector<8x128xbf16>
    tpu.vector_store %arg13[%c0_72, %c1536], %210 {strides = array<i32>} : memref<8x1792xbf16, #tpu.memory_space<vmem>>, vector<8x128xbf16>,
    %c13 = arith.constant 13 : index
    %c0_73 = arith.constant 0 : index
    %c0_74 = arith.constant 0 : index
    %212 = vector.load %arg1[%c13, %c0_73, %c0_74] : memref<14x8x192xbf16, #tpu.memory_space<vmem>>, vector<1x8x192xbf16>
    %213 = vector.shape_cast %212 : vector<1x8x192xbf16> to vector<8x192xbf16>
    %cst_75 = arith.constant dense<0.000000e+00> : vector<8x512xf32>
    %214 = tpu.matmul %213, %0, %cst_75 {dimension_numbers = #tpu.dot_dimension_numbers<[1], [0], [0], [1], [0, 0, 1, 1], [], []>} : vector<8x192xbf16>, vector<192x512xbf16>, vector<8x512xf32> -> vector<8x512xf32>
    %215 = vector.extract_strided_slice %214 {offsets = [0, 0], sizes = [8, 128], strides = [1, 1]} : vector<8x512xf32> to vector<8x128xf32>
    %216 = vector.extract_strided_slice %214 {offsets = [0, 128], sizes = [8, 128], strides = [1, 1]} : vector<8x512xf32> to vector<8x128xf32>
    %217 = arith.maximumf %215, %216 : vector<8x128xf32>
    %218 = vector.extract_strided_slice %214 {offsets = [0, 256], sizes = [8, 128], strides = [1, 1]} : vector<8x512xf32> to vector<8x128xf32>
    %219 = vector.extract_strided_slice %214 {offsets = [0, 384], sizes = [8, 128], strides = [1, 1]} : vector<8x512xf32> to vector<8x128xf32>
    %220 = arith.maximumf %218, %219 : vector<8x128xf32>
    %221 = arith.maximumf %217, %220 : vector<8x128xf32>
    %222 = vector.broadcast %2 : vector<1x128xf32> to vector<8x128xf32>
    %223 = arith.addf %221, %222 : vector<8x128xf32>
    %cst_76 = arith.constant 0.000000e+00 : f32
    %224 = vector.broadcast %cst_76 : f32 to vector<8x128xf32>
    %225 = arith.maximumf %223, %224 : vector<8x128xf32>
    %226 = arith.truncf %225 : vector<8x128xf32> to vector<8x128xbf16>
    %c0_77 = arith.constant 0 : index
    %c1664 = arith.constant 1664 : index
    %227 = vector.load %arg13[%c0_77, %c1664] : memref<8x1792xbf16, #tpu.memory_space<vmem>>, vector<8x128xbf16>
    tpu.vector_store %arg13[%c0_77, %c1664], %226 {strides = array<i32>} : memref<8x1792xbf16, #tpu.memory_space<vmem>>, vector<8x128xbf16>,
    %c0_78 = arith.constant 0 : index
    %c0_79 = arith.constant 0 : index
    %228 = vector.load %arg13[%c0_78, %c0_79] : memref<8x1792xbf16, #tpu.memory_space<vmem>>, vector<8x768xbf16>
    %cst_80 = arith.constant dense<0.000000e+00> : vector<8x512xf32>
    %229 = tpu.matmul %228, %1, %cst_80 {dimension_numbers = #tpu.dot_dimension_numbers<[1], [0], [0], [1], [0, 0, 1, 1], [], []>} : vector<8x768xbf16>, vector<768x512xbf16>, vector<8x512xf32> -> vector<8x512xf32>
    %230 = vector.extract_strided_slice %229 {offsets = [0, 0], sizes = [8, 128], strides = [1, 1]} : vector<8x512xf32> to vector<8x128xf32>
    %231 = vector.extract_strided_slice %229 {offsets = [0, 128], sizes = [8, 128], strides = [1, 1]} : vector<8x512xf32> to vector<8x128xf32>
    %232 = arith.maximumf %230, %231 : vector<8x128xf32>
    %233 = vector.extract_strided_slice %229 {offsets = [0, 256], sizes = [8, 128], strides = [1, 1]} : vector<8x512xf32> to vector<8x128xf32>
    %234 = vector.extract_strided_slice %229 {offsets = [0, 384], sizes = [8, 128], strides = [1, 1]} : vector<8x512xf32> to vector<8x128xf32>
    %235 = arith.maximumf %233, %234 : vector<8x128xf32>
    %236 = arith.maximumf %232, %235 : vector<8x128xf32>
    %237 = vector.broadcast %3 : vector<1x128xf32> to vector<8x128xf32>
    %238 = arith.addf %236, %237 : vector<8x128xf32>
    %cst_81 = arith.constant 0.000000e+00 : f32
    %239 = vector.broadcast %cst_81 : f32 to vector<8x128xf32>
    %240 = arith.maximumf %238, %239 : vector<8x128xf32>
    %241 = arith.truncf %240 : vector<8x128xf32> to vector<8x128xbf16>
    %c0_82 = arith.constant 0 : index
    %c0_83 = arith.constant 0 : index
    %242 = vector.load %arg14[%c0_82, %c0_83] : memref<8x640xbf16, #tpu.memory_space<vmem>>, vector<8x128xbf16>
    tpu.vector_store %arg14[%c0_82, %c0_83], %241 {strides = array<i32>} : memref<8x640xbf16, #tpu.memory_space<vmem>>, vector<8x128xbf16>,
    %c0_84 = arith.constant 0 : index
    %c256_85 = arith.constant 256 : index
    %243 = vector.load %arg13[%c0_84, %c256_85] : memref<8x1792xbf16, #tpu.memory_space<vmem>>, vector<8x768xbf16>
    %cst_86 = arith.constant dense<0.000000e+00> : vector<8x512xf32>
    %244 = tpu.matmul %243, %1, %cst_86 {dimension_numbers = #tpu.dot_dimension_numbers<[1], [0], [0], [1], [0, 0, 1, 1], [], []>} : vector<8x768xbf16>, vector<768x512xbf16>, vector<8x512xf32> -> vector<8x512xf32>
    %245 = vector.extract_strided_slice %244 {offsets = [0, 0], sizes = [8, 128], strides = [1, 1]} : vector<8x512xf32> to vector<8x128xf32>
    %246 = vector.extract_strided_slice %244 {offsets = [0, 128], sizes = [8, 128], strides = [1, 1]} : vector<8x512xf32> to vector<8x128xf32>
    %247 = arith.maximumf %245, %246 : vector<8x128xf32>
    %248 = vector.extract_strided_slice %244 {offsets = [0, 256], sizes = [8, 128], strides = [1, 1]} : vector<8x512xf32> to vector<8x128xf32>
    %249 = vector.extract_strided_slice %244 {offsets = [0, 384], sizes = [8, 128], strides = [1, 1]} : vector<8x512xf32> to vector<8x128xf32>
    %250 = arith.maximumf %248, %249 : vector<8x128xf32>
    %251 = arith.maximumf %247, %250 : vector<8x128xf32>
    %252 = vector.broadcast %3 : vector<1x128xf32> to vector<8x128xf32>
    %253 = arith.addf %251, %252 : vector<8x128xf32>
    %cst_87 = arith.constant 0.000000e+00 : f32
    %254 = vector.broadcast %cst_87 : f32 to vector<8x128xf32>
    %255 = arith.maximumf %253, %254 : vector<8x128xf32>
    %256 = arith.truncf %255 : vector<8x128xf32> to vector<8x128xbf16>
    %c0_88 = arith.constant 0 : index
    %c128_89 = arith.constant 128 : index
    %257 = vector.load %arg14[%c0_88, %c128_89] : memref<8x640xbf16, #tpu.memory_space<vmem>>, vector<8x128xbf16>
    tpu.vector_store %arg14[%c0_88, %c128_89], %256 {strides = array<i32>} : memref<8x640xbf16, #tpu.memory_space<vmem>>, vector<8x128xbf16>,
    %c0_90 = arith.constant 0 : index
    %c512_91 = arith.constant 512 : index
    %258 = vector.load %arg13[%c0_90, %c512_91] : memref<8x1792xbf16, #tpu.memory_space<vmem>>, vector<8x768xbf16>
    %cst_92 = arith.constant dense<0.000000e+00> : vector<8x512xf32>
    %259 = tpu.matmul %258, %1, %cst_92 {dimension_numbers = #tpu.dot_dimension_numbers<[1], [0], [0], [1], [0, 0, 1, 1], [], []>} : vector<8x768xbf16>, vector<768x512xbf16>, vector<8x512xf32> -> vector<8x512xf32>
    %260 = vector.extract_strided_slice %259 {offsets = [0, 0], sizes = [8, 128], strides = [1, 1]} : vector<8x512xf32> to vector<8x128xf32>
    %261 = vector.extract_strided_slice %259 {offsets = [0, 128], sizes = [8, 128], strides = [1, 1]} : vector<8x512xf32> to vector<8x128xf32>
    %262 = arith.maximumf %260, %261 : vector<8x128xf32>
    %263 = vector.extract_strided_slice %259 {offsets = [0, 256], sizes = [8, 128], strides = [1, 1]} : vector<8x512xf32> to vector<8x128xf32>
    %264 = vector.extract_strided_slice %259 {offsets = [0, 384], sizes = [8, 128], strides = [1, 1]} : vector<8x512xf32> to vector<8x128xf32>
    %265 = arith.maximumf %263, %264 : vector<8x128xf32>
    %266 = arith.maximumf %262, %265 : vector<8x128xf32>
    %267 = vector.broadcast %3 : vector<1x128xf32> to vector<8x128xf32>
    %268 = arith.addf %266, %267 : vector<8x128xf32>
    %cst_93 = arith.constant 0.000000e+00 : f32
    %269 = vector.broadcast %cst_93 : f32 to vector<8x128xf32>
    %270 = arith.maximumf %268, %269 : vector<8x128xf32>
    %271 = arith.truncf %270 : vector<8x128xf32> to vector<8x128xbf16>
    %c0_94 = arith.constant 0 : index
    %c256_95 = arith.constant 256 : index
    %272 = vector.load %arg14[%c0_94, %c256_95] : memref<8x640xbf16, #tpu.memory_space<vmem>>, vector<8x128xbf16>
    tpu.vector_store %arg14[%c0_94, %c256_95], %271 {strides = array<i32>} : memref<8x640xbf16, #tpu.memory_space<vmem>>, vector<8x128xbf16>,
    %c0_96 = arith.constant 0 : index
    %c768_97 = arith.constant 768 : index
    %273 = vector.load %arg13[%c0_96, %c768_97] : memref<8x1792xbf16, #tpu.memory_space<vmem>>, vector<8x768xbf16>
    %cst_98 = arith.constant dense<0.000000e+00> : vector<8x512xf32>
    %274 = tpu.matmul %273, %1, %cst_98 {dimension_numbers = #tpu.dot_dimension_numbers<[1], [0], [0], [1], [0, 0, 1, 1], [], []>} : vector<8x768xbf16>, vector<768x512xbf16>, vector<8x512xf32> -> vector<8x512xf32>
    %275 = vector.extract_strided_slice %274 {offsets = [0, 0], sizes = [8, 128], strides = [1, 1]} : vector<8x512xf32> to vector<8x128xf32>
    %276 = vector.extract_strided_slice %274 {offsets = [0, 128], sizes = [8, 128], strides = [1, 1]} : vector<8x512xf32> to vector<8x128xf32>
    %277 = arith.maximumf %275, %276 : vector<8x128xf32>
    %278 = vector.extract_strided_slice %274 {offsets = [0, 256], sizes = [8, 128], strides = [1, 1]} : vector<8x512xf32> to vector<8x128xf32>
    %279 = vector.extract_strided_slice %274 {offsets = [0, 384], sizes = [8, 128], strides = [1, 1]} : vector<8x512xf32> to vector<8x128xf32>
    %280 = arith.maximumf %278, %279 : vector<8x128xf32>
    %281 = arith.maximumf %277, %280 : vector<8x128xf32>
    %282 = vector.broadcast %3 : vector<1x128xf32> to vector<8x128xf32>
    %283 = arith.addf %281, %282 : vector<8x128xf32>
    %cst_99 = arith.constant 0.000000e+00 : f32
    %284 = vector.broadcast %cst_99 : f32 to vector<8x128xf32>
    %285 = arith.maximumf %283, %284 : vector<8x128xf32>
    %286 = arith.truncf %285 : vector<8x128xf32> to vector<8x128xbf16>
    %c0_100 = arith.constant 0 : index
    %c384_101 = arith.constant 384 : index
    %287 = vector.load %arg14[%c0_100, %c384_101] : memref<8x640xbf16, #tpu.memory_space<vmem>>, vector<8x128xbf16>
    tpu.vector_store %arg14[%c0_100, %c384_101], %286 {strides = array<i32>} : memref<8x640xbf16, #tpu.memory_space<vmem>>, vector<8x128xbf16>,
    %c0_102 = arith.constant 0 : index
    %c1024_103 = arith.constant 1024 : index
    %288 = vector.load %arg13[%c0_102, %c1024_103] : memref<8x1792xbf16, #tpu.memory_space<vmem>>, vector<8x768xbf16>
    %cst_104 = arith.constant dense<0.000000e+00> : vector<8x512xf32>
    %289 = tpu.matmul %288, %1, %cst_104 {dimension_numbers = #tpu.dot_dimension_numbers<[1], [0], [0], [1], [0, 0, 1, 1], [], []>} : vector<8x768xbf16>, vector<768x512xbf16>, vector<8x512xf32> -> vector<8x512xf32>
    %290 = vector.extract_strided_slice %289 {offsets = [0, 0], sizes = [8, 128], strides = [1, 1]} : vector<8x512xf32> to vector<8x128xf32>
    %291 = vector.extract_strided_slice %289 {offsets = [0, 128], sizes = [8, 128], strides = [1, 1]} : vector<8x512xf32> to vector<8x128xf32>
    %292 = arith.maximumf %290, %291 : vector<8x128xf32>
    %293 = vector.extract_strided_slice %289 {offsets = [0, 256], sizes = [8, 128], strides = [1, 1]} : vector<8x512xf32> to vector<8x128xf32>
    %294 = vector.extract_strided_slice %289 {offsets = [0, 384], sizes = [8, 128], strides = [1, 1]} : vector<8x512xf32> to vector<8x128xf32>
    %295 = arith.maximumf %293, %294 : vector<8x128xf32>
    %296 = arith.maximumf %292, %295 : vector<8x128xf32>
    %297 = vector.broadcast %3 : vector<1x128xf32> to vector<8x128xf32>
    %298 = arith.addf %296, %297 : vector<8x128xf32>
    %cst_105 = arith.constant 0.000000e+00 : f32
    %299 = vector.broadcast %cst_105 : f32 to vector<8x128xf32>
    %300 = arith.maximumf %298, %299 : vector<8x128xf32>
    %301 = arith.truncf %300 : vector<8x128xf32> to vector<8x128xbf16>
    %c0_106 = arith.constant 0 : index
    %c512_107 = arith.constant 512 : index
    %302 = vector.load %arg14[%c0_106, %c512_107] : memref<8x640xbf16, #tpu.memory_space<vmem>>, vector<8x128xbf16>
    tpu.vector_store %arg14[%c0_106, %c512_107], %301 {strides = array<i32>} : memref<8x640xbf16, #tpu.memory_space<vmem>>, vector<8x128xbf16>,
    %c0_108 = arith.constant 0 : index
    %c0_109 = arith.constant 0 : index
    %303 = vector.load %arg14[%c0_108, %c0_109] : memref<8x640xbf16, #tpu.memory_space<vmem>>, vector<8x640xbf16>
    %c0_110 = arith.constant 0 : index
    %c0_111 = arith.constant 0 : index
    %304 = vector.load %arg6[%c0_110, %c0_111] : memref<640x120xbf16, #tpu.memory_space<vmem>>, vector<640x120xbf16>
    %cst_112 = arith.constant dense<0.000000e+00> : vector<8x120xf32>
    %305 = tpu.matmul %303, %304, %cst_112 {dimension_numbers = #tpu.dot_dimension_numbers<[1], [0], [0], [1], [0, 0, 1, 1], [], []>} : vector<8x640xbf16>, vector<640x120xbf16>, vector<8x120xf32> -> vector<8x120xf32>
    %c0_113 = arith.constant 0 : index
    %c0_114 = arith.constant 0 : index
    %306 = vector.load %arg7[%c0_113, %c0_114] : memref<1x120xf32, #tpu.memory_space<vmem>>, vector<1x120xf32>
    %307 = vector.broadcast %306 : vector<1x120xf32> to vector<8x120xf32>
    %308 = arith.addf %305, %307 : vector<8x120xf32>
    %cst_115 = arith.constant 0.000000e+00 : f32
    %309 = vector.broadcast %cst_115 : f32 to vector<8x120xf32>
    %310 = arith.maximumf %308, %309 : vector<8x120xf32>
    %311 = arith.truncf %310 : vector<8x120xf32> to vector<8x120xbf16>
    %c0_116 = arith.constant 0 : index
    %c0_117 = arith.constant 0 : index
    %312 = vector.load %arg8[%c0_116, %c0_117] : memref<120x84xbf16, #tpu.memory_space<vmem>>, vector<120x84xbf16>
    %cst_118 = arith.constant dense<0.000000e+00> : vector<8x84xf32>
    %313 = tpu.matmul %311, %312, %cst_118 {dimension_numbers = #tpu.dot_dimension_numbers<[1], [0], [0], [1], [0, 0, 1, 1], [], []>} : vector<8x120xbf16>, vector<120x84xbf16>, vector<8x84xf32> -> vector<8x84xf32>
    %c0_119 = arith.constant 0 : index
    %c0_120 = arith.constant 0 : index
    %314 = vector.load %arg9[%c0_119, %c0_120] : memref<1x84xf32, #tpu.memory_space<vmem>>, vector<1x84xf32>
    %315 = vector.broadcast %314 : vector<1x84xf32> to vector<8x84xf32>
    %316 = arith.addf %313, %315 : vector<8x84xf32>
    %cst_121 = arith.constant 0.000000e+00 : f32
    %317 = vector.broadcast %cst_121 : f32 to vector<8x84xf32>
    %318 = arith.maximumf %316, %317 : vector<8x84xf32>
    %319 = arith.truncf %318 : vector<8x84xf32> to vector<8x84xbf16>
    %c0_122 = arith.constant 0 : index
    %c0_123 = arith.constant 0 : index
    %320 = vector.load %arg10[%c0_122, %c0_123] : memref<84x10xbf16, #tpu.memory_space<vmem>>, vector<84x10xbf16>
    %cst_124 = arith.constant dense<0.000000e+00> : vector<8x10xf32>
    %321 = tpu.matmul %319, %320, %cst_124 {dimension_numbers = #tpu.dot_dimension_numbers<[1], [0], [0], [1], [0, 0, 1, 1], [], []>} : vector<8x84xbf16>, vector<84x10xbf16>, vector<8x10xf32> -> vector<8x10xf32>
    %c0_125 = arith.constant 0 : index
    %c0_126 = arith.constant 0 : index
    %322 = vector.load %arg11[%c0_125, %c0_126] : memref<1x10xf32, #tpu.memory_space<vmem>>, vector<1x10xf32>
    %323 = vector.broadcast %322 : vector<1x10xf32> to vector<8x10xf32>
    %324 = arith.addf %321, %323 : vector<8x10xf32>
    %c0_127 = arith.constant 0 : index
    %c0_128 = arith.constant 0 : index
    %325 = vector.load %arg12[%c0_127, %c0_128] : memref<8x10xf32, #tpu.memory_space<vmem>>, vector<8x10xf32>
    tpu.vector_store %arg12[%c0_127, %c0_128], %324 {strides = array<i32>} : memref<8x10xf32, #tpu.memory_space<vmem>>, vector<8x10xf32>,
    return
  }
  func.func @transform_0(%arg0: i32) -> (i32, i32, i32) {
    %c0_i32 = arith.constant 0 : i32
    %c0_i32_0 = arith.constant 0 : i32
    %c0_i32_1 = arith.constant 0 : i32
    return %c0_i32, %arg0, %c0_i32_0 : i32, i32, i32
  }
  func.func @transform_1(%arg0: i32) -> (i32, i32) {
    %c0_i32 = arith.constant 0 : i32
    %c0_i32_0 = arith.constant 0 : i32
    %c0_i32_1 = arith.constant 0 : i32
    return %c0_i32, %c0_i32_0 : i32, i32
  }
  func.func @transform_2(%arg0: i32) -> (i32, i32) {
    %c0_i32 = arith.constant 0 : i32
    %c0_i32_0 = arith.constant 0 : i32
    %c0_i32_1 = arith.constant 0 : i32
    return %c0_i32, %c0_i32_0 : i32, i32
  }
  func.func @transform_3(%arg0: i32) -> (i32, i32) {
    %c0_i32 = arith.constant 0 : i32
    %c0_i32_0 = arith.constant 0 : i32
    %c0_i32_1 = arith.constant 0 : i32
    return %c0_i32, %c0_i32_0 : i32, i32
  }
  func.func @transform_4(%arg0: i32) -> (i32, i32) {
    %c0_i32 = arith.constant 0 : i32
    %c0_i32_0 = arith.constant 0 : i32
    %c0_i32_1 = arith.constant 0 : i32
    return %c0_i32, %c0_i32_0 : i32, i32
  }
  func.func @transform_5(%arg0: i32) -> (i32, i32) {
    %c0_i32 = arith.constant 0 : i32
    %c0_i32_0 = arith.constant 0 : i32
    %c0_i32_1 = arith.constant 0 : i32
    return %c0_i32, %c0_i32_0 : i32, i32
  }
  func.func @transform_6(%arg0: i32) -> (i32, i32) {
    %c0_i32 = arith.constant 0 : i32
    %c0_i32_0 = arith.constant 0 : i32
    %c0_i32_1 = arith.constant 0 : i32
    return %c0_i32, %c0_i32_0 : i32, i32
  }
  func.func @transform_7(%arg0: i32) -> (i32, i32) {
    %c0_i32 = arith.constant 0 : i32
    %c0_i32_0 = arith.constant 0 : i32
    %c0_i32_1 = arith.constant 0 : i32
    return %c0_i32, %c0_i32_0 : i32, i32
  }
  func.func @transform_8(%arg0: i32) -> (i32, i32) {
    %c0_i32 = arith.constant 0 : i32
    %c0_i32_0 = arith.constant 0 : i32
    %c0_i32_1 = arith.constant 0 : i32
    return %c0_i32, %c0_i32_0 : i32, i32
  }
  func.func @transform_9(%arg0: i32) -> (i32, i32) {
    %c0_i32 = arith.constant 0 : i32
    %c0_i32_0 = arith.constant 0 : i32
    %c0_i32_1 = arith.constant 0 : i32
    return %c0_i32, %c0_i32_0 : i32, i32
  }
  func.func @transform_10(%arg0: i32) -> (i32, i32) {
    %c0_i32 = arith.constant 0 : i32
    %c0_i32_0 = arith.constant 0 : i32
    %c0_i32_1 = arith.constant 0 : i32
    return %c0_i32, %c0_i32_0 : i32, i32
  }
  func.func @transform_11(%arg0: i32) -> (i32, i32) {
    %c0_i32 = arith.constant 0 : i32
    %c0_i32_0 = arith.constant 0 : i32
    return %arg0, %c0_i32 : i32, i32
  }
}

</mosaic_0001>

<bundles_post_ra>
// kernel: lenet5_forward.1
= control target key start
LH: loop header
LB: loop body
LE: loop exit
PB: predicated region body
PF: predicated region fallthrough
CT: control target
= control target key end

     0   :  { %vm528_vm0 = vcmask 523264   ;;  %vm6355_vm1 = vmmov 0   ;;  %vm4819_vm2 = vcmask 1043456   ;;  %vm4920_vm3 = vcmask 1041408   ;;  %s11346_s1 = inlined_call_operand.vmem [shape: bf16[192,512], index: 1, kind: input, shape index: {}]   ;;  %s11347_s0 = inlined_call_operand.vmem [shape: bf16[14,8,192], index: 0, kind: input, shape index: {}]   ;;  %s11348_s2 = inlined_call_operand.vmem [shape: f32[1,128], index: 2, kind: input, shape index: {}]   ;;  %s11349_s3 = inlined_call_operand.vmem [shape: bf16[768,512], index: 3, kind: input, shape index: {}]   ;;  %s11350_s4 = inlined_call_operand.vmem [shape: f32[1,128], index: 4, kind: input, shape index: {}]   ;;  %s11351_s5 = inlined_call_operand.vmem [shape: bf16[640,120], index: 5, kind: input, shape index: {}]   ;;  %s11352_s7 = inlined_call_operand.vmem [shape: bf16[120,84], index: 7, kind: input, shape index: {}]   ;;  %s11353_s6 = inlined_call_operand.vmem [shape: f32[1,120], index: 6, kind: input, shape index: {}]   ;;  %s11354_s9 = inlined_call_operand.vmem [shape: bf16[84,10], index: 9, kind: input, shape index: {}]   ;;  %s11355_s8 = inlined_call_operand.vmem [shape: f32[1,84], index: 8, kind: input, shape index: {}]   ;;  %s11356_s10 = inlined_call_operand.vmem [shape: f32[1,10], index: 10, kind: input, shape index: {}]   ;;  %s11357_s11 = inlined_call_operand.vmem [shape: f32[8,10], index: 11, kind: output, shape index: {}]  }
   0x1   :  { %v6419_v0 = vld [vmem:[%s11346_s1 + $0xe4] ss:$16 sps:$4 sm:$0xff]   ;;  %v6424_v1 = vld [vmem:[%s11346_s1 + $0xec] ss:$16 sps:$4 sm:$0xff]   ;;  %v6430_v2 = vld [vmem:[%s11346_s1 + $0xe0] ss:$16 sps:$4 sm:$0xff]  }
   0x2   :  { %532 = vmatprep.subr.bf16.mxu0 %v6419_v0  ;;  %v6435_v3 = vld [vmem:[%s11346_s1 + $0xe8] ss:$16 sps:$4 sm:$0xff]   ;;  %573 = vmatprep.subr.bf16.mxu1 %v6424_v1  ;;  %v6441_v4 = vld [vmem:[%s11346_s1 + $0xc4] ss:$16 sps:$4 sm:$0xff]   ;;  %v6448_v5 = vld [vmem:[%s11346_s1 + $0xcc] ss:$16 sps:$4 sm:$0xff]  }
   0x3   :  { %533 = vmatpush1.bf16.msra.mxu0 %v6430_v2  ;;  %574 = vmatpush1.bf16.msra.mxu1 %v6435_v3  ;;  %v6453_v6 = vld [vmem:[%s11346_s1 + $0xc0] ss:$16 sps:$4 sm:$0xff]   ;;  %v6459_v7 = vld [vmem:[%s11346_s1 + $0xc8] ss:$16 sps:$4 sm:$0xff]   ;;  %v6465_v8 = vld [vmem:[%s11346_s1 + $0xa4] ss:$16 sps:$4 sm:$0xff]  }
   0x4   :  { %534 = vmatprep.subr.bf16.mxu0 %v6441_v4  ;;  %575 = vmatprep.subr.bf16.mxu1 %v6448_v5  ;;  %v6470_v9 = vld [vmem:[%s11346_s1 + $0xac] ss:$16 sps:$4 sm:$0xff]   ;;  %v6475_v10 = vld [vmem:[%s11346_s1 + $0xa0] ss:$16 sps:$4 sm:$0xff]   ;;  %v6480_v11 = vld [vmem:[%s11346_s1 + $0xa8] ss:$16 sps:$4 sm:$0xff]  }
   0x5   :  { %v6487_v12 = vld [vmem:[%s11346_s1 + $0x84] ss:$16 sps:$4 sm:$0xff]   ;;  %v6494_v13 = vld [vmem:[%s11346_s1 + $0x8c] ss:$16 sps:$4 sm:$0xff]   ;;  %v6499_v14 = vld [vmem:[%s11346_s1 + $0x80] ss:$16 sps:$4 sm:$0xff]  }
   0x6   :  { %v6506_v15 = vld [vmem:[%s11346_s1 + $0x88] ss:$16 sps:$4 sm:$0xff]   ;;  %v6511_v16 = vld [vmem:[%s11346_s1 + $0x64] ss:$16 sps:$4 sm:$0xff]   ;;  %v6518_v17 = vld [vmem:[%s11346_s1 + $0x6c] ss:$16 sps:$4 sm:$0xff]  }
   0x7   :  { %535 = vmatpush1.bf16.msra.mxu0 %v6453_v6  ;;  %576 = vmatpush1.bf16.msra.mxu1 %v6459_v7  ;;  %v6523_v18 = vld [vmem:[%s11346_s1 + $0x60] ss:$16 sps:$4 sm:$0xff]   ;;  %v6528_v19 = vld [vmem:[%s11346_s1 + $0x68] ss:$16 sps:$4 sm:$0xff]   ;;  %v6535_v20 = vld [vmem:[%s11346_s1 + $0x44] ss:$16 sps:$4 sm:$0xff]  }
   0x8   :  { %536 = vmatprep.subr.bf16.mxu0 %v6465_v8  ;;  %577 = vmatprep.subr.bf16.mxu1 %v6470_v9  ;;  %v6542_v21 = vld [vmem:[%s11346_s1 + $0x4c] ss:$16 sps:$4 sm:$0xff]   ;;  %v6547_v22 = vld [vmem:[%s11346_s1 + $0x40] ss:$16 sps:$4 sm:$0xff]   ;;  %v6554_v23 = vld [vmem:[%s11346_s1 + $0x48] ss:$16 sps:$4 sm:$0xff]  }
   0x9   :  { %v6559_v24 = vld [vmem:[%s11346_s1 + $0x24] ss:$16 sps:$4 sm:$0xff]   ;;  %v6566_v25 = vld [vmem:[%s11346_s1 + $0x2c] ss:$16 sps:$4 sm:$0xff]   ;;  %v6571_v26 = vld [vmem:[%s11346_s1 + $0x20] ss:$16 sps:$4 sm:$0xff]  }
   0xa   :  { %v6576_v27 = vld [vmem:[%s11346_s1 + $0x28] ss:$16 sps:$4 sm:$0xff]   ;;  %v6583_v28 = vld [vmem:[%s11346_s1 + $0x4] ss:$16 sps:$4 sm:$0xff]   ;;  %v6590_v29 = vld [vmem:[%s11346_s1 + $0xc] ss:$16 sps:$4 sm:$0xff]  }
   0xb   :  { %537 = vmatpush1.bf16.msra.mxu0 %v6475_v10  ;;  %578 = vmatpush1.bf16.msra.mxu1 %v6480_v11  ;;  %v6595_v30 = vld [vmem:[%s11346_s1] ss:$16 sps:$4 sm:$0xff]   ;;  %v6602_v31 = vld [vmem:[%s11346_s1 + $0x8] ss:$16 sps:$4 sm:$0xff]   ;;  %v6607_v32 = vld [vmem:[%s11346_s1 + $0x164] ss:$16 sps:$4 sm:$0xff]  }
   0xc   :  { %538 = vmatprep.subr.bf16.mxu0 %v6487_v12  ;;  %579 = vmatprep.subr.bf16.mxu1 %v6494_v13  ;;  %v6614_v33 = vld [vmem:[%s11346_s1 + $0x16c] ss:$16 sps:$4 sm:$0xff]   ;;  %v6621_v34 = vld [vmem:[%s11346_s1 + $0x160] ss:$16 sps:$4 sm:$0xff]   ;;  %v6626_v35 = vld [vmem:[%s11346_s1 + $0x168] ss:$16 sps:$4 sm:$0xff]  }
   0xd   :  { %v281_v36 = vld [vmem:[%s11347_s0] sm:$0xff]  ;;  %v6641_v38 = vld [vmem:[%s11346_s1 + $0x14c] ss:$16 sps:$4 sm:$0xff]   ;;  %v6655_v41 = vld [vmem:[%s11346_s1 + $0x148] ss:$16 sps:$4 sm:$0xff]   ;;  %vm4815_vm4 = vcmask 982016  }
   0xe   :  { %v6636_v37 = vld [vmem:[%s11346_s1 + $0x144] ss:$16 sps:$4 sm:$0xff]   ;;  %v4971_v39 = vcombine.high %v281_v36, %v281_v36  ;;  %v6650_v40 = vld [vmem:[%s11346_s1 + $0x140] ss:$16 sps:$4 sm:$0xff]   ;;  %v6667_v43 = vld [vmem:[%s11346_s1 + $0x12c] ss:$16 sps:$4 sm:$0xff]   ;;  %v4970_v50 = vcombine.low %v281_v36, %v281_v36 }
   0xf   :  { %539 = vmatpush1.bf16.msra.mxu0 %v6499_v14  ;;  %580 = vmatpush1.bf16.msra.mxu1 %v6506_v15  ;;  %v6662_v42 = vld [vmem:[%s11346_s1 + $0x124] ss:$16 sps:$4 sm:$0xff]   ;;  %v6674_v44 = vld [vmem:[%s11346_s1 + $0x120] ss:$16 sps:$4 sm:$0xff]   ;;  %v6679_v45 = vld [vmem:[%s11346_s1 + $0x128] ss:$16 sps:$4 sm:$0xff]  }
  0x10   :  { %540 = vmatprep.subr.bf16.mxu0 %v6511_v16  ;;  %581 = vmatprep.subr.bf16.mxu1 %v6518_v17  ;;  %v6686_v46 = vld [vmem:[%s11346_s1 + $0x104] ss:$16 sps:$4 sm:$0xff]   ;;  %v6691_v47 = vld [vmem:[%s11346_s1 + $0x10c] ss:$16 sps:$4 sm:$0xff]   ;;  %v6698_v48 = vld [vmem:[%s11346_s1 + $0x100] ss:$16 sps:$4 sm:$0xff]  }
  0x11   :  { %5020 = vmatprep.mubr.msk.bf16.mxu0 %vm528_vm0, %v4971_v39  ;;  %5021 = vmatprep.mubr.msk.bf16.mxu1 %vm528_vm0, %v4971_v39  ;;  %v6703_v49 = vld [vmem:[%s11346_s1 + $0x108] ss:$16 sps:$4 sm:$0xff]   ;;  %v5028_v54 = vld [vmem:[%s11347_s0 + $0x10] sm:$0xff]  ;;  %v5038_v60 = vld [vmem:[%s11347_s0 + $0x20] sm:$0xff]  ;;  %vm4916_vm5 = vcmask 687104   ;;  %vm4964_vm6 = vcmask 80896  }
  0x12   :  { %v5023_v51 = vld [vmem:[%s11347_s0 + $0x8] sm:$0xff]  ;;  %v5030_v55 = vcombine.high %v5028_v54, %v5028_v54  ;;  %v5029_v56 = vcombine.low %v5028_v54, %v5028_v54  ;;  %v5033_v57 = vld [vmem:[%s11347_s0 + $0x18] sm:$0xff]  ;;  %v5040_v61 = vcombine.high %v5038_v60, %v5038_v60  ;;  %v5039_v62 = vcombine.low %v5038_v60, %v5038_v60 }
  0x13   :  { %541 = vmatpush1.bf16.msra.mxu0 %v6523_v18  ;;  %582 = vmatpush1.bf16.msra.mxu1 %v6528_v19  ;;  %v5025_v52 = vcombine.high %v5023_v51, %v5023_v51  ;;  %v5024_v53 = vcombine.low %v5023_v51, %v5023_v51  ;;  %v5035_v58 = vcombine.high %v5033_v57, %v5033_v57  ;;  %v6922_v63 = vld [vmem:[%s11347_s0 + $0x28] sm:$0xff] }
  0x14   :  { %542 = vmatprep.subr.bf16.mxu0 %v6535_v20  ;;  %583 = vmatprep.subr.bf16.mxu1 %v6542_v21  ;;  %v5034_v59 = vcombine.low %v5033_v57, %v5033_v57  ;;  %v5045_v36 = vcombine.high %v6922_v63, %v6922_v63 }
  0x17   :  { %543 = vmatpush1.bf16.msra.mxu0 %v6547_v22  ;;  %584 = vmatpush1.bf16.msra.mxu1 %v6554_v23 }
  0x18   :  { %544 = vmatprep.subr.bf16.mxu0 %v6559_v24  ;;  %585 = vmatprep.subr.bf16.mxu1 %v6566_v25 }
  0x1b   :  { %545 = vmatpush1.bf16.msra.mxu0 %v6571_v26  ;;  %586 = vmatpush1.bf16.msra.mxu1 %v6576_v27 }
  0x1c   :  { %546 = vmatprep.subr.bf16.mxu0 %v6583_v28  ;;  %587 = vmatprep.subr.bf16.mxu1 %v6590_v29 }
  0x1f   :  { %547 = vmatpush1.bf16.msra.mxu0 %v6595_v30  ;;  %588 = vmatpush1.bf16.msra.mxu1 %v6602_v31 }
  0x20   :  { %556 = vmatprep.subr.bf16.mxu0 %v6607_v32  ;;  %597 = vmatprep.subr.bf16.mxu1 %v6614_v33 }
  0x23   :  { %557 = vmatpush2.bf16.msra.mxu0 %v6621_v34  ;;  %598 = vmatpush2.bf16.msra.mxu1 %v6626_v35 }
  0x24   :  { %558 = vmatprep.subr.bf16.mxu0 %v6636_v37  ;;  %599 = vmatprep.subr.bf16.mxu1 %v6641_v38 }
  0x27   :  { %559 = vmatpush2.bf16.msra.mxu0 %v6650_v40  ;;  %600 = vmatpush2.bf16.msra.mxu1 %v6655_v41 }
  0x28   :  { %560 = vmatprep.subr.bf16.mxu0 %v6662_v42  ;;  %601 = vmatprep.subr.bf16.mxu1 %v6667_v43 }
  0x2b   :  { %561 = vmatpush2.bf16.msra.mxu0 %v6674_v44  ;;  %602 = vmatpush2.bf16.msra.mxu1 %v6679_v45 }
  0x2c   :  { %562 = vmatprep.subr.bf16.mxu0 %v6686_v46  ;;  %603 = vmatprep.subr.bf16.mxu1 %v6691_v47 }
  0x2f   :  { %563 = vmatpush2.bf16.msra.mxu0 %v6698_v48  ;;  %604 = vmatpush2.bf16.msra.mxu1 %v6703_v49 }
  0x30   :  { %638 = vmatprep.subr.bf16.mxu0 %v6419_v0  ;;  %679 = vmatprep.subr.bf16.mxu1 %v6424_v1 }
  0x32   :  { %565 = vmatmul.mubr.bf16.vlgmr.msra.gmra.mxu0 %v4970_v50  ;;  %606 = vmatmul.mubr.bf16.vlgmr.msra.gmra.mxu1 %v4970_v50 }
  0x33   :  { %639 = vmatpush1.bf16.msra.mxu0 %v6430_v2  ;;  %680 = vmatpush1.bf16.msra.mxu1 %v6435_v3 }
  0x34   :  { %640 = vmatprep.subr.bf16.mxu0 %v6441_v4  ;;  %681 = vmatprep.subr.bf16.mxu1 %v6448_v5 }
  0x35   :  { %5026 = vmatprep.mubr.msk.bf16.mxu0 %vm528_vm0, %v5025_v52  ;;  %5027 = vmatprep.mubr.msk.bf16.mxu1 %vm528_vm0, %v5025_v52 }
  0x37   :  { %641 = vmatpush1.bf16.msra.mxu0 %v6453_v6  ;;  %682 = vmatpush1.bf16.msra.mxu1 %v6459_v7 }
  0x38   :  { %642 = vmatprep.subr.bf16.mxu0 %v6465_v8  ;;  %683 = vmatprep.subr.bf16.mxu1 %v6470_v9 }
  0x3b   :  { %643 = vmatpush1.bf16.msra.mxu0 %v6475_v10  ;;  %684 = vmatpush1.bf16.msra.mxu1 %v6480_v11 }
  0x3c   :  { %644 = vmatprep.subr.bf16.mxu0 %v6487_v12  ;;  %685 = vmatprep.subr.bf16.mxu1 %v6494_v13 }
  0x3f   :  { %645 = vmatpush1.bf16.msra.mxu0 %v6499_v14  ;;  %686 = vmatpush1.bf16.msra.mxu1 %v6506_v15 }
  0x40   :  { %646 = vmatprep.subr.bf16.mxu0 %v6511_v16  ;;  %687 = vmatprep.subr.bf16.mxu1 %v6518_v17 }
  0x43   :  { %647 = vmatpush1.bf16.msra.mxu0 %v6523_v18  ;;  %688 = vmatpush1.bf16.msra.mxu1 %v6528_v19 }
  0x44   :  { %648 = vmatprep.subr.bf16.mxu0 %v6535_v20  ;;  %689 = vmatprep.subr.bf16.mxu1 %v6542_v21 }
  0x47   :  { %649 = vmatpush1.bf16.msra.mxu0 %v6547_v22  ;;  %690 = vmatpush1.bf16.msra.mxu1 %v6554_v23 }
  0x48   :  { %650 = vmatprep.subr.bf16.mxu0 %v6559_v24  ;;  %691 = vmatprep.subr.bf16.mxu1 %v6566_v25 }
  0x4b   :  { %651 = vmatpush1.bf16.msra.mxu0 %v6571_v26  ;;  %692 = vmatpush1.bf16.msra.mxu1 %v6576_v27 }
  0x4c   :  { %652 = vmatprep.subr.bf16.mxu0 %v6583_v28  ;;  %693 = vmatprep.subr.bf16.mxu1 %v6590_v29 }
  0x4f   :  { %653 = vmatpush1.bf16.msra.mxu0 %v6595_v30  ;;  %694 = vmatpush1.bf16.msra.mxu1 %v6602_v31 }
  0x50   :  { %662 = vmatprep.subr.bf16.mxu0 %v6607_v32  ;;  %703 = vmatprep.subr.bf16.mxu1 %v6614_v33 }
  0x53   :  { %663 = vmatpush2.bf16.msra.mxu0 %v6621_v34  ;;  %704 = vmatpush2.bf16.msra.mxu1 %v6626_v35 }
  0x54   :  { %664 = vmatprep.subr.bf16.mxu0 %v6636_v37  ;;  %705 = vmatprep.subr.bf16.mxu1 %v6641_v38 }
  0x57   :  { %665 = vmatpush2.bf16.msra.mxu0 %v6650_v40  ;;  %706 = vmatpush2.bf16.msra.mxu1 %v6655_v41 }
  0x58   :  { %666 = vmatprep.subr.bf16.mxu0 %v6662_v42  ;;  %707 = vmatprep.subr.bf16.mxu1 %v6667_v43 }
  0x5b   :  { %667 = vmatpush2.bf16.msra.mxu0 %v6674_v44  ;;  %708 = vmatpush2.bf16.msra.mxu1 %v6679_v45 }
  0x5c   :  { %668 = vmatprep.subr.bf16.mxu0 %v6686_v46  ;;  %709 = vmatprep.subr.bf16.mxu1 %v6691_v47 }
  0x5f   :  { %669 = vmatpush2.bf16.msra.mxu0 %v6698_v48  ;;  %710 = vmatpush2.bf16.msra.mxu1 %v6703_v49 }
  0x60   :  { %738 = vmatprep.subr.bf16.mxu0 %v6419_v0  ;;  %779 = vmatprep.subr.bf16.mxu1 %v6424_v1 }
  0x62   :  { %671 = vmatmul.mubr.bf16.vlgmr.msra.gmra.mxu0 %v5024_v53  ;;  %712 = vmatmul.mubr.bf16.vlgmr.msra.gmra.mxu1 %v5024_v53 }
  0x63   :  { %739 = vmatpush1.bf16.msra.mxu0 %v6430_v2  ;;  %780 = vmatpush1.bf16.msra.mxu1 %v6435_v3 }
  0x64   :  { %740 = vmatprep.subr.bf16.mxu0 %v6441_v4  ;;  %781 = vmatprep.subr.bf16.mxu1 %v6448_v5 }
  0x65   :  { %5031 = vmatprep.mubr.msk.bf16.mxu0 %vm528_vm0, %v5030_v55  ;;  %5032 = vmatprep.mubr.msk.bf16.mxu1 %vm528_vm0, %v5030_v55  ;;  %v6939_v55 = vld [vmem:[%s11348_s2] ss:$0 sm:$0xff] }
  0x67   :  { %741 = vmatpush1.bf16.msra.mxu0 %v6453_v6  ;;  %782 = vmatpush1.bf16.msra.mxu1 %v6459_v7 }
  0x68   :  { %742 = vmatprep.subr.bf16.mxu0 %v6465_v8  ;;  %783 = vmatprep.subr.bf16.mxu1 %v6470_v9 }
  0x6b   :  { %743 = vmatpush1.bf16.msra.mxu0 %v6475_v10  ;;  %784 = vmatpush1.bf16.msra.mxu1 %v6480_v11 }
  0x6c   :  { %744 = vmatprep.subr.bf16.mxu0 %v6487_v12  ;;  %785 = vmatprep.subr.bf16.mxu1 %v6494_v13 }
  0x6f   :  { %745 = vmatpush1.bf16.msra.mxu0 %v6499_v14  ;;  %786 = vmatpush1.bf16.msra.mxu1 %v6506_v15 }
  0x70   :  { %746 = vmatprep.subr.bf16.mxu0 %v6511_v16  ;;  %787 = vmatprep.subr.bf16.mxu1 %v6518_v17 }
  0x73   :  { %747 = vmatpush1.bf16.msra.mxu0 %v6523_v18  ;;  %788 = vmatpush1.bf16.msra.mxu1 %v6528_v19 }
  0x74   :  { %748 = vmatprep.subr.bf16.mxu0 %v6535_v20  ;;  %789 = vmatprep.subr.bf16.mxu1 %v6542_v21 }
  0x77   :  { %749 = vmatpush1.bf16.msra.mxu0 %v6547_v22  ;;  %790 = vmatpush1.bf16.msra.mxu1 %v6554_v23 }
  0x78   :  { %750 = vmatprep.subr.bf16.mxu0 %v6559_v24  ;;  %791 = vmatprep.subr.bf16.mxu1 %v6566_v25 }
  0x7b   :  { %751 = vmatpush1.bf16.msra.mxu0 %v6571_v26  ;;  %792 = vmatpush1.bf16.msra.mxu1 %v6576_v27 }
  0x7c   :  { %752 = vmatprep.subr.bf16.mxu0 %v6583_v28  ;;  %793 = vmatprep.subr.bf16.mxu1 %v6590_v29 }
  0x7f   :  { %753 = vmatpush1.bf16.msra.mxu0 %v6595_v30  ;;  %794 = vmatpush1.bf16.msra.mxu1 %v6602_v31 }
  0x80   :  { %762 = vmatprep.subr.bf16.mxu0 %v6607_v32  ;;  %803 = vmatprep.subr.bf16.mxu1 %v6614_v33 }
  0x83   :  { %763 = vmatpush2.bf16.msra.mxu0 %v6621_v34  ;;  %804 = vmatpush2.bf16.msra.mxu1 %v6626_v35 }
  0x84   :  { %764 = vmatprep.subr.bf16.mxu0 %v6636_v37  ;;  %805 = vmatprep.subr.bf16.mxu1 %v6641_v38 }
  0x87   :  { %765 = vmatpush2.bf16.msra.mxu0 %v6650_v40  ;;  %806 = vmatpush2.bf16.msra.mxu1 %v6655_v41 }
  0x88   :  { %766 = vmatprep.subr.bf16.mxu0 %v6662_v42  ;;  %807 = vmatprep.subr.bf16.mxu1 %v6667_v43 }
  0x8b   :  { %767 = vmatpush2.bf16.msra.mxu0 %v6674_v44  ;;  %808 = vmatpush2.bf16.msra.mxu1 %v6679_v45 }
  0x8c   :  { %768 = vmatprep.subr.bf16.mxu0 %v6686_v46  ;;  %809 = vmatprep.subr.bf16.mxu1 %v6691_v47 }
  0x8f   :  { %769 = vmatpush2.bf16.msra.mxu0 %v6698_v48  ;;  %810 = vmatpush2.bf16.msra.mxu1 %v6703_v49 }
  0x90   :  { %838 = vmatprep.subr.bf16.mxu0 %v6419_v0  ;;  %879 = vmatprep.subr.bf16.mxu1 %v6424_v1 }
  0x92   :  { %771 = vmatmul.mubr.bf16.vlgmr.msra.gmra.mxu0 %v5029_v56  ;;  %812 = vmatmul.mubr.bf16.vlgmr.msra.gmra.mxu1 %v5029_v56 }
  0x93   :  { %839 = vmatpush1.bf16.msra.mxu0 %v6430_v2  ;;  %880 = vmatpush1.bf16.msra.mxu1 %v6435_v3 }
  0x94   :  { %840 = vmatprep.subr.bf16.mxu0 %v6441_v4  ;;  %881 = vmatprep.subr.bf16.mxu1 %v6448_v5 }
  0x95   :  { %5036 = vmatprep.mubr.msk.bf16.mxu0 %vm528_vm0, %v5035_v58  ;;  %5037 = vmatprep.mubr.msk.bf16.mxu1 %vm528_vm0, %v5035_v58 }
  0x97   :  { %841 = vmatpush1.bf16.msra.mxu0 %v6453_v6  ;;  %882 = vmatpush1.bf16.msra.mxu1 %v6459_v7 }
  0x98   :  { %842 = vmatprep.subr.bf16.mxu0 %v6465_v8  ;;  %883 = vmatprep.subr.bf16.mxu1 %v6470_v9 }
  0x9b   :  { %843 = vmatpush1.bf16.msra.mxu0 %v6475_v10  ;;  %884 = vmatpush1.bf16.msra.mxu1 %v6480_v11 }
  0x9c   :  { %844 = vmatprep.subr.bf16.mxu0 %v6487_v12  ;;  %885 = vmatprep.subr.bf16.mxu1 %v6494_v13 }
  0x9f   :  { %845 = vmatpush1.bf16.msra.mxu0 %v6499_v14  ;;  %886 = vmatpush1.bf16.msra.mxu1 %v6506_v15 }
  0xa0   :  { %846 = vmatprep.subr.bf16.mxu0 %v6511_v16  ;;  %887 = vmatprep.subr.bf16.mxu1 %v6518_v17 }
  0xa3   :  { %847 = vmatpush1.bf16.msra.mxu0 %v6523_v18  ;;  %888 = vmatpush1.bf16.msra.mxu1 %v6528_v19 }
  0xa4   :  { %848 = vmatprep.subr.bf16.mxu0 %v6535_v20  ;;  %889 = vmatprep.subr.bf16.mxu1 %v6542_v21 }
  0xa7   :  { %849 = vmatpush1.bf16.msra.mxu0 %v6547_v22  ;;  %890 = vmatpush1.bf16.msra.mxu1 %v6554_v23 }
  0xa8   :  { %850 = vmatprep.subr.bf16.mxu0 %v6559_v24  ;;  %891 = vmatprep.subr.bf16.mxu1 %v6566_v25 }
  0xab   :  { %851 = vmatpush1.bf16.msra.mxu0 %v6571_v26  ;;  %892 = vmatpush1.bf16.msra.mxu1 %v6576_v27 }
  0xac   :  { %852 = vmatprep.subr.bf16.mxu0 %v6583_v28  ;;  %893 = vmatprep.subr.bf16.mxu1 %v6590_v29 }
  0xaf   :  { %853 = vmatpush1.bf16.msra.mxu0 %v6595_v30  ;;  %894 = vmatpush1.bf16.msra.mxu1 %v6602_v31 }
  0xb0   :  { %862 = vmatprep.subr.bf16.mxu0 %v6607_v32  ;;  %903 = vmatprep.subr.bf16.mxu1 %v6614_v33 }
  0xb3   :  { %863 = vmatpush2.bf16.msra.mxu0 %v6621_v34  ;;  %904 = vmatpush2.bf16.msra.mxu1 %v6626_v35 }
  0xb4   :  { %864 = vmatprep.subr.bf16.mxu0 %v6636_v37  ;;  %905 = vmatprep.subr.bf16.mxu1 %v6641_v38 }
  0xb7   :  { %865 = vmatpush2.bf16.msra.mxu0 %v6650_v40  ;;  %906 = vmatpush2.bf16.msra.mxu1 %v6655_v41 }
  0xb8   :  { %866 = vmatprep.subr.bf16.mxu0 %v6662_v42  ;;  %907 = vmatprep.subr.bf16.mxu1 %v6667_v43 }
  0xbb   :  { %867 = vmatpush2.bf16.msra.mxu0 %v6674_v44  ;;  %908 = vmatpush2.bf16.msra.mxu1 %v6679_v45 }
  0xbc   :  { %868 = vmatprep.subr.bf16.mxu0 %v6686_v46  ;;  %909 = vmatprep.subr.bf16.mxu1 %v6691_v47 }
  0xbf   :  { %869 = vmatpush2.bf16.msra.mxu0 %v6698_v48  ;;  %910 = vmatpush2.bf16.msra.mxu1 %v6703_v49 }
  0xc0   :  { %938 = vmatprep.subr.bf16.mxu0 %v6419_v0  ;;  %979 = vmatprep.subr.bf16.mxu1 %v6424_v1 }
  0xc2   :  { %871 = vmatmul.mubr.bf16.vlgmr.msra.gmra.mxu0 %v5034_v59  ;;  %912 = vmatmul.mubr.bf16.vlgmr.msra.gmra.mxu1 %v5034_v59 }
  0xc3   :  { %939 = vmatpush1.bf16.msra.mxu0 %v6430_v2  ;;  %980 = vmatpush1.bf16.msra.mxu1 %v6435_v3 }
  0xc4   :  { %940 = vmatprep.subr.bf16.mxu0 %v6441_v4  ;;  %981 = vmatprep.subr.bf16.mxu1 %v6448_v5 }
  0xc5   :  { %5041 = vmatprep.mubr.msk.bf16.mxu0 %vm528_vm0, %v5040_v61  ;;  %5042 = vmatprep.mubr.msk.bf16.mxu1 %vm528_vm0, %v5040_v61 }
  0xc7   :  { %941 = vmatpush1.bf16.msra.mxu0 %v6453_v6  ;;  %982 = vmatpush1.bf16.msra.mxu1 %v6459_v7 }
  0xc8   :  { %942 = vmatprep.subr.bf16.mxu0 %v6465_v8  ;;  %983 = vmatprep.subr.bf16.mxu1 %v6470_v9 }
  0xcb   :  { %943 = vmatpush1.bf16.msra.mxu0 %v6475_v10  ;;  %984 = vmatpush1.bf16.msra.mxu1 %v6480_v11 }
  0xcc   :  { %944 = vmatprep.subr.bf16.mxu0 %v6487_v12  ;;  %985 = vmatprep.subr.bf16.mxu1 %v6494_v13 }
  0xcf   :  { %945 = vmatpush1.bf16.msra.mxu0 %v6499_v14  ;;  %986 = vmatpush1.bf16.msra.mxu1 %v6506_v15 }
  0xd0   :  { %946 = vmatprep.subr.bf16.mxu0 %v6511_v16  ;;  %987 = vmatprep.subr.bf16.mxu1 %v6518_v17 }
  0xd3   :  { %947 = vmatpush1.bf16.msra.mxu0 %v6523_v18  ;;  %988 = vmatpush1.bf16.msra.mxu1 %v6528_v19 }
  0xd4   :  { %948 = vmatprep.subr.bf16.mxu0 %v6535_v20  ;;  %989 = vmatprep.subr.bf16.mxu1 %v6542_v21 }
  0xd7   :  { %949 = vmatpush1.bf16.msra.mxu0 %v6547_v22  ;;  %990 = vmatpush1.bf16.msra.mxu1 %v6554_v23 }
  0xd8   :  { %950 = vmatprep.subr.bf16.mxu0 %v6559_v24  ;;  %991 = vmatprep.subr.bf16.mxu1 %v6566_v25 }
  0xdb   :  { %951 = vmatpush1.bf16.msra.mxu0 %v6571_v26  ;;  %992 = vmatpush1.bf16.msra.mxu1 %v6576_v27 }
  0xdc   :  { %952 = vmatprep.subr.bf16.mxu0 %v6583_v28  ;;  %993 = vmatprep.subr.bf16.mxu1 %v6590_v29 }
  0xdf   :  { %953 = vmatpush1.bf16.msra.mxu0 %v6595_v30  ;;  %994 = vmatpush1.bf16.msra.mxu1 %v6602_v31 }
  0xe0   :  { %962 = vmatprep.subr.bf16.mxu0 %v6607_v32  ;;  %1003 = vmatprep.subr.bf16.mxu1 %v6614_v33 }
  0xe3   :  { %963 = vmatpush2.bf16.msra.mxu0 %v6621_v34  ;;  %1004 = vmatpush2.bf16.msra.mxu1 %v6626_v35 }
  0xe4   :  { %964 = vmatprep.subr.bf16.mxu0 %v6636_v37  ;;  %1005 = vmatprep.subr.bf16.mxu1 %v6641_v38 }
  0xe7   :  { %965 = vmatpush2.bf16.msra.mxu0 %v6650_v40  ;;  %1006 = vmatpush2.bf16.msra.mxu1 %v6655_v41 }
  0xe8   :  { %966 = vmatprep.subr.bf16.mxu0 %v6662_v42  ;;  %1007 = vmatprep.subr.bf16.mxu1 %v6667_v43 }
  0xeb   :  { %967 = vmatpush2.bf16.msra.mxu0 %v6674_v44  ;;  %1008 = vmatpush2.bf16.msra.mxu1 %v6679_v45 }
  0xec   :  { %968 = vmatprep.subr.bf16.mxu0 %v6686_v46  ;;  %1009 = vmatprep.subr.bf16.mxu1 %v6691_v47 }
  0xef   :  { %969 = vmatpush2.bf16.msra.mxu0 %v6698_v48  ;;  %1010 = vmatpush2.bf16.msra.mxu1 %v6703_v49 }
  0xf0   :  { %1038 = vmatprep.subr.bf16.mxu0 %v6419_v0  ;;  %1079 = vmatprep.subr.bf16.mxu1 %v6424_v1 }
  0xf2   :  { %v566_v39 = vpop.f32.mrf.mxu0  ;;  %v607_v50 = vpop.f32.mrf.mxu1  ;;  %971 = vmatmul.mubr.bf16.vlgmr.msra.gmra.mxu0 %v5039_v62  ;;  %1012 = vmatmul.mubr.bf16.vlgmr.msra.gmra.mxu1 %v5039_v62 }
  0xf3   :  { %1039 = vmatpush1.bf16.msra.mxu0 %v6430_v2  ;;  %1080 = vmatpush1.bf16.msra.mxu1 %v6435_v3 }
  0xf4   :  { %v568_v51 = vpop.f32.mrf.mxu0  ;;  %v609_v52 = vpop.f32.mrf.mxu1  ;;  %1040 = vmatprep.subr.bf16.mxu0 %v6441_v4  ;;  %1081 = vmatprep.subr.bf16.mxu1 %v6448_v5 }
  0xf5   :  { %v614_v53 = vmax.f32 %v566_v39, %v568_v51  ;;  %v615_v54 = vmax.f32 %v607_v50, %v609_v52  ;;  %5046 = vmatprep.mubr.msk.bf16.mxu0 %vm528_vm0, %v5045_v36  ;;  %5047 = vmatprep.mubr.msk.bf16.mxu1 %vm528_vm0, %v5045_v36  ;;  %v5044_v39 = vcombine.low %v6922_v63, %v6922_v63  ;;  %v6987_v50 = vld [vmem:[%s11347_s0 + $0x30] sm:$0xff] }
  0xf6   :  { %v570_v56 = vpop.f32.mrf.mxu0  ;;  %v611_v57 = vpop.f32.mrf.mxu1  ;;  %v5050_v51 = vcombine.high %v6987_v50, %v6987_v50 }
  0xf7   :  { %v616_v58 = vmax.f32 %v614_v53, %v615_v54  ;;  %1041 = vmatpush1.bf16.msra.mxu0 %v6453_v6  ;;  %1082 = vmatpush1.bf16.msra.mxu1 %v6459_v7 }
  0xf8   :  { %v571_v59 = vpop.f32.mrf.mxu0  ;;  %v612_v60 = vpop.f32.mrf.mxu1  ;;  %1042 = vmatprep.subr.bf16.mxu0 %v6465_v8  ;;  %1083 = vmatprep.subr.bf16.mxu1 %v6470_v9 }
  0xf9   :  { %v623_v61 = vadd.f32 %v6939_v55, %v616_v58 }
  0xfb   :  { %v624_v62 = vmax.f32 %v623_v61, 0.0  ;;  %1043 = vmatpush1.bf16.msra.mxu0 %v6475_v10  ;;  %1084 = vmatpush1.bf16.msra.mxu1 %v6480_v11 }
  0xfc   :  { %1044 = vmatprep.subr.bf16.mxu0 %v6487_v12  ;;  %1085 = vmatprep.subr.bf16.mxu1 %v6494_v13 }
  0xfd   :  { %v625_v36 = vpack.c.bf16 %v624_v62, %v624_v62  ;;  %v7063_v62 = vld [vmem:[%s11346_s1 + $0xe0] ss:$16 sps:$4 sm:$0xff]  }
  0xff   :  { %626 = vst [vmem:[#allocation2] sm:$0xf] %v625_v36  ;;  %1045 = vmatpush1.bf16.msra.mxu0 %v6499_v14  ;;  %1086 = vmatpush1.bf16.msra.mxu1 %v6506_v15  ;;  %v7069_v36 = vld [vmem:[%s11346_s1 + $0xe8] ss:$16 sps:$4 sm:$0xff]  }
 0x100   :  { %1046 = vmatprep.subr.bf16.mxu0 %v6511_v16  ;;  %1087 = vmatprep.subr.bf16.mxu1 %v6518_v17 }
 0x103   :  { %1047 = vmatpush1.bf16.msra.mxu0 %v6523_v18  ;;  %1088 = vmatpush1.bf16.msra.mxu1 %v6528_v19 }
 0x104   :  { %1048 = vmatprep.subr.bf16.mxu0 %v6535_v20  ;;  %1089 = vmatprep.subr.bf16.mxu1 %v6542_v21 }
 0x107   :  { %1049 = vmatpush1.bf16.msra.mxu0 %v6547_v22  ;;  %1090 = vmatpush1.bf16.msra.mxu1 %v6554_v23 }
 0x108   :  { %1050 = vmatprep.subr.bf16.mxu0 %v6559_v24  ;;  %1091 = vmatprep.subr.bf16.mxu1 %v6566_v25 }
 0x10b   :  { %1051 = vmatpush1.bf16.msra.mxu0 %v6571_v26  ;;  %1092 = vmatpush1.bf16.msra.mxu1 %v6576_v27 }
 0x10c   :  { %1052 = vmatprep.subr.bf16.mxu0 %v6583_v28  ;;  %1093 = vmatprep.subr.bf16.mxu1 %v6590_v29 }
 0x10f   :  { %1053 = vmatpush1.bf16.msra.mxu0 %v6595_v30  ;;  %1094 = vmatpush1.bf16.msra.mxu1 %v6602_v31 }
 0x110   :  { %1062 = vmatprep.subr.bf16.mxu0 %v6607_v32  ;;  %1103 = vmatprep.subr.bf16.mxu1 %v6614_v33 }
 0x113   :  { %1063 = vmatpush2.bf16.msra.mxu0 %v6621_v34  ;;  %1104 = vmatpush2.bf16.msra.mxu1 %v6626_v35 }
 0x114   :  { %1064 = vmatprep.subr.bf16.mxu0 %v6636_v37  ;;  %1105 = vmatprep.subr.bf16.mxu1 %v6641_v38 }
 0x117   :  { %1065 = vmatpush2.bf16.msra.mxu0 %v6650_v40  ;;  %1106 = vmatpush2.bf16.msra.mxu1 %v6655_v41 }
 0x118   :  { %1066 = vmatprep.subr.bf16.mxu0 %v6662_v42  ;;  %1107 = vmatprep.subr.bf16.mxu1 %v6667_v43 }
 0x11b   :  { %1067 = vmatpush2.bf16.msra.mxu0 %v6674_v44  ;;  %1108 = vmatpush2.bf16.msra.mxu1 %v6679_v45 }
 0x11c   :  { %1068 = vmatprep.subr.bf16.mxu0 %v6686_v46  ;;  %1109 = vmatprep.subr.bf16.mxu1 %v6691_v47 }
 0x11f   :  { %1069 = vmatpush2.bf16.msra.mxu0 %v6698_v48  ;;  %1110 = vmatpush2.bf16.msra.mxu1 %v6703_v49 }
 0x120   :  { %1138 = vmatprep.subr.bf16.mxu0 %v6419_v0  ;;  %1179 = vmatprep.subr.bf16.mxu1 %v6424_v1 }
 0x122   :  { %v672_v52 = vpop.f32.mrf.mxu0  ;;  %v713_v53 = vpop.f32.mrf.mxu1  ;;  %1071 = vmatmul.mubr.bf16.vlgmr.msra.gmra.mxu0 %v5044_v39  ;;  %1112 = vmatmul.mubr.bf16.vlgmr.msra.gmra.mxu1 %v5044_v39 }
 0x123   :  { %1139 = vmatpush1.bf16.msra.mxu0 %v6430_v2  ;;  %1180 = vmatpush1.bf16.msra.mxu1 %v6435_v3 }
 0x124   :  { %v674_v63 = vpop.f32.mrf.mxu0  ;;  %v715_v54 = vpop.f32.mrf.mxu1  ;;  %1140 = vmatprep.subr.bf16.mxu0 %v6441_v4  ;;  %1181 = vmatprep.subr.bf16.mxu1 %v6448_v5 }
 0x125   :  { %v720_v0 = vmax.f32 %v672_v52, %v674_v63  ;;  %v721_v56 = vmax.f32 %v713_v53, %v715_v54  ;;  %5051 = vmatprep.mubr.msk.bf16.mxu0 %vm528_vm0, %v5050_v51  ;;  %5052 = vmatprep.mubr.msk.bf16.mxu1 %vm528_vm0, %v5050_v51 }
 0x126   :  { %v676_v57 = vpop.f32.mrf.mxu0  ;;  %v717_v58 = vpop.f32.mrf.mxu1 }
 0x127   :  { %v722_v59 = vmax.f32 %v720_v0, %v721_v56  ;;  %1141 = vmatpush1.bf16.msra.mxu0 %v6453_v6  ;;  %1182 = vmatpush1.bf16.msra.mxu1 %v6459_v7  ;;  %v5049_v7 = vcombine.low %v6987_v50, %v6987_v50  ;;  %v7075_v50 = vld [vmem:[%s11346_s1 + $0xc4] ss:$16 sps:$4 sm:$0xff]   ;;  %v7084_v0 = vld [vmem:[%s11346_s1 + $0xc0] ss:$16 sps:$4 sm:$0xff]  }
 0x128   :  { %v677_v2 = vpop.f32.mrf.mxu0  ;;  %v718_v3 = vpop.f32.mrf.mxu1  ;;  %1142 = vmatprep.subr.bf16.mxu0 %v6465_v8  ;;  %1183 = vmatprep.subr.bf16.mxu1 %v6470_v9  ;;  %v7047_v8 = vld [vmem:[%s11347_s0 + $0x38] sm:$0xff]  ;;  %v7054_v9 = vld [vmem:[%s11346_s1 + $0xe4] ss:$16 sps:$4 sm:$0xff]  }
 0x129   :  { %v723_v4 = vadd.f32 %v6939_v55, %v722_v59  ;;  %v7096_v58 = vld [vmem:[%s11346_s1 + $0xa4] ss:$16 sps:$4 sm:$0xff]   ;;  %v7102_v59 = vld [vmem:[%s11346_s1 + $0xac] ss:$16 sps:$4 sm:$0xff]  }
 0x12b   :  { %v724_v60 = vmax.f32 %v723_v4, 0.0  ;;  %1143 = vmatpush1.bf16.msra.mxu0 %v6475_v10  ;;  %1184 = vmatpush1.bf16.msra.mxu1 %v6480_v11  ;;  %v5055_v10 = vcombine.high %v7047_v8, %v7047_v8  ;;  %v7109_v4 = vld [vmem:[%s11346_s1 + $0xa0] ss:$16 sps:$4 sm:$0xff]  }
 0x12c   :  { %1144 = vmatprep.subr.bf16.mxu0 %v6487_v12  ;;  %1185 = vmatprep.subr.bf16.mxu1 %v6494_v13 }
 0x12d   :  { %v725_v6 = vpack.c.bf16 %v724_v60, %v724_v60  ;;  %v7115_v60 = vld [vmem:[%s11346_s1 + $0xa8] ss:$16 sps:$4 sm:$0xff]  }
 0x12f   :  { %726 = vst [vmem:[#allocation2 + $0x4] sm:$0xf] %v725_v6  ;;  %1145 = vmatpush1.bf16.msra.mxu0 %v6499_v14  ;;  %1186 = vmatpush1.bf16.msra.mxu1 %v6506_v15 }
 0x130   :  { %1146 = vmatprep.subr.bf16.mxu0 %v6511_v16  ;;  %1187 = vmatprep.subr.bf16.mxu1 %v6518_v17 }
 0x133   :  { %1147 = vmatpush1.bf16.msra.mxu0 %v6523_v18  ;;  %1188 = vmatpush1.bf16.msra.mxu1 %v6528_v19 }
 0x134   :  { %1148 = vmatprep.subr.bf16.mxu0 %v6535_v20  ;;  %1189 = vmatprep.subr.bf16.mxu1 %v6542_v21 }
 0x137   :  { %1149 = vmatpush1.bf16.msra.mxu0 %v6547_v22  ;;  %1190 = vmatpush1.bf16.msra.mxu1 %v6554_v23 }
 0x138   :  { %1150 = vmatprep.subr.bf16.mxu0 %v6559_v24  ;;  %1191 = vmatprep.subr.bf16.mxu1 %v6566_v25 }
 0x13b   :  { %1151 = vmatpush1.bf16.msra.mxu0 %v6571_v26  ;;  %1192 = vmatpush1.bf16.msra.mxu1 %v6576_v27 }
 0x13c   :  { %1152 = vmatprep.subr.bf16.mxu0 %v6583_v28  ;;  %1193 = vmatprep.subr.bf16.mxu1 %v6590_v29 }
 0x13f   :  { %1153 = vmatpush1.bf16.msra.mxu0 %v6595_v30  ;;  %1194 = vmatpush1.bf16.msra.mxu1 %v6602_v31 }
 0x140   :  { %1162 = vmatprep.subr.bf16.mxu0 %v6607_v32  ;;  %1203 = vmatprep.subr.bf16.mxu1 %v6614_v33 }
 0x143   :  { %1163 = vmatpush2.bf16.msra.mxu0 %v6621_v34  ;;  %1204 = vmatpush2.bf16.msra.mxu1 %v6626_v35 }
 0x144   :  { %1164 = vmatprep.subr.bf16.mxu0 %v6636_v37  ;;  %1205 = vmatprep.subr.bf16.mxu1 %v6641_v38 }
 0x147   :  { %1165 = vmatpush2.bf16.msra.mxu0 %v6650_v40  ;;  %1206 = vmatpush2.bf16.msra.mxu1 %v6655_v41 }
 0x148   :  { %1166 = vmatprep.subr.bf16.mxu0 %v6662_v42  ;;  %1207 = vmatprep.subr.bf16.mxu1 %v6667_v43 }
 0x14b   :  { %1167 = vmatpush2.bf16.msra.mxu0 %v6674_v44  ;;  %1208 = vmatpush2.bf16.msra.mxu1 %v6679_v45 }
 0x14c   :  { %1168 = vmatprep.subr.bf16.mxu0 %v6686_v46  ;;  %1209 = vmatprep.subr.bf16.mxu1 %v6691_v47 }
 0x14f   :  { %1169 = vmatpush2.bf16.msra.mxu0 %v6698_v48  ;;  %1210 = vmatpush2.bf16.msra.mxu1 %v6703_v49 }
 0x150   :  { %1238 = vmatprep.subr.bf16.mxu0 %v7054_v9  ;;  %1279 = vmatprep.subr.bf16.mxu1 %v6424_v1 }
 0x152   :  { %v772_v11 = vpop.f32.mrf.mxu0  ;;  %v813_v61 = vpop.f32.mrf.mxu1  ;;  %1171 = vmatmul.mubr.bf16.vlgmr.msra.gmra.mxu0 %v5049_v7  ;;  %1212 = vmatmul.mubr.bf16.vlgmr.msra.gmra.mxu1 %v5049_v7  ;;  %v7257_v7 = vld [vmem:[%s11346_s1 + $0x48] ss:$16 sps:$4 sm:$0xff]  }
 0x153   :  { %1239 = vmatpush1.bf16.msra.mxu0 %v7063_v62  ;;  %1280 = vmatpush1.bf16.msra.mxu1 %v7069_v36 }
 0x154   :  { %v774_v1 = vpop.f32.mrf.mxu0  ;;  %v815_v39 = vpop.f32.mrf.mxu1  ;;  %1240 = vmatprep.subr.bf16.mxu0 %v7075_v50  ;;  %1281 = vmatprep.subr.bf16.mxu1 %v6448_v5  ;;  %v7090_v5 = vld [vmem:[%s11346_s1 + $0xc8] ss:$16 sps:$4 sm:$0xff]  }
 0x155   :  { %v820_v51 = vmax.f32 %v772_v11, %v774_v1  ;;  %v821_v52 = vmax.f32 %v813_v61, %v815_v39  ;;  %5056 = vmatprep.mubr.msk.bf16.mxu0 %vm528_vm0, %v5055_v10  ;;  %5057 = vmatprep.mubr.msk.bf16.mxu1 %vm528_vm0, %v5055_v10  ;;  %v7269_v10 = vld [vmem:[%s11346_s1 + $0x2c] ss:$16 sps:$4 sm:$0xff]   ;;  %v7275_v11 = vld [vmem:[%s11346_s1 + $0x20] ss:$16 sps:$4 sm:$0xff]   ;;  %v7281_v61 = vld [vmem:[%s11346_s1 + $0x28] ss:$16 sps:$4 sm:$0xff]  }
 0x156   :  { %v776_v53 = vpop.f32.mrf.mxu0  ;;  %v817_v63 = vpop.f32.mrf.mxu1  ;;  %v7287_v1 = vld [vmem:[%s11346_s1 + $0x4] ss:$16 sps:$4 sm:$0xff]   ;;  %v7293_v39 = vld [vmem:[%s11346_s1 + $0xc] ss:$16 sps:$4 sm:$0xff]  }
 0x157   :  { %v822_v54 = vmax.f32 %v820_v51, %v821_v52  ;;  %1241 = vmatpush1.bf16.msra.mxu0 %v7084_v0  ;;  %1282 = vmatpush1.bf16.msra.mxu1 %v7090_v5  ;;  %v7299_v51 = vld [vmem:[%s11346_s1] ss:$16 sps:$4 sm:$0xff]   ;;  %v7305_v52 = vld [vmem:[%s11346_s1 + $0x8] ss:$16 sps:$4 sm:$0xff]   ;;  %v7311_v53 = vld [vmem:[%s11346_s1 + $0x164] ss:$16 sps:$4 sm:$0xff]  }
 0x158   :  { %v777_v56 = vpop.f32.mrf.mxu0  ;;  %v818_v57 = vpop.f32.mrf.mxu1  ;;  %1242 = vmatprep.subr.bf16.mxu0 %v7096_v58  ;;  %1283 = vmatprep.subr.bf16.mxu1 %v7102_v59  ;;  %v7317_v63 = vld [vmem:[%s11346_s1 + $0x16c] ss:$16 sps:$4 sm:$0xff]  }
 0x159   :  { %v823_v2 = vadd.f32 %v6939_v55, %v822_v54  ;;  %v7323_v54 = vld [vmem:[%s11346_s1 + $0x160] ss:$16 sps:$4 sm:$0xff]   ;;  %v7329_v56 = vld [vmem:[%s11346_s1 + $0x168] ss:$16 sps:$4 sm:$0xff]   ;;  %v7335_v57 = vld [vmem:[%s11346_s1 + $0x144] ss:$16 sps:$4 sm:$0xff]  }
 0x15b   :  { %v824_v3 = vmax.f32 %v823_v2, 0.0  ;;  %1243 = vmatpush1.bf16.msra.mxu0 %v7109_v4  ;;  %1284 = vmatpush1.bf16.msra.mxu1 %v7115_v60  ;;  %v7341_v2 = vld [vmem:[%s11346_s1 + $0x14c] ss:$16 sps:$4 sm:$0xff]  }
 0x15c   :  { %1244 = vmatprep.subr.bf16.mxu0 %v6487_v12  ;;  %1285 = vmatprep.subr.bf16.mxu1 %v6494_v13  ;;  %v5054_v12 = vcombine.low %v7047_v8, %v7047_v8  ;;  %v7157_v13 = vld [vmem:[%s11347_s0 + $0x40] sm:$0xff] }
 0x15d   :  { %v825_v6 = vpack.c.bf16 %v824_v3, %v824_v3  ;;  %v7263_v8 = vld [vmem:[%s11346_s1 + $0x24] ss:$16 sps:$4 sm:$0xff]   ;;  %v7347_v3 = vld [vmem:[%s11346_s1 + $0x140] ss:$16 sps:$4 sm:$0xff]  }
 0x15f   :  { %826 = vst [vmem:[#allocation2 + $0x8] sm:$0xf] %v825_v6  ;;  %1245 = vmatpush1.bf16.msra.mxu0 %v6499_v14  ;;  %1286 = vmatpush1.bf16.msra.mxu1 %v6506_v15  ;;  %v7165_v14 = vld [vmem:[%s11346_s1 + $0xec] ss:$16 sps:$4 sm:$0xff]   ;;  %v5060_v15 = vcombine.high %v7157_v13, %v7157_v13  ;;  %v7353_v6 = vld [vmem:[%s11346_s1 + $0x148] ss:$16 sps:$4 sm:$0xff]  }
 0x160   :  { %1246 = vmatprep.subr.bf16.mxu0 %v6511_v16  ;;  %1287 = vmatprep.subr.bf16.mxu1 %v6518_v17 }
 0x163   :  { %1247 = vmatpush1.bf16.msra.mxu0 %v6523_v18  ;;  %1288 = vmatpush1.bf16.msra.mxu1 %v6528_v19 }
 0x164   :  { %1248 = vmatprep.subr.bf16.mxu0 %v6535_v20  ;;  %1289 = vmatprep.subr.bf16.mxu1 %v6542_v21  ;;  %v7176_v20 = vld [vmem:[%s11346_s1 + $0xcc] ss:$16 sps:$4 sm:$0xff]  }
 0x167   :  { %1249 = vmatpush1.bf16.msra.mxu0 %v6547_v22  ;;  %1290 = vmatpush1.bf16.msra.mxu1 %v6554_v23 }
 0x168   :  { %1250 = vmatprep.subr.bf16.mxu0 %v6559_v24  ;;  %1291 = vmatprep.subr.bf16.mxu1 %v6566_v25 }
 0x16b   :  { %1251 = vmatpush1.bf16.msra.mxu0 %v6571_v26  ;;  %1292 = vmatpush1.bf16.msra.mxu1 %v6576_v27 }
 0x16c   :  { %1252 = vmatprep.subr.bf16.mxu0 %v6583_v28  ;;  %1293 = vmatprep.subr.bf16.mxu1 %v6590_v29 }
 0x16f   :  { %1253 = vmatpush1.bf16.msra.mxu0 %v6595_v30  ;;  %1294 = vmatpush1.bf16.msra.mxu1 %v6602_v31  ;;  %v7191_v30 = vld [vmem:[%s11346_s1 + $0x84] ss:$16 sps:$4 sm:$0xff]   ;;  %v7197_v31 = vld [vmem:[%s11346_s1 + $0x8c] ss:$16 sps:$4 sm:$0xff]  }
 0x170   :  { %1262 = vmatprep.subr.bf16.mxu0 %v6607_v32  ;;  %1303 = vmatprep.subr.bf16.mxu1 %v6614_v33  ;;  %v7203_v33 = vld [vmem:[%s11346_s1 + $0x80] ss:$16 sps:$4 sm:$0xff]  }
 0x173   :  { %1263 = vmatpush2.bf16.msra.mxu0 %v6621_v34  ;;  %1304 = vmatpush2.bf16.msra.mxu1 %v6626_v35  ;;  %v7209_v34 = vld [vmem:[%s11346_s1 + $0x88] ss:$16 sps:$4 sm:$0xff]   ;;  %v7215_v35 = vld [vmem:[%s11346_s1 + $0x64] ss:$16 sps:$4 sm:$0xff]  }
 0x174   :  { %1264 = vmatprep.subr.bf16.mxu0 %v6636_v37  ;;  %1305 = vmatprep.subr.bf16.mxu1 %v6641_v38  ;;  %v7221_v37 = vld [vmem:[%s11346_s1 + $0x6c] ss:$16 sps:$4 sm:$0xff]   ;;  %v7227_v38 = vld [vmem:[%s11346_s1 + $0x60] ss:$16 sps:$4 sm:$0xff]  }
 0x177   :  { %1265 = vmatpush2.bf16.msra.mxu0 %v6650_v40  ;;  %1306 = vmatpush2.bf16.msra.mxu1 %v6655_v41  ;;  %v7233_v40 = vld [vmem:[%s11346_s1 + $0x68] ss:$16 sps:$4 sm:$0xff]   ;;  %v7239_v41 = vld [vmem:[%s11346_s1 + $0x44] ss:$16 sps:$4 sm:$0xff]  }
 0x178   :  { %1266 = vmatprep.subr.bf16.mxu0 %v6662_v42  ;;  %1307 = vmatprep.subr.bf16.mxu1 %v6667_v43  ;;  %v7245_v42 = vld [vmem:[%s11346_s1 + $0x4c] ss:$16 sps:$4 sm:$0xff]   ;;  %v7251_v43 = vld [vmem:[%s11346_s1 + $0x40] ss:$16 sps:$4 sm:$0xff]  }
 0x17b   :  { %1267 = vmatpush2.bf16.msra.mxu0 %v6674_v44  ;;  %1308 = vmatpush2.bf16.msra.mxu1 %v6679_v45 }
 0x17c   :  { %1268 = vmatprep.subr.bf16.mxu0 %v6686_v46  ;;  %1309 = vmatprep.subr.bf16.mxu1 %v6691_v47 }
 0x17f   :  { %1269 = vmatpush2.bf16.msra.mxu0 %v6698_v48  ;;  %1310 = vmatpush2.bf16.msra.mxu1 %v6703_v49 }
 0x180   :  { %1338 = vmatprep.subr.bf16.mxu0 %v7054_v9  ;;  %1379 = vmatprep.subr.bf16.mxu1 %v7165_v14 }
 0x182   :  { %v872_v16 = vpop.f32.mrf.mxu0  ;;  %v913_v17 = vpop.f32.mrf.mxu1  ;;  %1271 = vmatmul.mubr.bf16.vlgmr.msra.gmra.mxu0 %v5054_v12  ;;  %1312 = vmatmul.mubr.bf16.vlgmr.msra.gmra.mxu1 %v5054_v12  ;;  %v7359_v12 = vld [vmem:[%s11346_s1 + $0x124] ss:$16 sps:$4 sm:$0xff]  }
 0x183   :  { %1339 = vmatpush1.bf16.msra.mxu0 %v7063_v62  ;;  %1380 = vmatpush1.bf16.msra.mxu1 %v7069_v36 }
 0x184   :  { %v874_v18 = vpop.f32.mrf.mxu0  ;;  %v915_v19 = vpop.f32.mrf.mxu1  ;;  %1340 = vmatprep.subr.bf16.mxu0 %v7075_v50  ;;  %1381 = vmatprep.subr.bf16.mxu1 %v7176_v20 }
 0x185   :  { %v920_v21 = vmax.f32 %v872_v16, %v874_v18  ;;  %v921_v22 = vmax.f32 %v913_v17, %v915_v19  ;;  %5061 = vmatprep.mubr.msk.bf16.mxu0 %vm528_vm0, %v5060_v15  ;;  %5062 = vmatprep.mubr.msk.bf16.mxu1 %vm528_vm0, %v5060_v15  ;;  %v7365_v15 = vld [vmem:[%s11346_s1 + $0x12c] ss:$16 sps:$4 sm:$0xff]   ;;  %v5059_v16 = vcombine.low %v7157_v13, %v7157_v13 }
 0x186   :  { %v876_v23 = vpop.f32.mrf.mxu0  ;;  %v917_v24 = vpop.f32.mrf.mxu1  ;;  %v7377_v17 = vld [vmem:[%s11347_s0 + $0x48] sm:$0xff] }
 0x187   :  { %v922_v25 = vmax.f32 %v920_v21, %v921_v22  ;;  %1341 = vmatpush1.bf16.msra.mxu0 %v7084_v0  ;;  %1382 = vmatpush1.bf16.msra.mxu1 %v7090_v5 }
 0x188   :  { %v877_v26 = vpop.f32.mrf.mxu0  ;;  %v918_v27 = vpop.f32.mrf.mxu1  ;;  %1342 = vmatprep.subr.bf16.mxu0 %v7096_v58  ;;  %1383 = vmatprep.subr.bf16.mxu1 %v7102_v59 }
 0x189   :  { %v923_v28 = vadd.f32 %v6939_v55, %v922_v25  ;;  %v7431_v27 = vld [vmem:[%s11346_s1 + $0x120] ss:$16 sps:$4 sm:$0xff]  }
 0x18b   :  { %v924_v29 = vmax.f32 %v923_v28, 0.0  ;;  %1343 = vmatpush1.bf16.msra.mxu0 %v7109_v4  ;;  %1384 = vmatpush1.bf16.msra.mxu1 %v7115_v60  ;;  %v7437_v28 = vld [vmem:[%s11346_s1 + $0x128] ss:$16 sps:$4 sm:$0xff]  }
 0x18c   :  { %1344 = vmatprep.subr.bf16.mxu0 %v7191_v30  ;;  %1385 = vmatprep.subr.bf16.mxu1 %v7197_v31 }
 0x18d   :  { %v925_v32 = vpack.c.bf16 %v924_v29, %v924_v29  ;;  %v7443_v29 = vld [vmem:[%s11346_s1 + $0x104] ss:$16 sps:$4 sm:$0xff]  }
 0x18f   :  { %926 = vst [vmem:[#allocation2 + $0xc] sm:$0xf] %v925_v32  ;;  %1345 = vmatpush1.bf16.msra.mxu0 %v7203_v33  ;;  %1386 = vmatpush1.bf16.msra.mxu1 %v7209_v34  ;;  %v7449_v32 = vld [vmem:[%s11346_s1 + $0x10c] ss:$16 sps:$4 sm:$0xff]  }
 0x190   :  { %1346 = vmatprep.subr.bf16.mxu0 %v7215_v35  ;;  %1387 = vmatprep.subr.bf16.mxu1 %v7221_v37 }
 0x193   :  { %1347 = vmatpush1.bf16.msra.mxu0 %v7227_v38  ;;  %1388 = vmatpush1.bf16.msra.mxu1 %v7233_v40 }
 0x194   :  { %1348 = vmatprep.subr.bf16.mxu0 %v7239_v41  ;;  %1389 = vmatprep.subr.bf16.mxu1 %v7245_v42 }
 0x197   :  { %1349 = vmatpush1.bf16.msra.mxu0 %v7251_v43  ;;  %1390 = vmatpush1.bf16.msra.mxu1 %v7257_v7 }
 0x198   :  { %1350 = vmatprep.subr.bf16.mxu0 %v7263_v8  ;;  %1391 = vmatprep.subr.bf16.mxu1 %v7269_v10 }
 0x19b   :  { %1351 = vmatpush1.bf16.msra.mxu0 %v7275_v11  ;;  %1392 = vmatpush1.bf16.msra.mxu1 %v7281_v61 }
 0x19c   :  { %1352 = vmatprep.subr.bf16.mxu0 %v7287_v1  ;;  %1393 = vmatprep.subr.bf16.mxu1 %v7293_v39 }
 0x19f   :  { %1353 = vmatpush1.bf16.msra.mxu0 %v7299_v51  ;;  %1394 = vmatpush1.bf16.msra.mxu1 %v7305_v52 }
 0x1a0   :  { %1362 = vmatprep.subr.bf16.mxu0 %v7311_v53  ;;  %1403 = vmatprep.subr.bf16.mxu1 %v7317_v63 }
 0x1a3   :  { %1363 = vmatpush2.bf16.msra.mxu0 %v7323_v54  ;;  %1404 = vmatpush2.bf16.msra.mxu1 %v7329_v56 }
 0x1a4   :  { %1364 = vmatprep.subr.bf16.mxu0 %v7335_v57  ;;  %1405 = vmatprep.subr.bf16.mxu1 %v7341_v2 }
 0x1a7   :  { %1365 = vmatpush2.bf16.msra.mxu0 %v7347_v3  ;;  %1406 = vmatpush2.bf16.msra.mxu1 %v7353_v6 }
 0x1a8   :  { %1366 = vmatprep.subr.bf16.mxu0 %v7359_v12  ;;  %1407 = vmatprep.subr.bf16.mxu1 %v7365_v15 }
 0x1ab   :  { %1367 = vmatpush2.bf16.msra.mxu0 %v6674_v44  ;;  %1408 = vmatpush2.bf16.msra.mxu1 %v6679_v45  ;;  %v5065_v44 = vcombine.high %v7377_v17, %v7377_v17 }
 0x1ac   :  { %1368 = vmatprep.subr.bf16.mxu0 %v6686_v46  ;;  %1409 = vmatprep.subr.bf16.mxu1 %v6691_v47 }
 0x1af   :  { %1369 = vmatpush2.bf16.msra.mxu0 %v6698_v48  ;;  %1410 = vmatpush2.bf16.msra.mxu1 %v6703_v49 }
 0x1b0   :  { %1438 = vmatprep.subr.bf16.mxu0 %v7054_v9  ;;  %1479 = vmatprep.subr.bf16.mxu1 %v7165_v14 }
 0x1b2   :  { %v972_v45 = vpop.f32.mrf.mxu0  ;;  %v1013_v46 = vpop.f32.mrf.mxu1  ;;  %1371 = vmatmul.mubr.bf16.vlgmr.msra.gmra.mxu0 %v5059_v16  ;;  %1412 = vmatmul.mubr.bf16.vlgmr.msra.gmra.mxu1 %v5059_v16  ;;  %v5064_v16 = vcombine.low %v7377_v17, %v7377_v17 }
 0x1b3   :  { %1439 = vmatpush1.bf16.msra.mxu0 %v7063_v62  ;;  %1480 = vmatpush1.bf16.msra.mxu1 %v7069_v36 }
 0x1b4   :  { %v974_v47 = vpop.f32.mrf.mxu0  ;;  %v1015_v13 = vpop.f32.mrf.mxu1  ;;  %1440 = vmatprep.subr.bf16.mxu0 %v7075_v50  ;;  %1481 = vmatprep.subr.bf16.mxu1 %v7176_v20 }
 0x1b5   :  { %v1020_v48 = vmax.f32 %v972_v45, %v974_v47  ;;  %v1021_v49 = vmax.f32 %v1013_v46, %v1015_v13  ;;  %5066 = vmatprep.mubr.msk.bf16.mxu0 %vm528_vm0, %v5065_v44  ;;  %5067 = vmatprep.mubr.msk.bf16.mxu1 %vm528_vm0, %v5065_v44  ;;  %v7457_v44 = vld [vmem:[%s11347_s0 + $0x50] sm:$0xff]  ;;  %v7468_v46 = vld [vmem:[%s11346_s1 + $0x108] ss:$16 sps:$4 sm:$0xff]  }
 0x1b6   :  { %v976_v18 = vpop.f32.mrf.mxu0  ;;  %v1017_v19 = vpop.f32.mrf.mxu1  ;;  %v7462_v45 = vld [vmem:[%s11346_s1 + $0x100] ss:$16 sps:$4 sm:$0xff]   ;;  %v5070_v17 = vcombine.high %v7457_v44, %v7457_v44 }
 0x1b7   :  { %v1022_v21 = vmax.f32 %v1020_v48, %v1021_v49  ;;  %1441 = vmatpush1.bf16.msra.mxu0 %v7084_v0  ;;  %1482 = vmatpush1.bf16.msra.mxu1 %v7090_v5 }
 0x1b8   :  { %v977_v22 = vpop.f32.mrf.mxu0  ;;  %v1018_v23 = vpop.f32.mrf.mxu1  ;;  %1442 = vmatprep.subr.bf16.mxu0 %v7096_v58  ;;  %1483 = vmatprep.subr.bf16.mxu1 %v7102_v59 }
 0x1b9   :  { %v1023_v24 = vadd.f32 %v6939_v55, %v1022_v21 }
 0x1bb   :  { %v1024_v25 = vmax.f32 %v1023_v24, 0.0  ;;  %1443 = vmatpush1.bf16.msra.mxu0 %v7109_v4  ;;  %1484 = vmatpush1.bf16.msra.mxu1 %v7115_v60 }
 0x1bc   :  { %1444 = vmatprep.subr.bf16.mxu0 %v7191_v30  ;;  %1485 = vmatprep.subr.bf16.mxu1 %v7197_v31 }
 0x1bd   :  { %v1025_v26 = vpack.c.bf16 %v1024_v25, %v1024_v25 }
 0x1bf   :  { %1026 = vst [vmem:[#allocation2 + $0x10] sm:$0xf] %v1025_v26  ;;  %1445 = vmatpush1.bf16.msra.mxu0 %v7203_v33  ;;  %1486 = vmatpush1.bf16.msra.mxu1 %v7209_v34 }
 0x1c0   :  { %1446 = vmatprep.subr.bf16.mxu0 %v7215_v35  ;;  %1487 = vmatprep.subr.bf16.mxu1 %v7221_v37 }
 0x1c3   :  { %1447 = vmatpush1.bf16.msra.mxu0 %v7227_v38  ;;  %1488 = vmatpush1.bf16.msra.mxu1 %v7233_v40 }
 0x1c4   :  { %1448 = vmatprep.subr.bf16.mxu0 %v7239_v41  ;;  %1489 = vmatprep.subr.bf16.mxu1 %v7245_v42 }
 0x1c7   :  { %1449 = vmatpush1.bf16.msra.mxu0 %v7251_v43  ;;  %1490 = vmatpush1.bf16.msra.mxu1 %v7257_v7 }
 0x1c8   :  { %1450 = vmatprep.subr.bf16.mxu0 %v7263_v8  ;;  %1491 = vmatprep.subr.bf16.mxu1 %v7269_v10 }
 0x1cb   :  { %1451 = vmatpush1.bf16.msra.mxu0 %v7275_v11  ;;  %1492 = vmatpush1.bf16.msra.mxu1 %v7281_v61 }
 0x1cc   :  { %1452 = vmatprep.subr.bf16.mxu0 %v7287_v1  ;;  %1493 = vmatprep.subr.bf16.mxu1 %v7293_v39 }
 0x1cf   :  { %1453 = vmatpush1.bf16.msra.mxu0 %v7299_v51  ;;  %1494 = vmatpush1.bf16.msra.mxu1 %v7305_v52 }
 0x1d0   :  { %1462 = vmatprep.subr.bf16.mxu0 %v7311_v53  ;;  %1503 = vmatprep.subr.bf16.mxu1 %v7317_v63 }
 0x1d3   :  { %1463 = vmatpush2.bf16.msra.mxu0 %v7323_v54  ;;  %1504 = vmatpush2.bf16.msra.mxu1 %v7329_v56 }
 0x1d4   :  { %1464 = vmatprep.subr.bf16.mxu0 %v7335_v57  ;;  %1505 = vmatprep.subr.bf16.mxu1 %v7341_v2 }
 0x1d7   :  { %1465 = vmatpush2.bf16.msra.mxu0 %v7347_v3  ;;  %1506 = vmatpush2.bf16.msra.mxu1 %v7353_v6 }
 0x1d8   :  { %1466 = vmatprep.subr.bf16.mxu0 %v7359_v12  ;;  %1507 = vmatprep.subr.bf16.mxu1 %v7365_v15 }
 0x1db   :  { %1467 = vmatpush2.bf16.msra.mxu0 %v7431_v27  ;;  %1508 = vmatpush2.bf16.msra.mxu1 %v7437_v28 }
 0x1dc   :  { %1468 = vmatprep.subr.bf16.mxu0 %v7443_v29  ;;  %1509 = vmatprep.subr.bf16.mxu1 %v7449_v32 }
 0x1df   :  { %1469 = vmatpush2.bf16.msra.mxu0 %v7462_v45  ;;  %1510 = vmatpush2.bf16.msra.mxu1 %v7468_v46 }
 0x1e0   :  { %1538 = vmatprep.subr.bf16.mxu0 %v7054_v9  ;;  %1579 = vmatprep.subr.bf16.mxu1 %v7165_v14 }
 0x1e2   :  { %v1072_v47 = vpop.f32.mrf.mxu0  ;;  %v1113_v13 = vpop.f32.mrf.mxu1  ;;  %1471 = vmatmul.mubr.bf16.vlgmr.msra.gmra.mxu0 %v5064_v16  ;;  %1512 = vmatmul.mubr.bf16.vlgmr.msra.gmra.mxu1 %v5064_v16 }
 0x1e3   :  { %1539 = vmatpush1.bf16.msra.mxu0 %v7063_v62  ;;  %1580 = vmatpush1.bf16.msra.mxu1 %v7069_v36 }
 0x1e4   :  { %v1074_v48 = vpop.f32.mrf.mxu0  ;;  %v1115_v49 = vpop.f32.mrf.mxu1  ;;  %1540 = vmatprep.subr.bf16.mxu0 %v7075_v50  ;;  %1581 = vmatprep.subr.bf16.mxu1 %v7176_v20 }
 0x1e5   :  { %v1120_v18 = vmax.f32 %v1072_v47, %v1074_v48  ;;  %v1121_v19 = vmax.f32 %v1113_v13, %v1115_v49  ;;  %5071 = vmatprep.mubr.msk.bf16.mxu0 %vm528_vm0, %v5070_v17  ;;  %5072 = vmatprep.mubr.msk.bf16.mxu1 %vm528_vm0, %v5070_v17  ;;  %v5069_v47 = vcombine.low %v7457_v44, %v7457_v44  ;;  %v7527_v13 = vld [vmem:[%s11347_s0 + $0x58] sm:$0xff] }
 0x1e6   :  { %v1076_v21 = vpop.f32.mrf.mxu0  ;;  %v1117_v22 = vpop.f32.mrf.mxu1  ;;  %v5075_v48 = vcombine.high %v7527_v13, %v7527_v13 }
 0x1e7   :  { %v1122_v23 = vmax.f32 %v1120_v18, %v1121_v19  ;;  %1541 = vmatpush1.bf16.msra.mxu0 %v7084_v0  ;;  %1582 = vmatpush1.bf16.msra.mxu1 %v7090_v5 }
 0x1e8   :  { %v1077_v24 = vpop.f32.mrf.mxu0  ;;  %v1118_v25 = vpop.f32.mrf.mxu1  ;;  %1542 = vmatprep.subr.bf16.mxu0 %v7096_v58  ;;  %1583 = vmatprep.subr.bf16.mxu1 %v7102_v59 }
 0x1e9   :  { %v1123_v26 = vadd.f32 %v6939_v55, %v1122_v23 }
 0x1eb   :  { %v1124_v16 = vmax.f32 %v1123_v26, 0.0  ;;  %1543 = vmatpush1.bf16.msra.mxu0 %v7109_v4  ;;  %1584 = vmatpush1.bf16.msra.mxu1 %v7115_v60 }
 0x1ec   :  { %1544 = vmatprep.subr.bf16.mxu0 %v7191_v30  ;;  %1585 = vmatprep.subr.bf16.mxu1 %v7197_v31 }
 0x1ed   :  { %v1125_v17 = vpack.c.bf16 %v1124_v16, %v1124_v16 }
 0x1ef   :  { %1126 = vst [vmem:[#allocation2 + $0x14] sm:$0xf] %v1125_v17  ;;  %1545 = vmatpush1.bf16.msra.mxu0 %v7203_v33  ;;  %1586 = vmatpush1.bf16.msra.mxu1 %v7209_v34 }
 0x1f0   :  { %1546 = vmatprep.subr.bf16.mxu0 %v7215_v35  ;;  %1587 = vmatprep.subr.bf16.mxu1 %v7221_v37 }
 0x1f3   :  { %1547 = vmatpush1.bf16.msra.mxu0 %v7227_v38  ;;  %1588 = vmatpush1.bf16.msra.mxu1 %v7233_v40 }
 0x1f4   :  { %1548 = vmatprep.subr.bf16.mxu0 %v7239_v41  ;;  %1589 = vmatprep.subr.bf16.mxu1 %v7245_v42 }
 0x1f7   :  { %1549 = vmatpush1.bf16.msra.mxu0 %v7251_v43  ;;  %1590 = vmatpush1.bf16.msra.mxu1 %v7257_v7 }
 0x1f8   :  { %1550 = vmatprep.subr.bf16.mxu0 %v7263_v8  ;;  %1591 = vmatprep.subr.bf16.mxu1 %v7269_v10 }
 0x1fb   :  { %1551 = vmatpush1.bf16.msra.mxu0 %v7275_v11  ;;  %1592 = vmatpush1.bf16.msra.mxu1 %v7281_v61 }
 0x1fc   :  { %1552 = vmatprep.subr.bf16.mxu0 %v7287_v1  ;;  %1593 = vmatprep.subr.bf16.mxu1 %v7293_v39 }
 0x1ff   :  { %1553 = vmatpush1.bf16.msra.mxu0 %v7299_v51  ;;  %1594 = vmatpush1.bf16.msra.mxu1 %v7305_v52 }
 0x200   :  { %1562 = vmatprep.subr.bf16.mxu0 %v7311_v53  ;;  %1603 = vmatprep.subr.bf16.mxu1 %v7317_v63 }
 0x203   :  { %1563 = vmatpush2.bf16.msra.mxu0 %v7323_v54  ;;  %1604 = vmatpush2.bf16.msra.mxu1 %v7329_v56 }
 0x204   :  { %1564 = vmatprep.subr.bf16.mxu0 %v7335_v57  ;;  %1605 = vmatprep.subr.bf16.mxu1 %v7341_v2 }
 0x207   :  { %1565 = vmatpush2.bf16.msra.mxu0 %v7347_v3  ;;  %1606 = vmatpush2.bf16.msra.mxu1 %v7353_v6 }
 0x208   :  { %1566 = vmatprep.subr.bf16.mxu0 %v7359_v12  ;;  %1607 = vmatprep.subr.bf16.mxu1 %v7365_v15 }
 0x20b   :  { %1567 = vmatpush2.bf16.msra.mxu0 %v7431_v27  ;;  %1608 = vmatpush2.bf16.msra.mxu1 %v7437_v28 }
 0x20c   :  { %1568 = vmatprep.subr.bf16.mxu0 %v7443_v29  ;;  %1609 = vmatprep.subr.bf16.mxu1 %v7449_v32 }
 0x20f   :  { %1569 = vmatpush2.bf16.msra.mxu0 %v7462_v45  ;;  %1610 = vmatpush2.bf16.msra.mxu1 %v7468_v46 }
 0x210   :  { %1638 = vmatprep.subr.bf16.mxu0 %v7054_v9  ;;  %1679 = vmatprep.subr.bf16.mxu1 %v7165_v14 }
 0x212   :  { %v1172_v49 = vpop.f32.mrf.mxu0  ;;  %v1213_v18 = vpop.f32.mrf.mxu1  ;;  %1571 = vmatmul.mubr.bf16.vlgmr.msra.gmra.mxu0 %v5069_v47  ;;  %1612 = vmatmul.mubr.bf16.vlgmr.msra.gmra.mxu1 %v5069_v47 }
 0x213   :  { %1639 = vmatpush1.bf16.msra.mxu0 %v7063_v62  ;;  %1680 = vmatpush1.bf16.msra.mxu1 %v7069_v36 }
 0x214   :  { %v1174_v44 = vpop.f32.mrf.mxu0  ;;  %v1215_v19 = vpop.f32.mrf.mxu1  ;;  %1640 = vmatprep.subr.bf16.mxu0 %v7075_v50  ;;  %1681 = vmatprep.subr.bf16.mxu1 %v7176_v20 }
 0x215   :  { %v1220_v21 = vmax.f32 %v1172_v49, %v1174_v44  ;;  %v1221_v22 = vmax.f32 %v1213_v18, %v1215_v19  ;;  %5076 = vmatprep.mubr.msk.bf16.mxu0 %vm528_vm0, %v5075_v48  ;;  %5077 = vmatprep.mubr.msk.bf16.mxu1 %vm528_vm0, %v5075_v48  ;;  %v7587_v49 = vld [vmem:[%s11347_s0 + $0x60] sm:$0xff] }
 0x216   :  { %v1176_v23 = vpop.f32.mrf.mxu0  ;;  %v1217_v24 = vpop.f32.mrf.mxu1  ;;  %v5080_v18 = vcombine.high %v7587_v49, %v7587_v49 }
 0x217   :  { %v1222_v25 = vmax.f32 %v1220_v21, %v1221_v22  ;;  %1641 = vmatpush1.bf16.msra.mxu0 %v7084_v0  ;;  %1682 = vmatpush1.bf16.msra.mxu1 %v7090_v5 }
 0x218   :  { %v1177_v26 = vpop.f32.mrf.mxu0  ;;  %v1218_v16 = vpop.f32.mrf.mxu1  ;;  %1642 = vmatprep.subr.bf16.mxu0 %v7096_v58  ;;  %1683 = vmatprep.subr.bf16.mxu1 %v7102_v59 }
 0x219   :  { %v1223_v17 = vadd.f32 %v6939_v55, %v1222_v25  ;;  %v5074_v55 = vcombine.low %v7527_v13, %v7527_v13  ;;  %v6035_v16 = vld [vmem:[%s11346_s1 + $0x44] ss:$16 sps:$4 sm:$0xff]  }
 0x21b   :  { %v1224_v47 = vmax.f32 %v1223_v17, 0.0  ;;  %1643 = vmatpush1.bf16.msra.mxu0 %v7109_v4  ;;  %1684 = vmatpush1.bf16.msra.mxu1 %v7115_v60  ;;  %v6036_v17 = vld [vmem:[%s11346_s1 + $0x4c] ss:$16 sps:$4 sm:$0xff]  }
 0x21c   :  { %1644 = vmatprep.subr.bf16.mxu0 %v7191_v30  ;;  %1685 = vmatprep.subr.bf16.mxu1 %v7197_v31 }
 0x21d   :  { %v1225_v48 = vpack.c.bf16 %v1224_v47, %v1224_v47  ;;  %v6037_v47 = vld [vmem:[%s11346_s1 + $0x40] ss:$16 sps:$4 sm:$0xff]  }
 0x21f   :  { %1226 = vst [vmem:[#allocation2 + $0x18] sm:$0xf] %v1225_v48  ;;  %1645 = vmatpush1.bf16.msra.mxu0 %v7203_v33  ;;  %1686 = vmatpush1.bf16.msra.mxu1 %v7209_v34  ;;  %v6038_v48 = vld [vmem:[%s11346_s1 + $0x48] ss:$16 sps:$4 sm:$0xff]  }
 0x220   :  { %1646 = vmatprep.subr.bf16.mxu0 %v7215_v35  ;;  %1687 = vmatprep.subr.bf16.mxu1 %v7221_v37 }
 0x223   :  { %1647 = vmatpush1.bf16.msra.mxu0 %v7227_v38  ;;  %1688 = vmatpush1.bf16.msra.mxu1 %v7233_v40 }
 0x224   :  { %1648 = vmatprep.subr.bf16.mxu0 %v7239_v41  ;;  %1689 = vmatprep.subr.bf16.mxu1 %v7245_v42 }
 0x227   :  { %1649 = vmatpush1.bf16.msra.mxu0 %v7251_v43  ;;  %1690 = vmatpush1.bf16.msra.mxu1 %v7257_v7 }
 0x228   :  { %1650 = vmatprep.subr.bf16.mxu0 %v7263_v8  ;;  %1691 = vmatprep.subr.bf16.mxu1 %v7269_v10 }
 0x22b   :  { %1651 = vmatpush1.bf16.msra.mxu0 %v7275_v11  ;;  %1692 = vmatpush1.bf16.msra.mxu1 %v7281_v61 }
 0x22c   :  { %1652 = vmatprep.subr.bf16.mxu0 %v7287_v1  ;;  %1693 = vmatprep.subr.bf16.mxu1 %v7293_v39 }
 0x22f   :  { %1653 = vmatpush1.bf16.msra.mxu0 %v7299_v51  ;;  %1694 = vmatpush1.bf16.msra.mxu1 %v7305_v52 }
 0x230   :  { %1662 = vmatprep.subr.bf16.mxu0 %v7311_v53  ;;  %1703 = vmatprep.subr.bf16.mxu1 %v7317_v63 }
 0x233   :  { %1663 = vmatpush2.bf16.msra.mxu0 %v7323_v54  ;;  %1704 = vmatpush2.bf16.msra.mxu1 %v7329_v56 }
 0x234   :  { %1664 = vmatprep.subr.bf16.mxu0 %v7335_v57  ;;  %1705 = vmatprep.subr.bf16.mxu1 %v7341_v2 }
 0x237   :  { %1665 = vmatpush2.bf16.msra.mxu0 %v7347_v3  ;;  %1706 = vmatpush2.bf16.msra.mxu1 %v7353_v6 }
 0x238   :  { %1666 = vmatprep.subr.bf16.mxu0 %v7359_v12  ;;  %1707 = vmatprep.subr.bf16.mxu1 %v7365_v15 }
 0x23b   :  { %1667 = vmatpush2.bf16.msra.mxu0 %v7431_v27  ;;  %1708 = vmatpush2.bf16.msra.mxu1 %v7437_v28 }
 0x23c   :  { %1668 = vmatprep.subr.bf16.mxu0 %v7443_v29  ;;  %1709 = vmatprep.subr.bf16.mxu1 %v7449_v32 }
 0x23f   :  { %1669 = vmatpush2.bf16.msra.mxu0 %v7462_v45  ;;  %1710 = vmatpush2.bf16.msra.mxu1 %v7468_v46 }
 0x240   :  { %1738 = vmatprep.subr.bf16.mxu0 %v7054_v9  ;;  %1779 = vmatprep.subr.bf16.mxu1 %v7165_v14 }
 0x242   :  { %v1272_v44 = vpop.f32.mrf.mxu0  ;;  %v1313_v19 = vpop.f32.mrf.mxu1  ;;  %1671 = vmatmul.mubr.bf16.vlgmr.msra.gmra.mxu0 %v5074_v55  ;;  %1712 = vmatmul.mubr.bf16.vlgmr.msra.gmra.mxu1 %v5074_v55  ;;  %v6039_v55 = vld [vmem:[%s11346_s1 + $0x24] ss:$16 sps:$4 sm:$0xff]  }
 0x243   :  { %1739 = vmatpush1.bf16.msra.mxu0 %v7063_v62  ;;  %1780 = vmatpush1.bf16.msra.mxu1 %v7069_v36 }
 0x244   :  { %v1274_v13 = vpop.f32.mrf.mxu0  ;;  %v1315_v21 = vpop.f32.mrf.mxu1  ;;  %1740 = vmatprep.subr.bf16.mxu0 %v7075_v50  ;;  %1781 = vmatprep.subr.bf16.mxu1 %v7176_v20  ;;  %v7608_v50 = vld [vmem:[%s11348_s2] ss:$0 sm:$0xff] }
 0x245   :  { %v1320_v9 = vmax.f32 %v1272_v44, %v1274_v13  ;;  %v1321_v22 = vmax.f32 %v1313_v19, %v1315_v21  ;;  %5081 = vmatprep.mubr.msk.bf16.mxu0 %vm528_vm0, %v5080_v18  ;;  %5082 = vmatprep.mubr.msk.bf16.mxu1 %vm528_vm0, %v5080_v18  ;;  %v6041_v18 = vld [vmem:[%s11346_s1 + $0x20] ss:$16 sps:$4 sm:$0xff]   ;;  %v6042_v44 = vld [vmem:[%s11346_s1 + $0x28] ss:$16 sps:$4 sm:$0xff]   ;;  %v6043_v19 = vld [vmem:[%s11346_s1 + $0x4] ss:$16 sps:$4 sm:$0xff]  }
 0x246   :  { %v1276_v23 = vpop.f32.mrf.mxu0  ;;  %v1317_v24 = vpop.f32.mrf.mxu1  ;;  %v6044_v13 = vld [vmem:[%s11346_s1 + $0xc] ss:$16 sps:$4 sm:$0xff]   ;;  %v6045_v21 = vld [vmem:[%s11346_s1] ss:$16 sps:$4 sm:$0xff]  }
 0x247   :  { %v1322_v25 = vmax.f32 %v1320_v9, %v1321_v22  ;;  %1741 = vmatpush1.bf16.msra.mxu0 %v7084_v0  ;;  %1782 = vmatpush1.bf16.msra.mxu1 %v7090_v5  ;;  %v7650_v5 = vld [vmem:[%s11347_s0 + $0x68] sm:$0xff]  ;;  %v6047_v22 = vld [vmem:[%s11346_s1 + $0x164] ss:$16 sps:$4 sm:$0xff]   ;;  %v6049_v24 = vld [vmem:[%s11346_s1 + $0x160] ss:$16 sps:$4 sm:$0xff]  }
 0x248   :  { %v1277_v62 = vpop.f32.mrf.mxu0  ;;  %v1318_v36 = vpop.f32.mrf.mxu1  ;;  %1742 = vmatprep.subr.bf16.mxu0 %v7096_v58  ;;  %1783 = vmatprep.subr.bf16.mxu1 %v7102_v59  ;;  %v5079_v58 = vcombine.low %v7587_v49, %v7587_v49  ;;  %v6016_v59 = vld [vmem:[%s11346_s1 + $0xe4] ss:$16 sps:$4 sm:$0xff]   ;;  %v6040_v49 = vld [vmem:[%s11346_s1 + $0x2c] ss:$16 sps:$4 sm:$0xff]   ;;  %v6046_v9 = vld [vmem:[%s11346_s1 + $0x8] ss:$16 sps:$4 sm:$0xff]  }
 0x249   :  { %v1323_v20 = vadd.f32 %v7608_v50, %v1322_v25  ;;  %v6048_v23 = vld [vmem:[%s11346_s1 + $0x16c] ss:$16 sps:$4 sm:$0xff]   ;;  %v6050_v25 = vld [vmem:[%s11346_s1 + $0x168] ss:$16 sps:$4 sm:$0xff]   ;;  %v6051_v62 = vld [vmem:[%s11346_s1 + $0x144] ss:$16 sps:$4 sm:$0xff]  }
 0x24a   :  { %v6052_v36 = vld [vmem:[%s11346_s1 + $0x14c] ss:$16 sps:$4 sm:$0xff]  }
 0x24b   :  { %v1324_v26 = vmax.f32 %v1323_v20, 0.0  ;;  %1743 = vmatpush1.bf16.msra.mxu0 %v7109_v4  ;;  %1784 = vmatpush1.bf16.msra.mxu1 %v7115_v60  ;;  %v5085_v4 = vcombine.high %v7650_v5, %v7650_v5  ;;  %v6053_v20 = vld [vmem:[%s11346_s1 + $0x140] ss:$16 sps:$4 sm:$0xff]  }
 0x24c   :  { %1744 = vmatprep.subr.bf16.mxu0 %v7191_v30  ;;  %1785 = vmatprep.subr.bf16.mxu1 %v7197_v31  ;;  %v6017_v31 = vld [vmem:[%s11346_s1 + $0xe0] ss:$16 sps:$4 sm:$0xff]  }
 0x24d   :  { %v1325_v0 = vpack.c.bf16 %v1324_v26, %v1324_v26  ;;  %v6054_v26 = vld [vmem:[%s11346_s1 + $0x148] ss:$16 sps:$4 sm:$0xff]  }
 0x24f   :  { %1326 = vst [vmem:[#allocation2 + $0x1c] sm:$0xf] %v1325_v0  ;;  %1745 = vmatpush1.bf16.msra.mxu0 %v7203_v33  ;;  %1786 = vmatpush1.bf16.msra.mxu1 %v7209_v34  ;;  %v6018_v33 = vld [vmem:[%s11346_s1 + $0xe8] ss:$16 sps:$4 sm:$0xff]   ;;  %v6055_v0 = vld [vmem:[%s11346_s1 + $0x124] ss:$16 sps:$4 sm:$0xff]  }
 0x250   :  { %1746 = vmatprep.subr.bf16.mxu0 %v7215_v35  ;;  %1787 = vmatprep.subr.bf16.mxu1 %v7221_v37  ;;  %v6020_v37 = vld [vmem:[%s11346_s1 + $0xcc] ss:$16 sps:$4 sm:$0xff]  }
 0x253   :  { %1747 = vmatpush1.bf16.msra.mxu0 %v7227_v38  ;;  %1788 = vmatpush1.bf16.msra.mxu1 %v7233_v40 }
 0x254   :  { %1748 = vmatprep.subr.bf16.mxu0 %v7239_v41  ;;  %1789 = vmatprep.subr.bf16.mxu1 %v7245_v42 }
 0x257   :  { %1749 = vmatpush1.bf16.msra.mxu0 %v7251_v43  ;;  %1790 = vmatpush1.bf16.msra.mxu1 %v7257_v7  ;;  %v6021_v7 = vld [vmem:[%s11346_s1 + $0xc0] ss:$16 sps:$4 sm:$0xff]  }
 0x258   :  { %1750 = vmatprep.subr.bf16.mxu0 %v7263_v8  ;;  %1791 = vmatprep.subr.bf16.mxu1 %v7269_v10  ;;  %v6022_v8 = vld [vmem:[%s11346_s1 + $0xc8] ss:$16 sps:$4 sm:$0xff]  }
 0x25b   :  { %1751 = vmatpush1.bf16.msra.mxu0 %v7275_v11  ;;  %1792 = vmatpush1.bf16.msra.mxu1 %v7281_v61  ;;  %v6023_v61 = vld [vmem:[%s11346_s1 + $0xa4] ss:$16 sps:$4 sm:$0xff]  }
 0x25c   :  { %1752 = vmatprep.subr.bf16.mxu0 %v7287_v1  ;;  %1793 = vmatprep.subr.bf16.mxu1 %v7293_v39  ;;  %v6024_v1 = vld [vmem:[%s11346_s1 + $0xac] ss:$16 sps:$4 sm:$0xff]  }
 0x25f   :  { %1753 = vmatpush1.bf16.msra.mxu0 %v7299_v51  ;;  %1794 = vmatpush1.bf16.msra.mxu1 %v7305_v52  ;;  %v6025_v52 = vld [vmem:[%s11346_s1 + $0xa0] ss:$16 sps:$4 sm:$0xff]  }
 0x260   :  { %1762 = vmatprep.subr.bf16.mxu0 %v7311_v53  ;;  %1803 = vmatprep.subr.bf16.mxu1 %v7317_v63  ;;  %v6026_v53 = vld [vmem:[%s11346_s1 + $0xa8] ss:$16 sps:$4 sm:$0xff]   ;;  %v6027_v63 = vld [vmem:[%s11346_s1 + $0x84] ss:$16 sps:$4 sm:$0xff]  }
 0x263   :  { %1763 = vmatpush2.bf16.msra.mxu0 %v7323_v54  ;;  %1804 = vmatpush2.bf16.msra.mxu1 %v7329_v56  ;;  %v6028_v54 = vld [vmem:[%s11346_s1 + $0x8c] ss:$16 sps:$4 sm:$0xff]  }
 0x264   :  { %1764 = vmatprep.subr.bf16.mxu0 %v7335_v57  ;;  %1805 = vmatprep.subr.bf16.mxu1 %v7341_v2  ;;  %v6029_v57 = vld [vmem:[%s11346_s1 + $0x80] ss:$16 sps:$4 sm:$0xff]   ;;  %v6030_v2 = vld [vmem:[%s11346_s1 + $0x88] ss:$16 sps:$4 sm:$0xff]  }
 0x267   :  { %1765 = vmatpush2.bf16.msra.mxu0 %v7347_v3  ;;  %1806 = vmatpush2.bf16.msra.mxu1 %v7353_v6  ;;  %v6031_v3 = vld [vmem:[%s11346_s1 + $0x64] ss:$16 sps:$4 sm:$0xff]   ;;  %v6032_v6 = vld [vmem:[%s11346_s1 + $0x6c] ss:$16 sps:$4 sm:$0xff]  }
 0x268   :  { %1766 = vmatprep.subr.bf16.mxu0 %v7359_v12  ;;  %1807 = vmatprep.subr.bf16.mxu1 %v7365_v15  ;;  %v6033_v12 = vld [vmem:[%s11346_s1 + $0x60] ss:$16 sps:$4 sm:$0xff]   ;;  %v6034_v15 = vld [vmem:[%s11346_s1 + $0x68] ss:$16 sps:$4 sm:$0xff]  }
 0x26b   :  { %1767 = vmatpush2.bf16.msra.mxu0 %v7431_v27  ;;  %1808 = vmatpush2.bf16.msra.mxu1 %v7437_v28 }
 0x26c   :  { %1768 = vmatprep.subr.bf16.mxu0 %v7443_v29  ;;  %1809 = vmatprep.subr.bf16.mxu1 %v7449_v32 }
 0x26f   :  { %1769 = vmatpush2.bf16.msra.mxu0 %v7462_v45  ;;  %1810 = vmatpush2.bf16.msra.mxu1 %v7468_v46 }
 0x270   :  { %1838 = vmatprep.subr.bf16.mxu0 %v6016_v59  ;;  %1879 = vmatprep.subr.bf16.mxu1 %v7165_v14  ;;  %v6019_v14 = vld [vmem:[%s11346_s1 + $0xc4] ss:$16 sps:$4 sm:$0xff]  }
 0x271   :  { %v7792_v59 = vld [vmem:[%s11349_s3 + $0xe4] ss:$16 sps:$4 sm:$0xff]  }
 0x272   :  { %v1372_v60 = vpop.f32.mrf.mxu0  ;;  %v1413_v30 = vpop.f32.mrf.mxu1  ;;  %1771 = vmatmul.mubr.bf16.vlgmr.msra.gmra.mxu0 %v5079_v58  ;;  %1812 = vmatmul.mubr.bf16.vlgmr.msra.gmra.mxu1 %v5079_v58  ;;  %v6056_v58 = vld [vmem:[%s11346_s1 + $0x12c] ss:$16 sps:$4 sm:$0xff]  }
 0x273   :  { %1839 = vmatpush1.bf16.msra.mxu0 %v6017_v31  ;;  %1880 = vmatpush1.bf16.msra.mxu1 %v6018_v33 }
 0x274   :  { %v1374_v34 = vpop.f32.mrf.mxu0  ;;  %v1415_v35 = vpop.f32.mrf.mxu1  ;;  %1840 = vmatprep.subr.bf16.mxu0 %v6019_v14  ;;  %1881 = vmatprep.subr.bf16.mxu1 %v6020_v37  ;;  %v7849_v37 = vld [vmem:[%s11349_s3 + $0x2c0] ss:$16 sps:$4 sm:$0xff]  }
 0x275   :  { %v1420_v38 = vmax.f32 %v1372_v60, %v1374_v34  ;;  %v1421_v40 = vmax.f32 %v1413_v30, %v1415_v35  ;;  %5086 = vmatprep.mubr.msk.bf16.mxu0 %vm528_vm0, %v5085_v4  ;;  %5087 = vmatprep.mubr.msk.bf16.mxu1 %vm528_vm0, %v5085_v4  ;;  %v7797_v4 = vld [vmem:[%s11349_s3 + $0x2e4] ss:$16 sps:$4 sm:$0xff]   ;;  %v5084_v60 = vcombine.low %v7650_v5, %v7650_v5  ;;  %v7842_v34 = vld [vmem:[%s11349_s3 + $0xc0] ss:$16 sps:$4 sm:$0xff]  }
 0x276   :  { %v1376_v41 = vpop.f32.mrf.mxu0  ;;  %v1417_v42 = vpop.f32.mrf.mxu1  ;;  %v7831_v5 = vld [vmem:[%s11349_s3 + $0x2c4] ss:$16 sps:$4 sm:$0xff]  }
 0x277   :  { %v1422_v43 = vmax.f32 %v1420_v38, %v1421_v40  ;;  %1841 = vmatpush1.bf16.msra.mxu0 %v6021_v7  ;;  %1882 = vmatpush1.bf16.msra.mxu1 %v6022_v8  ;;  %v7854_v38 = vld [vmem:[%s11349_s3 + $0xa4] ss:$16 sps:$4 sm:$0xff]  }
 0x278   :  { %v1377_v10 = vpop.f32.mrf.mxu0  ;;  %v1418_v11 = vpop.f32.mrf.mxu1  ;;  %1842 = vmatprep.subr.bf16.mxu0 %v6023_v61  ;;  %1883 = vmatprep.subr.bf16.mxu1 %v6024_v1  ;;  %v7861_v42 = vld [vmem:[%s11349_s3 + $0x2a4] ss:$16 sps:$4 sm:$0xff]   ;;  %v7874_v1 = vld [vmem:[%s11349_s3 + $0x2a0] ss:$16 sps:$4 sm:$0xff]  }
 0x279   :  { %v1423_v39 = vadd.f32 %v7608_v50, %v1422_v43  ;;  %v7867_v10 = vld [vmem:[%s11349_s3 + $0xa0] ss:$16 sps:$4 sm:$0xff]  }
 0x27b   :  { %v1424_v51 = vmax.f32 %v1423_v39, 0.0  ;;  %1843 = vmatpush1.bf16.msra.mxu0 %v6025_v52  ;;  %1884 = vmatpush1.bf16.msra.mxu1 %v6026_v53  ;;  %v7879_v39 = vld [vmem:[%s11349_s3 + $0x84] ss:$16 sps:$4 sm:$0xff]  }
 0x27c   :  { %1844 = vmatprep.subr.bf16.mxu0 %v6027_v63  ;;  %1885 = vmatprep.subr.bf16.mxu1 %v6028_v54  ;;  %v7886_v52 = vld [vmem:[%s11349_s3 + $0x284] ss:$16 sps:$4 sm:$0xff]   ;;  %v7892_v63 = vld [vmem:[%s11349_s3 + $0x80] ss:$16 sps:$4 sm:$0xff]  }
 0x27d   :  { %v1425_v56 = vpack.c.bf16 %v1424_v51, %v1424_v51  ;;  %v7899_v54 = vld [vmem:[%s11349_s3 + $0x280] ss:$16 sps:$4 sm:$0xff]  }
 0x27f   :  { %1426 = vst [vmem:[#allocation2 + $0x20] sm:$0xf] %v1425_v56  ;;  %1845 = vmatpush1.bf16.msra.mxu0 %v6029_v57  ;;  %1886 = vmatpush1.bf16.msra.mxu1 %v6030_v2  ;;  %v7904_v56 = vld [vmem:[%s11349_s3 + $0x64] ss:$16 sps:$4 sm:$0xff]  }
 0x280   :  { %1846 = vmatprep.subr.bf16.mxu0 %v6031_v3  ;;  %1887 = vmatprep.subr.bf16.mxu1 %v6032_v6  ;;  %v7910_v2 = vld [vmem:[%s11349_s3 + $0x264] ss:$16 sps:$4 sm:$0xff]   ;;  %v7916_v3 = vld [vmem:[%s11349_s3 + $0x60] ss:$16 sps:$4 sm:$0xff]  }
 0x281   :  { %v7923_v6 = vld [vmem:[%s11349_s3 + $0x260] ss:$16 sps:$4 sm:$0xff]  }
 0x283   :  { %1847 = vmatpush1.bf16.msra.mxu0 %v6033_v12  ;;  %1888 = vmatpush1.bf16.msra.mxu1 %v6034_v15  ;;  %v7928_v12 = vld [vmem:[%s11349_s3 + $0x44] ss:$16 sps:$4 sm:$0xff]  }
 0x284   :  { %1848 = vmatprep.subr.bf16.mxu0 %v6035_v16  ;;  %1889 = vmatprep.subr.bf16.mxu1 %v6036_v17  ;;  %v7934_v15 = vld [vmem:[%s11349_s3 + $0x244] ss:$16 sps:$4 sm:$0xff]   ;;  %v7940_v16 = vld [vmem:[%s11349_s3 + $0x40] ss:$16 sps:$4 sm:$0xff]  }
 0x285   :  { %v7947_v17 = vld [vmem:[%s11349_s3 + $0x240] ss:$16 sps:$4 sm:$0xff]  }
 0x287   :  { %1849 = vmatpush1.bf16.msra.mxu0 %v6037_v47  ;;  %1890 = vmatpush1.bf16.msra.mxu1 %v6038_v48  ;;  %v7952_v47 = vld [vmem:[%s11349_s3 + $0x24] ss:$16 sps:$4 sm:$0xff]  }
 0x288   :  { %1850 = vmatprep.subr.bf16.mxu0 %v6039_v55  ;;  %1891 = vmatprep.subr.bf16.mxu1 %v6040_v49  ;;  %v7958_v48 = vld [vmem:[%s11349_s3 + $0x224] ss:$16 sps:$4 sm:$0xff]   ;;  %v7964_v55 = vld [vmem:[%s11349_s3 + $0x20] ss:$16 sps:$4 sm:$0xff]  }
 0x289   :  { %v7971_v49 = vld [vmem:[%s11349_s3 + $0x220] ss:$16 sps:$4 sm:$0xff]  }
 0x28b   :  { %1851 = vmatpush1.bf16.msra.mxu0 %v6041_v18  ;;  %1892 = vmatpush1.bf16.msra.mxu1 %v6042_v44  ;;  %v7976_v18 = vld [vmem:[%s11349_s3 + $0x4] ss:$16 sps:$4 sm:$0xff]  }
 0x28c   :  { %1852 = vmatprep.subr.bf16.mxu0 %v6043_v19  ;;  %1893 = vmatprep.subr.bf16.mxu1 %v6044_v13  ;;  %v7982_v44 = vld [vmem:[%s11349_s3 + $0x204] ss:$16 sps:$4 sm:$0xff]   ;;  %v7988_v19 = vld [vmem:[%s11349_s3] ss:$16 sps:$4 sm:$0xff]  }
 0x28d   :  { %v7995_v13 = vld [vmem:[%s11349_s3 + $0x200] ss:$16 sps:$4 sm:$0xff]  }
 0x28f   :  { %1853 = vmatpush1.bf16.msra.mxu0 %v6045_v21  ;;  %1894 = vmatpush1.bf16.msra.mxu1 %v6046_v9  ;;  %v8000_v21 = vld [vmem:[%s11349_s3 + $0x1e4] ss:$16 sps:$4 sm:$0xff]  }
 0x290   :  { %1862 = vmatprep.subr.bf16.mxu0 %v6047_v22  ;;  %1903 = vmatprep.subr.bf16.mxu1 %v6048_v23  ;;  %v8006_v9 = vld [vmem:[%s11349_s3 + $0x3e4] ss:$16 sps:$4 sm:$0xff]   ;;  %v8012_v22 = vld [vmem:[%s11349_s3 + $0x1e0] ss:$16 sps:$4 sm:$0xff]  }
 0x291   :  { %v8019_v23 = vld [vmem:[%s11349_s3 + $0x3e0] ss:$16 sps:$4 sm:$0xff]  }
 0x293   :  { %1863 = vmatpush2.bf16.msra.mxu0 %v6049_v24  ;;  %1904 = vmatpush2.bf16.msra.mxu1 %v6050_v25  ;;  %v8024_v24 = vld [vmem:[%s11349_s3 + $0x1c4] ss:$16 sps:$4 sm:$0xff]  }
 0x294   :  { %1864 = vmatprep.subr.bf16.mxu0 %v6051_v62  ;;  %1905 = vmatprep.subr.bf16.mxu1 %v6052_v36  ;;  %v8030_v25 = vld [vmem:[%s11349_s3 + $0x3c4] ss:$16 sps:$4 sm:$0xff]   ;;  %v8036_v62 = vld [vmem:[%s11349_s3 + $0x1c0] ss:$16 sps:$4 sm:$0xff]  }
 0x295   :  { %v8043_v36 = vld [vmem:[%s11349_s3 + $0x3c0] ss:$16 sps:$4 sm:$0xff]  }
 0x297   :  { %1865 = vmatpush2.bf16.msra.mxu0 %v6053_v20  ;;  %1906 = vmatpush2.bf16.msra.mxu1 %v6054_v26  ;;  %v8048_v20 = vld [vmem:[%s11349_s3 + $0x1a4] ss:$16 sps:$4 sm:$0xff]  }
 0x298   :  { %1866 = vmatprep.subr.bf16.mxu0 %v6055_v0  ;;  %1907 = vmatprep.subr.bf16.mxu1 %v6056_v58  ;;  %v8054_v26 = vld [vmem:[%s11349_s3 + $0x3a4] ss:$16 sps:$4 sm:$0xff]   ;;  %v8060_v0 = vld [vmem:[%s11349_s3 + $0x1a0] ss:$16 sps:$4 sm:$0xff]  }
 0x299   :  { %v8067_v58 = vld [vmem:[%s11349_s3 + $0x3a0] ss:$16 sps:$4 sm:$0xff]  }
 0x29a   :  { %11691 = vst [vmem:[#allocation4_spill] sm:$0xff] %v8067_v58 }
 0x29b   :  { %1867 = vmatpush2.bf16.msra.mxu0 %v7431_v27  ;;  %1908 = vmatpush2.bf16.msra.mxu1 %v7437_v28  ;;  %v7801_v27 = vld [vmem:[#allocation2] sm:$0xff] }
 0x29c   :  { %1868 = vmatprep.subr.bf16.mxu0 %v7443_v29  ;;  %1909 = vmatprep.subr.bf16.mxu1 %v7449_v32  ;;  %v7808_v28 = vld [vmem:[%s11349_s3 + $0xe0] ss:$16 sps:$4 sm:$0xff]   ;;  %v7810_v29 = vld [vmem:[#allocation2 + $0x8] sm:$0xff] }
 0x29d   :  { %v7817_v32 = vld [vmem:[%s11349_s3 + $0x2e0] ss:$16 sps:$4 sm:$0xff]   ;;  %v7835_v33 = vcombine.high %v7810_v29, %v7810_v29 }
 0x29f   :  { %1869 = vmatpush2.bf16.msra.mxu0 %v7462_v45  ;;  %1910 = vmatpush2.bf16.msra.mxu1 %v7468_v46  ;;  %v7821_v45 = vcombine.high %v7801_v27, %v7801_v27  ;;  %v7826_v46 = vld [vmem:[%s11349_s3 + $0xc4] ss:$16 sps:$4 sm:$0xff]  }
 0x2a0   :  { %2911 = vmatprep.subr.bf16.mxu0 %v7792_v59  ;;  %2952 = vmatprep.subr.bf16.mxu1 %v7797_v4 }
 0x2a2   :  { %v1472_v30 = vpop.f32.mrf.mxu0  ;;  %v1513_v31 = vpop.f32.mrf.mxu1  ;;  %1871 = vmatmul.mubr.bf16.vlgmr.msra.gmra.mxu0 %v5084_v60  ;;  %1912 = vmatmul.mubr.bf16.vlgmr.msra.gmra.mxu1 %v5084_v60  ;;  %v8072_v60 = vld [vmem:[%s11349_s3 + $0x184] ss:$16 sps:$4 sm:$0xff]  }
 0x2a3   :  { %2912 = vmatpush1.bf16.msra.mxu0 %v7808_v28  ;;  %2943 = vmatprep.mubr.bf16.mxu0 %v7821_v45  ;;  %11692 = vst [vmem:[#allocation5_spill] sm:$0xff] %v8072_v60 }
 0x2a4   :  { %2953 = vmatpush1.bf16.msra.mxu1 %v7817_v32  ;;  %2984 = vmatprep.mubr.bf16.mxu1 %v7835_v33  ;;  %v1474_v35 = vpop.f32.mrf.mxu0  ;;  %v1515_v14 = vpop.f32.mrf.mxu1 }
 0x2a5   :  { %v1520_v40 = vmax.f32 %v1472_v30, %v1474_v35  ;;  %v1521_v41 = vmax.f32 %v1513_v31, %v1515_v14  ;;  %2913 = vmatprep.subr.bf16.mxu0 %v7826_v46  ;;  %2954 = vmatprep.subr.bf16.mxu1 %v7831_v5  ;;  %v8078_v30 = vld [vmem:[%s11349_s3 + $0x384] ss:$16 sps:$4 sm:$0xff]   ;;  %v8084_v31 = vld [vmem:[%s11349_s3 + $0x180] ss:$16 sps:$4 sm:$0xff]  }
 0x2a6   :  { %v1476_v43 = vpop.f32.mrf.mxu0  ;;  %v1517_v7 = vpop.f32.mrf.mxu1  ;;  %11693 = vst [vmem:[#allocation6_spill] sm:$0xff] %v8078_v30  ;;  %11694 = vst [vmem:[#allocation7_spill] sm:$0xff] %v8084_v31  ;;  %v8091_v35 = vld [vmem:[%s11349_s3 + $0x380] ss:$16 sps:$4 sm:$0xff]   ;;  %v8096_v14 = vld [vmem:[%s11349_s3 + $0x164] ss:$16 sps:$4 sm:$0xff]  }
 0x2a7   :  { %v1522_v8 = vmax.f32 %v1520_v40, %v1521_v41  ;;  %2914 = vmatpush1.bf16.msra.mxu0 %v7842_v34  ;;  %11695 = vst [vmem:[#allocation8_spill] sm:$0xff] %v8091_v35  ;;  %11696 = vst [vmem:[#allocation9_spill] sm:$0xff] %v8096_v14  ;;  %v8102_v40 = vld [vmem:[%s11349_s3 + $0x364] ss:$16 sps:$4 sm:$0xff]   ;;  %v8108_v41 = vld [vmem:[%s11349_s3 + $0x160] ss:$16 sps:$4 sm:$0xff]  }
 0x2a8   :  { %2955 = vmatpush1.bf16.msra.mxu1 %v7849_v37  ;;  %v1477_v11 = vpop.f32.mrf.mxu0  ;;  %v1518_v61 = vpop.f32.mrf.mxu1  ;;  %2915 = vmatprep.subr.bf16.mxu0 %v7854_v38  ;;  %11697 = vst [vmem:[#allocation10_spill] sm:$0xff] %v8102_v40  ;;  %11698 = vst [vmem:[#allocation11_spill] sm:$0xff] %v8108_v41  ;;  %v8115_v43 = vld [vmem:[%s11349_s3 + $0x360] ss:$16 sps:$4 sm:$0xff]   ;;  %v8120_v7 = vld [vmem:[%s11349_s3 + $0x144] ss:$16 sps:$4 sm:$0xff]  }
 0x2a9   :  { %v1523_v51 = vadd.f32 %v7608_v50, %v1522_v8  ;;  %2956 = vmatprep.subr.bf16.mxu1 %v7861_v42  ;;  %11699 = vst [vmem:[#allocation12_spill] sm:$0xff] %v8115_v43  ;;  %11700 = vst [vmem:[#allocation13_spill] sm:$0xff] %v8120_v7  ;;  %v8126_v8 = vld [vmem:[%s11349_s3 + $0x344] ss:$16 sps:$4 sm:$0xff]  }
 0x2aa   :  { %11701 = vst [vmem:[#allocation14_spill] sm:$0xff] %v8126_v8 }
 0x2ab   :  { %v1524_v53 = vmax.f32 %v1523_v51, 0.0  ;;  %2916 = vmatpush1.bf16.msra.mxu0 %v7867_v10  ;;  %v8132_v51 = vld [vmem:[%s11349_s3 + $0x140] ss:$16 sps:$4 sm:$0xff]  }
 0x2ac   :  { %2957 = vmatpush1.bf16.msra.mxu1 %v7874_v1  ;;  %2917 = vmatprep.subr.bf16.mxu0 %v7879_v39  ;;  %11702 = vst [vmem:[#allocation15_spill] sm:$0xff] %v8132_v51 }
 0x2ad   :  { %v1525_v57 = vpack.c.bf16 %v1524_v53, %v1524_v53  ;;  %2958 = vmatprep.subr.bf16.mxu1 %v7886_v52 }
 0x2af   :  { %1526 = vst [vmem:[#allocation2 + $0x24] sm:$0xf] %v1525_v57  ;;  %2918 = vmatpush1.bf16.msra.mxu0 %v7892_v63 }
 0x2b0   :  { %2959 = vmatpush1.bf16.msra.mxu1 %v7899_v54  ;;  %2919 = vmatprep.subr.bf16.mxu0 %v7904_v56 }
 0x2b1   :  { %2960 = vmatprep.subr.bf16.mxu1 %v7910_v2 }
 0x2b3   :  { %2920 = vmatpush1.bf16.msra.mxu0 %v7916_v3 }
 0x2b4   :  { %2961 = vmatpush1.bf16.msra.mxu1 %v7923_v6  ;;  %2921 = vmatprep.subr.bf16.mxu0 %v7928_v12 }
 0x2b5   :  { %2962 = vmatprep.subr.bf16.mxu1 %v7934_v15 }
 0x2b7   :  { %2922 = vmatpush1.bf16.msra.mxu0 %v7940_v16 }
 0x2b8   :  { %2963 = vmatpush1.bf16.msra.mxu1 %v7947_v17  ;;  %2923 = vmatprep.subr.bf16.mxu0 %v7952_v47 }
 0x2b9   :  { %2964 = vmatprep.subr.bf16.mxu1 %v7958_v48 }
 0x2bb   :  { %2924 = vmatpush1.bf16.msra.mxu0 %v7964_v55 }
 0x2bc   :  { %2965 = vmatpush1.bf16.msra.mxu1 %v7971_v49  ;;  %2925 = vmatprep.subr.bf16.mxu0 %v7976_v18 }
 0x2bd   :  { %2966 = vmatprep.subr.bf16.mxu1 %v7982_v44 }
 0x2bf   :  { %2926 = vmatpush1.bf16.msra.mxu0 %v7988_v19 }
 0x2c0   :  { %2967 = vmatpush1.bf16.msra.mxu1 %v7995_v13  ;;  %2927 = vmatprep.subr.bf16.mxu0 %v8000_v21 }
 0x2c1   :  { %2968 = vmatprep.subr.bf16.mxu1 %v8006_v9 }
 0x2c3   :  { %2928 = vmatpush2.bf16.msra.mxu0 %v8012_v22 }
 0x2c4   :  { %2969 = vmatpush2.bf16.msra.mxu1 %v8019_v23  ;;  %2929 = vmatprep.subr.bf16.mxu0 %v8024_v24 }
 0x2c5   :  { %2970 = vmatprep.subr.bf16.mxu1 %v8030_v25 }
 0x2c7   :  { %2930 = vmatpush2.bf16.msra.mxu0 %v8036_v62 }
 0x2c8   :  { %2971 = vmatpush2.bf16.msra.mxu1 %v8043_v36  ;;  %2931 = vmatprep.subr.bf16.mxu0 %v8048_v20 }
 0x2c9   :  { %2972 = vmatprep.subr.bf16.mxu1 %v8054_v26 }
 0x2cb   :  { %2932 = vmatpush2.bf16.msra.mxu0 %v8060_v0 }
 0x2cc   :  { %2973 = vmatpush2.bf16.msra.mxu1 %v8067_v58  ;;  %2933 = vmatprep.subr.bf16.mxu0 %v8072_v60  ;;  %v8156_v60 = vld [vmem:[%s11349_s3 + $0x120] ss:$16 sps:$4 sm:$0xff]  }
 0x2cd   :  { %2974 = vmatprep.subr.bf16.mxu1 %v8078_v30  ;;  %11706 = vst [vmem:[#allocation19_spill] sm:$0xff] %v8156_v60  ;;  %v8463_v58 = vld [vmem:[%s11349_s3 + $0x5a0] ss:$16 sps:$4 sm:$0xff]  }
 0x2ce   :  { %11751 = vst [vmem:[#allocation64_spill] sm:$0xff] %v8463_v58 }
 0x2cf   :  { %2934 = vmatpush2.bf16.msra.mxu0 %v8084_v31 }
 0x2d0   :  { %2975 = vmatpush2.bf16.msra.mxu1 %v8091_v35  ;;  %2935 = vmatprep.subr.bf16.mxu0 %v8096_v14 }
 0x2d1   :  { %2976 = vmatprep.subr.bf16.mxu1 %v8102_v40  ;;  %v8139_v40 = vld [vmem:[%s11349_s3 + $0x340] ss:$16 sps:$4 sm:$0xff]  }
 0x2d2   :  { %v1572_v11 = vpop.f32.mrf.mxu0  ;;  %v1613_v61 = vpop.f32.mrf.mxu1  ;;  %11703 = vst [vmem:[#allocation16_spill] sm:$0xff] %v8139_v40 }
 0x2d3   :  { %2936 = vmatpush2.bf16.msra.mxu0 %v8108_v41  ;;  %v8144_v41 = vld [vmem:[%s11349_s3 + $0x124] ss:$16 sps:$4 sm:$0xff]  }
 0x2d4   :  { %2977 = vmatpush2.bf16.msra.mxu1 %v8115_v43  ;;  %v1574_v53 = vpop.f32.mrf.mxu0  ;;  %v1615_v57 = vpop.f32.mrf.mxu1  ;;  %2937 = vmatprep.subr.bf16.mxu0 %v8120_v7  ;;  %11704 = vst [vmem:[#allocation17_spill] sm:$0xff] %v8144_v41  ;;  %v8150_v43 = vld [vmem:[%s11349_s3 + $0x324] ss:$16 sps:$4 sm:$0xff]  }
 0x2d5   :  { %v1620_v14 = vmax.f32 %v1572_v11, %v1574_v53  ;;  %v1621_v35 = vmax.f32 %v1613_v61, %v1615_v57  ;;  %2978 = vmatprep.subr.bf16.mxu1 %v8126_v8  ;;  %11705 = vst [vmem:[#allocation18_spill] sm:$0xff] %v8150_v43  ;;  %v8163_v53 = vld [vmem:[%s11349_s3 + $0x320] ss:$16 sps:$4 sm:$0xff]  }
 0x2d6   :  { %v1576_v7 = vpop.f32.mrf.mxu0  ;;  %v1617_v31 = vpop.f32.mrf.mxu1  ;;  %11707 = vst [vmem:[#allocation20_spill] sm:$0xff] %v8163_v53  ;;  %v8181_v57 = vld [vmem:[%s11349_s3 + $0x100] ss:$16 sps:$4 sm:$0xff]  }
 0x2d7   :  { %v1622_v30 = vmax.f32 %v1620_v14, %v1621_v35  ;;  %2938 = vmatpush2.bf16.msra.mxu0 %v8132_v51  ;;  %v8168_v31 = vld [vmem:[%s11349_s3 + $0x104] ss:$16 sps:$4 sm:$0xff]   ;;  %11710 = vst [vmem:[#allocation23_spill] sm:$0xff] %v8181_v57 }
 0x2d8   :  { %2979 = vmatpush2.bf16.msra.mxu1 %v8139_v40  ;;  %v1577_v11 = vpop.f32.mrf.mxu0  ;;  %v1618_v61 = vpop.f32.mrf.mxu1  ;;  %2939 = vmatprep.subr.bf16.mxu0 %v8144_v41  ;;  %11708 = vst [vmem:[#allocation21_spill] sm:$0xff] %v8168_v31  ;;  %v8175_v14 = vld [vmem:[%s11349_s3 + $0x304] ss:$16 sps:$4 sm:$0xff]  }
 0x2d9   :  { %v1623_v35 = vadd.f32 %v7608_v50, %v1622_v30  ;;  %2980 = vmatprep.subr.bf16.mxu1 %v8150_v43  ;;  %11709 = vst [vmem:[#allocation22_spill] sm:$0xff] %v8175_v14  ;;  %v8188_v30 = vld [vmem:[%s11349_s3 + $0x300] ss:$16 sps:$4 sm:$0xff]   ;;  %v8193_v11 = vld [vmem:[%s11349_s3 + $0x4e4] ss:$16 sps:$4 sm:$0xff]  }
 0x2da   :  { %11711 = vst [vmem:[#allocation24_spill] sm:$0xff] %v8188_v30  ;;  %11712 = vst [vmem:[#allocation25_spill] sm:$0xff] %v8193_v11 }
 0x2db   :  { %v1624_v7 = vmax.f32 %v1623_v35, 0.0  ;;  %2940 = vmatpush2.bf16.msra.mxu0 %v8156_v60  ;;  %v8199_v35 = vld [vmem:[%s11349_s3 + $0xec] ss:$16 sps:$4 sm:$0xff]  }
 0x2dc   :  { %2981 = vmatpush2.bf16.msra.mxu1 %v8163_v53  ;;  %2941 = vmatprep.subr.bf16.mxu0 %v8168_v31  ;;  %11713 = vst [vmem:[#allocation26_spill] sm:$0xff] %v8199_v35  ;;  %v8205_v31 = vld [vmem:[%s11349_s3 + $0x4e0] ss:$16 sps:$4 sm:$0xff]  }
 0x2dd   :  { %v1625_v61 = vpack.c.bf16 %v1624_v7, %v1624_v7  ;;  %2982 = vmatprep.subr.bf16.mxu1 %v8175_v14  ;;  %11714 = vst [vmem:[#allocation27_spill] sm:$0xff] %v8205_v31  ;;  %v8207_v53 = vld [vmem:[#allocation2 + $0x10] sm:$0xff]  ;;  %v8211_v7 = vcombine.low %v7801_v27, %v7801_v27 }
 0x2de   :  { %v8228_v27 = vld [vmem:[%s11349_s3 + $0x4c4] ss:$16 sps:$4 sm:$0xff]  }
 0x2df   :  { %1626 = vst [vmem:[#allocation2 + $0x28] sm:$0xf] %v1625_v61  ;;  %2942 = vmatpush2.bf16.msra.mxu0 %v8181_v57  ;;  %v8218_v61 = vld [vmem:[%s11349_s3 + $0xe8] ss:$16 sps:$4 sm:$0xff]   ;;  %v8222_v57 = vcombine.low %v7810_v29, %v7810_v29  ;;  %11716 = vst [vmem:[#allocation29_spill] sm:$0xff] %v8228_v27 }
 0x2e0   :  { %2983 = vmatpush2.bf16.msra.mxu1 %v8188_v30  ;;  %2993 = vmatprep.subr.bf16.mxu0 %v8193_v11  ;;  %11715 = vst [vmem:[#allocation28_spill] sm:$0xff] %v8218_v61  ;;  %v8233_v11 = vcombine.high %v8207_v53, %v8207_v53  ;;  %v8238_v30 = vld [vmem:[%s11349_s3 + $0xcc] ss:$16 sps:$4 sm:$0xff]   ;;  %v8245_v29 = vld [vmem:[%s11349_s3 + $0x4c0] ss:$16 sps:$4 sm:$0xff]  }
 0x2e1   :  { %3034 = vmatprep.subr.bf16.mxu1 %v8199_v35  ;;  %11717 = vst [vmem:[#allocation30_spill] sm:$0xff] %v8238_v30  ;;  %11718 = vst [vmem:[#allocation31_spill] sm:$0xff] %v8245_v29  ;;  %v8252_v35 = vld [vmem:[%s11349_s3 + $0xc8] ss:$16 sps:$4 sm:$0xff]   ;;  %v8257_v14 = vld [vmem:[%s11349_s3 + $0x4a4] ss:$16 sps:$4 sm:$0xff]  }
 0x2e2   :  { %2944 = vmatmul.mubr.bf16.vlgmr.msra.gmra.mxu0 %v8211_v7  ;;  %11719 = vst [vmem:[#allocation32_spill] sm:$0xff] %v8252_v35  ;;  %11720 = vst [vmem:[#allocation33_spill] sm:$0xff] %v8257_v14 }
 0x2e3   :  { %2985 = vmatmul.mubr.bf16.vlgmr.msra.gmra.mxu1 %v8222_v57  ;;  %2994 = vmatpush1.bf16.msra.mxu0 %v8205_v31  ;;  %v8264_v31 = vld [vmem:[%s11349_s3 + $0xac] ss:$16 sps:$4 sm:$0xff]  }
 0x2e4   :  { %3025 = vmatprep.mubr.bf16.mxu0 %v8233_v11  ;;  %3035 = vmatpush1.bf16.msra.mxu1 %v8218_v61  ;;  %11721 = vst [vmem:[#allocation34_spill] sm:$0xff] %v8264_v31  ;;  %v8271_v61 = vld [vmem:[%s11349_s3 + $0x4a0] ss:$16 sps:$4 sm:$0xff]  }
 0x2e5   :  { %3066 = vmatprep.mubr.bf16.mxu1 %v7821_v45  ;;  %2995 = vmatprep.subr.bf16.mxu0 %v8228_v27  ;;  %11722 = vst [vmem:[#allocation35_spill] sm:$0xff] %v8271_v61  ;;  %v8278_v45 = vld [vmem:[%s11349_s3 + $0xa8] ss:$16 sps:$4 sm:$0xff]  }
 0x2e6   :  { %3036 = vmatprep.subr.bf16.mxu1 %v8238_v30  ;;  %11723 = vst [vmem:[#allocation36_spill] sm:$0xff] %v8278_v45  ;;  %v8283_v30 = vld [vmem:[%s11349_s3 + $0x484] ss:$16 sps:$4 sm:$0xff]  }
 0x2e7   :  { %2996 = vmatpush1.bf16.msra.mxu0 %v8245_v29  ;;  %11724 = vst [vmem:[#allocation37_spill] sm:$0xff] %v8283_v30  ;;  %v8289_v29 = vld [vmem:[%s11349_s3 + $0x8c] ss:$16 sps:$4 sm:$0xff]  }
 0x2e8   :  { %3037 = vmatpush1.bf16.msra.mxu1 %v8252_v35  ;;  %2997 = vmatprep.subr.bf16.mxu0 %v8257_v14  ;;  %11725 = vst [vmem:[#allocation38_spill] sm:$0xff] %v8289_v29  ;;  %v8295_v14 = vld [vmem:[%s11349_s3 + $0x480] ss:$16 sps:$4 sm:$0xff]   ;;  %v8307_v35 = vld [vmem:[%s11349_s3 + $0x464] ss:$16 sps:$4 sm:$0xff]  }
 0x2e9   :  { %3038 = vmatprep.subr.bf16.mxu1 %v8264_v31  ;;  %11726 = vst [vmem:[#allocation39_spill] sm:$0xff] %v8295_v14  ;;  %v8302_v31 = vld [vmem:[%s11349_s3 + $0x88] ss:$16 sps:$4 sm:$0xff]   ;;  %11728 = vst [vmem:[#allocation41_spill] sm:$0xff] %v8307_v35 }
 0x2ea   :  { %11727 = vst [vmem:[#allocation40_spill] sm:$0xff] %v8302_v31 }
 0x2eb   :  { %2998 = vmatpush1.bf16.msra.mxu0 %v8271_v61  ;;  %v8313_v61 = vld [vmem:[%s11349_s3 + $0x6c] ss:$16 sps:$4 sm:$0xff]  }
 0x2ec   :  { %3039 = vmatpush1.bf16.msra.mxu1 %v8278_v45  ;;  %2999 = vmatprep.subr.bf16.mxu0 %v8283_v30  ;;  %11729 = vst [vmem:[#allocation42_spill] sm:$0xff] %v8313_v61  ;;  %v8319_v30 = vld [vmem:[%s11349_s3 + $0x460] ss:$16 sps:$4 sm:$0xff]   ;;  %v8331_v45 = vld [vmem:[%s11349_s3 + $0x444] ss:$16 sps:$4 sm:$0xff]  }
 0x2ed   :  { %3040 = vmatprep.subr.bf16.mxu1 %v8289_v29  ;;  %11730 = vst [vmem:[#allocation43_spill] sm:$0xff] %v8319_v30  ;;  %v8326_v29 = vld [vmem:[%s11349_s3 + $0x68] ss:$16 sps:$4 sm:$0xff]   ;;  %11732 = vst [vmem:[#allocation45_spill] sm:$0xff] %v8331_v45 }
 0x2ee   :  { %11731 = vst [vmem:[#allocation44_spill] sm:$0xff] %v8326_v29 }
 0x2ef   :  { %3000 = vmatpush1.bf16.msra.mxu0 %v8295_v14  ;;  %v8337_v14 = vld [vmem:[%s11349_s3 + $0x4c] ss:$16 sps:$4 sm:$0xff]  }
 0x2f0   :  { %3041 = vmatpush1.bf16.msra.mxu1 %v8302_v31  ;;  %3001 = vmatprep.subr.bf16.mxu0 %v8307_v35  ;;  %11733 = vst [vmem:[#allocation46_spill] sm:$0xff] %v8337_v14  ;;  %v8343_v35 = vld [vmem:[%s11349_s3 + $0x440] ss:$16 sps:$4 sm:$0xff]   ;;  %v8355_v31 = vld [vmem:[%s11349_s3 + $0x424] ss:$16 sps:$4 sm:$0xff]  }
 0x2f1   :  { %3042 = vmatprep.subr.bf16.mxu1 %v8313_v61  ;;  %11734 = vst [vmem:[#allocation47_spill] sm:$0xff] %v8343_v35  ;;  %v8350_v61 = vld [vmem:[%s11349_s3 + $0x48] ss:$16 sps:$4 sm:$0xff]   ;;  %11736 = vst [vmem:[#allocation49_spill] sm:$0xff] %v8355_v31 }
 0x2f2   :  { %11735 = vst [vmem:[#allocation48_spill] sm:$0xff] %v8350_v61 }
 0x2f3   :  { %3002 = vmatpush1.bf16.msra.mxu0 %v8319_v30  ;;  %v8361_v30 = vld [vmem:[%s11349_s3 + $0x2c] ss:$16 sps:$4 sm:$0xff]  }
 0x2f4   :  { %3043 = vmatpush1.bf16.msra.mxu1 %v8326_v29  ;;  %3003 = vmatprep.subr.bf16.mxu0 %v8331_v45  ;;  %11737 = vst [vmem:[#allocation50_spill] sm:$0xff] %v8361_v30  ;;  %v8367_v45 = vld [vmem:[%s11349_s3 + $0x420] ss:$16 sps:$4 sm:$0xff]   ;;  %v8379_v29 = vld [vmem:[%s11349_s3 + $0x404] ss:$16 sps:$4 sm:$0xff]  }
 0x2f5   :  { %3044 = vmatprep.subr.bf16.mxu1 %v8337_v14  ;;  %11738 = vst [vmem:[#allocation51_spill] sm:$0xff] %v8367_v45  ;;  %v8374_v14 = vld [vmem:[%s11349_s3 + $0x28] ss:$16 sps:$4 sm:$0xff]   ;;  %11740 = vst [vmem:[#allocation53_spill] sm:$0xff] %v8379_v29 }
 0x2f6   :  { %11739 = vst [vmem:[#allocation52_spill] sm:$0xff] %v8374_v14 }
 0x2f7   :  { %3004 = vmatpush1.bf16.msra.mxu0 %v8343_v35  ;;  %v8385_v35 = vld [vmem:[%s11349_s3 + $0xc] ss:$16 sps:$4 sm:$0xff]  }
 0x2f8   :  { %3045 = vmatpush1.bf16.msra.mxu1 %v8350_v61  ;;  %3005 = vmatprep.subr.bf16.mxu0 %v8355_v31  ;;  %11741 = vst [vmem:[#allocation54_spill] sm:$0xff] %v8385_v35  ;;  %v8391_v31 = vld [vmem:[%s11349_s3 + $0x400] ss:$16 sps:$4 sm:$0xff]   ;;  %v8403_v61 = vld [vmem:[%s11349_s3 + $0x5e4] ss:$16 sps:$4 sm:$0xff]  }
 0x2f9   :  { %3046 = vmatprep.subr.bf16.mxu1 %v8361_v30  ;;  %11742 = vst [vmem:[#allocation55_spill] sm:$0xff] %v8391_v31  ;;  %v8398_v30 = vld [vmem:[%s11349_s3 + $0x8] ss:$16 sps:$4 sm:$0xff]   ;;  %11744 = vst [vmem:[#allocation57_spill] sm:$0xff] %v8403_v61 }
 0x2fa   :  { %11743 = vst [vmem:[#allocation56_spill] sm:$0xff] %v8398_v30 }
 0x2fb   :  { %3006 = vmatpush1.bf16.msra.mxu0 %v8367_v45  ;;  %v8409_v45 = vld [vmem:[%s11349_s3 + $0x1ec] ss:$16 sps:$4 sm:$0xff]  }
 0x2fc   :  { %3047 = vmatpush1.bf16.msra.mxu1 %v8374_v14  ;;  %3007 = vmatprep.subr.bf16.mxu0 %v8379_v29  ;;  %11745 = vst [vmem:[#allocation58_spill] sm:$0xff] %v8409_v45  ;;  %v8415_v29 = vld [vmem:[%s11349_s3 + $0x5e0] ss:$16 sps:$4 sm:$0xff]   ;;  %v8427_v14 = vld [vmem:[%s11349_s3 + $0x5c4] ss:$16 sps:$4 sm:$0xff]  }
 0x2fd   :  { %3048 = vmatprep.subr.bf16.mxu1 %v8385_v35  ;;  %11746 = vst [vmem:[#allocation59_spill] sm:$0xff] %v8415_v29  ;;  %v8422_v35 = vld [vmem:[%s11349_s3 + $0x1e8] ss:$16 sps:$4 sm:$0xff]   ;;  %11748 = vst [vmem:[#allocation61_spill] sm:$0xff] %v8427_v14 }
 0x2fe   :  { %11747 = vst [vmem:[#allocation60_spill] sm:$0xff] %v8422_v35 }
 0x2ff   :  { %3008 = vmatpush1.bf16.msra.mxu0 %v8391_v31  ;;  %v8433_v31 = vld [vmem:[%s11349_s3 + $0x1cc] ss:$16 sps:$4 sm:$0xff]  }
 0x300   :  { %3049 = vmatpush1.bf16.msra.mxu1 %v8398_v30  ;;  %3009 = vmatprep.subr.bf16.mxu0 %v8403_v61  ;;  %v8439_v61 = vld [vmem:[%s11349_s3 + $0x5c0] ss:$16 sps:$4 sm:$0xff]  }
 0x301   :  { %3050 = vmatprep.subr.bf16.mxu1 %v8409_v45  ;;  %v8446_v45 = vld [vmem:[%s11349_s3 + $0x1c8] ss:$16 sps:$4 sm:$0xff]  }
 0x302   :  { %v1672_v30 = vpop.f32.mrf.mxu0  ;;  %v1713_v27 = vpop.f32.mrf.mxu1 }
 0x303   :  { %3010 = vmatpush2.bf16.msra.mxu0 %v8415_v29  ;;  %v8451_v29 = vld [vmem:[%s11349_s3 + $0x5a4] ss:$16 sps:$4 sm:$0xff]  }
 0x304   :  { %3051 = vmatpush2.bf16.msra.mxu1 %v8422_v35  ;;  %v1674_v60 = vpop.f32.mrf.mxu0  ;;  %v1715_v43 = vpop.f32.mrf.mxu1  ;;  %3011 = vmatprep.subr.bf16.mxu0 %v8427_v14  ;;  %11749 = vst [vmem:[#allocation62_spill] sm:$0xff] %v8451_v29  ;;  %v8457_v35 = vld [vmem:[%s11349_s3 + $0x1ac] ss:$16 sps:$4 sm:$0xff]  }
 0x305   :  { %v1720_v41 = vmax.f32 %v1672_v30, %v1674_v60  ;;  %v1721_v40 = vmax.f32 %v1713_v27, %v1715_v43  ;;  %3052 = vmatprep.subr.bf16.mxu1 %v8433_v31  ;;  %11750 = vst [vmem:[#allocation63_spill] sm:$0xff] %v8457_v35  ;;  %v8470_v30 = vld [vmem:[%s11349_s3 + $0x1a8] ss:$16 sps:$4 sm:$0xff]   ;;  %v8488_v27 = vld [vmem:[%s11349_s3 + $0x580] ss:$16 sps:$4 sm:$0xff]  }
 0x306   :  { %v1676_v14 = vpop.f32.mrf.mxu0  ;;  %v1717_v51 = vpop.f32.mrf.mxu1  ;;  %11752 = vst [vmem:[#allocation65_spill] sm:$0xff] %v8470_v30  ;;  %11755 = vst [vmem:[#allocation68_spill] sm:$0xff] %v8488_v27 }
 0x307   :  { %v1722_v8 = vmax.f32 %v1720_v41, %v1721_v40  ;;  %3012 = vmatpush2.bf16.msra.mxu0 %v8439_v61  ;;  %v8475_v40 = vld [vmem:[%s11349_s3 + $0x584] ss:$16 sps:$4 sm:$0xff]   ;;  %v8482_v51 = vld [vmem:[%s11349_s3 + $0x18c] ss:$16 sps:$4 sm:$0xff]  }
 0x308   :  { %3053 = vmatpush2.bf16.msra.mxu1 %v8446_v45  ;;  %v1677_v60 = vpop.f32.mrf.mxu0  ;;  %v1718_v43 = vpop.f32.mrf.mxu1  ;;  %3013 = vmatprep.subr.bf16.mxu0 %v8451_v29  ;;  %11753 = vst [vmem:[#allocation66_spill] sm:$0xff] %v8475_v40  ;;  %11754 = vst [vmem:[#allocation67_spill] sm:$0xff] %v8482_v51  ;;  %v8760_v29 = vld [vmem:[%s11349_s3 + $0x228] ss:$16 sps:$4 sm:$0xff]  }
 0x309   :  { %v1723_v41 = vadd.f32 %v7608_v50, %v1722_v8  ;;  %3054 = vmatprep.subr.bf16.mxu1 %v8457_v35  ;;  %v8495_v50 = vld [vmem:[%s11349_s3 + $0x188] ss:$16 sps:$4 sm:$0xff]   ;;  %v8500_v8 = vld [vmem:[%s11349_s3 + $0x564] ss:$16 sps:$4 sm:$0xff]   ;;  %v8506_v43 = vld [vmem:[%s11349_s3 + $0x16c] ss:$16 sps:$4 sm:$0xff]  }
 0x30a   :  { %11756 = vst [vmem:[#allocation69_spill] sm:$0xff] %v8495_v50  ;;  %11757 = vst [vmem:[#allocation70_spill] sm:$0xff] %v8500_v8 }
 0x30b   :  { %v1724_v14 = vmax.f32 %v1723_v41, 0.0  ;;  %3014 = vmatpush2.bf16.msra.mxu0 %v8463_v58  ;;  %11758 = vst [vmem:[#allocation71_spill] sm:$0xff] %v8506_v43  ;;  %v8512_v41 = vld [vmem:[%s11349_s3 + $0x560] ss:$16 sps:$4 sm:$0xff]   ;;  %11794 = vst [vmem:[#allocation107_spill] sm:$0xff] %v8760_v29 }
 0x30c   :  { %3055 = vmatpush2.bf16.msra.mxu1 %v8470_v30  ;;  %3015 = vmatprep.subr.bf16.mxu0 %v8475_v40  ;;  %11759 = vst [vmem:[#allocation72_spill] sm:$0xff] %v8512_v41 }
 0x30d   :  { %v1725_v60 = vpack.c.bf16 %v1724_v14, %v1724_v14  ;;  %3056 = vmatprep.subr.bf16.mxu1 %v8482_v51  ;;  %v8519_v14 = vld [vmem:[%s11349_s3 + $0x168] ss:$16 sps:$4 sm:$0xff]  }
 0x30e   :  { %11760 = vst [vmem:[#allocation73_spill] sm:$0xff] %v8519_v14 }
 0x30f   :  { %1726 = vst [vmem:[#allocation2 + $0x2c] sm:$0xf] %v1725_v60  ;;  %3016 = vmatpush2.bf16.msra.mxu0 %v8488_v27  ;;  %v8524_v60 = vld [vmem:[%s11349_s3 + $0x544] ss:$16 sps:$4 sm:$0xff]   ;;  %v8530_v27 = vld [vmem:[%s11349_s3 + $0x14c] ss:$16 sps:$4 sm:$0xff]  }
 0x310   :  { %3057 = vmatpush2.bf16.msra.mxu1 %v8495_v50  ;;  %3017 = vmatprep.subr.bf16.mxu0 %v8500_v8  ;;  %11761 = vst [vmem:[#allocation74_spill] sm:$0xff] %v8524_v60  ;;  %11762 = vst [vmem:[#allocation75_spill] sm:$0xff] %v8530_v27  ;;  %v8536_v8 = vld [vmem:[%s11349_s3 + $0x540] ss:$16 sps:$4 sm:$0xff]   ;;  %v8548_v50 = vld [vmem:[%s11349_s3 + $0x524] ss:$16 sps:$4 sm:$0xff]  }
 0x311   :  { %3058 = vmatprep.subr.bf16.mxu1 %v8506_v43  ;;  %11763 = vst [vmem:[#allocation76_spill] sm:$0xff] %v8536_v8  ;;  %v8543_v43 = vld [vmem:[%s11349_s3 + $0x148] ss:$16 sps:$4 sm:$0xff]   ;;  %11765 = vst [vmem:[#allocation78_spill] sm:$0xff] %v8548_v50 }
 0x312   :  { %11764 = vst [vmem:[#allocation77_spill] sm:$0xff] %v8543_v43 }
 0x313   :  { %3018 = vmatpush2.bf16.msra.mxu0 %v8512_v41  ;;  %v8554_v41 = vld [vmem:[%s11349_s3 + $0x12c] ss:$16 sps:$4 sm:$0xff]  }
 0x314   :  { %3059 = vmatpush2.bf16.msra.mxu1 %v8519_v14  ;;  %3019 = vmatprep.subr.bf16.mxu0 %v8524_v60  ;;  %11766 = vst [vmem:[#allocation79_spill] sm:$0xff] %v8554_v41  ;;  %v8560_v60 = vld [vmem:[%s11349_s3 + $0x520] ss:$16 sps:$4 sm:$0xff]   ;;  %v8572_v14 = vld [vmem:[%s11349_s3 + $0x504] ss:$16 sps:$4 sm:$0xff]  }
 0x315   :  { %3060 = vmatprep.subr.bf16.mxu1 %v8530_v27  ;;  %11767 = vst [vmem:[#allocation80_spill] sm:$0xff] %v8560_v60  ;;  %v8567_v27 = vld [vmem:[%s11349_s3 + $0x128] ss:$16 sps:$4 sm:$0xff]   ;;  %11769 = vst [vmem:[#allocation82_spill] sm:$0xff] %v8572_v14 }
 0x316   :  { %11768 = vst [vmem:[#allocation81_spill] sm:$0xff] %v8567_v27 }
 0x317   :  { %3020 = vmatpush2.bf16.msra.mxu0 %v8536_v8  ;;  %v8578_v8 = vld [vmem:[%s11349_s3 + $0x10c] ss:$16 sps:$4 sm:$0xff]  }
 0x318   :  { %3061 = vmatpush2.bf16.msra.mxu1 %v8543_v43  ;;  %3021 = vmatprep.subr.bf16.mxu0 %v8548_v50  ;;  %11770 = vst [vmem:[#allocation83_spill] sm:$0xff] %v8578_v8  ;;  %v8584_v50 = vld [vmem:[%s11349_s3 + $0x500] ss:$16 sps:$4 sm:$0xff]   ;;  %v8596_v43 = vld [vmem:[%s11349_s3 + $0x2ec] ss:$16 sps:$4 sm:$0xff]  }
 0x319   :  { %3062 = vmatprep.subr.bf16.mxu1 %v8554_v41  ;;  %11771 = vst [vmem:[#allocation84_spill] sm:$0xff] %v8584_v50  ;;  %v8591_v41 = vld [vmem:[%s11349_s3 + $0x108] ss:$16 sps:$4 sm:$0xff]   ;;  %11773 = vst [vmem:[#allocation86_spill] sm:$0xff] %v8596_v43 }
 0x31a   :  { %11772 = vst [vmem:[#allocation85_spill] sm:$0xff] %v8591_v41 }
 0x31b   :  { %3022 = vmatpush2.bf16.msra.mxu0 %v8560_v60  ;;  %v8602_v60 = vld [vmem:[%s11349_s3 + $0x4ec] ss:$16 sps:$4 sm:$0xff]  }
 0x31c   :  { %3063 = vmatpush2.bf16.msra.mxu1 %v8567_v27  ;;  %3023 = vmatprep.subr.bf16.mxu0 %v8572_v14  ;;  %11774 = vst [vmem:[#allocation87_spill] sm:$0xff] %v8602_v60  ;;  %v8608_v14 = vld [vmem:[%s11349_s3 + $0x2e8] ss:$16 sps:$4 sm:$0xff]   ;;  %v8612_v27 = vcombine.low %v8207_v53, %v8207_v53  ;;  %v8631_v53 = vld [vmem:[%s11349_s3 + $0x4cc] ss:$16 sps:$4 sm:$0xff]  }
 0x31d   :  { %3064 = vmatprep.subr.bf16.mxu1 %v8578_v8  ;;  %11775 = vst [vmem:[#allocation88_spill] sm:$0xff] %v8608_v14  ;;  %v8619_v8 = vld [vmem:[%s11349_s3 + $0x4e8] ss:$16 sps:$4 sm:$0xff]   ;;  %11778 = vst [vmem:[#allocation91_spill] sm:$0xff] %v8631_v53 }
 0x31e   :  { %11776 = vst [vmem:[#allocation89_spill] sm:$0xff] %v8619_v8 }
 0x31f   :  { %3024 = vmatpush2.bf16.msra.mxu0 %v8584_v50  ;;  %v8625_v50 = vld [vmem:[%s11349_s3 + $0x2cc] ss:$16 sps:$4 sm:$0xff]  }
 0x320   :  { %3065 = vmatpush2.bf16.msra.mxu1 %v8591_v41  ;;  %3075 = vmatprep.subr.bf16.mxu0 %v8596_v43  ;;  %11777 = vst [vmem:[#allocation90_spill] sm:$0xff] %v8625_v50  ;;  %v8645_v43 = vld [vmem:[%s11349_s3 + $0x4c8] ss:$16 sps:$4 sm:$0xff]  }
 0x321   :  { %3116 = vmatprep.subr.bf16.mxu1 %v8602_v60  ;;  %v8638_v60 = vld [vmem:[%s11349_s3 + $0x2c8] ss:$16 sps:$4 sm:$0xff]   ;;  %11780 = vst [vmem:[#allocation93_spill] sm:$0xff] %v8645_v43 }
 0x322   :  { %3026 = vmatmul.mubr.bf16.vlgmr.msra.gmra.mxu0 %v8612_v27  ;;  %11779 = vst [vmem:[#allocation92_spill] sm:$0xff] %v8638_v60 }
 0x323   :  { %3067 = vmatmul.mubr.bf16.vlgmr.msra.gmra.mxu1 %v8211_v7  ;;  %3076 = vmatpush1.bf16.msra.mxu0 %v8608_v14  ;;  %v8650_v7 = vld [vmem:[%s11349_s3 + $0x2ac] ss:$16 sps:$4 sm:$0xff]  }
 0x324   :  { %3107 = vmatprep.mubr.bf16.mxu0 %v7835_v33  ;;  %3117 = vmatpush1.bf16.msra.mxu1 %v8619_v8  ;;  %11781 = vst [vmem:[#allocation94_spill] sm:$0xff] %v8650_v7  ;;  %v8657_v33 = vld [vmem:[%s11349_s3 + $0x4ac] ss:$16 sps:$4 sm:$0xff]   ;;  %v8664_v8 = vld [vmem:[%s11349_s3 + $0x2a8] ss:$16 sps:$4 sm:$0xff]  }
 0x325   :  { %3148 = vmatprep.mubr.bf16.mxu1 %v8233_v11  ;;  %3077 = vmatprep.subr.bf16.mxu0 %v8625_v50  ;;  %11782 = vst [vmem:[#allocation95_spill] sm:$0xff] %v8657_v33  ;;  %11783 = vst [vmem:[#allocation96_spill] sm:$0xff] %v8664_v8  ;;  %v8671_v50 = vld [vmem:[%s11349_s3 + $0x4a8] ss:$16 sps:$4 sm:$0xff]  }
 0x326   :  { %3118 = vmatprep.subr.bf16.mxu1 %v8631_v53  ;;  %11784 = vst [vmem:[#allocation97_spill] sm:$0xff] %v8671_v50  ;;  %v8676_v53 = vld [vmem:[%s11349_s3 + $0x28c] ss:$16 sps:$4 sm:$0xff]  }
 0x327   :  { %3078 = vmatpush1.bf16.msra.mxu0 %v8638_v60  ;;  %11785 = vst [vmem:[#allocation98_spill] sm:$0xff] %v8676_v53  ;;  %v8682_v60 = vld [vmem:[%s11349_s3 + $0x48c] ss:$16 sps:$4 sm:$0xff]  }
 0x328   :  { %3119 = vmatpush1.bf16.msra.mxu1 %v8645_v43  ;;  %3079 = vmatprep.subr.bf16.mxu0 %v8650_v7  ;;  %11786 = vst [vmem:[#allocation99_spill] sm:$0xff] %v8682_v60  ;;  %v8688_v7 = vld [vmem:[%s11349_s3 + $0x288] ss:$16 sps:$4 sm:$0xff]   ;;  %v8700_v43 = vld [vmem:[%s11349_s3 + $0x26c] ss:$16 sps:$4 sm:$0xff]  }
 0x329   :  { %3120 = vmatprep.subr.bf16.mxu1 %v8657_v33  ;;  %11787 = vst [vmem:[#allocation100_spill] sm:$0xff] %v8688_v7  ;;  %v8695_v33 = vld [vmem:[%s11349_s3 + $0x488] ss:$16 sps:$4 sm:$0xff]   ;;  %11789 = vst [vmem:[#allocation102_spill] sm:$0xff] %v8700_v43 }
 0x32a   :  { %11788 = vst [vmem:[#allocation101_spill] sm:$0xff] %v8695_v33 }
 0x32b   :  { %3080 = vmatpush1.bf16.msra.mxu0 %v8664_v8  ;;  %v8706_v8 = vld [vmem:[%s11349_s3 + $0x46c] ss:$16 sps:$4 sm:$0xff]  }
 0x32c   :  { %3121 = vmatpush1.bf16.msra.mxu1 %v8671_v50  ;;  %3081 = vmatprep.subr.bf16.mxu0 %v8676_v53  ;;  %11790 = vst [vmem:[#allocation103_spill] sm:$0xff] %v8706_v8  ;;  %v8712_v53 = vld [vmem:[%s11349_s3 + $0x268] ss:$16 sps:$4 sm:$0xff]   ;;  %v8724_v50 = vld [vmem:[%s11349_s3 + $0x24c] ss:$16 sps:$4 sm:$0xff]  }
 0x32d   :  { %3122 = vmatprep.subr.bf16.mxu1 %v8682_v60  ;;  %11791 = vst [vmem:[#allocation104_spill] sm:$0xff] %v8712_v53  ;;  %v8719_v60 = vld [vmem:[%s11349_s3 + $0x468] ss:$16 sps:$4 sm:$0xff]   ;;  %11793 = vst [vmem:[#allocation106_spill] sm:$0xff] %v8724_v50 }
 0x32e   :  { %11792 = vst [vmem:[#allocation105_spill] sm:$0xff] %v8719_v60 }
 0x32f   :  { %3082 = vmatpush1.bf16.msra.mxu0 %v8688_v7  ;;  %v8730_v7 = vld [vmem:[%s11349_s3 + $0x44c] ss:$16 sps:$4 sm:$0xff]  }
 0x330   :  { %3123 = vmatpush1.bf16.msra.mxu1 %v8695_v33  ;;  %3083 = vmatprep.subr.bf16.mxu0 %v8700_v43  ;;  %v8736_v43 = vld [vmem:[%s11349_s3 + $0x248] ss:$16 sps:$4 sm:$0xff]  }
 0x331   :  { %3124 = vmatprep.subr.bf16.mxu1 %v8706_v8  ;;  %v8743_v8 = vld [vmem:[%s11349_s3 + $0x448] ss:$16 sps:$4 sm:$0xff]  }
 0x332   :  { %v1772_v33 = vpop.f32.mrf.mxu0  ;;  %v1813_v14 = vpop.f32.mrf.mxu1 }
 0x333   :  { %3084 = vmatpush1.bf16.msra.mxu0 %v8712_v53  ;;  %v8748_v53 = vld [vmem:[%s11349_s3 + $0x22c] ss:$16 sps:$4 sm:$0xff]  }
 0x334   :  { %3125 = vmatpush1.bf16.msra.mxu1 %v8719_v60  ;;  %v1774_v41 = vpop.f32.mrf.mxu0  ;;  %v1815_v51 = vpop.f32.mrf.mxu1  ;;  %3085 = vmatprep.subr.bf16.mxu0 %v8724_v50  ;;  %v8754_v60 = vld [vmem:[%s11349_s3 + $0x42c] ss:$16 sps:$4 sm:$0xff]  }
 0x335   :  { %v1820_v40 = vmax.f32 %v1772_v33, %v1774_v41  ;;  %v1821_v30 = vmax.f32 %v1813_v14, %v1815_v51  ;;  %3126 = vmatprep.subr.bf16.mxu1 %v8730_v7  ;;  %v8767_v14 = vld [vmem:[%s11349_s3 + $0x428] ss:$16 sps:$4 sm:$0xff]  }
 0x336   :  { %v1776_v50 = vpop.f32.mrf.mxu0  ;;  %v1817_v58 = vpop.f32.mrf.mxu1  ;;  %11795 = vst [vmem:[#allocation108_spill] sm:$0xff] %v8767_v14 }
 0x337   :  { %v1822_v35 = vmax.f32 %v1820_v40, %v1821_v30  ;;  %3086 = vmatpush1.bf16.msra.mxu0 %v8736_v43  ;;  %v8772_v58 = vld [vmem:[%s11349_s3 + $0x20c] ss:$16 sps:$4 sm:$0xff]   ;;  %v8777_v30 = vld [vmem:[%s11348_s2] ss:$0 sm:$0xff] }
 0x338   :  { %3127 = vmatpush1.bf16.msra.mxu1 %v8743_v8  ;;  %v1777_v51 = vpop.f32.mrf.mxu0  ;;  %v1818_v41 = vpop.f32.mrf.mxu1  ;;  %3087 = vmatprep.subr.bf16.mxu0 %v8748_v53  ;;  %11796 = vst [vmem:[#allocation109_spill] sm:$0xff] %v8772_v58  ;;  %v8784_v50 = vld [vmem:[%s11349_s3 + $0x40c] ss:$16 sps:$4 sm:$0xff]  }
 0x339   :  { %v1823_v40 = vadd.f32 %v8777_v30, %v1822_v35  ;;  %3128 = vmatprep.subr.bf16.mxu1 %v8754_v60  ;;  %11797 = vst [vmem:[#allocation110_spill] sm:$0xff] %v8784_v50  ;;  %v8790_v51 = vld [vmem:[%s11349_s3 + $0x208] ss:$16 sps:$4 sm:$0xff]   ;;  %v8802_v41 = vld [vmem:[%s11349_s3 + $0x3ec] ss:$16 sps:$4 sm:$0xff]  }
 0x33a   :  { %11798 = vst [vmem:[#allocation111_spill] sm:$0xff] %v8790_v51  ;;  %v8797_v35 = vld [vmem:[%s11349_s3 + $0x408] ss:$16 sps:$4 sm:$0xff]   ;;  %11800 = vst [vmem:[#allocation113_spill] sm:$0xff] %v8802_v41 }
 0x33b   :  { %v1824_v33 = vmax.f32 %v1823_v40, 0.0  ;;  %3088 = vmatpush1.bf16.msra.mxu0 %v8760_v29  ;;  %11799 = vst [vmem:[#allocation112_spill] sm:$0xff] %v8797_v35  ;;  %v8808_v29 = vld [vmem:[%s11349_s3 + $0x5ec] ss:$16 sps:$4 sm:$0xff]  }
 0x33c   :  { %3129 = vmatpush1.bf16.msra.mxu1 %v8767_v14  ;;  %3089 = vmatprep.subr.bf16.mxu0 %v8772_v58  ;;  %11801 = vst [vmem:[#allocation114_spill] sm:$0xff] %v8808_v29  ;;  %v8814_v58 = vld [vmem:[%s11349_s3 + $0x3e8] ss:$16 sps:$4 sm:$0xff]  }
 0x33d   :  { %v1825_v40 = vpack.c.bf16 %v1824_v33, %v1824_v33  ;;  %3130 = vmatprep.subr.bf16.mxu1 %v8784_v50  ;;  %11802 = vst [vmem:[#allocation115_spill] sm:$0xff] %v8814_v58  ;;  %v8821_v33 = vld [vmem:[%s11349_s3 + $0x5e8] ss:$16 sps:$4 sm:$0xff]  }
 0x33e   :  { %11803 = vst [vmem:[#allocation116_spill] sm:$0xff] %v8821_v33 }
 0x33f   :  { %1826 = vst [vmem:[#allocation2 + $0x30] sm:$0xf] %v1825_v40  ;;  %3090 = vmatpush1.bf16.msra.mxu0 %v8790_v51  ;;  %v8826_v40 = vld [vmem:[%s11349_s3 + $0x3cc] ss:$16 sps:$4 sm:$0xff]  }
 0x340   :  { %3131 = vmatpush1.bf16.msra.mxu1 %v8797_v35  ;;  %3091 = vmatprep.subr.bf16.mxu0 %v8802_v41  ;;  %11804 = vst [vmem:[#allocation117_spill] sm:$0xff] %v8826_v40  ;;  %v8832_v51 = vld [vmem:[%s11349_s3 + $0x5cc] ss:$16 sps:$4 sm:$0xff]   ;;  %v8838_v41 = vld [vmem:[%s11349_s3 + $0x3c8] ss:$16 sps:$4 sm:$0xff]  }
 0x341   :  { %3132 = vmatprep.subr.bf16.mxu1 %v8808_v29  ;;  %11805 = vst [vmem:[#allocation118_spill] sm:$0xff] %v8832_v51  ;;  %11806 = vst [vmem:[#allocation119_spill] sm:$0xff] %v8838_v41  ;;  %v8845_v29 = vld [vmem:[%s11349_s3 + $0x5c8] ss:$16 sps:$4 sm:$0xff]   ;;  %v8850_v35 = vld [vmem:[%s11349_s3 + $0x3ac] ss:$16 sps:$4 sm:$0xff]  }
 0x342   :  { %11807 = vst [vmem:[#allocation120_spill] sm:$0xff] %v8845_v29  ;;  %11808 = vst [vmem:[#allocation121_spill] sm:$0xff] %v8850_v35 }
 0x343   :  { %3092 = vmatpush2.bf16.msra.mxu0 %v8814_v58  ;;  %v8856_v58 = vld [vmem:[%s11349_s3 + $0x5ac] ss:$16 sps:$4 sm:$0xff]  }
 0x344   :  { %3133 = vmatpush2.bf16.msra.mxu1 %v8821_v33  ;;  %3093 = vmatprep.subr.bf16.mxu0 %v8826_v40  ;;  %11809 = vst [vmem:[#allocation122_spill] sm:$0xff] %v8856_v58  ;;  %v8862_v40 = vld [vmem:[%s11349_s3 + $0x3a8] ss:$16 sps:$4 sm:$0xff]   ;;  %v8874_v33 = vld [vmem:[%s11349_s3 + $0x38c] ss:$16 sps:$4 sm:$0xff]  }
 0x345   :  { %3134 = vmatprep.subr.bf16.mxu1 %v8832_v51  ;;  %11810 = vst [vmem:[#allocation123_spill] sm:$0xff] %v8862_v40  ;;  %v8869_v51 = vld [vmem:[%s11349_s3 + $0x5a8] ss:$16 sps:$4 sm:$0xff]   ;;  %11812 = vst [vmem:[#allocation125_spill] sm:$0xff] %v8874_v33 }
 0x346   :  { %11811 = vst [vmem:[#allocation124_spill] sm:$0xff] %v8869_v51 }
 0x347   :  { %3094 = vmatpush2.bf16.msra.mxu0 %v8838_v41  ;;  %v8880_v41 = vld [vmem:[%s11349_s3 + $0x58c] ss:$16 sps:$4 sm:$0xff]  }
 0x348   :  { %3135 = vmatpush2.bf16.msra.mxu1 %v8845_v29  ;;  %3095 = vmatprep.subr.bf16.mxu0 %v8850_v35  ;;  %11813 = vst [vmem:[#allocation126_spill] sm:$0xff] %v8880_v41  ;;  %v8886_v35 = vld [vmem:[%s11349_s3 + $0x388] ss:$16 sps:$4 sm:$0xff]   ;;  %v8898_v29 = vld [vmem:[%s11349_s3 + $0x36c] ss:$16 sps:$4 sm:$0xff]  }
 0x349   :  { %3136 = vmatprep.subr.bf16.mxu1 %v8856_v58  ;;  %11814 = vst [vmem:[#allocation127_spill] sm:$0xff] %v8886_v35  ;;  %v8893_v58 = vld [vmem:[%s11349_s3 + $0x588] ss:$16 sps:$4 sm:$0xff]   ;;  %11816 = vst [vmem:[#allocation129_spill] sm:$0xff] %v8898_v29 }
 0x34a   :  { %11815 = vst [vmem:[#allocation128_spill] sm:$0xff] %v8893_v58 }
 0x34b   :  { %3096 = vmatpush2.bf16.msra.mxu0 %v8862_v40  ;;  %v8904_v40 = vld [vmem:[%s11349_s3 + $0x56c] ss:$16 sps:$4 sm:$0xff]  }
 0x34c   :  { %3137 = vmatpush2.bf16.msra.mxu1 %v8869_v51  ;;  %3097 = vmatprep.subr.bf16.mxu0 %v8874_v33  ;;  %11817 = vst [vmem:[#allocation130_spill] sm:$0xff] %v8904_v40  ;;  %v8910_v33 = vld [vmem:[%s11349_s3 + $0x368] ss:$16 sps:$4 sm:$0xff]   ;;  %v8922_v51 = vld [vmem:[%s11349_s3 + $0x34c] ss:$16 sps:$4 sm:$0xff]  }
 0x34d   :  { %3138 = vmatprep.subr.bf16.mxu1 %v8880_v41  ;;  %11818 = vst [vmem:[#allocation131_spill] sm:$0xff] %v8910_v33  ;;  %v8917_v41 = vld [vmem:[%s11349_s3 + $0x568] ss:$16 sps:$4 sm:$0xff]   ;;  %11820 = vst [vmem:[#allocation133_spill] sm:$0xff] %v8922_v51 }
 0x34e   :  { %11819 = vst [vmem:[#allocation132_spill] sm:$0xff] %v8917_v41 }
 0x34f   :  { %3098 = vmatpush2.bf16.msra.mxu0 %v8886_v35  ;;  %v8928_v35 = vld [vmem:[%s11349_s3 + $0x54c] ss:$16 sps:$4 sm:$0xff]  }
 0x350   :  { %3139 = vmatpush2.bf16.msra.mxu1 %v8893_v58  ;;  %3099 = vmatprep.subr.bf16.mxu0 %v8898_v29  ;;  %11821 = vst [vmem:[#allocation134_spill] sm:$0xff] %v8928_v35  ;;  %v8934_v29 = vld [vmem:[%s11349_s3 + $0x348] ss:$16 sps:$4 sm:$0xff]   ;;  %v8946_v58 = vld [vmem:[%s11349_s3 + $0x32c] ss:$16 sps:$4 sm:$0xff]  }
 0x351   :  { %3140 = vmatprep.subr.bf16.mxu1 %v8904_v40  ;;  %11822 = vst [vmem:[#allocation135_spill] sm:$0xff] %v8934_v29  ;;  %v8941_v40 = vld [vmem:[%s11349_s3 + $0x548] ss:$16 sps:$4 sm:$0xff]   ;;  %11824 = vst [vmem:[#allocation137_spill] sm:$0xff] %v8946_v58 }
 0x352   :  { %11823 = vst [vmem:[#allocation136_spill] sm:$0xff] %v8941_v40 }
 0x353   :  { %3100 = vmatpush2.bf16.msra.mxu0 %v8910_v33  ;;  %v8952_v33 = vld [vmem:[%s11349_s3 + $0x52c] ss:$16 sps:$4 sm:$0xff]  }
 0x354   :  { %3141 = vmatpush2.bf16.msra.mxu1 %v8917_v41  ;;  %3101 = vmatprep.subr.bf16.mxu0 %v8922_v51  ;;  %11825 = vst [vmem:[#allocation138_spill] sm:$0xff] %v8952_v33  ;;  %v8958_v51 = vld [vmem:[%s11349_s3 + $0x328] ss:$16 sps:$4 sm:$0xff]   ;;  %v8970_v41 = vld [vmem:[%s11349_s3 + $0x30c] ss:$16 sps:$4 sm:$0xff]  }
 0x355   :  { %3142 = vmatprep.subr.bf16.mxu1 %v8928_v35  ;;  %11826 = vst [vmem:[#allocation139_spill] sm:$0xff] %v8958_v51  ;;  %v8965_v35 = vld [vmem:[%s11349_s3 + $0x528] ss:$16 sps:$4 sm:$0xff]   ;;  %11828 = vst [vmem:[#allocation141_spill] sm:$0xff] %v8970_v41 }
 0x356   :  { %11827 = vst [vmem:[#allocation140_spill] sm:$0xff] %v8965_v35 }
 0x357   :  { %3102 = vmatpush2.bf16.msra.mxu0 %v8934_v29  ;;  %v8976_v29 = vld [vmem:[%s11349_s3 + $0x50c] ss:$16 sps:$4 sm:$0xff]  }
 0x358   :  { %3143 = vmatpush2.bf16.msra.mxu1 %v8941_v40  ;;  %3103 = vmatprep.subr.bf16.mxu0 %v8946_v58  ;;  %11829 = vst [vmem:[#allocation142_spill] sm:$0xff] %v8976_v29  ;;  %v8982_v58 = vld [vmem:[%s11349_s3 + $0x308] ss:$16 sps:$4 sm:$0xff]  }
 0x359   :  { %3144 = vmatprep.subr.bf16.mxu1 %v8952_v33  ;;  %11830 = vst [vmem:[#allocation143_spill] sm:$0xff] %v8982_v58  ;;  %v8989_v33 = vld [vmem:[%s11349_s3 + $0x508] ss:$16 sps:$4 sm:$0xff]  }
 0x35a   :  { %11831 = vst [vmem:[#allocation144_spill] sm:$0xff] %v8989_v33  ;;  %v8993_v40 = vld [vmem:[#allocation2 + $0x8] sm:$0xff] }
 0x35b   :  { %3104 = vmatpush2.bf16.msra.mxu0 %v8958_v51 }
 0x35c   :  { %3145 = vmatpush2.bf16.msra.mxu1 %v8965_v35  ;;  %3105 = vmatprep.subr.bf16.mxu0 %v8970_v41  ;;  %v9001_v41 = vcombine.high %v8993_v40, %v8993_v40 }
 0x35d   :  { %3146 = vmatprep.subr.bf16.mxu1 %v8976_v29 }
 0x35f   :  { %3106 = vmatpush2.bf16.msra.mxu0 %v8982_v58 }
 0x360   :  { %3147 = vmatpush2.bf16.msra.mxu1 %v8989_v33  ;;  %3194 = vmatprep.subr.bf16.mxu0 %v7792_v59 }
 0x361   :  { %3235 = vmatprep.subr.bf16.mxu1 %v7797_v4 }
 0x362   :  { %v1872_v35 = vpop.f32.mrf.mxu0  ;;  %v1913_v51 = vpop.f32.mrf.mxu1  ;;  %3108 = vmatmul.mubr.bf16.vlgmr.msra.gmra.mxu0 %v8222_v57 }
 0x363   :  { %3149 = vmatmul.mubr.bf16.vlgmr.msra.gmra.mxu1 %v8612_v27  ;;  %3195 = vmatpush1.bf16.msra.mxu0 %v7808_v28 }
 0x364   :  { %3226 = vmatprep.mubr.bf16.mxu0 %v9001_v41  ;;  %3236 = vmatpush1.bf16.msra.mxu1 %v7817_v32  ;;  %v1874_v33 = vpop.f32.mrf.mxu0  ;;  %v1915_v59 = vpop.f32.mrf.mxu1 }
 0x365   :  { %3267 = vmatprep.mubr.bf16.mxu1 %v8233_v11  ;;  %v1920_v4 = vmax.f32 %v1872_v35, %v1874_v33  ;;  %v1921_v58 = vmax.f32 %v1913_v51, %v1915_v59  ;;  %3196 = vmatprep.subr.bf16.mxu0 %v7826_v46  ;;  %v11862_v35 = vld [vmem:[#allocation34_spill] sm:$0xff]  ;;  %v11864_v33 = vld [vmem:[#allocation36_spill] sm:$0xff] }
 0x366   :  { %v1876_v57 = vpop.f32.mrf.mxu0  ;;  %v1917_v29 = vpop.f32.mrf.mxu1  ;;  %3237 = vmatprep.subr.bf16.mxu1 %v7831_v5  ;;  %v11832_v5 = vld [vmem:[#allocation4_spill] sm:$0xff]  ;;  %v11866_v59 = vld [vmem:[#allocation38_spill] sm:$0xff] }
 0x367   :  { %v1922_v50 = vmax.f32 %v1920_v4, %v1921_v58  ;;  %3197 = vmatpush1.bf16.msra.mxu0 %v7842_v34  ;;  %v11833_v34 = vld [vmem:[#allocation5_spill] sm:$0xff]  ;;  %v11859_v29 = vld [vmem:[#allocation31_spill] sm:$0xff]  ;;  %v11868_v57 = vld [vmem:[#allocation40_spill] sm:$0xff] }
 0x368   :  { %3238 = vmatpush1.bf16.msra.mxu1 %v7849_v37  ;;  %v1877_v28 = vpop.f32.mrf.mxu0  ;;  %v1918_v14 = vpop.f32.mrf.mxu1  ;;  %3198 = vmatprep.subr.bf16.mxu0 %v7854_v38  ;;  %v11834_v37 = vld [vmem:[#allocation6_spill] sm:$0xff]  ;;  %v11835_v38 = vld [vmem:[#allocation7_spill] sm:$0xff] }
 0x369   :  { %v1923_v32 = vadd.f32 %v8777_v30, %v1922_v50  ;;  %3239 = vmatprep.subr.bf16.mxu1 %v7861_v42  ;;  %v11836_v42 = vld [vmem:[#allocation8_spill] sm:$0xff]  ;;  %v11861_v30 = vld [vmem:[#allocation33_spill] sm:$0xff]  ;;  %v11867_v4 = vld [vmem:[#allocation39_spill] sm:$0xff] }
 0x36a   :  { %v11860_v14 = vld [vmem:[#allocation32_spill] sm:$0xff]  ;;  %v11869_v28 = vld [vmem:[#allocation41_spill] sm:$0xff] }
 0x36b   :  { %v1924_v51 = vmax.f32 %v1923_v32, 0.0  ;;  %3199 = vmatpush1.bf16.msra.mxu0 %v7867_v10  ;;  %v11837_v10 = vld [vmem:[#allocation9_spill] sm:$0xff]  ;;  %v11870_v32 = vld [vmem:[#allocation42_spill] sm:$0xff] }
 0x36c   :  { %3240 = vmatpush1.bf16.msra.mxu1 %v7874_v1  ;;  %3200 = vmatprep.subr.bf16.mxu0 %v7879_v39  ;;  %v11838_v1 = vld [vmem:[#allocation10_spill] sm:$0xff]  ;;  %v11839_v39 = vld [vmem:[#allocation11_spill] sm:$0xff] }
 0x36d   :  { %v1925_v46 = vpack.c.bf16 %v1924_v51, %v1924_v51  ;;  %3241 = vmatprep.subr.bf16.mxu1 %v7886_v52  ;;  %v11840_v52 = vld [vmem:[#allocation12_spill] sm:$0xff]  ;;  %v11871_v51 = vld [vmem:[#allocation43_spill] sm:$0xff] }
 0x36f   :  { %1926 = vst [vmem:[#allocation2 + $0x34] sm:$0xf] %v1925_v46  ;;  %3201 = vmatpush1.bf16.msra.mxu0 %v7892_v63  ;;  %v11841_v63 = vld [vmem:[#allocation13_spill] sm:$0xff]  ;;  %v11872_v46 = vld [vmem:[#allocation44_spill] sm:$0xff] }
 0x370   :  { %3242 = vmatpush1.bf16.msra.mxu1 %v7899_v54  ;;  %3202 = vmatprep.subr.bf16.mxu0 %v7904_v56  ;;  %v11842_v54 = vld [vmem:[#allocation14_spill] sm:$0xff]  ;;  %v11843_v56 = vld [vmem:[#allocation15_spill] sm:$0xff] }
 0x371   :  { %3243 = vmatprep.subr.bf16.mxu1 %v7910_v2  ;;  %v11844_v2 = vld [vmem:[#allocation16_spill] sm:$0xff] }
 0x373   :  { %3203 = vmatpush1.bf16.msra.mxu0 %v7916_v3  ;;  %v11845_v3 = vld [vmem:[#allocation17_spill] sm:$0xff] }
 0x374   :  { %3244 = vmatpush1.bf16.msra.mxu1 %v7923_v6  ;;  %3204 = vmatprep.subr.bf16.mxu0 %v7928_v12  ;;  %v11846_v6 = vld [vmem:[#allocation18_spill] sm:$0xff]  ;;  %v11847_v12 = vld [vmem:[#allocation19_spill] sm:$0xff] }
 0x375   :  { %3245 = vmatprep.subr.bf16.mxu1 %v7934_v15  ;;  %v11848_v15 = vld [vmem:[#allocation20_spill] sm:$0xff] }
 0x377   :  { %3205 = vmatpush1.bf16.msra.mxu0 %v7940_v16  ;;  %v11849_v16 = vld [vmem:[#allocation21_spill] sm:$0xff] }
 0x378   :  { %3246 = vmatpush1.bf16.msra.mxu1 %v7947_v17  ;;  %3206 = vmatprep.subr.bf16.mxu0 %v7952_v47  ;;  %v11850_v17 = vld [vmem:[#allocation22_spill] sm:$0xff]  ;;  %v11851_v47 = vld [vmem:[#allocation23_spill] sm:$0xff] }
 0x379   :  { %3247 = vmatprep.subr.bf16.mxu1 %v7958_v48  ;;  %v9068_v48 = vld [vmem:[#allocation2 + $0x18] sm:$0xff] }
 0x37b   :  { %3207 = vmatpush1.bf16.msra.mxu0 %v7964_v55  ;;  %v9072_v55 = vcombine.low %v8993_v40, %v8993_v40  ;;  %v11865_v40 = vld [vmem:[#allocation37_spill] sm:$0xff] }
 0x37c   :  { %3248 = vmatpush1.bf16.msra.mxu1 %v7971_v49  ;;  %3208 = vmatprep.subr.bf16.mxu0 %v7976_v18  ;;  %v11852_v49 = vld [vmem:[#allocation24_spill] sm:$0xff]  ;;  %v11853_v18 = vld [vmem:[#allocation25_spill] sm:$0xff] }
 0x37d   :  { %3249 = vmatprep.subr.bf16.mxu1 %v7982_v44  ;;  %v11854_v44 = vld [vmem:[#allocation26_spill] sm:$0xff] }
 0x37f   :  { %3209 = vmatpush1.bf16.msra.mxu0 %v7988_v19 }
 0x380   :  { %3250 = vmatpush1.bf16.msra.mxu1 %v7995_v13  ;;  %3210 = vmatprep.subr.bf16.mxu0 %v8000_v21  ;;  %v9080_v13 = vcombine.high %v9068_v48, %v9068_v48 }
 0x381   :  { %3251 = vmatprep.subr.bf16.mxu1 %v8006_v9  ;;  %v11855_v9 = vld [vmem:[#allocation27_spill] sm:$0xff] }
 0x383   :  { %3211 = vmatpush2.bf16.msra.mxu0 %v8012_v22 }
 0x384   :  { %3252 = vmatpush2.bf16.msra.mxu1 %v8019_v23  ;;  %3212 = vmatprep.subr.bf16.mxu0 %v8024_v24  ;;  %v11856_v23 = vld [vmem:[#allocation28_spill] sm:$0xff] }
 0x385   :  { %3253 = vmatprep.subr.bf16.mxu1 %v8030_v25 }
 0x387   :  { %3213 = vmatpush2.bf16.msra.mxu0 %v8036_v62  ;;  %v11857_v62 = vld [vmem:[#allocation29_spill] sm:$0xff] }
 0x388   :  { %3254 = vmatpush2.bf16.msra.mxu1 %v8043_v36  ;;  %3214 = vmatprep.subr.bf16.mxu0 %v8048_v20 }
 0x389   :  { %3255 = vmatprep.subr.bf16.mxu1 %v8054_v26  ;;  %v11858_v26 = vld [vmem:[#allocation30_spill] sm:$0xff] }
 0x38b   :  { %3215 = vmatpush2.bf16.msra.mxu0 %v8060_v0 }
 0x38c   :  { %3256 = vmatpush2.bf16.msra.mxu1 %v11832_v5  ;;  %3216 = vmatprep.subr.bf16.mxu0 %v11833_v34  ;;  %v11873_v5 = vld [vmem:[#allocation45_spill] sm:$0xff]  ;;  %v11874_v34 = vld [vmem:[#allocation46_spill] sm:$0xff] }
 0x38d   :  { %3257 = vmatprep.subr.bf16.mxu1 %v11834_v37  ;;  %v11875_v37 = vld [vmem:[#allocation47_spill] sm:$0xff] }
 0x38f   :  { %3217 = vmatpush2.bf16.msra.mxu0 %v11835_v38  ;;  %v11876_v38 = vld [vmem:[#allocation48_spill] sm:$0xff] }
 0x390   :  { %3258 = vmatpush2.bf16.msra.mxu1 %v11836_v42  ;;  %3218 = vmatprep.subr.bf16.mxu0 %v11837_v10  ;;  %v11877_v42 = vld [vmem:[#allocation49_spill] sm:$0xff]  ;;  %v11878_v10 = vld [vmem:[#allocation50_spill] sm:$0xff] }
 0x391   :  { %3259 = vmatprep.subr.bf16.mxu1 %v11838_v1  ;;  %v11879_v1 = vld [vmem:[#allocation51_spill] sm:$0xff] }
 0x393   :  { %3219 = vmatpush2.bf16.msra.mxu0 %v11839_v39  ;;  %v11880_v39 = vld [vmem:[#allocation52_spill] sm:$0xff] }
 0x394   :  { %3260 = vmatpush2.bf16.msra.mxu1 %v11840_v52  ;;  %3220 = vmatprep.subr.bf16.mxu0 %v11841_v63  ;;  %v11881_v52 = vld [vmem:[#allocation53_spill] sm:$0xff]  ;;  %v11882_v63 = vld [vmem:[#allocation54_spill] sm:$0xff] }
 0x395   :  { %3261 = vmatprep.subr.bf16.mxu1 %v11842_v54  ;;  %v11883_v54 = vld [vmem:[#allocation55_spill] sm:$0xff] }
 0x397   :  { %3221 = vmatpush2.bf16.msra.mxu0 %v11843_v56  ;;  %v11884_v56 = vld [vmem:[#allocation56_spill] sm:$0xff] }
 0x398   :  { %3262 = vmatpush2.bf16.msra.mxu1 %v11844_v2  ;;  %3222 = vmatprep.subr.bf16.mxu0 %v11845_v3  ;;  %v11885_v2 = vld [vmem:[#allocation57_spill] sm:$0xff]  ;;  %v11886_v3 = vld [vmem:[#allocation58_spill] sm:$0xff] }
 0x399   :  { %3263 = vmatprep.subr.bf16.mxu1 %v11846_v6  ;;  %v11887_v6 = vld [vmem:[#allocation59_spill] sm:$0xff] }
 0x39b   :  { %3223 = vmatpush2.bf16.msra.mxu0 %v11847_v12  ;;  %v11888_v12 = vld [vmem:[#allocation60_spill] sm:$0xff] }
 0x39c   :  { %3264 = vmatpush2.bf16.msra.mxu1 %v11848_v15  ;;  %3224 = vmatprep.subr.bf16.mxu0 %v11849_v16  ;;  %v11889_v15 = vld [vmem:[#allocation61_spill] sm:$0xff]  ;;  %v11890_v16 = vld [vmem:[#allocation62_spill] sm:$0xff] }
 0x39d   :  { %3265 = vmatprep.subr.bf16.mxu1 %v11850_v17  ;;  %v11891_v17 = vld [vmem:[#allocation63_spill] sm:$0xff] }
 0x39f   :  { %3225 = vmatpush2.bf16.msra.mxu0 %v11851_v47  ;;  %v11892_v47 = vld [vmem:[#allocation64_spill] sm:$0xff] }
 0x3a0   :  { %3266 = vmatpush2.bf16.msra.mxu1 %v11852_v49  ;;  %3276 = vmatprep.subr.bf16.mxu0 %v11853_v18  ;;  %v11893_v49 = vld [vmem:[#allocation65_spill] sm:$0xff]  ;;  %v11894_v18 = vld [vmem:[#allocation66_spill] sm:$0xff] }
 0x3a1   :  { %3317 = vmatprep.subr.bf16.mxu1 %v11854_v44  ;;  %v11895_v44 = vld [vmem:[#allocation67_spill] sm:$0xff] }
 0x3a2   :  { %v2945_v19 = vpop.f32.mrf.mxu0  ;;  %3227 = vmatmul.mubr.bf16.vlgmr.msra.gmra.mxu0 %v9072_v55 }
 0x3a3   :  { %v2986_v21 = vpop.f32.mrf.mxu1  ;;  %3268 = vmatmul.mubr.bf16.vlgmr.msra.gmra.mxu1 %v8612_v27  ;;  %3277 = vmatpush1.bf16.msra.mxu0 %v11855_v9  ;;  %v11901_v9 = vld [vmem:[#allocation73_spill] sm:$0xff] }
 0x3a4   :  { %v9084_v22 = vadd.f32 %v2986_v21, %v2945_v19  ;;  %3308 = vmatprep.mubr.bf16.mxu0 %v9080_v13  ;;  %3318 = vmatpush1.bf16.msra.mxu1 %v11856_v23  ;;  %v2947_v24 = vpop.f32.mrf.mxu0  ;;  %v11896_v19 = vld [vmem:[#allocation68_spill] sm:$0xff]  ;;  %v11897_v21 = vld [vmem:[#allocation69_spill] sm:$0xff]  ;;  %v11902_v23 = vld [vmem:[#allocation74_spill] sm:$0xff] }
 0x3a5   :  { %3349 = vmatprep.mubr.bf16.mxu1 %v9001_v41  ;;  %v2988_v25 = vpop.f32.mrf.mxu1  ;;  %3278 = vmatprep.subr.bf16.mxu0 %v11857_v62  ;;  %v11863_v41 = vld [vmem:[#allocation35_spill] sm:$0xff]  ;;  %v11905_v62 = vld [vmem:[#allocation77_spill] sm:$0xff] }
 0x3a6   :  { %v9090_v36 = vadd.f32 %v2988_v25, %v2947_v24  ;;  %v2949_v20 = vpop.f32.mrf.mxu0  ;;  %3319 = vmatprep.subr.bf16.mxu1 %v11858_v26  ;;  %v11903_v24 = vld [vmem:[#allocation75_spill] sm:$0xff]  ;;  %v11904_v25 = vld [vmem:[#allocation76_spill] sm:$0xff] }
 0x3a7   :  { %v2990_v0 = vpop.f32.mrf.mxu1  ;;  %3279 = vmatpush1.bf16.msra.mxu0 %v11859_v29  ;;  %v11906_v20 = vld [vmem:[#allocation78_spill] sm:$0xff]  ;;  %v11907_v26 = vld [vmem:[#allocation79_spill] sm:$0xff]  ;;  %v11909_v29 = vld [vmem:[#allocation81_spill] sm:$0xff] }
 0x3a8   :  { %3320 = vmatpush1.bf16.msra.mxu1 %v11860_v14  ;;  %v2950_v58 = vpop.f32.mrf.mxu0  ;;  %3280 = vmatprep.subr.bf16.mxu0 %v11861_v30  ;;  %v11908_v0 = vld [vmem:[#allocation80_spill] sm:$0xff]  ;;  %v11910_v14 = vld [vmem:[#allocation82_spill] sm:$0xff] }
 0x3a9   :  { %v2991_v50 = vpop.f32.mrf.mxu1  ;;  %3321 = vmatprep.subr.bf16.mxu1 %v11862_v35  ;;  %v11911_v58 = vld [vmem:[#allocation83_spill] sm:$0xff]  ;;  %v11912_v30 = vld [vmem:[#allocation84_spill] sm:$0xff]  ;;  %v11913_v35 = vld [vmem:[#allocation85_spill] sm:$0xff] }
 0x3aa   :  { %v9152_v50 = vcombine.low %v9068_v48, %v9068_v48  ;;  %v11917_v48 = vld [vmem:[#allocation89_spill] sm:$0xff] }
 0x3ab   :  { %3281 = vmatpush1.bf16.msra.mxu0 %v11863_v41  ;;  %v11914_v41 = vld [vmem:[#allocation86_spill] sm:$0xff] }
 0x3ac   :  { %3322 = vmatpush1.bf16.msra.mxu1 %v11864_v33  ;;  %3282 = vmatprep.subr.bf16.mxu0 %v11865_v40  ;;  %v11915_v33 = vld [vmem:[#allocation87_spill] sm:$0xff] }
 0x3ad   :  { %3323 = vmatprep.subr.bf16.mxu1 %v11866_v59 }
 0x3af   :  { %3283 = vmatpush1.bf16.msra.mxu0 %v11867_v4 }
 0x3b0   :  { %3324 = vmatpush1.bf16.msra.mxu1 %v11868_v57  ;;  %3284 = vmatprep.subr.bf16.mxu0 %v11869_v28  ;;  %v11916_v57 = vld [vmem:[#allocation88_spill] sm:$0xff] }
 0x3b1   :  { %3325 = vmatprep.subr.bf16.mxu1 %v11870_v32 }
 0x3b3   :  { %3285 = vmatpush1.bf16.msra.mxu0 %v11871_v51 }
 0x3b4   :  { %3326 = vmatpush1.bf16.msra.mxu1 %v11872_v46  ;;  %3286 = vmatprep.subr.bf16.mxu0 %v11873_v5  ;;  %v11919_v5 = vld [vmem:[#allocation91_spill] sm:$0xff] }
 0x3b5   :  { %3327 = vmatprep.subr.bf16.mxu1 %v11874_v34 }
 0x3b7   :  { %3287 = vmatpush1.bf16.msra.mxu0 %v11875_v37  ;;  %v11921_v37 = vld [vmem:[#allocation93_spill] sm:$0xff] }
 0x3b8   :  { %3328 = vmatpush1.bf16.msra.mxu1 %v11876_v38  ;;  %3288 = vmatprep.subr.bf16.mxu0 %v11877_v42  ;;  %v11922_v42 = vld [vmem:[#allocation94_spill] sm:$0xff] }
 0x3b9   :  { %3329 = vmatprep.subr.bf16.mxu1 %v11878_v10  ;;  %v11923_v10 = vld [vmem:[#allocation95_spill] sm:$0xff] }
 0x3bb   :  { %3289 = vmatpush1.bf16.msra.mxu0 %v11879_v1  ;;  %v11924_v1 = vld [vmem:[#allocation96_spill] sm:$0xff] }
 0x3bc   :  { %3330 = vmatpush1.bf16.msra.mxu1 %v11880_v39  ;;  %3290 = vmatprep.subr.bf16.mxu0 %v11881_v52  ;;  %v11925_v39 = vld [vmem:[#allocation97_spill] sm:$0xff]  ;;  %v11926_v52 = vld [vmem:[#allocation98_spill] sm:$0xff] }
 0x3bd   :  { %3331 = vmatprep.subr.bf16.mxu1 %v11882_v63  ;;  %v11927_v63 = vld [vmem:[#allocation99_spill] sm:$0xff] }
 0x3bf   :  { %3291 = vmatpush1.bf16.msra.mxu0 %v11883_v54  ;;  %v11928_v54 = vld [vmem:[#allocation100_spill] sm:$0xff] }
 0x3c0   :  { %3332 = vmatpush1.bf16.msra.mxu1 %v11884_v56  ;;  %3292 = vmatprep.subr.bf16.mxu0 %v11885_v2  ;;  %v11929_v56 = vld [vmem:[#allocation101_spill] sm:$0xff]  ;;  %v11930_v2 = vld [vmem:[#allocation102_spill] sm:$0xff] }
 0x3c1   :  { %3333 = vmatprep.subr.bf16.mxu1 %v11886_v3  ;;  %v11931_v3 = vld [vmem:[#allocation103_spill] sm:$0xff] }
 0x3c3   :  { %3293 = vmatpush2.bf16.msra.mxu0 %v11887_v6  ;;  %v11932_v6 = vld [vmem:[#allocation104_spill] sm:$0xff] }
 0x3c4   :  { %3334 = vmatpush2.bf16.msra.mxu1 %v11888_v12  ;;  %3294 = vmatprep.subr.bf16.mxu0 %v11889_v15  ;;  %v11933_v12 = vld [vmem:[#allocation105_spill] sm:$0xff]  ;;  %v11934_v15 = vld [vmem:[#allocation106_spill] sm:$0xff] }
 0x3c5   :  { %3335 = vmatprep.subr.bf16.mxu1 %v8433_v31  ;;  %v11898_v31 = vld [vmem:[#allocation70_spill] sm:$0xff] }
 0x3c7   :  { %3295 = vmatpush2.bf16.msra.mxu0 %v8439_v61  ;;  %v11899_v61 = vld [vmem:[#allocation71_spill] sm:$0xff] }
 0x3c8   :  { %3336 = vmatpush2.bf16.msra.mxu1 %v8446_v45  ;;  %3296 = vmatprep.subr.bf16.mxu0 %v11890_v16  ;;  %v11900_v45 = vld [vmem:[#allocation72_spill] sm:$0xff]  ;;  %v11935_v16 = vld [vmem:[#allocation107_spill] sm:$0xff] }
 0x3c9   :  { %3337 = vmatprep.subr.bf16.mxu1 %v11891_v17  ;;  %v11936_v17 = vld [vmem:[#allocation108_spill] sm:$0xff] }
 0x3cb   :  { %3297 = vmatpush2.bf16.msra.mxu0 %v11892_v47  ;;  %v11937_v47 = vld [vmem:[#allocation109_spill] sm:$0xff] }
 0x3cc   :  { %3338 = vmatpush2.bf16.msra.mxu1 %v11893_v49  ;;  %3298 = vmatprep.subr.bf16.mxu0 %v11894_v18  ;;  %v11938_v49 = vld [vmem:[#allocation110_spill] sm:$0xff]  ;;  %v11939_v18 = vld [vmem:[#allocation111_spill] sm:$0xff] }
 0x3cd   :  { %3339 = vmatprep.subr.bf16.mxu1 %v11895_v44  ;;  %v11940_v44 = vld [vmem:[#allocation112_spill] sm:$0xff] }
 0x3cf   :  { %3299 = vmatpush2.bf16.msra.mxu0 %v11896_v19  ;;  %v11946_v19 = vld [vmem:[#allocation118_spill] sm:$0xff] }
 0x3d0   :  { %3340 = vmatpush2.bf16.msra.mxu1 %v11897_v21  ;;  %3300 = vmatprep.subr.bf16.mxu0 %v11898_v31  ;;  %v11947_v21 = vld [vmem:[#allocation119_spill] sm:$0xff]  ;;  %v11948_v31 = vld [vmem:[#allocation120_spill] sm:$0xff] }
 0x3d1   :  { %3341 = vmatprep.subr.bf16.mxu1 %v11899_v61  ;;  %v11949_v61 = vld [vmem:[#allocation121_spill] sm:$0xff] }
 0x3d3   :  { %3301 = vmatpush2.bf16.msra.mxu0 %v11900_v45  ;;  %v11950_v45 = vld [vmem:[#allocation122_spill] sm:$0xff] }
 0x3d4   :  { %3342 = vmatpush2.bf16.msra.mxu1 %v11901_v9  ;;  %3302 = vmatprep.subr.bf16.mxu0 %v11902_v23  ;;  %v11951_v9 = vld [vmem:[#allocation123_spill] sm:$0xff]  ;;  %v11952_v23 = vld [vmem:[#allocation124_spill] sm:$0xff] }
 0x3d5   :  { %3343 = vmatprep.subr.bf16.mxu1 %v11903_v24  ;;  %v11953_v24 = vld [vmem:[#allocation125_spill] sm:$0xff] }
 0x3d7   :  { %3303 = vmatpush2.bf16.msra.mxu0 %v11904_v25  ;;  %v11954_v25 = vld [vmem:[#allocation126_spill] sm:$0xff] }
 0x3d8   :  { %3344 = vmatpush2.bf16.msra.mxu1 %v11905_v62  ;;  %3304 = vmatprep.subr.bf16.mxu0 %v11906_v20  ;;  %v11955_v62 = vld [vmem:[#allocation127_spill] sm:$0xff]  ;;  %v11956_v20 = vld [vmem:[#allocation128_spill] sm:$0xff] }
 0x3d9   :  { %3345 = vmatprep.subr.bf16.mxu1 %v11907_v26  ;;  %v11957_v26 = vld [vmem:[#allocation129_spill] sm:$0xff] }
 0x3db   :  { %3305 = vmatpush2.bf16.msra.mxu0 %v11908_v0  ;;  %v11958_v0 = vld [vmem:[#allocation130_spill] sm:$0xff] }
 0x3dc   :  { %3346 = vmatpush2.bf16.msra.mxu1 %v11909_v29  ;;  %3306 = vmatprep.subr.bf16.mxu0 %v11910_v14  ;;  %v11959_v29 = vld [vmem:[#allocation131_spill] sm:$0xff]  ;;  %v11960_v14 = vld [vmem:[#allocation132_spill] sm:$0xff] }
 0x3dd   :  { %3347 = vmatprep.subr.bf16.mxu1 %v11911_v58  ;;  %v11961_v58 = vld [vmem:[#allocation133_spill] sm:$0xff] }
 0x3df   :  { %3307 = vmatpush2.bf16.msra.mxu0 %v11912_v30  ;;  %v11962_v30 = vld [vmem:[#allocation134_spill] sm:$0xff] }
 0x3e0   :  { %3348 = vmatpush2.bf16.msra.mxu1 %v11913_v35  ;;  %3358 = vmatprep.subr.bf16.mxu0 %v11914_v41  ;;  %v11963_v35 = vld [vmem:[#allocation135_spill] sm:$0xff]  ;;  %v11964_v41 = vld [vmem:[#allocation136_spill] sm:$0xff] }
 0x3e1   :  { %3399 = vmatprep.subr.bf16.mxu1 %v11915_v33  ;;  %v11965_v33 = vld [vmem:[#allocation137_spill] sm:$0xff] }
 0x3e2   :  { %v3027_v40 = vpop.f32.mrf.mxu0  ;;  %3309 = vmatmul.mubr.bf16.vlgmr.msra.gmra.mxu0 %v9152_v50 }
 0x3e3   :  { %v9159_v59 = vadd.f32 %v3027_v40, %v9084_v22  ;;  %v9161_v4 = vpop.f32.mrf.mxu1  ;;  %3350 = vmatmul.mubr.bf16.vlgmr.msra.gmra.mxu1 %v9072_v55  ;;  %3359 = vmatpush1.bf16.msra.mxu0 %v11916_v57  ;;  %v11918_v22 = vld [vmem:[#allocation90_spill] sm:$0xff]  ;;  %v11967_v57 = vld [vmem:[#allocation139_spill] sm:$0xff] }
 0x3e4   :  { %3390 = vmatprep.mubr.bf16.mxu0 %v8233_v11  ;;  %3400 = vmatpush1.bf16.msra.mxu1 %v11917_v48  ;;  %v3029_v28 = vpop.f32.mrf.mxu0  ;;  %v11920_v11 = vld [vmem:[#allocation92_spill] sm:$0xff]  ;;  %v11966_v40 = vld [vmem:[#allocation138_spill] sm:$0xff] }
 0x3e5   :  { %3431 = vmatprep.mubr.bf16.mxu1 %v9080_v13  ;;  %v9169_v32 = vadd.f32 %v3029_v28, %v9090_v36  ;;  %v9171_v51 = vpop.f32.mrf.mxu1  ;;  %3360 = vmatprep.subr.bf16.mxu0 %v11918_v22  ;;  %v11968_v48 = vld [vmem:[#allocation140_spill] sm:$0xff]  ;;  %v11969_v28 = vld [vmem:[#allocation141_spill] sm:$0xff]  ;;  %v11970_v22 = vld [vmem:[#allocation142_spill] sm:$0xff] }
 0x3e6   :  { %v3031_v46 = vpop.f32.mrf.mxu0  ;;  %3401 = vmatprep.subr.bf16.mxu1 %v11919_v5  ;;  %v9234_v5 = vld [vmem:[#allocation2 + $0x10] sm:$0xff] }
 0x3e7   :  { %v3157_v55 = vmax.f32 %v9159_v59, %v9169_v32  ;;  %v3072_v34 = vpop.f32.mrf.mxu1  ;;  %3361 = vmatpush1.bf16.msra.mxu0 %v11920_v11  ;;  %v11971_v46 = vld [vmem:[#allocation143_spill] sm:$0xff] }
 0x3e8   :  { %3402 = vmatpush1.bf16.msra.mxu1 %v11921_v37  ;;  %v3032_v38 = vpop.f32.mrf.mxu0  ;;  %3362 = vmatprep.subr.bf16.mxu0 %v11922_v42  ;;  %v11972_v34 = vld [vmem:[#allocation144_spill] sm:$0xff]  ;;  %v9240_v11 = vld [vmem:[%s11349_s3 + $0xe4] ss:$16 sps:$4 sm:$0xff]   ;;  %v9252_v42 = vcombine.high %v9234_v5, %v9234_v5 }
 0x3e9   :  { %v3073_v36 = vpop.f32.mrf.mxu1  ;;  %3403 = vmatprep.subr.bf16.mxu1 %v11923_v10  ;;  %v9246_v37 = vld [vmem:[%s11349_s3 + $0x2e4] ss:$16 sps:$4 sm:$0xff]  }
 0x3ea   :  { %v9337_v32 = vld [vmem:[%s11349_s3 + $0x284] ss:$16 sps:$4 sm:$0xff]  }
 0x3eb   :  { %3363 = vmatpush1.bf16.msra.mxu0 %v11924_v1  ;;  %v9259_v1 = vld [vmem:[%s11349_s3 + $0xe0] ss:$16 sps:$4 sm:$0xff]  }
 0x3ec   :  { %3404 = vmatpush1.bf16.msra.mxu1 %v11925_v39  ;;  %3364 = vmatprep.subr.bf16.mxu0 %v11926_v52 }
 0x3ed   :  { %3405 = vmatprep.subr.bf16.mxu1 %v11927_v63  ;;  %v9274_v63 = vld [vmem:[%s11349_s3 + $0xc4] ss:$16 sps:$4 sm:$0xff]  }
 0x3ef   :  { %3365 = vmatpush1.bf16.msra.mxu0 %v11928_v54 }
 0x3f0   :  { %3406 = vmatpush1.bf16.msra.mxu1 %v11929_v56  ;;  %3366 = vmatprep.subr.bf16.mxu0 %v11930_v2  ;;  %v9280_v56 = vld [vmem:[%s11349_s3 + $0x2c4] ss:$16 sps:$4 sm:$0xff]  }
 0x3f1   :  { %3407 = vmatprep.subr.bf16.mxu1 %v11931_v3 }
 0x3f3   :  { %3367 = vmatpush1.bf16.msra.mxu0 %v11932_v6 }
 0x3f4   :  { %3408 = vmatpush1.bf16.msra.mxu1 %v11933_v12  ;;  %3368 = vmatprep.subr.bf16.mxu0 %v11934_v15  ;;  %v9292_v12 = vld [vmem:[%s11349_s3 + $0x2c0] ss:$16 sps:$4 sm:$0xff]  }
 0x3f5   :  { %3409 = vmatprep.subr.bf16.mxu1 %v8730_v7  ;;  %v11941_v7 = vld [vmem:[#allocation113_spill] sm:$0xff] }
 0x3f7   :  { %3369 = vmatpush1.bf16.msra.mxu0 %v8736_v43  ;;  %v11942_v43 = vld [vmem:[#allocation114_spill] sm:$0xff] }
 0x3f8   :  { %3410 = vmatpush1.bf16.msra.mxu1 %v8743_v8  ;;  %3370 = vmatprep.subr.bf16.mxu0 %v8748_v53  ;;  %v11943_v8 = vld [vmem:[#allocation115_spill] sm:$0xff]  ;;  %v11944_v53 = vld [vmem:[#allocation116_spill] sm:$0xff] }
 0x3f9   :  { %3411 = vmatprep.subr.bf16.mxu1 %v8754_v60  ;;  %v11945_v60 = vld [vmem:[#allocation117_spill] sm:$0xff] }
 0x3fb   :  { %3371 = vmatpush1.bf16.msra.mxu0 %v11935_v16  ;;  %v9298_v16 = vld [vmem:[%s11349_s3 + $0xa4] ss:$16 sps:$4 sm:$0xff]  }
 0x3fc   :  { %3412 = vmatpush1.bf16.msra.mxu1 %v11936_v17  ;;  %3372 = vmatprep.subr.bf16.mxu0 %v11937_v47 }
 0x3fd   :  { %3413 = vmatprep.subr.bf16.mxu1 %v11938_v49  ;;  %v9304_v49 = vld [vmem:[%s11349_s3 + $0x2a4] ss:$16 sps:$4 sm:$0xff]  }
 0x3ff   :  { %3373 = vmatpush1.bf16.msra.mxu0 %v11939_v18  ;;  %v9310_v18 = vld [vmem:[%s11350_s4] ss:$0 sm:$0xff] }
 0x400   :  { %3414 = vmatpush1.bf16.msra.mxu1 %v11940_v44  ;;  %3374 = vmatprep.subr.bf16.mxu0 %v11941_v7  ;;  %v9318_v7 = vld [vmem:[%s11349_s3 + $0xa0] ss:$16 sps:$4 sm:$0xff]  }
 0x401   :  { %3415 = vmatprep.subr.bf16.mxu1 %v11942_v43  ;;  %v9324_v43 = vld [vmem:[%s11349_s3 + $0x2a0] ss:$16 sps:$4 sm:$0xff]  }
 0x403   :  { %3375 = vmatpush2.bf16.msra.mxu0 %v11943_v8  ;;  %v9330_v8 = vld [vmem:[%s11349_s3 + $0x84] ss:$16 sps:$4 sm:$0xff]  }
 0x404   :  { %3416 = vmatpush2.bf16.msra.mxu1 %v11944_v53  ;;  %3376 = vmatprep.subr.bf16.mxu0 %v11945_v60  ;;  %v9343_v53 = vld [vmem:[%s11349_s3 + $0x80] ss:$16 sps:$4 sm:$0xff]  }
 0x405   :  { %3417 = vmatprep.subr.bf16.mxu1 %v11946_v19  ;;  %v9349_v60 = vld [vmem:[%s11349_s3 + $0x280] ss:$16 sps:$4 sm:$0xff]   ;;  %v9355_v19 = vld [vmem:[%s11349_s3 + $0x64] ss:$16 sps:$4 sm:$0xff]  }
 0x407   :  { %3377 = vmatpush2.bf16.msra.mxu0 %v11947_v21 }
 0x408   :  { %3418 = vmatpush2.bf16.msra.mxu1 %v11948_v31  ;;  %3378 = vmatprep.subr.bf16.mxu0 %v11949_v61  ;;  %v9361_v31 = vld [vmem:[%s11349_s3 + $0x264] ss:$16 sps:$4 sm:$0xff]   ;;  %v9367_v61 = vld [vmem:[%s11349_s3 + $0x60] ss:$16 sps:$4 sm:$0xff]  }
 0x409   :  { %3419 = vmatprep.subr.bf16.mxu1 %v11950_v45  ;;  %v9373_v45 = vld [vmem:[%s11349_s3 + $0x260] ss:$16 sps:$4 sm:$0xff]  }
 0x40b   :  { %3379 = vmatpush2.bf16.msra.mxu0 %v11951_v9  ;;  %v9379_v9 = vld [vmem:[%s11349_s3 + $0x44] ss:$16 sps:$4 sm:$0xff]  }
 0x40c   :  { %3420 = vmatpush2.bf16.msra.mxu1 %v11952_v23  ;;  %3380 = vmatprep.subr.bf16.mxu0 %v11953_v24  ;;  %v9385_v23 = vld [vmem:[%s11349_s3 + $0x244] ss:$16 sps:$4 sm:$0xff]   ;;  %v9391_v24 = vld [vmem:[%s11349_s3 + $0x40] ss:$16 sps:$4 sm:$0xff]  }
 0x40d   :  { %3421 = vmatprep.subr.bf16.mxu1 %v11954_v25  ;;  %v9397_v25 = vld [vmem:[%s11349_s3 + $0x240] ss:$16 sps:$4 sm:$0xff]  }
 0x40f   :  { %3381 = vmatpush2.bf16.msra.mxu0 %v11955_v62  ;;  %v9403_v62 = vld [vmem:[%s11349_s3 + $0x24] ss:$16 sps:$4 sm:$0xff]  }
 0x410   :  { %3422 = vmatpush2.bf16.msra.mxu1 %v11956_v20  ;;  %3382 = vmatprep.subr.bf16.mxu0 %v11957_v26  ;;  %v9409_v20 = vld [vmem:[%s11349_s3 + $0x224] ss:$16 sps:$4 sm:$0xff]   ;;  %v9415_v26 = vld [vmem:[%s11349_s3 + $0x20] ss:$16 sps:$4 sm:$0xff]  }
 0x411   :  { %3423 = vmatprep.subr.bf16.mxu1 %v11958_v0  ;;  %v9421_v0 = vld [vmem:[%s11349_s3 + $0x220] ss:$16 sps:$4 sm:$0xff]  }
 0x413   :  { %3383 = vmatpush2.bf16.msra.mxu0 %v11959_v29  ;;  %v9427_v29 = vld [vmem:[%s11349_s3 + $0x4] ss:$16 sps:$4 sm:$0xff]  }
 0x414   :  { %3424 = vmatpush2.bf16.msra.mxu1 %v11960_v14  ;;  %3384 = vmatprep.subr.bf16.mxu0 %v11961_v58  ;;  %v9433_v14 = vld [vmem:[%s11349_s3 + $0x204] ss:$16 sps:$4 sm:$0xff]   ;;  %v9439_v58 = vld [vmem:[%s11349_s3] ss:$16 sps:$4 sm:$0xff]  }
 0x415   :  { %3425 = vmatprep.subr.bf16.mxu1 %v11962_v30 }
 0x417   :  { %3385 = vmatpush2.bf16.msra.mxu0 %v11963_v35 }
 0x418   :  { %3426 = vmatpush2.bf16.msra.mxu1 %v11964_v41  ;;  %3386 = vmatprep.subr.bf16.mxu0 %v11965_v33 }
 0x419   :  { %3427 = vmatprep.subr.bf16.mxu1 %v11966_v40 }
 0x41b   :  { %3387 = vmatpush2.bf16.msra.mxu0 %v11967_v57 }
 0x41c   :  { %3428 = vmatpush2.bf16.msra.mxu1 %v11968_v48  ;;  %3388 = vmatprep.subr.bf16.mxu0 %v11969_v28 }
 0x41d   :  { %3429 = vmatprep.subr.bf16.mxu1 %v11970_v22 }
 0x41f   :  { %3389 = vmatpush2.bf16.msra.mxu0 %v11971_v46 }
 0x420   :  { %3430 = vmatpush2.bf16.msra.mxu1 %v11972_v34  ;;  %3471 = vmatprep.subr.bf16.mxu0 %v9240_v11 }
 0x421   :  { %3512 = vmatprep.subr.bf16.mxu1 %v9246_v37 }
 0x422   :  { %v3109_v38 = vpop.f32.mrf.mxu0  ;;  %3391 = vmatmul.mubr.bf16.vlgmr.msra.gmra.mxu0 %v8612_v27  ;;  %v9266_v27 = vld [vmem:[%s11349_s3 + $0x2e0] ss:$16 sps:$4 sm:$0xff]  }
 0x423   :  { %v3110_v36 = vadd.f32 %v3109_v38, %v9161_v4  ;;  %v3150_v10 = vpop.f32.mrf.mxu1  ;;  %3432 = vmatmul.mubr.bf16.vlgmr.msra.gmra.mxu1 %v9152_v50  ;;  %3472 = vmatpush1.bf16.msra.mxu0 %v9259_v1  ;;  %v9445_v38 = vld [vmem:[%s11349_s3 + $0x200] ss:$16 sps:$4 sm:$0xff]  }
 0x424   :  { %3503 = vmatprep.mubr.bf16.mxu0 %v9252_v42  ;;  %3513 = vmatpush1.bf16.msra.mxu1 %v9266_v27  ;;  %v3111_v4 = vpop.f32.mrf.mxu0 }
 0x425   :  { %3544 = vmatprep.mubr.bf16.mxu1 %v9080_v13  ;;  %v3112_v39 = vadd.f32 %v3111_v4, %v9171_v51  ;;  %v3152_v52 = vpop.f32.mrf.mxu1  ;;  %3473 = vmatprep.subr.bf16.mxu0 %v9274_v63  ;;  %v3151_v2 = vadd.f32 %v3150_v10, %v3110_v36  ;;  %v9286_v51 = vld [vmem:[%s11349_s3 + $0xc0] ss:$16 sps:$4 sm:$0xff]   ;;  %v9451_v36 = vld [vmem:[%s11349_s3 + $0x1e4] ss:$16 sps:$4 sm:$0xff]  }
 0x426   :  { %v3113_v54 = vpop.f32.mrf.mxu0  ;;  %3514 = vmatprep.subr.bf16.mxu1 %v9280_v56  ;;  %v9457_v10 = vld [vmem:[%s11349_s3 + $0x3e4] ss:$16 sps:$4 sm:$0xff]   ;;  %v9463_v4 = vld [vmem:[%s11349_s3 + $0x1e0] ss:$16 sps:$4 sm:$0xff]  }
 0x427   :  { %v3153_v3 = vadd.f32 %v3152_v52, %v3112_v39  ;;  %v3154_v6 = vpop.f32.mrf.mxu1  ;;  %3474 = vmatpush1.bf16.msra.mxu0 %v9286_v51  ;;  %v9469_v39 = vld [vmem:[%s11349_s3 + $0x3e0] ss:$16 sps:$4 sm:$0xff]   ;;  %v9475_v52 = vld [vmem:[%s11349_s3 + $0x1c4] ss:$16 sps:$4 sm:$0xff]  }
 0x428   :  { %3515 = vmatpush1.bf16.msra.mxu1 %v9292_v12  ;;  %v3114_v15 = vpop.f32.mrf.mxu0  ;;  %3475 = vmatprep.subr.bf16.mxu0 %v9298_v16  ;;  %11973 = vst [vmem:[#allocation4_spill] sm:$0xff] %v9475_v52  ;;  %v9481_v54 = vld [vmem:[%s11349_s3 + $0x3c4] ss:$16 sps:$4 sm:$0xff]  }
 0x429   :  { %v3158_v17 = vmax.f32 %v3151_v2, %v3153_v3  ;;  %v3155_v47 = vpop.f32.mrf.mxu1  ;;  %3516 = vmatprep.subr.bf16.mxu1 %v9304_v49  ;;  %11974 = vst [vmem:[#allocation5_spill] sm:$0xff] %v9481_v54  ;;  %v9487_v2 = vld [vmem:[%s11349_s3 + $0x1c0] ss:$16 sps:$4 sm:$0xff]   ;;  %v9499_v6 = vld [vmem:[%s11349_s3 + $0x1a4] ss:$16 sps:$4 sm:$0xff]  }
 0x42a   :  { %11975 = vst [vmem:[#allocation6_spill] sm:$0xff] %v9487_v2  ;;  %v9493_v3 = vld [vmem:[%s11349_s3 + $0x3c0] ss:$16 sps:$4 sm:$0xff]   ;;  %11977 = vst [vmem:[#allocation8_spill] sm:$0xff] %v9499_v6  ;;  %v9505_v15 = vld [vmem:[%s11349_s3 + $0x3a4] ss:$16 sps:$4 sm:$0xff]  }
 0x42b   :  { %v3159_v44 = vmax.f32 %v3157_v55, %v3158_v17  ;;  %3476 = vmatpush1.bf16.msra.mxu0 %v9318_v7  ;;  %11976 = vst [vmem:[#allocation7_spill] sm:$0xff] %v9493_v3  ;;  %11978 = vst [vmem:[#allocation9_spill] sm:$0xff] %v9505_v15  ;;  %v9511_v17 = vld [vmem:[%s11349_s3 + $0x1a0] ss:$16 sps:$4 sm:$0xff]  }
 0x42c   :  { %3517 = vmatpush1.bf16.msra.mxu1 %v9324_v43  ;;  %3477 = vmatprep.subr.bf16.mxu0 %v9330_v8  ;;  %11979 = vst [vmem:[#allocation10_spill] sm:$0xff] %v9511_v17  ;;  %v9517_v47 = vld [vmem:[%s11349_s3 + $0x3a0] ss:$16 sps:$4 sm:$0xff]  }
 0x42d   :  { %v3166_v59 = vadd.f32 %v9310_v18, %v3159_v44  ;;  %3518 = vmatprep.subr.bf16.mxu1 %v9337_v32  ;;  %11980 = vst [vmem:[#allocation11_spill] sm:$0xff] %v9517_v47  ;;  %v9523_v44 = vld [vmem:[%s11349_s3 + $0x184] ss:$16 sps:$4 sm:$0xff]  }
 0x42e   :  { %11981 = vst [vmem:[#allocation12_spill] sm:$0xff] %v9523_v44 }
 0x42f   :  { %v3167_v55 = vmax.f32 %v3166_v59, 0.0  ;;  %3478 = vmatpush1.bf16.msra.mxu0 %v9343_v53  ;;  %v9529_v59 = vld [vmem:[%s11349_s3 + $0x384] ss:$16 sps:$4 sm:$0xff]  }
 0x430   :  { %3519 = vmatpush1.bf16.msra.mxu1 %v9349_v60  ;;  %3479 = vmatprep.subr.bf16.mxu0 %v9355_v19  ;;  %11982 = vst [vmem:[#allocation13_spill] sm:$0xff] %v9529_v59 }
 0x431   :  { %v3168_v21 = vpack.c.bf16 %v3167_v55, %v3167_v55  ;;  %3520 = vmatprep.subr.bf16.mxu1 %v9361_v31  ;;  %v9535_v55 = vld [vmem:[%s11349_s3 + $0x180] ss:$16 sps:$4 sm:$0xff]  }
 0x432   :  { %11983 = vst [vmem:[#allocation14_spill] sm:$0xff] %v9535_v55 }
 0x433   :  { %3169 = vst [vmem:[#allocation3] sm:$0xf] %v3168_v21  ;;  %3480 = vmatpush1.bf16.msra.mxu0 %v9367_v61  ;;  %v9541_v21 = vld [vmem:[%s11349_s3 + $0x380] ss:$16 sps:$4 sm:$0xff]  }
 0x434   :  { %3521 = vmatpush1.bf16.msra.mxu1 %v9373_v45  ;;  %3481 = vmatprep.subr.bf16.mxu0 %v9379_v9  ;;  %11984 = vst [vmem:[#allocation15_spill] sm:$0xff] %v9541_v21 }
 0x435   :  { %3522 = vmatprep.subr.bf16.mxu1 %v9385_v23 }
 0x437   :  { %3482 = vmatpush1.bf16.msra.mxu0 %v9391_v24 }
 0x438   :  { %3523 = vmatpush1.bf16.msra.mxu1 %v9397_v25  ;;  %3483 = vmatprep.subr.bf16.mxu0 %v9403_v62 }
 0x439   :  { %3524 = vmatprep.subr.bf16.mxu1 %v9409_v20 }
 0x43b   :  { %3484 = vmatpush1.bf16.msra.mxu0 %v9415_v26 }
 0x43c   :  { %3525 = vmatpush1.bf16.msra.mxu1 %v9421_v0  ;;  %3485 = vmatprep.subr.bf16.mxu0 %v9427_v29 }
 0x43d   :  { %3526 = vmatprep.subr.bf16.mxu1 %v9433_v14 }
 0x43f   :  { %3486 = vmatpush1.bf16.msra.mxu0 %v9439_v58 }
 0x440   :  { %3527 = vmatpush1.bf16.msra.mxu1 %v9445_v38  ;;  %3487 = vmatprep.subr.bf16.mxu0 %v9451_v36 }
 0x441   :  { %3528 = vmatprep.subr.bf16.mxu1 %v9457_v10 }
 0x443   :  { %3488 = vmatpush2.bf16.msra.mxu0 %v9463_v4 }
 0x444   :  { %3529 = vmatpush2.bf16.msra.mxu1 %v9469_v39  ;;  %3489 = vmatprep.subr.bf16.mxu0 %v9475_v52 }
 0x445   :  { %3530 = vmatprep.subr.bf16.mxu1 %v9481_v54 }
 0x447   :  { %3490 = vmatpush2.bf16.msra.mxu0 %v9487_v2  ;;  %v9683_v2 = vld [vmem:[%s11349_s3 + $0x4c4] ss:$16 sps:$4 sm:$0xff]  }
 0x448   :  { %3531 = vmatpush2.bf16.msra.mxu1 %v9493_v3  ;;  %3491 = vmatprep.subr.bf16.mxu0 %v9499_v6  ;;  %12005 = vst [vmem:[#allocation36_spill] sm:$0xff] %v9683_v2 }
 0x449   :  { %3532 = vmatprep.subr.bf16.mxu1 %v9505_v15 }
 0x44b   :  { %3492 = vmatpush2.bf16.msra.mxu0 %v9511_v17 }
 0x44c   :  { %3533 = vmatpush2.bf16.msra.mxu1 %v9517_v47  ;;  %3493 = vmatprep.subr.bf16.mxu0 %v9523_v44  ;;  %v9547_v44 = vld [vmem:[%s11349_s3 + $0x164] ss:$16 sps:$4 sm:$0xff]   ;;  %v9638_v47 = vcombine.low %v9234_v5, %v9234_v5 }
 0x44d   :  { %3534 = vmatprep.subr.bf16.mxu1 %v9529_v59  ;;  %11985 = vst [vmem:[#allocation16_spill] sm:$0xff] %v9547_v44  ;;  %v9553_v59 = vld [vmem:[%s11349_s3 + $0x364] ss:$16 sps:$4 sm:$0xff]  }
 0x44e   :  { %11986 = vst [vmem:[#allocation17_spill] sm:$0xff] %v9553_v59 }
 0x44f   :  { %3494 = vmatpush2.bf16.msra.mxu0 %v9535_v55  ;;  %v9559_v55 = vld [vmem:[%s11349_s3 + $0x160] ss:$16 sps:$4 sm:$0xff]  }
 0x450   :  { %3535 = vmatpush2.bf16.msra.mxu1 %v9541_v21  ;;  %3495 = vmatprep.subr.bf16.mxu0 %v9547_v44  ;;  %11987 = vst [vmem:[#allocation18_spill] sm:$0xff] %v9559_v55  ;;  %v9565_v21 = vld [vmem:[%s11349_s3 + $0x360] ss:$16 sps:$4 sm:$0xff]   ;;  %v9571_v44 = vld [vmem:[%s11349_s3 + $0x144] ss:$16 sps:$4 sm:$0xff]  }
 0x451   :  { %3536 = vmatprep.subr.bf16.mxu1 %v9553_v59  ;;  %11988 = vst [vmem:[#allocation19_spill] sm:$0xff] %v9565_v21  ;;  %11989 = vst [vmem:[#allocation20_spill] sm:$0xff] %v9571_v44  ;;  %v9577_v59 = vld [vmem:[%s11349_s3 + $0x344] ss:$16 sps:$4 sm:$0xff]  }
 0x452   :  { %11990 = vst [vmem:[#allocation21_spill] sm:$0xff] %v9577_v59 }
 0x453   :  { %3496 = vmatpush2.bf16.msra.mxu0 %v9559_v55  ;;  %v9583_v55 = vld [vmem:[%s11349_s3 + $0x140] ss:$16 sps:$4 sm:$0xff]  }
 0x454   :  { %3537 = vmatpush2.bf16.msra.mxu1 %v9565_v21  ;;  %3497 = vmatprep.subr.bf16.mxu0 %v9571_v44  ;;  %11991 = vst [vmem:[#allocation22_spill] sm:$0xff] %v9583_v55  ;;  %v9589_v21 = vld [vmem:[%s11349_s3 + $0x340] ss:$16 sps:$4 sm:$0xff]   ;;  %v9595_v44 = vld [vmem:[%s11349_s3 + $0x124] ss:$16 sps:$4 sm:$0xff]  }
 0x455   :  { %3538 = vmatprep.subr.bf16.mxu1 %v9577_v59  ;;  %11992 = vst [vmem:[#allocation23_spill] sm:$0xff] %v9589_v21  ;;  %11993 = vst [vmem:[#allocation24_spill] sm:$0xff] %v9595_v44  ;;  %v9601_v59 = vld [vmem:[%s11349_s3 + $0x324] ss:$16 sps:$4 sm:$0xff]  }
 0x456   :  { %11994 = vst [vmem:[#allocation25_spill] sm:$0xff] %v9601_v59 }
 0x457   :  { %3498 = vmatpush2.bf16.msra.mxu0 %v9583_v55  ;;  %v9607_v55 = vld [vmem:[%s11349_s3 + $0x120] ss:$16 sps:$4 sm:$0xff]  }
 0x458   :  { %3539 = vmatpush2.bf16.msra.mxu1 %v9589_v21  ;;  %3499 = vmatprep.subr.bf16.mxu0 %v9595_v44  ;;  %11995 = vst [vmem:[#allocation26_spill] sm:$0xff] %v9607_v55  ;;  %v9613_v21 = vld [vmem:[%s11349_s3 + $0x320] ss:$16 sps:$4 sm:$0xff]   ;;  %v9619_v44 = vld [vmem:[%s11349_s3 + $0x104] ss:$16 sps:$4 sm:$0xff]  }
 0x459   :  { %3540 = vmatprep.subr.bf16.mxu1 %v9601_v59  ;;  %11996 = vst [vmem:[#allocation27_spill] sm:$0xff] %v9613_v21  ;;  %11997 = vst [vmem:[#allocation28_spill] sm:$0xff] %v9619_v44  ;;  %v9625_v59 = vld [vmem:[%s11349_s3 + $0x304] ss:$16 sps:$4 sm:$0xff]  }
 0x45a   :  { %11998 = vst [vmem:[#allocation29_spill] sm:$0xff] %v9625_v59 }
 0x45b   :  { %3500 = vmatpush2.bf16.msra.mxu0 %v9607_v55  ;;  %v9631_v55 = vld [vmem:[%s11349_s3 + $0x100] ss:$16 sps:$4 sm:$0xff]  }
 0x45c   :  { %3541 = vmatpush2.bf16.msra.mxu1 %v9613_v21  ;;  %3501 = vmatprep.subr.bf16.mxu0 %v9619_v44  ;;  %11999 = vst [vmem:[#allocation30_spill] sm:$0xff] %v9631_v55  ;;  %v9634_v21 = vld [vmem:[#allocation2 + $0x20] sm:$0xff] }
 0x45d   :  { %3542 = vmatprep.subr.bf16.mxu1 %v9625_v59  ;;  %v9643_v44 = vld [vmem:[%s11349_s3 + $0x300] ss:$16 sps:$4 sm:$0xff]   ;;  %v9649_v59 = vld [vmem:[%s11349_s3 + $0x4e4] ss:$16 sps:$4 sm:$0xff]  }
 0x45e   :  { %12000 = vst [vmem:[#allocation31_spill] sm:$0xff] %v9643_v44  ;;  %12001 = vst [vmem:[#allocation32_spill] sm:$0xff] %v9649_v59 }
 0x45f   :  { %3502 = vmatpush2.bf16.msra.mxu0 %v9631_v55  ;;  %v9655_v55 = vld [vmem:[%s11349_s3 + $0xec] ss:$16 sps:$4 sm:$0xff]  }
 0x460   :  { %3543 = vmatpush2.bf16.msra.mxu1 %v9643_v44  ;;  %3553 = vmatprep.subr.bf16.mxu0 %v9649_v59  ;;  %12002 = vst [vmem:[#allocation33_spill] sm:$0xff] %v9655_v55  ;;  %v9661_v44 = vcombine.high %v9634_v21, %v9634_v21  ;;  %v9667_v59 = vld [vmem:[%s11349_s3 + $0x4e0] ss:$16 sps:$4 sm:$0xff]  }
 0x461   :  { %3594 = vmatprep.subr.bf16.mxu1 %v9655_v55  ;;  %12003 = vst [vmem:[#allocation34_spill] sm:$0xff] %v9667_v59  ;;  %v9676_v55 = vld [vmem:[%s11349_s3 + $0xe8] ss:$16 sps:$4 sm:$0xff]  }
 0x462   :  { %v3228_v5 = vpop.f32.mrf.mxu0  ;;  %3504 = vmatmul.mubr.bf16.vlgmr.msra.gmra.mxu0 %v9638_v47  ;;  %12004 = vst [vmem:[#allocation35_spill] sm:$0xff] %v9676_v55 }
 0x463   :  { %v3269_v17 = vpop.f32.mrf.mxu1  ;;  %3545 = vmatmul.mubr.bf16.vlgmr.msra.gmra.mxu1 %v9152_v50  ;;  %3554 = vmatpush1.bf16.msra.mxu0 %v9667_v59  ;;  %v9691_v59 = vld [vmem:[%s11349_s3 + $0xcc] ss:$16 sps:$4 sm:$0xff]  }
 0x464   :  { %v9670_v15 = vadd.f32 %v3269_v17, %v3228_v5  ;;  %3585 = vmatprep.mubr.bf16.mxu0 %v9661_v44  ;;  %3595 = vmatpush1.bf16.msra.mxu1 %v9676_v55  ;;  %v3230_v6 = vpop.f32.mrf.mxu0  ;;  %12006 = vst [vmem:[#allocation37_spill] sm:$0xff] %v9691_v59 }
 0x465   :  { %3626 = vmatprep.mubr.bf16.mxu1 %v9252_v42  ;;  %v3271_v3 = vpop.f32.mrf.mxu1  ;;  %3555 = vmatprep.subr.bf16.mxu0 %v9683_v2  ;;  %v9697_v42 = vld [vmem:[%s11349_s3 + $0x4c0] ss:$16 sps:$4 sm:$0xff]   ;;  %v10101_v2 = vld [vmem:[%s11349_s3 + $0x2c8] ss:$16 sps:$4 sm:$0xff]  }
 0x466   :  { %v9686_v17 = vadd.f32 %v3271_v3, %v3230_v6  ;;  %v3232_v5 = vpop.f32.mrf.mxu0  ;;  %3596 = vmatprep.subr.bf16.mxu1 %v9691_v59  ;;  %12007 = vst [vmem:[#allocation38_spill] sm:$0xff] %v9697_v42  ;;  %v9703_v3 = vld [vmem:[%s11349_s3 + $0xc8] ss:$16 sps:$4 sm:$0xff]   ;;  %12070 = vst [vmem:[#allocation101_spill] sm:$0xff] %v10101_v2 }
 0x467   :  { %v3273_v55 = vpop.f32.mrf.mxu1  ;;  %3556 = vmatpush1.bf16.msra.mxu0 %v9697_v42  ;;  %12008 = vst [vmem:[#allocation39_spill] sm:$0xff] %v9703_v3  ;;  %v9709_v5 = vld [vmem:[%s11349_s3 + $0x4a4] ss:$16 sps:$4 sm:$0xff]   ;;  %v9715_v42 = vld [vmem:[%s11349_s3 + $0xac] ss:$16 sps:$4 sm:$0xff]  }
 0x468   :  { %3597 = vmatpush1.bf16.msra.mxu1 %v9703_v3  ;;  %v3233_v6 = vpop.f32.mrf.mxu0  ;;  %12009 = vst [vmem:[#allocation40_spill] sm:$0xff] %v9709_v5  ;;  %3557 = vmatprep.subr.bf16.mxu0 %v9709_v5  ;;  %12010 = vst [vmem:[#allocation41_spill] sm:$0xff] %v9715_v42  ;;  %v9721_v3 = vld [vmem:[%s11349_s3 + $0x4a0] ss:$16 sps:$4 sm:$0xff]  }
 0x469   :  { %v3274_v55 = vpop.f32.mrf.mxu1  ;;  %3598 = vmatprep.subr.bf16.mxu1 %v9715_v42  ;;  %12011 = vst [vmem:[#allocation42_spill] sm:$0xff] %v9721_v3  ;;  %v9727_v6 = vld [vmem:[%s11349_s3 + $0xa8] ss:$16 sps:$4 sm:$0xff]   ;;  %v9739_v42 = vld [vmem:[%s11349_s3 + $0x8c] ss:$16 sps:$4 sm:$0xff]  }
 0x46a   :  { %12012 = vst [vmem:[#allocation43_spill] sm:$0xff] %v9727_v6  ;;  %v9733_v55 = vld [vmem:[%s11349_s3 + $0x484] ss:$16 sps:$4 sm:$0xff]   ;;  %12014 = vst [vmem:[#allocation45_spill] sm:$0xff] %v9739_v42 }
 0x46b   :  { %3558 = vmatpush1.bf16.msra.mxu0 %v9721_v3  ;;  %12013 = vst [vmem:[#allocation44_spill] sm:$0xff] %v9733_v55  ;;  %v9745_v3 = vld [vmem:[%s11349_s3 + $0x480] ss:$16 sps:$4 sm:$0xff]  }
 0x46c   :  { %3599 = vmatpush1.bf16.msra.mxu1 %v9727_v6  ;;  %3559 = vmatprep.subr.bf16.mxu0 %v9733_v55  ;;  %12015 = vst [vmem:[#allocation46_spill] sm:$0xff] %v9745_v3  ;;  %v9751_v6 = vld [vmem:[%s11349_s3 + $0x88] ss:$16 sps:$4 sm:$0xff]   ;;  %v9757_v55 = vld [vmem:[%s11349_s3 + $0x464] ss:$16 sps:$4 sm:$0xff]  }
 0x46d   :  { %3600 = vmatprep.subr.bf16.mxu1 %v9739_v42  ;;  %12016 = vst [vmem:[#allocation47_spill] sm:$0xff] %v9751_v6  ;;  %12017 = vst [vmem:[#allocation48_spill] sm:$0xff] %v9757_v55  ;;  %v9763_v42 = vld [vmem:[%s11349_s3 + $0x6c] ss:$16 sps:$4 sm:$0xff]  }
 0x46e   :  { %12018 = vst [vmem:[#allocation49_spill] sm:$0xff] %v9763_v42 }
 0x46f   :  { %3560 = vmatpush1.bf16.msra.mxu0 %v9745_v3  ;;  %v9769_v3 = vld [vmem:[%s11349_s3 + $0x460] ss:$16 sps:$4 sm:$0xff]  }
 0x470   :  { %3601 = vmatpush1.bf16.msra.mxu1 %v9751_v6  ;;  %3561 = vmatprep.subr.bf16.mxu0 %v9757_v55  ;;  %12019 = vst [vmem:[#allocation50_spill] sm:$0xff] %v9769_v3  ;;  %v9775_v6 = vld [vmem:[%s11349_s3 + $0x68] ss:$16 sps:$4 sm:$0xff]   ;;  %v9781_v55 = vld [vmem:[%s11349_s3 + $0x444] ss:$16 sps:$4 sm:$0xff]  }
 0x471   :  { %3602 = vmatprep.subr.bf16.mxu1 %v9763_v42  ;;  %12020 = vst [vmem:[#allocation51_spill] sm:$0xff] %v9775_v6  ;;  %12021 = vst [vmem:[#allocation52_spill] sm:$0xff] %v9781_v55  ;;  %v9787_v42 = vld [vmem:[%s11349_s3 + $0x4c] ss:$16 sps:$4 sm:$0xff]  }
 0x472   :  { %12022 = vst [vmem:[#allocation53_spill] sm:$0xff] %v9787_v42 }
 0x473   :  { %3562 = vmatpush1.bf16.msra.mxu0 %v9769_v3  ;;  %v9793_v3 = vld [vmem:[%s11349_s3 + $0x440] ss:$16 sps:$4 sm:$0xff]  }
 0x474   :  { %3603 = vmatpush1.bf16.msra.mxu1 %v9775_v6  ;;  %3563 = vmatprep.subr.bf16.mxu0 %v9781_v55  ;;  %12023 = vst [vmem:[#allocation54_spill] sm:$0xff] %v9793_v3  ;;  %v9799_v6 = vld [vmem:[%s11349_s3 + $0x48] ss:$16 sps:$4 sm:$0xff]   ;;  %v9805_v55 = vld [vmem:[%s11349_s3 + $0x424] ss:$16 sps:$4 sm:$0xff]  }
 0x475   :  { %3604 = vmatprep.subr.bf16.mxu1 %v9787_v42  ;;  %12024 = vst [vmem:[#allocation55_spill] sm:$0xff] %v9799_v6  ;;  %12025 = vst [vmem:[#allocation56_spill] sm:$0xff] %v9805_v55  ;;  %v9811_v42 = vld [vmem:[%s11349_s3 + $0x2c] ss:$16 sps:$4 sm:$0xff]  }
 0x476   :  { %12026 = vst [vmem:[#allocation57_spill] sm:$0xff] %v9811_v42 }
 0x477   :  { %3564 = vmatpush1.bf16.msra.mxu0 %v9793_v3  ;;  %v9817_v3 = vld [vmem:[%s11349_s3 + $0x420] ss:$16 sps:$4 sm:$0xff]  }
 0x478   :  { %3605 = vmatpush1.bf16.msra.mxu1 %v9799_v6  ;;  %3565 = vmatprep.subr.bf16.mxu0 %v9805_v55  ;;  %12027 = vst [vmem:[#allocation58_spill] sm:$0xff] %v9817_v3  ;;  %v9823_v6 = vld [vmem:[%s11349_s3 + $0x28] ss:$16 sps:$4 sm:$0xff]   ;;  %v9829_v55 = vld [vmem:[%s11349_s3 + $0x404] ss:$16 sps:$4 sm:$0xff]  }
 0x479   :  { %3606 = vmatprep.subr.bf16.mxu1 %v9811_v42  ;;  %12028 = vst [vmem:[#allocation59_spill] sm:$0xff] %v9823_v6  ;;  %12029 = vst [vmem:[#allocation60_spill] sm:$0xff] %v9829_v55  ;;  %v9835_v42 = vld [vmem:[%s11349_s3 + $0xc] ss:$16 sps:$4 sm:$0xff]  }
 0x47a   :  { %12030 = vst [vmem:[#allocation61_spill] sm:$0xff] %v9835_v42 }
 0x47b   :  { %3566 = vmatpush1.bf16.msra.mxu0 %v9817_v3  ;;  %v9841_v3 = vld [vmem:[%s11349_s3 + $0x400] ss:$16 sps:$4 sm:$0xff]  }
 0x47c   :  { %3607 = vmatpush1.bf16.msra.mxu1 %v9823_v6  ;;  %3567 = vmatprep.subr.bf16.mxu0 %v9829_v55  ;;  %12031 = vst [vmem:[#allocation62_spill] sm:$0xff] %v9841_v3  ;;  %v9847_v6 = vld [vmem:[%s11349_s3 + $0x8] ss:$16 sps:$4 sm:$0xff]   ;;  %v9853_v55 = vld [vmem:[%s11349_s3 + $0x5e4] ss:$16 sps:$4 sm:$0xff]  }
 0x47d   :  { %3608 = vmatprep.subr.bf16.mxu1 %v9835_v42  ;;  %12032 = vst [vmem:[#allocation63_spill] sm:$0xff] %v9847_v6  ;;  %12033 = vst [vmem:[#allocation64_spill] sm:$0xff] %v9853_v55  ;;  %v9859_v42 = vld [vmem:[%s11349_s3 + $0x1ec] ss:$16 sps:$4 sm:$0xff]  }
 0x47e   :  { %12034 = vst [vmem:[#allocation65_spill] sm:$0xff] %v9859_v42 }
 0x47f   :  { %3568 = vmatpush1.bf16.msra.mxu0 %v9841_v3  ;;  %v9865_v3 = vld [vmem:[%s11349_s3 + $0x5e0] ss:$16 sps:$4 sm:$0xff]  }
 0x480   :  { %3609 = vmatpush1.bf16.msra.mxu1 %v9847_v6  ;;  %3569 = vmatprep.subr.bf16.mxu0 %v9853_v55  ;;  %12035 = vst [vmem:[#allocation66_spill] sm:$0xff] %v9865_v3  ;;  %v9871_v6 = vld [vmem:[%s11349_s3 + $0x1e8] ss:$16 sps:$4 sm:$0xff]   ;;  %v9877_v55 = vld [vmem:[%s11349_s3 + $0x5c4] ss:$16 sps:$4 sm:$0xff]  }
 0x481   :  { %3610 = vmatprep.subr.bf16.mxu1 %v9859_v42  ;;  %12036 = vst [vmem:[#allocation67_spill] sm:$0xff] %v9871_v6  ;;  %12037 = vst [vmem:[#allocation68_spill] sm:$0xff] %v9877_v55  ;;  %v9883_v42 = vld [vmem:[%s11349_s3 + $0x1cc] ss:$16 sps:$4 sm:$0xff]  }
 0x482   :  { %12038 = vst [vmem:[#allocation69_spill] sm:$0xff] %v9883_v42 }
 0x483   :  { %3570 = vmatpush2.bf16.msra.mxu0 %v9865_v3  ;;  %v9889_v3 = vld [vmem:[%s11349_s3 + $0x5c0] ss:$16 sps:$4 sm:$0xff]  }
 0x484   :  { %3611 = vmatpush2.bf16.msra.mxu1 %v9871_v6  ;;  %3571 = vmatprep.subr.bf16.mxu0 %v9877_v55  ;;  %12039 = vst [vmem:[#allocation70_spill] sm:$0xff] %v9889_v3  ;;  %v9895_v6 = vld [vmem:[%s11349_s3 + $0x1c8] ss:$16 sps:$4 sm:$0xff]   ;;  %v9901_v55 = vld [vmem:[%s11349_s3 + $0x5a4] ss:$16 sps:$4 sm:$0xff]  }
 0x485   :  { %3612 = vmatprep.subr.bf16.mxu1 %v9883_v42  ;;  %12040 = vst [vmem:[#allocation71_spill] sm:$0xff] %v9895_v6  ;;  %12041 = vst [vmem:[#allocation72_spill] sm:$0xff] %v9901_v55  ;;  %v9907_v42 = vld [vmem:[%s11349_s3 + $0x1ac] ss:$16 sps:$4 sm:$0xff]  }
 0x486   :  { %12042 = vst [vmem:[#allocation73_spill] sm:$0xff] %v9907_v42 }
 0x487   :  { %3572 = vmatpush2.bf16.msra.mxu0 %v9889_v3  ;;  %v9913_v3 = vld [vmem:[%s11349_s3 + $0x5a0] ss:$16 sps:$4 sm:$0xff]  }
 0x488   :  { %3613 = vmatpush2.bf16.msra.mxu1 %v9895_v6  ;;  %3573 = vmatprep.subr.bf16.mxu0 %v9901_v55  ;;  %12043 = vst [vmem:[#allocation74_spill] sm:$0xff] %v9913_v3  ;;  %v9919_v6 = vld [vmem:[%s11349_s3 + $0x1a8] ss:$16 sps:$4 sm:$0xff]   ;;  %v9925_v55 = vld [vmem:[%s11349_s3 + $0x584] ss:$16 sps:$4 sm:$0xff]  }
 0x489   :  { %3614 = vmatprep.subr.bf16.mxu1 %v9907_v42  ;;  %12044 = vst [vmem:[#allocation75_spill] sm:$0xff] %v9919_v6  ;;  %12045 = vst [vmem:[#allocation76_spill] sm:$0xff] %v9925_v55  ;;  %v9931_v42 = vld [vmem:[%s11349_s3 + $0x18c] ss:$16 sps:$4 sm:$0xff]  }
 0x48a   :  { %12046 = vst [vmem:[#allocation77_spill] sm:$0xff] %v9931_v42 }
 0x48b   :  { %3574 = vmatpush2.bf16.msra.mxu0 %v9913_v3  ;;  %v9937_v3 = vld [vmem:[%s11349_s3 + $0x580] ss:$16 sps:$4 sm:$0xff]  }
 0x48c   :  { %3615 = vmatpush2.bf16.msra.mxu1 %v9919_v6  ;;  %3575 = vmatprep.subr.bf16.mxu0 %v9925_v55  ;;  %12047 = vst [vmem:[#allocation78_spill] sm:$0xff] %v9937_v3  ;;  %v9943_v6 = vld [vmem:[%s11349_s3 + $0x188] ss:$16 sps:$4 sm:$0xff]   ;;  %v9949_v55 = vld [vmem:[%s11349_s3 + $0x564] ss:$16 sps:$4 sm:$0xff]  }
 0x48d   :  { %3616 = vmatprep.subr.bf16.mxu1 %v9931_v42  ;;  %12048 = vst [vmem:[#allocation79_spill] sm:$0xff] %v9943_v6  ;;  %12049 = vst [vmem:[#allocation80_spill] sm:$0xff] %v9949_v55  ;;  %v9955_v42 = vld [vmem:[%s11349_s3 + $0x16c] ss:$16 sps:$4 sm:$0xff]  }
 0x48e   :  { %12050 = vst [vmem:[#allocation81_spill] sm:$0xff] %v9955_v42 }
 0x48f   :  { %3576 = vmatpush2.bf16.msra.mxu0 %v9937_v3  ;;  %v9961_v3 = vld [vmem:[%s11349_s3 + $0x560] ss:$16 sps:$4 sm:$0xff]  }
 0x490   :  { %3617 = vmatpush2.bf16.msra.mxu1 %v9943_v6  ;;  %3577 = vmatprep.subr.bf16.mxu0 %v9949_v55  ;;  %12051 = vst [vmem:[#allocation82_spill] sm:$0xff] %v9961_v3  ;;  %v9967_v6 = vld [vmem:[%s11349_s3 + $0x168] ss:$16 sps:$4 sm:$0xff]   ;;  %v9973_v55 = vld [vmem:[%s11349_s3 + $0x544] ss:$16 sps:$4 sm:$0xff]  }
 0x491   :  { %3618 = vmatprep.subr.bf16.mxu1 %v9955_v42  ;;  %12052 = vst [vmem:[#allocation83_spill] sm:$0xff] %v9967_v6  ;;  %12053 = vst [vmem:[#allocation84_spill] sm:$0xff] %v9973_v55  ;;  %v9979_v42 = vld [vmem:[%s11349_s3 + $0x14c] ss:$16 sps:$4 sm:$0xff]  }
 0x492   :  { %12054 = vst [vmem:[#allocation85_spill] sm:$0xff] %v9979_v42 }
 0x493   :  { %3578 = vmatpush2.bf16.msra.mxu0 %v9961_v3  ;;  %v9985_v3 = vld [vmem:[%s11349_s3 + $0x540] ss:$16 sps:$4 sm:$0xff]  }
 0x494   :  { %3619 = vmatpush2.bf16.msra.mxu1 %v9967_v6  ;;  %3579 = vmatprep.subr.bf16.mxu0 %v9973_v55  ;;  %12055 = vst [vmem:[#allocation86_spill] sm:$0xff] %v9985_v3  ;;  %v9991_v6 = vld [vmem:[%s11349_s3 + $0x148] ss:$16 sps:$4 sm:$0xff]   ;;  %v9997_v55 = vld [vmem:[%s11349_s3 + $0x524] ss:$16 sps:$4 sm:$0xff]  }
 0x495   :  { %3620 = vmatprep.subr.bf16.mxu1 %v9979_v42  ;;  %12056 = vst [vmem:[#allocation87_spill] sm:$0xff] %v9991_v6  ;;  %12057 = vst [vmem:[#allocation88_spill] sm:$0xff] %v9997_v55  ;;  %v10003_v42 = vld [vmem:[%s11349_s3 + $0x12c] ss:$16 sps:$4 sm:$0xff]  }
 0x496   :  { %12058 = vst [vmem:[#allocation89_spill] sm:$0xff] %v10003_v42 }
 0x497   :  { %3580 = vmatpush2.bf16.msra.mxu0 %v9985_v3  ;;  %v10009_v3 = vld [vmem:[%s11349_s3 + $0x520] ss:$16 sps:$4 sm:$0xff]  }
 0x498   :  { %3621 = vmatpush2.bf16.msra.mxu1 %v9991_v6  ;;  %3581 = vmatprep.subr.bf16.mxu0 %v9997_v55  ;;  %12059 = vst [vmem:[#allocation90_spill] sm:$0xff] %v10009_v3  ;;  %v10015_v6 = vld [vmem:[%s11349_s3 + $0x128] ss:$16 sps:$4 sm:$0xff]   ;;  %v10021_v55 = vld [vmem:[%s11349_s3 + $0x504] ss:$16 sps:$4 sm:$0xff]  }
 0x499   :  { %3622 = vmatprep.subr.bf16.mxu1 %v10003_v42  ;;  %12060 = vst [vmem:[#allocation91_spill] sm:$0xff] %v10015_v6  ;;  %12061 = vst [vmem:[#allocation92_spill] sm:$0xff] %v10021_v55  ;;  %v10027_v42 = vld [vmem:[%s11349_s3 + $0x10c] ss:$16 sps:$4 sm:$0xff]  }
 0x49a   :  { %12062 = vst [vmem:[#allocation93_spill] sm:$0xff] %v10027_v42 }
 0x49b   :  { %3582 = vmatpush2.bf16.msra.mxu0 %v10009_v3  ;;  %v10033_v3 = vld [vmem:[%s11349_s3 + $0x500] ss:$16 sps:$4 sm:$0xff]  }
 0x49c   :  { %3623 = vmatpush2.bf16.msra.mxu1 %v10015_v6  ;;  %3583 = vmatprep.subr.bf16.mxu0 %v10021_v55  ;;  %12063 = vst [vmem:[#allocation94_spill] sm:$0xff] %v10033_v3  ;;  %v10038_v6 = vcombine.low %v9634_v21, %v9634_v21  ;;  %v10043_v55 = vld [vmem:[%s11349_s3 + $0x108] ss:$16 sps:$4 sm:$0xff]  }
 0x49d   :  { %3624 = vmatprep.subr.bf16.mxu1 %v10027_v42  ;;  %12064 = vst [vmem:[#allocation95_spill] sm:$0xff] %v10043_v55  ;;  %v10049_v42 = vld [vmem:[%s11349_s3 + $0x2ec] ss:$16 sps:$4 sm:$0xff]  }
 0x49e   :  { %12065 = vst [vmem:[#allocation96_spill] sm:$0xff] %v10049_v42 }
 0x49f   :  { %3584 = vmatpush2.bf16.msra.mxu0 %v10033_v3  ;;  %v10055_v3 = vld [vmem:[%s11349_s3 + $0x4ec] ss:$16 sps:$4 sm:$0xff]  }
 0x4a0   :  { %3625 = vmatpush2.bf16.msra.mxu1 %v10043_v55  ;;  %3635 = vmatprep.subr.bf16.mxu0 %v10049_v42  ;;  %12066 = vst [vmem:[#allocation97_spill] sm:$0xff] %v10055_v3  ;;  %v10068_v42 = vld [vmem:[%s11349_s3 + $0x2e8] ss:$16 sps:$4 sm:$0xff]  }
 0x4a1   :  { %3676 = vmatprep.subr.bf16.mxu1 %v10055_v3  ;;  %12067 = vst [vmem:[#allocation98_spill] sm:$0xff] %v10068_v42  ;;  %v10075_v3 = vld [vmem:[%s11349_s3 + $0x4e8] ss:$16 sps:$4 sm:$0xff]  }
 0x4a2   :  { %v3310_v21 = vpop.f32.mrf.mxu0  ;;  %3586 = vmatmul.mubr.bf16.vlgmr.msra.gmra.mxu0 %v10038_v6  ;;  %12068 = vst [vmem:[#allocation99_spill] sm:$0xff] %v10075_v3 }
 0x4a3   :  { %v10060_v5 = vadd.f32 %v3310_v21, %v9670_v15  ;;  %v10062_v55 = vpop.f32.mrf.mxu1  ;;  %3627 = vmatmul.mubr.bf16.vlgmr.msra.gmra.mxu1 %v9638_v47  ;;  %3636 = vmatpush1.bf16.msra.mxu0 %v10068_v42  ;;  %v10087_v42 = vld [vmem:[%s11349_s3 + $0x2cc] ss:$16 sps:$4 sm:$0xff]  }
 0x4a4   :  { %3667 = vmatprep.mubr.bf16.mxu0 %v9080_v13  ;;  %3677 = vmatpush1.bf16.msra.mxu1 %v10075_v3  ;;  %v3312_v15 = vpop.f32.mrf.mxu0  ;;  %12069 = vst [vmem:[#allocation100_spill] sm:$0xff] %v10087_v42  ;;  %v10093_v3 = vld [vmem:[%s11349_s3 + $0x4cc] ss:$16 sps:$4 sm:$0xff]  }
 0x4a5   :  { %3708 = vmatprep.mubr.bf16.mxu1 %v9661_v44  ;;  %v10080_v47 = vadd.f32 %v3312_v15, %v9686_v17  ;;  %v10082_v21 = vpop.f32.mrf.mxu1  ;;  %3637 = vmatprep.subr.bf16.mxu0 %v10087_v42  ;;  %v10113_v17 = vld [vmem:[%s11349_s3 + $0x2ac] ss:$16 sps:$4 sm:$0xff]  }
 0x4a6   :  { %v3314_v59 = vpop.f32.mrf.mxu0  ;;  %3678 = vmatprep.subr.bf16.mxu1 %v10093_v3 }
 0x4a7   :  { %v3355_v15 = vpop.f32.mrf.mxu1  ;;  %3638 = vmatpush1.bf16.msra.mxu0 %v10101_v2  ;;  %v10107_v59 = vld [vmem:[%s11349_s3 + $0x4c8] ss:$16 sps:$4 sm:$0xff]   ;;  %v10119_v2 = vld [vmem:[%s11349_s3 + $0x4ac] ss:$16 sps:$4 sm:$0xff]  }
 0x4a8   :  { %12071 = vst [vmem:[#allocation102_spill] sm:$0xff] %v10107_v59  ;;  %3679 = vmatpush1.bf16.msra.mxu1 %v10107_v59  ;;  %v3315_v42 = vpop.f32.mrf.mxu0  ;;  %3639 = vmatprep.subr.bf16.mxu0 %v10113_v17  ;;  %12072 = vst [vmem:[#allocation103_spill] sm:$0xff] %v10119_v2  ;;  %v10125_v59 = vld [vmem:[%s11349_s3 + $0x2a8] ss:$16 sps:$4 sm:$0xff]  }
 0x4a9   :  { %v3356_v15 = vpop.f32.mrf.mxu1  ;;  %3680 = vmatprep.subr.bf16.mxu1 %v10119_v2  ;;  %12073 = vst [vmem:[#allocation104_spill] sm:$0xff] %v10125_v59  ;;  %v10131_v42 = vld [vmem:[%s11349_s3 + $0x4a8] ss:$16 sps:$4 sm:$0xff]   ;;  %v10143_v2 = vld [vmem:[%s11349_s3 + $0x48c] ss:$16 sps:$4 sm:$0xff]  }
 0x4aa   :  { %12074 = vst [vmem:[#allocation105_spill] sm:$0xff] %v10131_v42  ;;  %v10137_v15 = vld [vmem:[%s11349_s3 + $0x28c] ss:$16 sps:$4 sm:$0xff]   ;;  %12076 = vst [vmem:[#allocation107_spill] sm:$0xff] %v10143_v2 }
 0x4ab   :  { %3640 = vmatpush1.bf16.msra.mxu0 %v10125_v59  ;;  %12075 = vst [vmem:[#allocation106_spill] sm:$0xff] %v10137_v15  ;;  %v10149_v59 = vld [vmem:[%s11349_s3 + $0x288] ss:$16 sps:$4 sm:$0xff]  }
 0x4ac   :  { %3681 = vmatpush1.bf16.msra.mxu1 %v10131_v42  ;;  %3641 = vmatprep.subr.bf16.mxu0 %v10137_v15  ;;  %12077 = vst [vmem:[#allocation108_spill] sm:$0xff] %v10149_v59  ;;  %v10155_v42 = vld [vmem:[%s11349_s3 + $0x488] ss:$16 sps:$4 sm:$0xff]   ;;  %v10161_v15 = vld [vmem:[%s11349_s3 + $0x26c] ss:$16 sps:$4 sm:$0xff]  }
 0x4ad   :  { %3682 = vmatprep.subr.bf16.mxu1 %v10143_v2  ;;  %12078 = vst [vmem:[#allocation109_spill] sm:$0xff] %v10155_v42  ;;  %12079 = vst [vmem:[#allocation110_spill] sm:$0xff] %v10161_v15  ;;  %v10167_v2 = vld [vmem:[%s11349_s3 + $0x46c] ss:$16 sps:$4 sm:$0xff]  }
 0x4ae   :  { %12080 = vst [vmem:[#allocation111_spill] sm:$0xff] %v10167_v2 }
 0x4af   :  { %3642 = vmatpush1.bf16.msra.mxu0 %v10149_v59  ;;  %v10173_v59 = vld [vmem:[%s11349_s3 + $0x268] ss:$16 sps:$4 sm:$0xff]  }
 0x4b0   :  { %3683 = vmatpush1.bf16.msra.mxu1 %v10155_v42  ;;  %3643 = vmatprep.subr.bf16.mxu0 %v10161_v15  ;;  %12081 = vst [vmem:[#allocation112_spill] sm:$0xff] %v10173_v59  ;;  %v10179_v42 = vld [vmem:[%s11349_s3 + $0x468] ss:$16 sps:$4 sm:$0xff]   ;;  %v10185_v15 = vld [vmem:[%s11349_s3 + $0x24c] ss:$16 sps:$4 sm:$0xff]  }
 0x4b1   :  { %3684 = vmatprep.subr.bf16.mxu1 %v10167_v2  ;;  %12082 = vst [vmem:[#allocation113_spill] sm:$0xff] %v10179_v42  ;;  %12083 = vst [vmem:[#allocation114_spill] sm:$0xff] %v10185_v15  ;;  %v10191_v2 = vld [vmem:[%s11349_s3 + $0x44c] ss:$16 sps:$4 sm:$0xff]  }
 0x4b2   :  { %12084 = vst [vmem:[#allocation115_spill] sm:$0xff] %v10191_v2 }
 0x4b3   :  { %3644 = vmatpush1.bf16.msra.mxu0 %v10173_v59  ;;  %v10197_v59 = vld [vmem:[%s11349_s3 + $0x248] ss:$16 sps:$4 sm:$0xff]  }
 0x4b4   :  { %3685 = vmatpush1.bf16.msra.mxu1 %v10179_v42  ;;  %3645 = vmatprep.subr.bf16.mxu0 %v10185_v15  ;;  %12085 = vst [vmem:[#allocation116_spill] sm:$0xff] %v10197_v59  ;;  %v10203_v42 = vld [vmem:[%s11349_s3 + $0x448] ss:$16 sps:$4 sm:$0xff]   ;;  %v10209_v15 = vld [vmem:[%s11349_s3 + $0x22c] ss:$16 sps:$4 sm:$0xff]  }
 0x4b5   :  { %3686 = vmatprep.subr.bf16.mxu1 %v10191_v2  ;;  %12086 = vst [vmem:[#allocation117_spill] sm:$0xff] %v10203_v42  ;;  %12087 = vst [vmem:[#allocation118_spill] sm:$0xff] %v10209_v15  ;;  %v10215_v2 = vld [vmem:[%s11349_s3 + $0x42c] ss:$16 sps:$4 sm:$0xff]  }
 0x4b6   :  { %12088 = vst [vmem:[#allocation119_spill] sm:$0xff] %v10215_v2 }
 0x4b7   :  { %3646 = vmatpush1.bf16.msra.mxu0 %v10197_v59  ;;  %v10221_v59 = vld [vmem:[%s11349_s3 + $0x228] ss:$16 sps:$4 sm:$0xff]  }
 0x4b8   :  { %3687 = vmatpush1.bf16.msra.mxu1 %v10203_v42  ;;  %3647 = vmatprep.subr.bf16.mxu0 %v10209_v15  ;;  %12089 = vst [vmem:[#allocation120_spill] sm:$0xff] %v10221_v59  ;;  %v10227_v42 = vld [vmem:[%s11349_s3 + $0x428] ss:$16 sps:$4 sm:$0xff]   ;;  %v10233_v15 = vld [vmem:[%s11349_s3 + $0x20c] ss:$16 sps:$4 sm:$0xff]  }
 0x4b9   :  { %3688 = vmatprep.subr.bf16.mxu1 %v10215_v2  ;;  %12090 = vst [vmem:[#allocation121_spill] sm:$0xff] %v10227_v42  ;;  %12091 = vst [vmem:[#allocation122_spill] sm:$0xff] %v10233_v15  ;;  %v10239_v2 = vld [vmem:[%s11349_s3 + $0x40c] ss:$16 sps:$4 sm:$0xff]  }
 0x4ba   :  { %12092 = vst [vmem:[#allocation123_spill] sm:$0xff] %v10239_v2 }
 0x4bb   :  { %3648 = vmatpush1.bf16.msra.mxu0 %v10221_v59  ;;  %v10245_v59 = vld [vmem:[%s11349_s3 + $0x208] ss:$16 sps:$4 sm:$0xff]  }
 0x4bc   :  { %3689 = vmatpush1.bf16.msra.mxu1 %v10227_v42  ;;  %3649 = vmatprep.subr.bf16.mxu0 %v10233_v15  ;;  %12093 = vst [vmem:[#allocation124_spill] sm:$0xff] %v10245_v59  ;;  %v10251_v42 = vld [vmem:[%s11349_s3 + $0x408] ss:$16 sps:$4 sm:$0xff]   ;;  %v10257_v15 = vld [vmem:[%s11349_s3 + $0x3ec] ss:$16 sps:$4 sm:$0xff]  }
 0x4bd   :  { %3690 = vmatprep.subr.bf16.mxu1 %v10239_v2  ;;  %12094 = vst [vmem:[#allocation125_spill] sm:$0xff] %v10251_v42  ;;  %12095 = vst [vmem:[#allocation126_spill] sm:$0xff] %v10257_v15  ;;  %v10263_v2 = vld [vmem:[%s11349_s3 + $0x5ec] ss:$16 sps:$4 sm:$0xff]  }
 0x4be   :  { %12096 = vst [vmem:[#allocation127_spill] sm:$0xff] %v10263_v2 }
 0x4bf   :  { %3650 = vmatpush1.bf16.msra.mxu0 %v10245_v59  ;;  %v10269_v59 = vld [vmem:[%s11349_s3 + $0x3e8] ss:$16 sps:$4 sm:$0xff]  }
 0x4c0   :  { %3691 = vmatpush1.bf16.msra.mxu1 %v10251_v42  ;;  %3651 = vmatprep.subr.bf16.mxu0 %v10257_v15  ;;  %12097 = vst [vmem:[#allocation128_spill] sm:$0xff] %v10269_v59  ;;  %v10275_v42 = vld [vmem:[%s11349_s3 + $0x5e8] ss:$16 sps:$4 sm:$0xff]   ;;  %v10281_v15 = vld [vmem:[%s11349_s3 + $0x3cc] ss:$16 sps:$4 sm:$0xff]  }
 0x4c1   :  { %3692 = vmatprep.subr.bf16.mxu1 %v10263_v2  ;;  %12098 = vst [vmem:[#allocation129_spill] sm:$0xff] %v10275_v42  ;;  %12099 = vst [vmem:[#allocation130_spill] sm:$0xff] %v10281_v15  ;;  %v10287_v2 = vld [vmem:[%s11349_s3 + $0x5cc] ss:$16 sps:$4 sm:$0xff]  }
 0x4c2   :  { %12100 = vst [vmem:[#allocation131_spill] sm:$0xff] %v10287_v2 }
 0x4c3   :  { %3652 = vmatpush2.bf16.msra.mxu0 %v10269_v59  ;;  %v10293_v59 = vld [vmem:[%s11349_s3 + $0x3c8] ss:$16 sps:$4 sm:$0xff]  }
 0x4c4   :  { %3693 = vmatpush2.bf16.msra.mxu1 %v10275_v42  ;;  %3653 = vmatprep.subr.bf16.mxu0 %v10281_v15  ;;  %12101 = vst [vmem:[#allocation132_spill] sm:$0xff] %v10293_v59  ;;  %v10299_v42 = vld [vmem:[%s11349_s3 + $0x5c8] ss:$16 sps:$4 sm:$0xff]   ;;  %v10305_v15 = vld [vmem:[%s11349_s3 + $0x3ac] ss:$16 sps:$4 sm:$0xff]  }
 0x4c5   :  { %3694 = vmatprep.subr.bf16.mxu1 %v10287_v2  ;;  %12102 = vst [vmem:[#allocation133_spill] sm:$0xff] %v10299_v42  ;;  %12103 = vst [vmem:[#allocation134_spill] sm:$0xff] %v10305_v15  ;;  %v10311_v2 = vld [vmem:[%s11349_s3 + $0x5ac] ss:$16 sps:$4 sm:$0xff]  }
 0x4c6   :  { %12104 = vst [vmem:[#allocation135_spill] sm:$0xff] %v10311_v2 }
 0x4c7   :  { %3654 = vmatpush2.bf16.msra.mxu0 %v10293_v59  ;;  %v10317_v59 = vld [vmem:[%s11349_s3 + $0x3a8] ss:$16 sps:$4 sm:$0xff]  }
 0x4c8   :  { %3695 = vmatpush2.bf16.msra.mxu1 %v10299_v42  ;;  %3655 = vmatprep.subr.bf16.mxu0 %v10305_v15  ;;  %12105 = vst [vmem:[#allocation136_spill] sm:$0xff] %v10317_v59  ;;  %v10323_v42 = vld [vmem:[%s11349_s3 + $0x5a8] ss:$16 sps:$4 sm:$0xff]   ;;  %v10329_v15 = vld [vmem:[%s11349_s3 + $0x38c] ss:$16 sps:$4 sm:$0xff]  }
 0x4c9   :  { %3696 = vmatprep.subr.bf16.mxu1 %v10311_v2  ;;  %12106 = vst [vmem:[#allocation137_spill] sm:$0xff] %v10323_v42  ;;  %12107 = vst [vmem:[#allocation138_spill] sm:$0xff] %v10329_v15  ;;  %v10335_v2 = vld [vmem:[%s11349_s3 + $0x58c] ss:$16 sps:$4 sm:$0xff]  }
 0x4ca   :  { %12108 = vst [vmem:[#allocation139_spill] sm:$0xff] %v10335_v2 }
 0x4cb   :  { %3656 = vmatpush2.bf16.msra.mxu0 %v10317_v59  ;;  %v10341_v59 = vld [vmem:[%s11349_s3 + $0x388] ss:$16 sps:$4 sm:$0xff]  }
 0x4cc   :  { %3697 = vmatpush2.bf16.msra.mxu1 %v10323_v42  ;;  %3657 = vmatprep.subr.bf16.mxu0 %v10329_v15  ;;  %12109 = vst [vmem:[#allocation140_spill] sm:$0xff] %v10341_v59  ;;  %v10347_v42 = vld [vmem:[%s11349_s3 + $0x588] ss:$16 sps:$4 sm:$0xff]   ;;  %v10353_v15 = vld [vmem:[%s11349_s3 + $0x36c] ss:$16 sps:$4 sm:$0xff]  }
 0x4cd   :  { %3698 = vmatprep.subr.bf16.mxu1 %v10335_v2  ;;  %12110 = vst [vmem:[#allocation141_spill] sm:$0xff] %v10347_v42  ;;  %12111 = vst [vmem:[#allocation142_spill] sm:$0xff] %v10353_v15  ;;  %v10359_v2 = vld [vmem:[%s11349_s3 + $0x56c] ss:$16 sps:$4 sm:$0xff]  }
 0x4cf   :  { %3658 = vmatpush2.bf16.msra.mxu0 %v10341_v59  ;;  %v10365_v59 = vld [vmem:[%s11349_s3 + $0x368] ss:$16 sps:$4 sm:$0xff]  }
 0x4d0   :  { %3699 = vmatpush2.bf16.msra.mxu1 %v10347_v42  ;;  %3659 = vmatprep.subr.bf16.mxu0 %v10353_v15  ;;  %v10371_v42 = vld [vmem:[%s11349_s3 + $0x568] ss:$16 sps:$4 sm:$0xff]   ;;  %v10377_v15 = vld [vmem:[%s11349_s3 + $0x34c] ss:$16 sps:$4 sm:$0xff]  }
 0x4d1   :  { %3700 = vmatprep.subr.bf16.mxu1 %v10359_v2 }
 0x4d3   :  { %3660 = vmatpush2.bf16.msra.mxu0 %v10365_v59 }
 0x4d4   :  { %3701 = vmatpush2.bf16.msra.mxu1 %v10371_v42  ;;  %3661 = vmatprep.subr.bf16.mxu0 %v10377_v15 }
 0x4d5   :  { %3702 = vmatprep.subr.bf16.mxu1 %v11962_v30 }
 0x4d7   :  { %3662 = vmatpush2.bf16.msra.mxu0 %v11963_v35 }
 0x4d8   :  { %3703 = vmatpush2.bf16.msra.mxu1 %v11964_v41  ;;  %3663 = vmatprep.subr.bf16.mxu0 %v11965_v33 }
 0x4d9   :  { %3704 = vmatprep.subr.bf16.mxu1 %v11966_v40 }
 0x4db   :  { %3664 = vmatpush2.bf16.msra.mxu0 %v11967_v57 }
 0x4dc   :  { %3705 = vmatpush2.bf16.msra.mxu1 %v11968_v48  ;;  %3665 = vmatprep.subr.bf16.mxu0 %v11969_v28 }
 0x4dd   :  { %3706 = vmatprep.subr.bf16.mxu1 %v11970_v22 }
 0x4df   :  { %3666 = vmatpush2.bf16.msra.mxu0 %v11971_v46 }
 0x4e0   :  { %3707 = vmatpush2.bf16.msra.mxu1 %v11972_v34  ;;  %3748 = vmatprep.subr.bf16.mxu0 %v9240_v11 }
 0x4e1   :  { %3789 = vmatprep.subr.bf16.mxu1 %v9246_v37 }
 0x4e2   :  { %v3392_v30 = vpop.f32.mrf.mxu0  ;;  %3668 = vmatmul.mubr.bf16.vlgmr.msra.gmra.mxu0 %v9152_v50 }
 0x4e3   :  { %v3393_v35 = vadd.f32 %v3392_v30, %v10062_v55  ;;  %v3433_v41 = vpop.f32.mrf.mxu1  ;;  %3709 = vmatmul.mubr.bf16.vlgmr.msra.gmra.mxu1 %v10038_v6  ;;  %3749 = vmatpush1.bf16.msra.mxu0 %v9259_v1 }
 0x4e4   :  { %3780 = vmatprep.mubr.bf16.mxu0 %v9080_v13  ;;  %3790 = vmatpush1.bf16.msra.mxu1 %v9266_v27  ;;  %v3394_v33 = vpop.f32.mrf.mxu0 }
 0x4e5   :  { %3821 = vmatprep.mubr.bf16.mxu1 %v9661_v44  ;;  %v3395_v40 = vadd.f32 %v3394_v33, %v10082_v21  ;;  %v3435_v57 = vpop.f32.mrf.mxu1  ;;  %3750 = vmatprep.subr.bf16.mxu0 %v9274_v63  ;;  %v3434_v28 = vadd.f32 %v3433_v41, %v3393_v35  ;;  %v12112_v21 = vmax.f32 %v10060_v5, %v10080_v47  ;;  %v12113_v5 = vld [vmem:[#allocation6_spill] sm:$0xff]  ;;  %v12114_v47 = vld [vmem:[#allocation7_spill] sm:$0xff] }
 0x4e6   :  { %v3396_v48 = vpop.f32.mrf.mxu0  ;;  %3791 = vmatprep.subr.bf16.mxu1 %v9280_v56 }
 0x4e7   :  { %v3436_v22 = vadd.f32 %v3435_v57, %v3395_v40  ;;  %v3437_v46 = vpop.f32.mrf.mxu1  ;;  %3751 = vmatpush1.bf16.msra.mxu0 %v9286_v51  ;;  %v12115_v57 = vld [vmem:[#allocation8_spill] sm:$0xff]  ;;  %v12116_v48 = vld [vmem:[#allocation9_spill] sm:$0xff] }
 0x4e8   :  { %3792 = vmatpush1.bf16.msra.mxu1 %v9292_v12  ;;  %v3397_v34 = vpop.f32.mrf.mxu0  ;;  %3752 = vmatprep.subr.bf16.mxu0 %v9298_v16  ;;  %v12119_v46 = vld [vmem:[#allocation12_spill] sm:$0xff] }
 0x4e9   :  { %v3441_v55 = vmax.f32 %v3434_v28, %v3436_v22  ;;  %v3438_v30 = vpop.f32.mrf.mxu1  ;;  %3793 = vmatprep.subr.bf16.mxu1 %v9304_v49  ;;  %v12117_v28 = vld [vmem:[#allocation10_spill] sm:$0xff]  ;;  %v12118_v22 = vld [vmem:[#allocation11_spill] sm:$0xff]  ;;  %v12120_v34 = vld [vmem:[#allocation13_spill] sm:$0xff] }
 0x4ea   :  { %v12122_v30 = vld [vmem:[#allocation15_spill] sm:$0xff] }
 0x4eb   :  { %v3442_v33 = vmax.f32 %v12112_v21, %v3441_v55  ;;  %3753 = vmatpush1.bf16.msra.mxu0 %v9318_v7  ;;  %v12121_v55 = vld [vmem:[#allocation14_spill] sm:$0xff]  ;;  %v12123_v21 = vld [vmem:[#allocation16_spill] sm:$0xff] }
 0x4ec   :  { %3794 = vmatpush1.bf16.msra.mxu1 %v9324_v43  ;;  %3754 = vmatprep.subr.bf16.mxu0 %v9330_v8 }
 0x4ed   :  { %v3443_v35 = vadd.f32 %v9310_v18, %v3442_v33  ;;  %3795 = vmatprep.subr.bf16.mxu1 %v9337_v32  ;;  %v12124_v33 = vld [vmem:[#allocation17_spill] sm:$0xff] }
 0x4ef   :  { %v3444_v41 = vmax.f32 %v3443_v35, 0.0  ;;  %3755 = vmatpush1.bf16.msra.mxu0 %v9343_v53  ;;  %v12125_v35 = vld [vmem:[#allocation18_spill] sm:$0xff] }
 0x4f0   :  { %3796 = vmatpush1.bf16.msra.mxu1 %v9349_v60  ;;  %3756 = vmatprep.subr.bf16.mxu0 %v9355_v19 }
 0x4f1   :  { %v3445_v40 = vpack.c.bf16 %v3444_v41, %v3444_v41  ;;  %3797 = vmatprep.subr.bf16.mxu1 %v9361_v31  ;;  %v12126_v41 = vld [vmem:[#allocation19_spill] sm:$0xff] }
 0x4f3   :  { %3446 = vst [vmem:[#allocation3 + $0x4] sm:$0xf] %v3445_v40  ;;  %3757 = vmatpush1.bf16.msra.mxu0 %v9367_v61  ;;  %v12127_v40 = vld [vmem:[#allocation20_spill] sm:$0xff] }
 0x4f4   :  { %3798 = vmatpush1.bf16.msra.mxu1 %v9373_v45  ;;  %3758 = vmatprep.subr.bf16.mxu0 %v9379_v9 }
 0x4f5   :  { %3799 = vmatprep.subr.bf16.mxu1 %v9385_v23 }
 0x4f7   :  { %3759 = vmatpush1.bf16.msra.mxu0 %v9391_v24 }
 0x4f8   :  { %3800 = vmatpush1.bf16.msra.mxu1 %v9397_v25  ;;  %3760 = vmatprep.subr.bf16.mxu0 %v9403_v62 }
 0x4f9   :  { %3801 = vmatprep.subr.bf16.mxu1 %v9409_v20 }
 0x4fb   :  { %3761 = vmatpush1.bf16.msra.mxu0 %v9415_v26 }
 0x4fc   :  { %3802 = vmatpush1.bf16.msra.mxu1 %v9421_v0  ;;  %3762 = vmatprep.subr.bf16.mxu0 %v9427_v29 }
 0x4fd   :  { %3803 = vmatprep.subr.bf16.mxu1 %v9433_v14 }
 0x4ff   :  { %3763 = vmatpush1.bf16.msra.mxu0 %v9439_v58 }
 0x500   :  { %3804 = vmatpush1.bf16.msra.mxu1 %v9445_v38  ;;  %3764 = vmatprep.subr.bf16.mxu0 %v9451_v36 }
 0x501   :  { %3805 = vmatprep.subr.bf16.mxu1 %v9457_v10 }
 0x503   :  { %3765 = vmatpush2.bf16.msra.mxu0 %v9463_v4 }
 0x504   :  { %3806 = vmatpush2.bf16.msra.mxu1 %v9469_v39  ;;  %3766 = vmatprep.subr.bf16.mxu0 %v9475_v52  ;;  %v12150_v52 = vld [vmem:[#allocation43_spill] sm:$0xff] }
 0x505   :  { %3807 = vmatprep.subr.bf16.mxu1 %v9481_v54  ;;  %v12148_v54 = vld [vmem:[#allocation41_spill] sm:$0xff] }
 0x507   :  { %3767 = vmatpush2.bf16.msra.mxu0 %v12113_v5  ;;  %v12145_v5 = vld [vmem:[#allocation38_spill] sm:$0xff] }
 0x508   :  { %3808 = vmatpush2.bf16.msra.mxu1 %v12114_v47  ;;  %3768 = vmatprep.subr.bf16.mxu0 %v12115_v57  ;;  %v12144_v57 = vld [vmem:[#allocation37_spill] sm:$0xff] }
 0x509   :  { %3809 = vmatprep.subr.bf16.mxu1 %v12116_v48 }
 0x50b   :  { %3769 = vmatpush2.bf16.msra.mxu0 %v12117_v28  ;;  %v12128_v28 = vld [vmem:[#allocation21_spill] sm:$0xff] }
 0x50c   :  { %3810 = vmatpush2.bf16.msra.mxu1 %v12118_v22  ;;  %3770 = vmatprep.subr.bf16.mxu0 %v12119_v46  ;;  %v12129_v22 = vld [vmem:[#allocation22_spill] sm:$0xff]  ;;  %v12130_v46 = vld [vmem:[#allocation23_spill] sm:$0xff] }
 0x50d   :  { %3811 = vmatprep.subr.bf16.mxu1 %v12120_v34  ;;  %v12131_v34 = vld [vmem:[#allocation24_spill] sm:$0xff] }
 0x50f   :  { %3771 = vmatpush2.bf16.msra.mxu0 %v12121_v55  ;;  %v12132_v55 = vld [vmem:[#allocation25_spill] sm:$0xff] }
 0x510   :  { %3812 = vmatpush2.bf16.msra.mxu1 %v12122_v30  ;;  %3772 = vmatprep.subr.bf16.mxu0 %v12123_v21  ;;  %v12133_v30 = vld [vmem:[#allocation26_spill] sm:$0xff]  ;;  %v12134_v21 = vld [vmem:[#allocation27_spill] sm:$0xff] }
 0x511   :  { %3813 = vmatprep.subr.bf16.mxu1 %v12124_v33  ;;  %v12135_v33 = vld [vmem:[#allocation28_spill] sm:$0xff] }
 0x513   :  { %3773 = vmatpush2.bf16.msra.mxu0 %v12125_v35  ;;  %v12136_v35 = vld [vmem:[#allocation29_spill] sm:$0xff] }
 0x514   :  { %3814 = vmatpush2.bf16.msra.mxu1 %v12126_v41  ;;  %3774 = vmatprep.subr.bf16.mxu0 %v12127_v40  ;;  %v12137_v41 = vld [vmem:[#allocation30_spill] sm:$0xff]  ;;  %v10464_v40 = vld [vmem:[#allocation2 + $0x28] sm:$0xff] }
 0x515   :  { %3815 = vmatprep.subr.bf16.mxu1 %v12128_v28  ;;  %v12138_v28 = vld [vmem:[#allocation31_spill] sm:$0xff] }
 0x517   :  { %3775 = vmatpush2.bf16.msra.mxu0 %v12129_v22  ;;  %v12139_v22 = vld [vmem:[#allocation32_spill] sm:$0xff] }
 0x518   :  { %3816 = vmatpush2.bf16.msra.mxu1 %v12130_v46  ;;  %3776 = vmatprep.subr.bf16.mxu0 %v12131_v34  ;;  %v12140_v46 = vld [vmem:[#allocation33_spill] sm:$0xff] }
 0x519   :  { %3817 = vmatprep.subr.bf16.mxu1 %v12132_v55 }
 0x51b   :  { %3777 = vmatpush2.bf16.msra.mxu0 %v12133_v30  ;;  %v12143_v30 = vld [vmem:[#allocation36_spill] sm:$0xff] }
 0x51c   :  { %3818 = vmatpush2.bf16.msra.mxu1 %v12134_v21  ;;  %3778 = vmatprep.subr.bf16.mxu0 %v12135_v33  ;;  %v10472_v21 = vcombine.high %v10464_v40, %v10464_v40 }
 0x51d   :  { %3819 = vmatprep.subr.bf16.mxu1 %v12136_v35  ;;  %v12141_v35 = vld [vmem:[#allocation34_spill] sm:$0xff] }
 0x51f   :  { %3779 = vmatpush2.bf16.msra.mxu0 %v12137_v41 }
 0x520   :  { %3820 = vmatpush2.bf16.msra.mxu1 %v12138_v28  ;;  %3830 = vmatprep.subr.bf16.mxu0 %v12139_v22  ;;  %v12142_v28 = vld [vmem:[#allocation35_spill] sm:$0xff] }
 0x521   :  { %3871 = vmatprep.subr.bf16.mxu1 %v12140_v46 }
 0x522   :  { %v3505_v34 = vpop.f32.mrf.mxu0  ;;  %3781 = vmatmul.mubr.bf16.vlgmr.msra.gmra.mxu0 %v9152_v50 }
 0x523   :  { %v3546_v33 = vpop.f32.mrf.mxu1  ;;  %3822 = vmatmul.mubr.bf16.vlgmr.msra.gmra.mxu1 %v10038_v6  ;;  %3831 = vmatpush1.bf16.msra.mxu0 %v12141_v35  ;;  %v12147_v35 = vld [vmem:[#allocation40_spill] sm:$0xff] }
 0x524   :  { %v10476_v41 = vadd.f32 %v3546_v33, %v3505_v34  ;;  %3862 = vmatprep.mubr.bf16.mxu0 %v10472_v21  ;;  %3872 = vmatpush1.bf16.msra.mxu1 %v12142_v28  ;;  %v3507_v22 = vpop.f32.mrf.mxu0  ;;  %v12146_v34 = vld [vmem:[#allocation39_spill] sm:$0xff] }
 0x525   :  { %3903 = vmatprep.mubr.bf16.mxu1 %v9080_v13  ;;  %v3548_v46 = vpop.f32.mrf.mxu1  ;;  %3832 = vmatprep.subr.bf16.mxu0 %v12143_v30  ;;  %v12149_v13 = vld [vmem:[#allocation42_spill] sm:$0xff] }
 0x526   :  { %v10482_v55 = vadd.f32 %v3548_v46, %v3507_v22  ;;  %v3509_v48 = vpop.f32.mrf.mxu0  ;;  %3873 = vmatprep.subr.bf16.mxu1 %v12144_v57  ;;  %v12151_v22 = vld [vmem:[#allocation44_spill] sm:$0xff]  ;;  %v12153_v46 = vld [vmem:[#allocation46_spill] sm:$0xff] }
 0x527   :  { %v3550_v47 = vpop.f32.mrf.mxu1  ;;  %3833 = vmatpush1.bf16.msra.mxu0 %v12145_v5  ;;  %v12152_v48 = vld [vmem:[#allocation45_spill] sm:$0xff]  ;;  %v12155_v5 = vld [vmem:[#allocation48_spill] sm:$0xff] }
 0x528   :  { %3874 = vmatpush1.bf16.msra.mxu1 %v12146_v34  ;;  %v3510_v33 = vpop.f32.mrf.mxu0  ;;  %3834 = vmatprep.subr.bf16.mxu0 %v12147_v35  ;;  %v12154_v47 = vld [vmem:[#allocation47_spill] sm:$0xff]  ;;  %v12157_v35 = vld [vmem:[#allocation50_spill] sm:$0xff] }
 0x529   :  { %v3551_v28 = vpop.f32.mrf.mxu1  ;;  %3875 = vmatprep.subr.bf16.mxu1 %v12148_v54  ;;  %v12156_v33 = vld [vmem:[#allocation49_spill] sm:$0xff]  ;;  %v12159_v54 = vld [vmem:[#allocation52_spill] sm:$0xff] }
 0x52a   :  { %v12158_v28 = vld [vmem:[#allocation51_spill] sm:$0xff] }
 0x52b   :  { %3835 = vmatpush1.bf16.msra.mxu0 %v12149_v13  ;;  %v12160_v13 = vld [vmem:[#allocation53_spill] sm:$0xff] }
 0x52c   :  { %3876 = vmatpush1.bf16.msra.mxu1 %v12150_v52  ;;  %3836 = vmatprep.subr.bf16.mxu0 %v12151_v22  ;;  %v12161_v52 = vld [vmem:[#allocation54_spill] sm:$0xff]  ;;  %v12162_v22 = vld [vmem:[#allocation55_spill] sm:$0xff] }
 0x52d   :  { %3877 = vmatprep.subr.bf16.mxu1 %v12152_v48  ;;  %v12163_v48 = vld [vmem:[#allocation56_spill] sm:$0xff] }
 0x52f   :  { %3837 = vmatpush1.bf16.msra.mxu0 %v12153_v46  ;;  %v12164_v46 = vld [vmem:[#allocation57_spill] sm:$0xff] }
 0x530   :  { %3878 = vmatpush1.bf16.msra.mxu1 %v12154_v47  ;;  %3838 = vmatprep.subr.bf16.mxu0 %v12155_v5  ;;  %v12165_v47 = vld [vmem:[#allocation58_spill] sm:$0xff]  ;;  %v12166_v5 = vld [vmem:[#allocation59_spill] sm:$0xff] }
 0x531   :  { %3879 = vmatprep.subr.bf16.mxu1 %v12156_v33  ;;  %v12167_v33 = vld [vmem:[#allocation60_spill] sm:$0xff] }
 0x533   :  { %3839 = vmatpush1.bf16.msra.mxu0 %v12157_v35  ;;  %v12168_v35 = vld [vmem:[#allocation61_spill] sm:$0xff] }
 0x534   :  { %3880 = vmatpush1.bf16.msra.mxu1 %v12158_v28  ;;  %3840 = vmatprep.subr.bf16.mxu0 %v12159_v54  ;;  %v12169_v28 = vld [vmem:[#allocation62_spill] sm:$0xff]  ;;  %v12170_v54 = vld [vmem:[#allocation63_spill] sm:$0xff] }
 0x535   :  { %3881 = vmatprep.subr.bf16.mxu1 %v12160_v13  ;;  %v12171_v13 = vld [vmem:[#allocation64_spill] sm:$0xff] }
 0x537   :  { %3841 = vmatpush1.bf16.msra.mxu0 %v12161_v52  ;;  %v12172_v52 = vld [vmem:[#allocation65_spill] sm:$0xff] }
 0x538   :  { %3882 = vmatpush1.bf16.msra.mxu1 %v12162_v22  ;;  %3842 = vmatprep.subr.bf16.mxu0 %v12163_v48  ;;  %v12173_v22 = vld [vmem:[#allocation66_spill] sm:$0xff]  ;;  %v12174_v48 = vld [vmem:[#allocation67_spill] sm:$0xff] }
 0x539   :  { %3883 = vmatprep.subr.bf16.mxu1 %v12164_v46  ;;  %v12175_v46 = vld [vmem:[#allocation68_spill] sm:$0xff] }
 0x53b   :  { %3843 = vmatpush1.bf16.msra.mxu0 %v12165_v47  ;;  %v12176_v47 = vld [vmem:[#allocation69_spill] sm:$0xff] }
 0x53c   :  { %3884 = vmatpush1.bf16.msra.mxu1 %v12166_v5  ;;  %3844 = vmatprep.subr.bf16.mxu0 %v12167_v33  ;;  %v12177_v5 = vld [vmem:[#allocation70_spill] sm:$0xff]  ;;  %v12178_v33 = vld [vmem:[#allocation71_spill] sm:$0xff] }
 0x53d   :  { %3885 = vmatprep.subr.bf16.mxu1 %v12168_v35  ;;  %v12179_v35 = vld [vmem:[#allocation72_spill] sm:$0xff] }
 0x53f   :  { %3845 = vmatpush1.bf16.msra.mxu0 %v12169_v28  ;;  %v12180_v28 = vld [vmem:[#allocation73_spill] sm:$0xff] }
 0x540   :  { %3886 = vmatpush1.bf16.msra.mxu1 %v12170_v54  ;;  %3846 = vmatprep.subr.bf16.mxu0 %v12171_v13  ;;  %v12181_v54 = vld [vmem:[#allocation74_spill] sm:$0xff]  ;;  %v12182_v13 = vld [vmem:[#allocation75_spill] sm:$0xff] }
 0x541   :  { %3887 = vmatprep.subr.bf16.mxu1 %v12172_v52  ;;  %v12183_v52 = vld [vmem:[#allocation76_spill] sm:$0xff] }
 0x543   :  { %3847 = vmatpush2.bf16.msra.mxu0 %v12173_v22  ;;  %v12184_v22 = vld [vmem:[#allocation77_spill] sm:$0xff] }
 0x544   :  { %3888 = vmatpush2.bf16.msra.mxu1 %v12174_v48  ;;  %3848 = vmatprep.subr.bf16.mxu0 %v12175_v46  ;;  %v12185_v48 = vld [vmem:[#allocation78_spill] sm:$0xff]  ;;  %v12186_v46 = vld [vmem:[#allocation79_spill] sm:$0xff] }
 0x545   :  { %3889 = vmatprep.subr.bf16.mxu1 %v12176_v47  ;;  %v12187_v47 = vld [vmem:[#allocation80_spill] sm:$0xff] }
 0x547   :  { %3849 = vmatpush2.bf16.msra.mxu0 %v12177_v5  ;;  %v12188_v5 = vld [vmem:[#allocation81_spill] sm:$0xff] }
 0x548   :  { %3890 = vmatpush2.bf16.msra.mxu1 %v12178_v33  ;;  %3850 = vmatprep.subr.bf16.mxu0 %v12179_v35  ;;  %v12189_v33 = vld [vmem:[#allocation82_spill] sm:$0xff]  ;;  %v12190_v35 = vld [vmem:[#allocation83_spill] sm:$0xff] }
 0x549   :  { %3891 = vmatprep.subr.bf16.mxu1 %v12180_v28  ;;  %v12191_v28 = vld [vmem:[#allocation84_spill] sm:$0xff] }
 0x54b   :  { %3851 = vmatpush2.bf16.msra.mxu0 %v12181_v54  ;;  %v12192_v54 = vld [vmem:[#allocation85_spill] sm:$0xff] }
 0x54c   :  { %3892 = vmatpush2.bf16.msra.mxu1 %v12182_v13  ;;  %3852 = vmatprep.subr.bf16.mxu0 %v12183_v52  ;;  %v12193_v13 = vld [vmem:[#allocation86_spill] sm:$0xff]  ;;  %v12194_v52 = vld [vmem:[#allocation87_spill] sm:$0xff] }
 0x54d   :  { %3893 = vmatprep.subr.bf16.mxu1 %v12184_v22  ;;  %v12195_v22 = vld [vmem:[#allocation88_spill] sm:$0xff] }
 0x54f   :  { %3853 = vmatpush2.bf16.msra.mxu0 %v12185_v48  ;;  %v12196_v48 = vld [vmem:[#allocation89_spill] sm:$0xff] }
 0x550   :  { %3894 = vmatpush2.bf16.msra.mxu1 %v12186_v46  ;;  %3854 = vmatprep.subr.bf16.mxu0 %v12187_v47  ;;  %v12197_v46 = vld [vmem:[#allocation90_spill] sm:$0xff]  ;;  %v12198_v47 = vld [vmem:[#allocation91_spill] sm:$0xff] }
 0x551   :  { %3895 = vmatprep.subr.bf16.mxu1 %v12188_v5  ;;  %v12199_v5 = vld [vmem:[#allocation92_spill] sm:$0xff] }
 0x553   :  { %3855 = vmatpush2.bf16.msra.mxu0 %v12189_v33  ;;  %v12200_v33 = vld [vmem:[#allocation93_spill] sm:$0xff] }
 0x554   :  { %3896 = vmatpush2.bf16.msra.mxu1 %v12190_v35  ;;  %3856 = vmatprep.subr.bf16.mxu0 %v12191_v28  ;;  %v12201_v35 = vld [vmem:[#allocation94_spill] sm:$0xff]  ;;  %v10544_v28 = vcombine.low %v10464_v40, %v10464_v40  ;;  %v12206_v40 = vld [vmem:[#allocation99_spill] sm:$0xff] }
 0x555   :  { %3897 = vmatprep.subr.bf16.mxu1 %v12192_v54  ;;  %v12202_v54 = vld [vmem:[#allocation95_spill] sm:$0xff] }
 0x557   :  { %3857 = vmatpush2.bf16.msra.mxu0 %v12193_v13  ;;  %v12203_v13 = vld [vmem:[#allocation96_spill] sm:$0xff] }
 0x558   :  { %3898 = vmatpush2.bf16.msra.mxu1 %v12194_v52  ;;  %3858 = vmatprep.subr.bf16.mxu0 %v12195_v22  ;;  %v12204_v52 = vld [vmem:[#allocation97_spill] sm:$0xff] }
 0x559   :  { %3899 = vmatprep.subr.bf16.mxu1 %v12196_v48 }
 0x55b   :  { %3859 = vmatpush2.bf16.msra.mxu0 %v12197_v46 }
 0x55c   :  { %3900 = vmatpush2.bf16.msra.mxu1 %v12198_v47  ;;  %3860 = vmatprep.subr.bf16.mxu0 %v12199_v5  ;;  %v12205_v47 = vld [vmem:[#allocation98_spill] sm:$0xff] }
 0x55d   :  { %3901 = vmatprep.subr.bf16.mxu1 %v12200_v33 }
 0x55f   :  { %3861 = vmatpush2.bf16.msra.mxu0 %v12201_v35 }
 0x560   :  { %3902 = vmatpush2.bf16.msra.mxu1 %v12202_v54  ;;  %3912 = vmatprep.subr.bf16.mxu0 %v12203_v13 }
 0x561   :  { %3953 = vmatprep.subr.bf16.mxu1 %v12204_v52  ;;  %v12208_v52 = vld [vmem:[#allocation101_spill] sm:$0xff] }
 0x562   :  { %v3587_v22 = vpop.f32.mrf.mxu0  ;;  %3863 = vmatmul.mubr.bf16.vlgmr.msra.gmra.mxu0 %v10544_v28 }
 0x563   :  { %v10551_v48 = vadd.f32 %v3587_v22, %v10476_v41  ;;  %v10553_v46 = vpop.f32.mrf.mxu1  ;;  %3904 = vmatmul.mubr.bf16.vlgmr.msra.gmra.mxu1 %v9152_v50  ;;  %3913 = vmatpush1.bf16.msra.mxu0 %v12205_v47  ;;  %v12207_v41 = vld [vmem:[#allocation100_spill] sm:$0xff]  ;;  %v12209_v22 = vld [vmem:[#allocation102_spill] sm:$0xff] }
 0x564   :  { %3944 = vmatprep.mubr.bf16.mxu0 %v9661_v44  ;;  %3954 = vmatpush1.bf16.msra.mxu1 %v12206_v40  ;;  %v3589_v5 = vpop.f32.mrf.mxu0  ;;  %v12210_v40 = vld [vmem:[#allocation103_spill] sm:$0xff]  ;;  %v12215_v50 = vld [vmem:[#allocation108_spill] sm:$0xff] }
 0x565   :  { %3985 = vmatprep.mubr.bf16.mxu1 %v10472_v21  ;;  %v10561_v33 = vadd.f32 %v3589_v5, %v10482_v55  ;;  %v10563_v35 = vpop.f32.mrf.mxu1  ;;  %3914 = vmatprep.subr.bf16.mxu0 %v12207_v41  ;;  %v12211_v5 = vld [vmem:[#allocation104_spill] sm:$0xff]  ;;  %v12212_v41 = vld [vmem:[#allocation105_spill] sm:$0xff] }
 0x566   :  { %v3591_v54 = vpop.f32.mrf.mxu0  ;;  %3955 = vmatprep.subr.bf16.mxu1 %v10093_v3  ;;  %v12214_v3 = vld [vmem:[#allocation107_spill] sm:$0xff] }
 0x567   :  { %v3632_v13 = vpop.f32.mrf.mxu1  ;;  %3915 = vmatpush1.bf16.msra.mxu0 %v12208_v52  ;;  %v12213_v54 = vld [vmem:[#allocation106_spill] sm:$0xff] }
 0x568   :  { %3956 = vmatpush1.bf16.msra.mxu1 %v12209_v22  ;;  %v3592_v47 = vpop.f32.mrf.mxu0  ;;  %3916 = vmatprep.subr.bf16.mxu0 %v10113_v17  ;;  %v12216_v13 = vld [vmem:[#allocation109_spill] sm:$0xff]  ;;  %v12217_v52 = vld [vmem:[#allocation110_spill] sm:$0xff]  ;;  %v12218_v22 = vld [vmem:[#allocation111_spill] sm:$0xff] }
 0x569   :  { %v3633_v55 = vpop.f32.mrf.mxu1  ;;  %3957 = vmatprep.subr.bf16.mxu1 %v12210_v40  ;;  %v12219_v17 = vld [vmem:[#allocation112_spill] sm:$0xff]  ;;  %v12220_v47 = vld [vmem:[#allocation113_spill] sm:$0xff]  ;;  %v12222_v40 = vld [vmem:[#allocation115_spill] sm:$0xff] }
 0x56a   :  { %v12221_v55 = vld [vmem:[#allocation114_spill] sm:$0xff] }
 0x56b   :  { %3917 = vmatpush1.bf16.msra.mxu0 %v12211_v5  ;;  %v12223_v5 = vld [vmem:[#allocation116_spill] sm:$0xff] }
 0x56c   :  { %3958 = vmatpush1.bf16.msra.mxu1 %v12212_v41  ;;  %3918 = vmatprep.subr.bf16.mxu0 %v12213_v54  ;;  %v12224_v41 = vld [vmem:[#allocation117_spill] sm:$0xff]  ;;  %v12225_v54 = vld [vmem:[#allocation118_spill] sm:$0xff] }
 0x56d   :  { %3959 = vmatprep.subr.bf16.mxu1 %v12214_v3  ;;  %v12227_v3 = vld [vmem:[#allocation120_spill] sm:$0xff] }
 0x56f   :  { %3919 = vmatpush1.bf16.msra.mxu0 %v12215_v50  ;;  %v12226_v50 = vld [vmem:[#allocation119_spill] sm:$0xff] }
 0x570   :  { %3960 = vmatpush1.bf16.msra.mxu1 %v12216_v13  ;;  %3920 = vmatprep.subr.bf16.mxu0 %v12217_v52  ;;  %v12228_v13 = vld [vmem:[#allocation121_spill] sm:$0xff]  ;;  %v12229_v52 = vld [vmem:[#allocation122_spill] sm:$0xff] }
 0x571   :  { %3961 = vmatprep.subr.bf16.mxu1 %v12218_v22  ;;  %v12230_v22 = vld [vmem:[#allocation123_spill] sm:$0xff] }
 0x573   :  { %3921 = vmatpush1.bf16.msra.mxu0 %v12219_v17  ;;  %v12231_v17 = vld [vmem:[#allocation124_spill] sm:$0xff] }
 0x574   :  { %3962 = vmatpush1.bf16.msra.mxu1 %v12220_v47  ;;  %3922 = vmatprep.subr.bf16.mxu0 %v12221_v55  ;;  %v12232_v47 = vld [vmem:[#allocation125_spill] sm:$0xff]  ;;  %v12233_v55 = vld [vmem:[#allocation126_spill] sm:$0xff] }
 0x575   :  { %3963 = vmatprep.subr.bf16.mxu1 %v12222_v40  ;;  %v12234_v40 = vld [vmem:[#allocation127_spill] sm:$0xff] }
 0x577   :  { %3923 = vmatpush1.bf16.msra.mxu0 %v12223_v5  ;;  %v12235_v5 = vld [vmem:[#allocation128_spill] sm:$0xff] }
 0x578   :  { %3964 = vmatpush1.bf16.msra.mxu1 %v12224_v41  ;;  %3924 = vmatprep.subr.bf16.mxu0 %v12225_v54  ;;  %v12236_v41 = vld [vmem:[#allocation129_spill] sm:$0xff]  ;;  %v12237_v54 = vld [vmem:[#allocation130_spill] sm:$0xff] }
 0x579   :  { %3965 = vmatprep.subr.bf16.mxu1 %v12226_v50  ;;  %v12238_v50 = vld [vmem:[#allocation131_spill] sm:$0xff] }
 0x57b   :  { %3925 = vmatpush1.bf16.msra.mxu0 %v12227_v3  ;;  %v12239_v3 = vld [vmem:[#allocation132_spill] sm:$0xff] }
 0x57c   :  { %3966 = vmatpush1.bf16.msra.mxu1 %v12228_v13  ;;  %3926 = vmatprep.subr.bf16.mxu0 %v12229_v52  ;;  %v12240_v13 = vld [vmem:[#allocation133_spill] sm:$0xff]  ;;  %v12241_v52 = vld [vmem:[#allocation134_spill] sm:$0xff] }
 0x57d   :  { %3967 = vmatprep.subr.bf16.mxu1 %v12230_v22  ;;  %v12242_v22 = vld [vmem:[#allocation135_spill] sm:$0xff] }
 0x57f   :  { %3927 = vmatpush1.bf16.msra.mxu0 %v12231_v17  ;;  %v12243_v17 = vld [vmem:[#allocation136_spill] sm:$0xff] }
 0x580   :  { %3968 = vmatpush1.bf16.msra.mxu1 %v12232_v47  ;;  %3928 = vmatprep.subr.bf16.mxu0 %v12233_v55  ;;  %v12244_v47 = vld [vmem:[#allocation137_spill] sm:$0xff]  ;;  %v12245_v55 = vld [vmem:[#allocation138_spill] sm:$0xff] }
 0x581   :  { %3969 = vmatprep.subr.bf16.mxu1 %v12234_v40  ;;  %v12246_v40 = vld [vmem:[#allocation139_spill] sm:$0xff] }
 0x583   :  { %3929 = vmatpush2.bf16.msra.mxu0 %v12235_v5  ;;  %v12247_v5 = vld [vmem:[#allocation140_spill] sm:$0xff] }
 0x584   :  { %3970 = vmatpush2.bf16.msra.mxu1 %v12236_v41  ;;  %3930 = vmatprep.subr.bf16.mxu0 %v12237_v54  ;;  %v12248_v41 = vld [vmem:[#allocation141_spill] sm:$0xff]  ;;  %v12249_v54 = vld [vmem:[#allocation142_spill] sm:$0xff] }
 0x585   :  { %3971 = vmatprep.subr.bf16.mxu1 %v12238_v50  ;;  %v10619_v50 = vld [vmem:[%s11349_s3 + $0x54c] ss:$16 sps:$4 sm:$0xff]  }
 0x587   :  { %3931 = vmatpush2.bf16.msra.mxu0 %v12239_v3  ;;  %v10625_v3 = vld [vmem:[%s11349_s3 + $0x348] ss:$16 sps:$4 sm:$0xff]  }
 0x588   :  { %3972 = vmatpush2.bf16.msra.mxu1 %v12240_v13  ;;  %3932 = vmatprep.subr.bf16.mxu0 %v12241_v52  ;;  %v10655_v13 = vld [vmem:[%s11349_s3 + $0x528] ss:$16 sps:$4 sm:$0xff]   ;;  %v10661_v52 = vld [vmem:[%s11349_s3 + $0x30c] ss:$16 sps:$4 sm:$0xff]  }
 0x589   :  { %3973 = vmatprep.subr.bf16.mxu1 %v12242_v22  ;;  %v10667_v22 = vld [vmem:[%s11349_s3 + $0x50c] ss:$16 sps:$4 sm:$0xff]  }
 0x58b   :  { %3933 = vmatpush2.bf16.msra.mxu0 %v12243_v17  ;;  %v10673_v17 = vld [vmem:[%s11349_s3 + $0x308] ss:$16 sps:$4 sm:$0xff]  }
 0x58c   :  { %3974 = vmatpush2.bf16.msra.mxu1 %v12244_v47  ;;  %3934 = vmatprep.subr.bf16.mxu0 %v12245_v55  ;;  %12250 = vst [vmem:[#allocation143_spill] sm:$0xff] %v10673_v17  ;;  %v10679_v47 = vld [vmem:[%s11349_s3 + $0x508] ss:$16 sps:$4 sm:$0xff]  }
 0x58d   :  { %3975 = vmatprep.subr.bf16.mxu1 %v12246_v40  ;;  %12251 = vst [vmem:[#allocation144_spill] sm:$0xff] %v10679_v47 }
 0x58f   :  { %3935 = vmatpush2.bf16.msra.mxu0 %v12247_v5 }
 0x590   :  { %3976 = vmatpush2.bf16.msra.mxu1 %v12248_v41  ;;  %3936 = vmatprep.subr.bf16.mxu0 %v12249_v54 }
 0x591   :  { %3977 = vmatprep.subr.bf16.mxu1 %v10359_v2  ;;  %v10631_v2 = vld [vmem:[%s11349_s3 + $0x548] ss:$16 sps:$4 sm:$0xff]  }
 0x593   :  { %3937 = vmatpush2.bf16.msra.mxu0 %v10365_v59  ;;  %v10637_v59 = vld [vmem:[%s11349_s3 + $0x32c] ss:$16 sps:$4 sm:$0xff]  }
 0x594   :  { %3978 = vmatpush2.bf16.msra.mxu1 %v10371_v42  ;;  %3938 = vmatprep.subr.bf16.mxu0 %v10377_v15  ;;  %v10643_v42 = vld [vmem:[%s11349_s3 + $0x52c] ss:$16 sps:$4 sm:$0xff]   ;;  %v10649_v15 = vld [vmem:[%s11349_s3 + $0x328] ss:$16 sps:$4 sm:$0xff]  }
 0x595   :  { %3979 = vmatprep.subr.bf16.mxu1 %v10619_v50 }
 0x597   :  { %3939 = vmatpush2.bf16.msra.mxu0 %v10625_v3 }
 0x598   :  { %3980 = vmatpush2.bf16.msra.mxu1 %v10631_v2  ;;  %3940 = vmatprep.subr.bf16.mxu0 %v10637_v59 }
 0x599   :  { %3981 = vmatprep.subr.bf16.mxu1 %v10643_v42 }
 0x59b   :  { %3941 = vmatpush2.bf16.msra.mxu0 %v10649_v15 }
 0x59c   :  { %3982 = vmatpush2.bf16.msra.mxu1 %v10655_v13  ;;  %3942 = vmatprep.subr.bf16.mxu0 %v10661_v52 }
 0x59d   :  { %3983 = vmatprep.subr.bf16.mxu1 %v10667_v22 }
 0x59f   :  { %3943 = vmatpush2.bf16.msra.mxu0 %v10673_v17 }
 0x5a0   :  { %3984 = vmatpush2.bf16.msra.mxu1 %v10679_v47  ;;  %4025 = vmatprep.subr.bf16.mxu0 %v9240_v11 }
 0x5a1   :  { %4066 = vmatprep.subr.bf16.mxu1 %v9246_v37 }
 0x5a2   :  { %v3669_v55 = vpop.f32.mrf.mxu0  ;;  %3945 = vmatmul.mubr.bf16.vlgmr.msra.gmra.mxu0 %v10038_v6 }
 0x5a3   :  { %v3670_v40 = vadd.f32 %v3669_v55, %v10553_v46  ;;  %v3710_v5 = vpop.f32.mrf.mxu1  ;;  %3986 = vmatmul.mubr.bf16.vlgmr.msra.gmra.mxu1 %v10544_v28  ;;  %4026 = vmatpush1.bf16.msra.mxu0 %v9259_v1 }
 0x5a4   :  { %4057 = vmatprep.mubr.bf16.mxu0 %v9661_v44  ;;  %4067 = vmatpush1.bf16.msra.mxu1 %v9266_v27  ;;  %v3671_v41 = vpop.f32.mrf.mxu0 }
 0x5a5   :  { %4098 = vmatprep.mubr.bf16.mxu1 %v10472_v21  ;;  %v3672_v11 = vadd.f32 %v3671_v41, %v10563_v35  ;;  %v3712_v37 = vpop.f32.mrf.mxu1  ;;  %4027 = vmatprep.subr.bf16.mxu0 %v9274_v63  ;;  %v3711_v46 = vadd.f32 %v3710_v5, %v3670_v40  ;;  %v12252_v63 = vmax.f32 %v10551_v48, %v10561_v33  ;;  %v12281_v48 = vld [vmem:[#allocation32_spill] sm:$0xff]  ;;  %v12282_v33 = vld [vmem:[#allocation33_spill] sm:$0xff]  ;;  %v12283_v5 = vld [vmem:[#allocation34_spill] sm:$0xff] }
 0x5a6   :  { %v3673_v54 = vpop.f32.mrf.mxu0  ;;  %4068 = vmatprep.subr.bf16.mxu1 %v9280_v56 }
 0x5a7   :  { %v3713_v55 = vadd.f32 %v3712_v37, %v3672_v11  ;;  %v3714_v47 = vpop.f32.mrf.mxu1  ;;  %4028 = vmatpush1.bf16.msra.mxu0 %v9286_v51  ;;  %v12284_v11 = vld [vmem:[#allocation35_spill] sm:$0xff] }
 0x5a8   :  { %4069 = vmatpush1.bf16.msra.mxu1 %v9292_v12  ;;  %v3674_v1 = vpop.f32.mrf.mxu0  ;;  %4029 = vmatprep.subr.bf16.mxu0 %v9298_v16  ;;  %v12253_v16 = vld [vmem:[#allocation4_spill] sm:$0xff] }
 0x5a9   :  { %v3718_v27 = vmax.f32 %v3711_v46, %v3713_v55  ;;  %v3715_v17 = vpop.f32.mrf.mxu1  ;;  %4070 = vmatprep.subr.bf16.mxu1 %v9304_v49  ;;  %v12254_v49 = vld [vmem:[#allocation5_spill] sm:$0xff] }
 0x5ab   :  { %v3719_v35 = vmax.f32 %v12252_v63, %v3718_v27  ;;  %4030 = vmatpush1.bf16.msra.mxu0 %v9318_v7  ;;  %v12256_v7 = vld [vmem:[#allocation7_spill] sm:$0xff]  ;;  %v12285_v27 = vld [vmem:[#allocation38_spill] sm:$0xff] }
 0x5ac   :  { %4071 = vmatpush1.bf16.msra.mxu1 %v9324_v43  ;;  %4031 = vmatprep.subr.bf16.mxu0 %v9330_v8  ;;  %v12257_v43 = vld [vmem:[#allocation8_spill] sm:$0xff]  ;;  %v12258_v8 = vld [vmem:[#allocation9_spill] sm:$0xff] }
 0x5ad   :  { %v3720_v56 = vadd.f32 %v9310_v18, %v3719_v35  ;;  %4072 = vmatprep.subr.bf16.mxu1 %v9337_v32  ;;  %v12255_v18 = vld [vmem:[#allocation6_spill] sm:$0xff]  ;;  %v12286_v35 = vld [vmem:[#allocation40_spill] sm:$0xff] }
 0x5ae   :  { %v12259_v32 = vld [vmem:[#allocation10_spill] sm:$0xff] }
 0x5af   :  { %v3721_v51 = vmax.f32 %v3720_v56, 0.0  ;;  %4032 = vmatpush1.bf16.msra.mxu0 %v9343_v53  ;;  %v12260_v53 = vld [vmem:[#allocation11_spill] sm:$0xff] }
 0x5b0   :  { %4073 = vmatpush1.bf16.msra.mxu1 %v9349_v60  ;;  %4033 = vmatprep.subr.bf16.mxu0 %v9355_v19  ;;  %v12261_v60 = vld [vmem:[#allocation12_spill] sm:$0xff]  ;;  %v12262_v19 = vld [vmem:[#allocation13_spill] sm:$0xff] }
 0x5b1   :  { %v3722_v12 = vpack.c.bf16 %v3721_v51, %v3721_v51  ;;  %4074 = vmatprep.subr.bf16.mxu1 %v9361_v31  ;;  %v12263_v31 = vld [vmem:[#allocation14_spill] sm:$0xff]  ;;  %v12287_v51 = vld [vmem:[#allocation41_spill] sm:$0xff] }
 0x5b3   :  { %3723 = vst [vmem:[#allocation3 + $0x8] sm:$0xf] %v3722_v12  ;;  %4034 = vmatpush1.bf16.msra.mxu0 %v9367_v61  ;;  %v12264_v61 = vld [vmem:[#allocation15_spill] sm:$0xff] }
 0x5b4   :  { %4075 = vmatpush1.bf16.msra.mxu1 %v9373_v45  ;;  %4035 = vmatprep.subr.bf16.mxu0 %v9379_v9  ;;  %v12265_v45 = vld [vmem:[#allocation16_spill] sm:$0xff]  ;;  %v12266_v9 = vld [vmem:[#allocation17_spill] sm:$0xff]  ;;  %v12289_v12 = vld [vmem:[#allocation43_spill] sm:$0xff] }
 0x5b5   :  { %4076 = vmatprep.subr.bf16.mxu1 %v9385_v23  ;;  %v12267_v23 = vld [vmem:[#allocation18_spill] sm:$0xff] }
 0x5b7   :  { %4036 = vmatpush1.bf16.msra.mxu0 %v9391_v24  ;;  %v12268_v24 = vld [vmem:[#allocation19_spill] sm:$0xff] }
 0x5b8   :  { %4077 = vmatpush1.bf16.msra.mxu1 %v9397_v25  ;;  %4037 = vmatprep.subr.bf16.mxu0 %v9403_v62  ;;  %v12269_v25 = vld [vmem:[#allocation20_spill] sm:$0xff]  ;;  %v12270_v62 = vld [vmem:[#allocation21_spill] sm:$0xff] }
 0x5b9   :  { %4078 = vmatprep.subr.bf16.mxu1 %v9409_v20  ;;  %v12271_v20 = vld [vmem:[#allocation22_spill] sm:$0xff] }
 0x5bb   :  { %4038 = vmatpush1.bf16.msra.mxu0 %v9415_v26  ;;  %v12272_v26 = vld [vmem:[#allocation23_spill] sm:$0xff] }
 0x5bc   :  { %4079 = vmatpush1.bf16.msra.mxu1 %v9421_v0  ;;  %4039 = vmatprep.subr.bf16.mxu0 %v9427_v29  ;;  %v12273_v0 = vld [vmem:[#allocation24_spill] sm:$0xff]  ;;  %v12274_v29 = vld [vmem:[#allocation25_spill] sm:$0xff] }
 0x5bd   :  { %4080 = vmatprep.subr.bf16.mxu1 %v9433_v14  ;;  %v12275_v14 = vld [vmem:[#allocation26_spill] sm:$0xff] }
 0x5bf   :  { %4040 = vmatpush1.bf16.msra.mxu0 %v9439_v58  ;;  %v12276_v58 = vld [vmem:[#allocation27_spill] sm:$0xff] }
 0x5c0   :  { %4081 = vmatpush1.bf16.msra.mxu1 %v9445_v38  ;;  %4041 = vmatprep.subr.bf16.mxu0 %v9451_v36  ;;  %v12277_v38 = vld [vmem:[#allocation28_spill] sm:$0xff]  ;;  %v12278_v36 = vld [vmem:[#allocation29_spill] sm:$0xff] }
 0x5c1   :  { %4082 = vmatprep.subr.bf16.mxu1 %v9457_v10  ;;  %v12279_v10 = vld [vmem:[#allocation30_spill] sm:$0xff] }
 0x5c3   :  { %4042 = vmatpush2.bf16.msra.mxu0 %v9463_v4  ;;  %v10755_v4 = vld [vmem:[#allocation2 + $0x30] sm:$0xff] }
 0x5c4   :  { %4083 = vmatpush2.bf16.msra.mxu1 %v9469_v39  ;;  %4043 = vmatprep.subr.bf16.mxu0 %v12253_v16  ;;  %v12280_v39 = vld [vmem:[#allocation31_spill] sm:$0xff]  ;;  %v10763_v47 = vcombine.high %v10755_v4, %v10755_v4  ;;  %v12291_v16 = vld [vmem:[#allocation45_spill] sm:$0xff] }
 0x5c5   :  { %4084 = vmatprep.subr.bf16.mxu1 %v12254_v49  ;;  %v6252_v49 = vld [vmem:[%s11349_s3 + $0x464] ss:$16 sps:$4 sm:$0xff]  }
 0x5c7   :  { %4044 = vmatpush2.bf16.msra.mxu0 %v12255_v18  ;;  %v6253_v18 = vld [vmem:[%s11349_s3 + $0x6c] ss:$16 sps:$4 sm:$0xff]  }
 0x5c8   :  { %4085 = vmatpush2.bf16.msra.mxu1 %v12256_v7  ;;  %4045 = vmatprep.subr.bf16.mxu0 %v12257_v43  ;;  %v6254_v7 = vld [vmem:[%s11349_s3 + $0x460] ss:$16 sps:$4 sm:$0xff]   ;;  %v6255_v43 = vld [vmem:[%s11349_s3 + $0x68] ss:$16 sps:$4 sm:$0xff]  }
 0x5c9   :  { %4086 = vmatprep.subr.bf16.mxu1 %v12258_v8  ;;  %v6256_v8 = vld [vmem:[%s11349_s3 + $0x444] ss:$16 sps:$4 sm:$0xff]  }
 0x5cb   :  { %4046 = vmatpush2.bf16.msra.mxu0 %v12259_v32  ;;  %v6257_v32 = vld [vmem:[%s11349_s3 + $0x4c] ss:$16 sps:$4 sm:$0xff]  }
 0x5cc   :  { %4087 = vmatpush2.bf16.msra.mxu1 %v12260_v53  ;;  %4047 = vmatprep.subr.bf16.mxu0 %v12261_v60  ;;  %v6258_v53 = vld [vmem:[%s11349_s3 + $0x440] ss:$16 sps:$4 sm:$0xff]   ;;  %v6259_v60 = vld [vmem:[%s11349_s3 + $0x48] ss:$16 sps:$4 sm:$0xff]  }
 0x5cd   :  { %4088 = vmatprep.subr.bf16.mxu1 %v12262_v19  ;;  %v6260_v19 = vld [vmem:[%s11349_s3 + $0x424] ss:$16 sps:$4 sm:$0xff]  }
 0x5cf   :  { %4048 = vmatpush2.bf16.msra.mxu0 %v12263_v31  ;;  %v6261_v31 = vld [vmem:[%s11349_s3 + $0x2c] ss:$16 sps:$4 sm:$0xff]  }
 0x5d0   :  { %4089 = vmatpush2.bf16.msra.mxu1 %v12264_v61  ;;  %4049 = vmatprep.subr.bf16.mxu0 %v12265_v45  ;;  %v6262_v61 = vld [vmem:[%s11349_s3 + $0x420] ss:$16 sps:$4 sm:$0xff]   ;;  %v6263_v45 = vld [vmem:[%s11349_s3 + $0x28] ss:$16 sps:$4 sm:$0xff]  }
 0x5d1   :  { %4090 = vmatprep.subr.bf16.mxu1 %v12266_v9  ;;  %v6264_v9 = vld [vmem:[%s11349_s3 + $0x404] ss:$16 sps:$4 sm:$0xff]  }
 0x5d3   :  { %4050 = vmatpush2.bf16.msra.mxu0 %v12267_v23  ;;  %v6265_v23 = vld [vmem:[%s11349_s3 + $0xc] ss:$16 sps:$4 sm:$0xff]  }
 0x5d4   :  { %4091 = vmatpush2.bf16.msra.mxu1 %v12268_v24  ;;  %4051 = vmatprep.subr.bf16.mxu0 %v12269_v25  ;;  %v6266_v24 = vld [vmem:[%s11349_s3 + $0x400] ss:$16 sps:$4 sm:$0xff]   ;;  %v6267_v25 = vld [vmem:[%s11349_s3 + $0x8] ss:$16 sps:$4 sm:$0xff]  }
 0x5d5   :  { %4092 = vmatprep.subr.bf16.mxu1 %v12270_v62  ;;  %v6268_v62 = vld [vmem:[%s11349_s3 + $0x5e4] ss:$16 sps:$4 sm:$0xff]  }
 0x5d7   :  { %4052 = vmatpush2.bf16.msra.mxu0 %v12271_v20  ;;  %v6269_v20 = vld [vmem:[%s11349_s3 + $0x1ec] ss:$16 sps:$4 sm:$0xff]  }
 0x5d8   :  { %4093 = vmatpush2.bf16.msra.mxu1 %v12272_v26  ;;  %4053 = vmatprep.subr.bf16.mxu0 %v12273_v0  ;;  %v6270_v26 = vld [vmem:[%s11349_s3 + $0x5e0] ss:$16 sps:$4 sm:$0xff]   ;;  %v6271_v0 = vld [vmem:[%s11349_s3 + $0x1e8] ss:$16 sps:$4 sm:$0xff]  }
 0x5d9   :  { %4094 = vmatprep.subr.bf16.mxu1 %v12274_v29  ;;  %v6272_v29 = vld [vmem:[%s11349_s3 + $0x5c4] ss:$16 sps:$4 sm:$0xff]  }
 0x5db   :  { %4054 = vmatpush2.bf16.msra.mxu0 %v12275_v14  ;;  %v6273_v14 = vld [vmem:[%s11349_s3 + $0x1cc] ss:$16 sps:$4 sm:$0xff]  }
 0x5dc   :  { %4095 = vmatpush2.bf16.msra.mxu1 %v12276_v58  ;;  %4055 = vmatprep.subr.bf16.mxu0 %v12277_v38  ;;  %v6274_v58 = vld [vmem:[%s11349_s3 + $0x5c0] ss:$16 sps:$4 sm:$0xff]   ;;  %v6275_v38 = vld [vmem:[%s11349_s3 + $0x1c8] ss:$16 sps:$4 sm:$0xff]  }
 0x5dd   :  { %4096 = vmatprep.subr.bf16.mxu1 %v12278_v36  ;;  %v6276_v36 = vld [vmem:[%s11349_s3 + $0x5a4] ss:$16 sps:$4 sm:$0xff]  }
 0x5df   :  { %4056 = vmatpush2.bf16.msra.mxu0 %v12279_v10  ;;  %v6277_v10 = vld [vmem:[%s11349_s3 + $0x1ac] ss:$16 sps:$4 sm:$0xff]  }
 0x5e0   :  { %4097 = vmatpush2.bf16.msra.mxu1 %v12280_v39  ;;  %4107 = vmatprep.subr.bf16.mxu0 %v12281_v48  ;;  %v6278_v39 = vld [vmem:[%s11349_s3 + $0x5a0] ss:$16 sps:$4 sm:$0xff]   ;;  %v6279_v48 = vld [vmem:[%s11349_s3 + $0x1a8] ss:$16 sps:$4 sm:$0xff]  }
 0x5e1   :  { %4148 = vmatprep.subr.bf16.mxu1 %v12282_v33  ;;  %v6280_v33 = vld [vmem:[%s11349_s3 + $0x584] ss:$16 sps:$4 sm:$0xff]  }
 0x5e2   :  { %v3782_v17 = vpop.f32.mrf.mxu0  ;;  %4058 = vmatmul.mubr.bf16.vlgmr.msra.gmra.mxu0 %v10038_v6 }
 0x5e3   :  { %v3823_v40 = vpop.f32.mrf.mxu1  ;;  %4099 = vmatmul.mubr.bf16.vlgmr.msra.gmra.mxu1 %v10544_v28  ;;  %4108 = vmatpush1.bf16.msra.mxu0 %v12283_v5  ;;  %v6283_v5 = vld [vmem:[%s11349_s3 + $0x188] ss:$16 sps:$4 sm:$0xff]  }
 0x5e4   :  { %v10767_v41 = vadd.f32 %v3823_v40, %v3782_v17  ;;  %4139 = vmatprep.mubr.bf16.mxu0 %v10763_v47  ;;  %4149 = vmatpush1.bf16.msra.mxu1 %v12284_v11  ;;  %v3784_v37 = vpop.f32.mrf.mxu0  ;;  %v6281_v17 = vld [vmem:[%s11349_s3 + $0x18c] ss:$16 sps:$4 sm:$0xff]   ;;  %v6282_v40 = vld [vmem:[%s11349_s3 + $0x580] ss:$16 sps:$4 sm:$0xff]   ;;  %v6284_v11 = vld [vmem:[%s11349_s3 + $0x564] ss:$16 sps:$4 sm:$0xff]  }
 0x5e5   :  { %4180 = vmatprep.mubr.bf16.mxu1 %v9661_v44  ;;  %v3825_v54 = vpop.f32.mrf.mxu1  ;;  %4109 = vmatprep.subr.bf16.mxu0 %v12143_v30  ;;  %v12288_v44 = vld [vmem:[#allocation42_spill] sm:$0xff]  ;;  %v12290_v30 = vld [vmem:[#allocation44_spill] sm:$0xff] }
 0x5e6   :  { %v10773_v46 = vadd.f32 %v3825_v54, %v3784_v37  ;;  %v3786_v55 = vpop.f32.mrf.mxu0  ;;  %4150 = vmatprep.subr.bf16.mxu1 %v12144_v57  ;;  %v6250_v57 = vld [vmem:[%s11349_s3 + $0x480] ss:$16 sps:$4 sm:$0xff]   ;;  %v6285_v37 = vld [vmem:[%s11349_s3 + $0x16c] ss:$16 sps:$4 sm:$0xff]  }
 0x5e7   :  { %v3827_v1 = vpop.f32.mrf.mxu1  ;;  %4110 = vmatpush1.bf16.msra.mxu0 %v12285_v27  ;;  %v6286_v54 = vld [vmem:[%s11349_s3 + $0x560] ss:$16 sps:$4 sm:$0xff]   ;;  %v6287_v55 = vld [vmem:[%s11349_s3 + $0x168] ss:$16 sps:$4 sm:$0xff]   ;;  %v6289_v27 = vld [vmem:[%s11349_s3 + $0x14c] ss:$16 sps:$4 sm:$0xff]  }
 0x5e8   :  { %4151 = vmatpush1.bf16.msra.mxu1 %v12146_v34  ;;  %v3787_v63 = vpop.f32.mrf.mxu0  ;;  %4111 = vmatprep.subr.bf16.mxu0 %v12286_v35  ;;  %v6251_v34 = vld [vmem:[%s11349_s3 + $0x88] ss:$16 sps:$4 sm:$0xff]   ;;  %v6288_v1 = vld [vmem:[%s11349_s3 + $0x544] ss:$16 sps:$4 sm:$0xff]  }
 0x5e9   :  { %v3828_v56 = vpop.f32.mrf.mxu1  ;;  %4152 = vmatprep.subr.bf16.mxu1 %v12287_v51  ;;  %v6290_v63 = vld [vmem:[%s11349_s3 + $0x540] ss:$16 sps:$4 sm:$0xff]   ;;  %v6291_v35 = vld [vmem:[%s11349_s3 + $0x148] ss:$16 sps:$4 sm:$0xff]   ;;  %v6293_v51 = vld [vmem:[%s11349_s3 + $0x12c] ss:$16 sps:$4 sm:$0xff]  }
 0x5ea   :  { %v6292_v56 = vld [vmem:[%s11349_s3 + $0x524] ss:$16 sps:$4 sm:$0xff]  }
 0x5eb   :  { %4112 = vmatpush1.bf16.msra.mxu0 %v12288_v44  ;;  %v6294_v44 = vld [vmem:[%s11349_s3 + $0x520] ss:$16 sps:$4 sm:$0xff]  }
 0x5ec   :  { %4153 = vmatpush1.bf16.msra.mxu1 %v12289_v12  ;;  %4113 = vmatprep.subr.bf16.mxu0 %v12290_v30  ;;  %v6295_v12 = vld [vmem:[%s11349_s3 + $0x128] ss:$16 sps:$4 sm:$0xff]   ;;  %v6296_v30 = vld [vmem:[%s11349_s3 + $0x504] ss:$16 sps:$4 sm:$0xff]  }
 0x5ed   :  { %4154 = vmatprep.subr.bf16.mxu1 %v12291_v16  ;;  %v6297_v16 = vld [vmem:[%s11349_s3 + $0x10c] ss:$16 sps:$4 sm:$0xff]  }
 0x5ef   :  { %4114 = vmatpush1.bf16.msra.mxu0 %v6250_v57  ;;  %v6298_v57 = vld [vmem:[%s11349_s3 + $0x500] ss:$16 sps:$4 sm:$0xff]  }
 0x5f0   :  { %4155 = vmatpush1.bf16.msra.mxu1 %v6251_v34  ;;  %4115 = vmatprep.subr.bf16.mxu0 %v6252_v49  ;;  %v10933_v34 = vcombine.low %v10755_v4, %v10755_v4  ;;  %v6299_v49 = vld [vmem:[%s11349_s3 + $0x108] ss:$16 sps:$4 sm:$0xff]  }
 0x5f1   :  { %4156 = vmatprep.subr.bf16.mxu1 %v6253_v18  ;;  %v6300_v18 = vld [vmem:[%s11349_s3 + $0x2ec] ss:$16 sps:$4 sm:$0xff]  }
 0x5f3   :  { %4116 = vmatpush1.bf16.msra.mxu0 %v6254_v7  ;;  %v6301_v7 = vld [vmem:[%s11349_s3 + $0x4ec] ss:$16 sps:$4 sm:$0xff]  }
 0x5f4   :  { %4157 = vmatpush1.bf16.msra.mxu1 %v6255_v43  ;;  %4117 = vmatprep.subr.bf16.mxu0 %v6256_v8 }
 0x5f5   :  { %4158 = vmatprep.subr.bf16.mxu1 %v6257_v32  ;;  %v6302_v32 = vld [vmem:[%s11349_s3 + $0x2e8] ss:$16 sps:$4 sm:$0xff]  }
 0x5f7   :  { %4118 = vmatpush1.bf16.msra.mxu0 %v6258_v53  ;;  %v6303_v53 = vld [vmem:[%s11349_s3 + $0x4e8] ss:$16 sps:$4 sm:$0xff]  }
 0x5f8   :  { %4159 = vmatpush1.bf16.msra.mxu1 %v6259_v60  ;;  %4119 = vmatprep.subr.bf16.mxu0 %v6260_v19 }
 0x5f9   :  { %4160 = vmatprep.subr.bf16.mxu1 %v6261_v31 }
 0x5fb   :  { %4120 = vmatpush1.bf16.msra.mxu0 %v6262_v61 }
 0x5fc   :  { %4161 = vmatpush1.bf16.msra.mxu1 %v6263_v45  ;;  %4121 = vmatprep.subr.bf16.mxu0 %v6264_v9  ;;  %v6307_v45 = vld [vmem:[%s11349_s3 + $0x4c8] ss:$16 sps:$4 sm:$0xff]  }
 0x5fd   :  { %4162 = vmatprep.subr.bf16.mxu1 %v6265_v23  ;;  %v6308_v23 = vld [vmem:[%s11349_s3 + $0x2ac] ss:$16 sps:$4 sm:$0xff]  }
 0x5ff   :  { %4122 = vmatpush1.bf16.msra.mxu0 %v6266_v24 }
 0x600   :  { %4163 = vmatpush1.bf16.msra.mxu1 %v6267_v25  ;;  %4123 = vmatprep.subr.bf16.mxu0 %v6268_v62  ;;  %v6309_v25 = vld [vmem:[%s11349_s3 + $0x4ac] ss:$16 sps:$4 sm:$0xff]   ;;  %v6310_v62 = vld [vmem:[%s11349_s3 + $0x2a8] ss:$16 sps:$4 sm:$0xff]  }
 0x601   :  { %4164 = vmatprep.subr.bf16.mxu1 %v6269_v20  ;;  %v6311_v20 = vld [vmem:[%s11349_s3 + $0x4a8] ss:$16 sps:$4 sm:$0xff]  }
 0x603   :  { %4124 = vmatpush2.bf16.msra.mxu0 %v6270_v26  ;;  %v6312_v26 = vld [vmem:[%s11349_s3 + $0x28c] ss:$16 sps:$4 sm:$0xff]  }
 0x604   :  { %4165 = vmatpush2.bf16.msra.mxu1 %v6271_v0  ;;  %4125 = vmatprep.subr.bf16.mxu0 %v6272_v29  ;;  %v6313_v0 = vld [vmem:[%s11349_s3 + $0x48c] ss:$16 sps:$4 sm:$0xff]   ;;  %v6314_v29 = vld [vmem:[%s11349_s3 + $0x288] ss:$16 sps:$4 sm:$0xff]  }
 0x605   :  { %4166 = vmatprep.subr.bf16.mxu1 %v6273_v14  ;;  %v6315_v14 = vld [vmem:[%s11349_s3 + $0x488] ss:$16 sps:$4 sm:$0xff]  }
 0x607   :  { %4126 = vmatpush2.bf16.msra.mxu0 %v6274_v58  ;;  %v6316_v58 = vld [vmem:[%s11349_s3 + $0x26c] ss:$16 sps:$4 sm:$0xff]  }
 0x608   :  { %4167 = vmatpush2.bf16.msra.mxu1 %v6275_v38  ;;  %4127 = vmatprep.subr.bf16.mxu0 %v6276_v36  ;;  %v6317_v38 = vld [vmem:[%s11349_s3 + $0x46c] ss:$16 sps:$4 sm:$0xff]   ;;  %v6318_v36 = vld [vmem:[%s11349_s3 + $0x268] ss:$16 sps:$4 sm:$0xff]  }
 0x609   :  { %4168 = vmatprep.subr.bf16.mxu1 %v6277_v10  ;;  %v6319_v10 = vld [vmem:[%s11349_s3 + $0x468] ss:$16 sps:$4 sm:$0xff]  }
 0x60b   :  { %4128 = vmatpush2.bf16.msra.mxu0 %v6278_v39  ;;  %v6320_v39 = vld [vmem:[%s11349_s3 + $0x24c] ss:$16 sps:$4 sm:$0xff]  }
 0x60c   :  { %4169 = vmatpush2.bf16.msra.mxu1 %v6279_v48  ;;  %4129 = vmatprep.subr.bf16.mxu0 %v6280_v33  ;;  %v6321_v48 = vld [vmem:[%s11349_s3 + $0x44c] ss:$16 sps:$4 sm:$0xff]   ;;  %v6322_v33 = vld [vmem:[%s11349_s3 + $0x248] ss:$16 sps:$4 sm:$0xff]  }
 0x60d   :  { %4170 = vmatprep.subr.bf16.mxu1 %v6281_v17  ;;  %v6323_v17 = vld [vmem:[%s11349_s3 + $0x448] ss:$16 sps:$4 sm:$0xff]  }
 0x60f   :  { %4130 = vmatpush2.bf16.msra.mxu0 %v6282_v40  ;;  %v6324_v40 = vld [vmem:[%s11349_s3 + $0x22c] ss:$16 sps:$4 sm:$0xff]  }
 0x610   :  { %4171 = vmatpush2.bf16.msra.mxu1 %v6283_v5  ;;  %4131 = vmatprep.subr.bf16.mxu0 %v6284_v11  ;;  %v6325_v5 = vld [vmem:[%s11349_s3 + $0x42c] ss:$16 sps:$4 sm:$0xff]   ;;  %v6326_v11 = vld [vmem:[%s11349_s3 + $0x228] ss:$16 sps:$4 sm:$0xff]  }
 0x611   :  { %4172 = vmatprep.subr.bf16.mxu1 %v6285_v37  ;;  %v6327_v37 = vld [vmem:[%s11349_s3 + $0x428] ss:$16 sps:$4 sm:$0xff]  }
 0x613   :  { %4132 = vmatpush2.bf16.msra.mxu0 %v6286_v54  ;;  %v6328_v54 = vld [vmem:[%s11349_s3 + $0x20c] ss:$16 sps:$4 sm:$0xff]  }
 0x614   :  { %4173 = vmatpush2.bf16.msra.mxu1 %v6287_v55  ;;  %4133 = vmatprep.subr.bf16.mxu0 %v6288_v1  ;;  %v6329_v55 = vld [vmem:[%s11349_s3 + $0x40c] ss:$16 sps:$4 sm:$0xff]   ;;  %v6330_v1 = vld [vmem:[%s11349_s3 + $0x208] ss:$16 sps:$4 sm:$0xff]  }
 0x615   :  { %4174 = vmatprep.subr.bf16.mxu1 %v6289_v27  ;;  %v6331_v27 = vld [vmem:[%s11349_s3 + $0x408] ss:$16 sps:$4 sm:$0xff]  }
 0x617   :  { %4134 = vmatpush2.bf16.msra.mxu0 %v6290_v63  ;;  %v6332_v63 = vld [vmem:[%s11349_s3 + $0x3ec] ss:$16 sps:$4 sm:$0xff]  }
 0x618   :  { %4175 = vmatpush2.bf16.msra.mxu1 %v6291_v35  ;;  %4135 = vmatprep.subr.bf16.mxu0 %v6292_v56  ;;  %v6333_v35 = vld [vmem:[%s11349_s3 + $0x5ec] ss:$16 sps:$4 sm:$0xff]   ;;  %v6334_v56 = vld [vmem:[%s11349_s3 + $0x3e8] ss:$16 sps:$4 sm:$0xff]  }
 0x619   :  { %4176 = vmatprep.subr.bf16.mxu1 %v6293_v51  ;;  %v6335_v51 = vld [vmem:[%s11349_s3 + $0x5e8] ss:$16 sps:$4 sm:$0xff]  }
 0x61b   :  { %4136 = vmatpush2.bf16.msra.mxu0 %v6294_v44  ;;  %v6336_v44 = vld [vmem:[%s11349_s3 + $0x3cc] ss:$16 sps:$4 sm:$0xff]  }
 0x61c   :  { %4177 = vmatpush2.bf16.msra.mxu1 %v6295_v12  ;;  %4137 = vmatprep.subr.bf16.mxu0 %v6296_v30  ;;  %v6337_v12 = vld [vmem:[%s11349_s3 + $0x5cc] ss:$16 sps:$4 sm:$0xff]   ;;  %v6338_v30 = vld [vmem:[%s11349_s3 + $0x3c8] ss:$16 sps:$4 sm:$0xff]  }
 0x61d   :  { %4178 = vmatprep.subr.bf16.mxu1 %v6297_v16  ;;  %v6339_v16 = vld [vmem:[%s11349_s3 + $0x5c8] ss:$16 sps:$4 sm:$0xff]  }
 0x61f   :  { %4138 = vmatpush2.bf16.msra.mxu0 %v6298_v57  ;;  %v6340_v57 = vld [vmem:[%s11349_s3 + $0x3ac] ss:$16 sps:$4 sm:$0xff]  }
 0x620   :  { %4179 = vmatpush2.bf16.msra.mxu1 %v6299_v49  ;;  %4189 = vmatprep.subr.bf16.mxu0 %v6300_v18  ;;  %v6341_v49 = vld [vmem:[%s11349_s3 + $0x5ac] ss:$16 sps:$4 sm:$0xff]   ;;  %v6342_v18 = vld [vmem:[%s11349_s3 + $0x3a8] ss:$16 sps:$4 sm:$0xff]  }
 0x621   :  { %4230 = vmatprep.subr.bf16.mxu1 %v6301_v7  ;;  %v6343_v7 = vld [vmem:[%s11349_s3 + $0x5a8] ss:$16 sps:$4 sm:$0xff]  }
 0x622   :  { %v3864_v43 = vpop.f32.mrf.mxu0  ;;  %4140 = vmatmul.mubr.bf16.vlgmr.msra.gmra.mxu0 %v10933_v34 }
 0x623   :  { %v10946_v4 = vadd.f32 %v3864_v43, %v10767_v41  ;;  %v10948_v8 = vpop.f32.mrf.mxu1  ;;  %4181 = vmatmul.mubr.bf16.vlgmr.msra.gmra.mxu1 %v10038_v6  ;;  %4190 = vmatpush1.bf16.msra.mxu0 %v6302_v32  ;;  %v6304_v6 = vld [vmem:[%s11349_s3 + $0x2cc] ss:$16 sps:$4 sm:$0xff]  }
 0x624   :  { %4221 = vmatprep.mubr.bf16.mxu0 %v10472_v21  ;;  %4231 = vmatpush1.bf16.msra.mxu1 %v6303_v53  ;;  %v3866_v60 = vpop.f32.mrf.mxu0  ;;  %v6305_v21 = vld [vmem:[%s11349_s3 + $0x4cc] ss:$16 sps:$4 sm:$0xff]   ;;  %v6346_v53 = vld [vmem:[%s11349_s3 + $0x388] ss:$16 sps:$4 sm:$0xff]  }
 0x625   :  { %4262 = vmatprep.mubr.bf16.mxu1 %v10763_v47  ;;  %v10960_v41 = vadd.f32 %v3866_v60, %v10773_v46  ;;  %v10962_v19 = vpop.f32.mrf.mxu1  ;;  %4191 = vmatprep.subr.bf16.mxu0 %v6304_v6  ;;  %v6306_v46 = vld [vmem:[%s11349_s3 + $0x2c8] ss:$16 sps:$4 sm:$0xff]   ;;  %v6344_v43 = vld [vmem:[%s11349_s3 + $0x38c] ss:$16 sps:$4 sm:$0xff]  }
 0x626   :  { %v3868_v31 = vpop.f32.mrf.mxu0  ;;  %4232 = vmatprep.subr.bf16.mxu1 %v6305_v21  ;;  %v6345_v32 = vld [vmem:[%s11349_s3 + $0x58c] ss:$16 sps:$4 sm:$0xff]   ;;  %v6347_v60 = vld [vmem:[%s11349_s3 + $0x588] ss:$16 sps:$4 sm:$0xff]  }
 0x627   :  { %v3994_v61 = vmax.f32 %v10946_v4, %v10960_v41  ;;  %v3909_v47 = vpop.f32.mrf.mxu1  ;;  %4192 = vmatpush1.bf16.msra.mxu0 %v6306_v46  ;;  %v6348_v6 = vld [vmem:[%s11349_s3 + $0x36c] ss:$16 sps:$4 sm:$0xff]   ;;  %v6350_v21 = vld [vmem:[%s11349_s3 + $0x368] ss:$16 sps:$4 sm:$0xff]   ;;  %v11189_v4 = vld [vmem:[%s11350_s4] ss:$0 sm:$0xff] }
 0x628   :  { %4233 = vmatpush1.bf16.msra.mxu1 %v6307_v45  ;;  %v3869_v9 = vpop.f32.mrf.mxu0  ;;  %4193 = vmatprep.subr.bf16.mxu0 %v6308_v23  ;;  %v6349_v31 = vld [vmem:[%s11349_s3 + $0x56c] ss:$16 sps:$4 sm:$0xff]   ;;  %v6351_v47 = vld [vmem:[%s11349_s3 + $0x568] ss:$16 sps:$4 sm:$0xff]  }
 0x629   :  { %v3910_v24 = vpop.f32.mrf.mxu1  ;;  %4234 = vmatprep.subr.bf16.mxu1 %v6309_v25  ;;  %v6352_v46 = vld [vmem:[%s11349_s3 + $0x34c] ss:$16 sps:$4 sm:$0xff]   ;;  %v5916_v25 = vld [vmem:[%s11351_s5 + $0x30] sm:$0xff]  }
 0x62a   :  { %v5908_v45 = vld [vmem:[%s11351_s5 + $0x78] sm:$0xff]  }
 0x62b   :  { %4194 = vmatpush1.bf16.msra.mxu0 %v6310_v62 }
 0x62c   :  { %4235 = vmatpush1.bf16.msra.mxu1 %v6311_v20  ;;  %4195 = vmatprep.subr.bf16.mxu0 %v6312_v26  ;;  %v5918_v20 = vld [vmem:[%s11351_s5 + $0x68] sm:$0xff]  }
 0x62d   :  { %4236 = vmatprep.subr.bf16.mxu1 %v6313_v0 }
 0x62f   :  { %4196 = vmatpush1.bf16.msra.mxu0 %v6314_v29 }
 0x630   :  { %4237 = vmatpush1.bf16.msra.mxu1 %v6315_v14  ;;  %4197 = vmatprep.subr.bf16.mxu0 %v6316_v58 }
 0x631   :  { %4238 = vmatprep.subr.bf16.mxu1 %v6317_v38  ;;  %v5920_v38 = vld [vmem:[%s11351_s5 + $0x28] sm:$0xff]  }
 0x633   :  { %4198 = vmatpush1.bf16.msra.mxu0 %v6318_v36 }
 0x634   :  { %4239 = vmatpush1.bf16.msra.mxu1 %v6319_v10  ;;  %4199 = vmatprep.subr.bf16.mxu0 %v6320_v39  ;;  %v5922_v10 = vld [vmem:[%s11351_s5 + $0x60] sm:$0xff]  }
 0x635   :  { %4240 = vmatprep.subr.bf16.mxu1 %v6321_v48 }
 0x637   :  { %4200 = vmatpush1.bf16.msra.mxu0 %v6322_v33  ;;  %v5923_v33 = vld [vmem:[%s11351_s5 + $0xe0] sm:$0xff]  }
 0x638   :  { %4241 = vmatpush1.bf16.msra.mxu1 %v6323_v17  ;;  %4201 = vmatprep.subr.bf16.mxu0 %v6324_v40  ;;  %v5924_v40 = vld [vmem:[%s11351_s5 + $0x20] sm:$0xff]  }
 0x639   :  { %4242 = vmatprep.subr.bf16.mxu1 %v6325_v5  ;;  %v5925_v5 = vld [vmem:[%s11351_s5 + $0xa0] sm:$0xff]  }
 0x63b   :  { %4202 = vmatpush1.bf16.msra.mxu0 %v6326_v11  ;;  %v5926_v11 = vld [vmem:[%s11351_s5 + $0x58] sm:$0xff]  }
 0x63c   :  { %4243 = vmatpush1.bf16.msra.mxu1 %v6327_v37  ;;  %4203 = vmatprep.subr.bf16.mxu0 %v6328_v54  ;;  %v5928_v54 = vld [vmem:[%s11351_s5 + $0x18] sm:$0xff]  }
 0x63d   :  { %4244 = vmatprep.subr.bf16.mxu1 %v6329_v55  ;;  %v5929_v55 = vld [vmem:[%s11351_s5 + $0x98] sm:$0xff]  }
 0x63f   :  { %4204 = vmatpush1.bf16.msra.mxu0 %v6330_v1  ;;  %v5930_v1 = vld [vmem:[%s11351_s5 + $0x50] sm:$0xff]  }
 0x640   :  { %4245 = vmatpush1.bf16.msra.mxu1 %v6331_v27  ;;  %4205 = vmatprep.subr.bf16.mxu0 %v6332_v63  ;;  %v5931_v63 = vld [vmem:[%s11351_s5 + $0xd0] sm:$0xff]  }
 0x641   :  { %4246 = vmatprep.subr.bf16.mxu1 %v6333_v35  ;;  %v5932_v35 = vld [vmem:[%s11351_s5 + $0x10] sm:$0xff]  }
 0x643   :  { %4206 = vmatpush2.bf16.msra.mxu0 %v6334_v56  ;;  %v5933_v56 = vld [vmem:[%s11351_s5 + $0x90] sm:$0xff]  }
 0x644   :  { %4247 = vmatpush2.bf16.msra.mxu1 %v6335_v51  ;;  %4207 = vmatprep.subr.bf16.mxu0 %v6336_v44  ;;  %v5934_v51 = vld [vmem:[%s11351_s5 + $0x48] sm:$0xff]  }
 0x645   :  { %4248 = vmatprep.subr.bf16.mxu1 %v6337_v12  ;;  %v5935_v44 = vld [vmem:[%s11351_s5 + $0xc8] sm:$0xff]  }
 0x646   :  { %v5936_v12 = vld [vmem:[%s11351_s5 + $0x8] sm:$0xff]  }
 0x647   :  { %4208 = vmatpush2.bf16.msra.mxu0 %v6338_v30  ;;  %v5937_v30 = vld [vmem:[%s11351_s5 + $0x88] sm:$0xff]  }
 0x648   :  { %4249 = vmatpush2.bf16.msra.mxu1 %v6339_v16  ;;  %4209 = vmatprep.subr.bf16.mxu0 %v6340_v57  ;;  %v5940_v16 = vld [vmem:[%s11351_s5 + $0x40] sm:$0xff]  }
 0x649   :  { %4250 = vmatprep.subr.bf16.mxu1 %v6341_v49  ;;  %v5941_v57 = vld [vmem:[%s11351_s5 + $0xc0] sm:$0xff]  }
 0x64b   :  { %4210 = vmatpush2.bf16.msra.mxu0 %v6342_v18 }
 0x64c   :  { %4251 = vmatpush2.bf16.msra.mxu1 %v6343_v7  ;;  %4211 = vmatprep.subr.bf16.mxu0 %v6344_v43  ;;  %v5942_v7 = vld [vmem:[%s11351_s5] sm:$0xff]  }
 0x64d   :  { %4252 = vmatprep.subr.bf16.mxu1 %v6345_v32  ;;  %v5943_v43 = vld [vmem:[%s11351_s5 + $0x80] sm:$0xff]   ;;  %v5944_v32 = vld [vmem:[%s11351_s5 + $0x138] sm:$0xff]  }
 0x64f   :  { %4212 = vmatpush2.bf16.msra.mxu0 %v6346_v53 }
 0x650   :  { %4253 = vmatpush2.bf16.msra.mxu1 %v6347_v60  ;;  %4213 = vmatprep.subr.bf16.mxu0 %v6348_v6  ;;  %v6354_v60 = vmov 0.0  }
 0x651   :  { %4254 = vmatprep.subr.bf16.mxu1 %v6349_v31 }
 0x653   :  { %4214 = vmatpush2.bf16.msra.mxu0 %v6350_v21 }
 0x654   :  { %4255 = vmatpush2.bf16.msra.mxu1 %v6351_v47  ;;  %4215 = vmatprep.subr.bf16.mxu0 %v6352_v46 }
 0x655   :  { %4256 = vmatprep.subr.bf16.mxu1 %v10619_v50  ;;  %v5909_v50 = vld [vmem:[%s11351_s5 + $0xf8] sm:$0xff]  }
 0x657   :  { %4216 = vmatpush2.bf16.msra.mxu0 %v10625_v3  ;;  %v12292_v3 = vld [vmem:[#allocation143_spill] sm:$0xff] }
 0x658   :  { %4257 = vmatpush2.bf16.msra.mxu1 %v10631_v2  ;;  %4217 = vmatprep.subr.bf16.mxu0 %v10637_v59  ;;  %v5910_v2 = vld [vmem:[%s11351_s5 + $0x38] sm:$0xff]  }
 0x659   :  { %4258 = vmatprep.subr.bf16.mxu1 %v10643_v42  ;;  %v11132_v59 = vld [vmem:[#allocation3] sm:$0xff]  ;;  %v12293_v42 = vld [vmem:[#allocation144_spill] sm:$0xff] }
 0x65a   :  { %v5313_v9 = vcombine.high %v11132_v59, %v11132_v59  ;;  %v5312_v53 = vcombine.low %v11132_v59, %v11132_v59 }
 0x65b   :  { %4218 = vmatpush2.bf16.msra.mxu0 %v10649_v15  ;;  %v5913_v15 = vld [vmem:[%s11351_s5 + $0xb8] sm:$0xff]  }
 0x65c   :  { %4259 = vmatpush2.bf16.msra.mxu1 %v10655_v13  ;;  %4219 = vmatprep.subr.bf16.mxu0 %v10661_v52  ;;  %v5914_v13 = vld [vmem:[%s11351_s5 + $0x70] sm:$0xff]  }
 0x65d   :  { %4260 = vmatprep.subr.bf16.mxu1 %v10667_v22  ;;  %v5915_v52 = vld [vmem:[%s11351_s5 + $0xf0] sm:$0xff]  }
 0x65f   :  { %4220 = vmatpush2.bf16.msra.mxu0 %v12292_v3 }
 0x660   :  { %4261 = vmatpush2.bf16.msra.mxu1 %v12293_v42  ;;  %5375 = vmatprep.subr.bf16.mxu0 %v5908_v45 }
 0x661   :  { %5397 = vmatprep.subr.bf16.mxu1 %v5909_v50  ;;  %v5945_v50 = vld [vmem:[%s11351_s5 + $0x130] sm:$0xff]  }
 0x662   :  { %v3946_v22 = vpop.f32.mrf.mxu0  ;;  %4222 = vmatmul.mubr.bf16.vlgmr.msra.gmra.mxu0 %v10544_v28  ;;  %v5917_v28 = vld [vmem:[%s11351_s5 + $0xb0] sm:$0xff]  }
 0x663   :  { %v3947_v23 = vadd.f32 %v3946_v22, %v10948_v8  ;;  %v3987_v24 = vpop.f32.mrf.mxu1  ;;  %4263 = vmatmul.mubr.bf16.vlgmr.msra.gmra.mxu1 %v10933_v34  ;;  %5376 = vmatpush3.bf16.msra.mxu0 %v5910_v2  ;;  %v5919_v34 = vld [vmem:[%s11351_s5 + $0xe8] sm:$0xff]   ;;  %v5948_v22 = vld [vmem:[%s11351_s5 + $0x118] sm:$0xff]  }
 0x664   :  { %4658 = vmatprep.mubr.bf16.mxu0 %v5313_v9  ;;  %5398 = vmatpush3.bf16.msra.mxu1 %v5913_v15  ;;  %v3948_v62 = vpop.f32.mrf.mxu0  ;;  %v5949_v9 = vld [vmem:[%s11351_s5 + $0x110] sm:$0xff]  }
 0x665   :  { %v3949_v8 = vadd.f32 %v3948_v62, %v10962_v19  ;;  %v3989_v26 = vpop.f32.mrf.mxu1  ;;  %5377 = vmatprep.subr.bf16.mxu0 %v5914_v13  ;;  %5399 = vmatprep.subr.bf16.mxu1 %v5915_v52  ;;  %v3988_v29 = vadd.f32 %v3987_v24, %v3947_v23  ;;  %v5921_v19 = vld [vmem:[%s11351_s5 + $0xa8] sm:$0xff]   ;;  %v5947_v52 = vld [vmem:[%s11351_s5 + $0x120] sm:$0xff]  }
 0x666   :  { %v3950_v0 = vpop.f32.mrf.mxu0  ;;  %v5946_v13 = vld [vmem:[%s11351_s5 + $0x128] sm:$0xff]   ;;  %v5951_v24 = vld [vmem:[%s11351_s5 + $0x100] sm:$0xff]  }
 0x667   :  { %v3990_v14 = vadd.f32 %v3989_v26, %v3949_v8  ;;  %v3991_v58 = vpop.f32.mrf.mxu1  ;;  %5378 = vmatpush3.bf16.msra.mxu0 %v5916_v25  ;;  %v5950_v23 = vld [vmem:[%s11351_s5 + $0x108] sm:$0xff]   ;;  %v5953_v25 = vld [vmem:[%s11352_s7 + $0x38] ss:$0 sps:$4 sm:$0xff]   ;;  %v5956_v8 = vld [vmem:[%s11352_s7 + $0x20] sm:$0xff]  }
 0x668   :  { %5400 = vmatpush3.bf16.msra.mxu1 %v5917_v28  ;;  %v3951_v36 = vpop.f32.mrf.mxu0  ;;  %5379 = vmatprep.subr.bf16.mxu0 %v5918_v20  ;;  %v4821_v62 = vsel %vm4819_vm2, %v5953_v25, 0  ;;  %v5954_v28 = vld [vmem:[%s11352_s7 + $0x30] sm:$0xff]   ;;  %v5955_v20 = vld [vmem:[%s11352_s7 + $0x28] sm:$0xff]   ;;  %v5957_v26 = vld [vmem:[%s11352_s7 + $0x18] sm:$0xff]  }
 0x669   :  { %v3995_v39 = vmax.f32 %v3988_v29, %v3990_v14  ;;  %v3992_v48 = vpop.f32.mrf.mxu1  ;;  %5401 = vmatprep.subr.bf16.mxu1 %v5919_v34  ;;  %v5958_v34 = vld [vmem:[%s11352_s7 + $0x10] sm:$0xff]   ;;  %v5965_v25 = vld [vmem:[%s11354_s9 + $0x8] sm:$0xff]  }
 0x66b   :  { %v3996_v17 = vmax.f32 %v3994_v61, %v3995_v39  ;;  %5380 = vmatpush3.bf16.msra.mxu0 %v5920_v38  ;;  %v5927_v61 = vld [vmem:[%s11351_s5 + $0xd8] sm:$0xff]  }
 0x66c   :  { %5402 = vmatpush3.bf16.msra.mxu1 %v5921_v19  ;;  %5381 = vmatprep.subr.bf16.mxu0 %v5922_v10 }
 0x66d   :  { %v3997_v41 = vadd.f32 %v11189_v4, %v3996_v17  ;;  %5403 = vmatprep.subr.bf16.mxu1 %v5923_v33 }
 0x66f   :  { %v3998_v37 = vmax.f32 %v3997_v41, 0.0  ;;  %5382 = vmatpush3.bf16.msra.mxu0 %v5924_v40 }
 0x670   :  { %5404 = vmatpush3.bf16.msra.mxu1 %v5925_v5  ;;  %5383 = vmatprep.subr.bf16.mxu0 %v5926_v11 }
 0x671   :  { %v3999_v27 = vpack.c.bf16 %v3998_v37, %v3998_v37  ;;  %5405 = vmatprep.subr.bf16.mxu1 %v5927_v61 }
 0x673   :  { %4000 = vst [vmem:[#allocation3 + $0xc] sm:$0xf] %v3999_v27  ;;  %5384 = vmatpush3.bf16.msra.mxu0 %v5928_v54 }
 0x674   :  { %5406 = vmatpush3.bf16.msra.mxu1 %v5929_v55  ;;  %5385 = vmatprep.subr.bf16.mxu0 %v5930_v1 }
 0x675   :  { %5407 = vmatprep.subr.bf16.mxu1 %v5931_v63 }
 0x677   :  { %5386 = vmatpush3.bf16.msra.mxu0 %v5932_v35 }
 0x678   :  { %5408 = vmatpush3.bf16.msra.mxu1 %v5933_v56  ;;  %5387 = vmatprep.subr.bf16.mxu0 %v5934_v51 }
 0x679   :  { %5409 = vmatprep.subr.bf16.mxu1 %v5935_v44 }
 0x67a   :  { %v4279_v49 = vld [vmem:[#allocation3 + $0x8] sm:$0xff] }
 0x67b   :  { %5388 = vmatpush3.bf16.msra.mxu0 %v5936_v12  ;;  %v5315_v18 = vcombine.high %v4279_v49, %v4279_v49  ;;  %v5314_v6 = vcombine.low %v4279_v49, %v4279_v49  ;;  %v5311_v49 = vld [vmem:[%s11353_s6] ss:$0 sm:$0xff] }
 0x67c   :  { %5410 = vmatpush3.bf16.msra.mxu1 %v5937_v30  ;;  %5389 = vmatprep.subr.bf16.mxu0 %v5940_v16 }
 0x67d   :  { %4698 = vmatprep.mubr.bf16.mxu1 %v5315_v18  ;;  %5411 = vmatprep.subr.bf16.mxu1 %v5941_v57 }
 0x67f   :  { %5390 = vmatpush3.bf16.msra.mxu0 %v5942_v7 }
 0x680   :  { %5412 = vmatpush3.bf16.msra.mxu1 %v5943_v43  ;;  %5444 = vmatprep.subr.bf16.mxu0 %v6354_v60 }
 0x681   :  { %5464 = vmatprep.subr.bf16.mxu1 %v6354_v60 }
 0x682   :  { %4659 = vmatmul.mubr.bf16.vlgmr.msra.gmra.mxu0 %v5312_v53 }
 0x683   :  { %4699 = vmatmul.mubr.bf16.vlgmr.msra.gmra.mxu1 %v5314_v6  ;;  %5445 = vmatpush3.bf16.msra.mxu0 %v5944_v32 }
 0x684   :  { %5446 = vmatprep.subr.bf16.mxu0 %v6354_v60  ;;  %5460 = vmatprep.mubr.msk.bf16.mxu0 %vm6355_vm1, %v6354_v60 }
 0x685   :  { %5480 = vmatprep.mubr.msk.bf16.mxu1 %vm6355_vm1, %v6354_v60  ;;  %5465 = vmatpush3.bf16.msra.mxu1 %v4821_v62  ;;  %v5966_v62 = vld [vmem:[%s11354_s9] sm:$0xff]  }
 0x686   :  { %5466 = vmatprep.subr.bf16.mxu1 %v6354_v60 }
 0x687   :  { %5447 = vmatpush3.bf16.msra.mxu0 %v5945_v50  ;;  %v5961_v50 = vld [vmem:[%s11354_s9 + $0x28] ss:$0 sps:$4 sm:$0x33]  }
 0x688   :  { %5448 = vmatprep.subr.bf16.mxu0 %v6354_v60 }
 0x689   :  { %5467 = vmatpush3.bf16.msra.mxu1 %v5954_v28  ;;  %v5357_v28 = vld [vmem:[%s11355_s8] ss:$0 sm:$0xff] }
 0x68a   :  { %5468 = vmatprep.subr.bf16.mxu1 %v6354_v60 }
 0x68b   :  { %5449 = vmatpush3.bf16.msra.mxu0 %v5946_v13 }
 0x68c   :  { %5450 = vmatprep.subr.bf16.mxu0 %v6354_v60 }
 0x68d   :  { %5469 = vmatpush3.bf16.msra.mxu1 %v5955_v20 }
 0x68e   :  { %5470 = vmatprep.subr.bf16.mxu1 %v6354_v60 }
 0x68f   :  { %5451 = vmatpush3.bf16.msra.mxu0 %v5947_v52 }
 0x690   :  { %5452 = vmatprep.subr.bf16.mxu0 %v6354_v60 }
 0x691   :  { %5471 = vmatpush3.bf16.msra.mxu1 %v5956_v8 }
 0x692   :  { %5472 = vmatprep.subr.bf16.mxu1 %v6354_v60 }
 0x693   :  { %5453 = vmatpush3.bf16.msra.mxu0 %v5948_v22 }
 0x694   :  { %5454 = vmatprep.subr.bf16.mxu0 %v6354_v60 }
 0x695   :  { %5473 = vmatpush3.bf16.msra.mxu1 %v5957_v26 }
 0x696   :  { %5474 = vmatprep.subr.bf16.mxu1 %v6354_v60 }
 0x697   :  { %5455 = vmatpush3.bf16.msra.mxu0 %v5949_v9 }
 0x698   :  { %5456 = vmatprep.subr.bf16.mxu0 %v6354_v60 }
 0x699   :  { %5475 = vmatpush3.bf16.msra.mxu1 %v5958_v34 }
 0x69a   :  { %5476 = vmatprep.subr.bf16.mxu1 %v6354_v60 }
 0x69b   :  { %5457 = vmatpush3.bf16.msra.mxu0 %v5950_v23 }
 0x69c   :  { %5458 = vmatprep.subr.bf16.mxu0 %v6354_v60 }
 0x69f   :  { %5459 = vmatpush3.bf16.msra.mxu0 %v5951_v24 }
 0x6a0   :  { %5484 = vmatprep.subr.bf16.mxu0 %v6354_v60 }
 0x6a2   :  { %v4059_v31 = vpop.f32.mrf.mxu0 }
 0x6a3   :  { %v4100_v21 = vpop.f32.mrf.mxu1 }
 0x6a4   :  { %v4101_v47 = vadd.f32 %v4100_v21, %v4059_v31  ;;  %v4061_v46 = vpop.f32.mrf.mxu0 }
 0x6a5   :  { %v4102_v45 = vpop.f32.mrf.mxu1 }
 0x6a6   :  { %v4103_v3 = vadd.f32 %v4102_v45, %v4061_v46  ;;  %v4063_v2 = vpop.f32.mrf.mxu0  ;;  %v5959_v46 = vld [vmem:[%s11352_s7 + $0x8] sm:$0xff]   ;;  %v5960_v45 = vld [vmem:[%s11352_s7] sm:$0xff]  }
 0x6a7   :  { %v4104_v59 = vpop.f32.mrf.mxu1  ;;  %5477 = vmatpush3.bf16.msra.mxu1 %v5959_v46  ;;  %v5962_v2 = vld [vmem:[%s11354_s9 + $0x20] sm:$0xff]  }
 0x6a8   :  { %v4064_v42 = vpop.f32.mrf.mxu0  ;;  %5478 = vmatprep.subr.bf16.mxu1 %v6354_v60  ;;  %v5963_v59 = vld [vmem:[%s11354_s9 + $0x18] sm:$0xff]  }
 0x6a9   :  { %v4105_v15 = vpop.f32.mrf.mxu1  ;;  %v5964_v42 = vld [vmem:[%s11354_s9 + $0x10] sm:$0xff]  }
 0x6ab   :  { %5479 = vmatpush3.bf16.msra.mxu1 %v5960_v45 }
 0x6e2   :  { %v4141_v0 = vpop.f32.mrf.mxu0 }
 0x6e3   :  { %v4142_v29 = vadd.f32 %v4141_v0, %v4101_v47  ;;  %v4182_v14 = vpop.f32.mrf.mxu1 }
 0x6e4   :  { %v4143_v58 = vpop.f32.mrf.mxu0 }
 0x6e5   :  { %v4144_v38 = vadd.f32 %v4143_v58, %v4103_v3  ;;  %v4184_v36 = vpop.f32.mrf.mxu1  ;;  %v4922_v3 = vsel %vm4920_vm3, %v5961_v50, 0  ;;  %v5367_v58 = vld [vmem:[%s11356_s10] ss:$0 sm:$0xff] }
 0x6e6   :  { %v4145_v19 = vpop.f32.mrf.mxu0 }
 0x6e7   :  { %v4271_v10 = vmax.f32 %v4142_v29, %v4144_v38  ;;  %v4186_v39 = vpop.f32.mrf.mxu1 }
 0x6e8   :  { %v4146_v48 = vpop.f32.mrf.mxu0 }
 0x6e9   :  { %v4187_v33 = vpop.f32.mrf.mxu1 }
 0x722   :  { %v4223_v17 = vpop.f32.mrf.mxu0 }
 0x723   :  { %v4224_v40 = vadd.f32 %v4223_v17, %v4182_v14  ;;  %v4264_v5 = vpop.f32.mrf.mxu1 }
 0x724   :  { %v4225_v11 = vpop.f32.mrf.mxu0 }
 0x725   :  { %v4226_v41 = vadd.f32 %v4225_v11, %v4184_v36  ;;  %v4266_v61 = vpop.f32.mrf.mxu1  ;;  %v4265_v54 = vadd.f32 %v4264_v5, %v4224_v40 }
 0x726   :  { %v4227_v37 = vpop.f32.mrf.mxu0 }
 0x727   :  { %v4267_v55 = vadd.f32 %v4266_v61, %v4226_v41  ;;  %v4268_v1 = vpop.f32.mrf.mxu1 }
 0x728   :  { %v4228_v27 = vpop.f32.mrf.mxu0 }
 0x729   :  { %v4272_v63 = vmax.f32 %v4265_v54, %v4267_v55  ;;  %v4269_v35 = vpop.f32.mrf.mxu1 }
 0x72b   :  { %v4273_v56 = vmax.f32 %v4271_v10, %v4272_v63 }
 0x72d   :  { %v4274_v51 = vadd.f32 %v11189_v4, %v4273_v56 }
 0x72f   :  { %v4275_v44 = vmax.f32 %v4274_v51, 0.0 }
 0x731   :  { %v4276_v12 = vpack.c.bf16 %v4275_v44, %v4275_v44 }
 0x733   :  { %4277 = vst [vmem:[#allocation3 + $0x10] sm:$0xf] %v4276_v12 }
 0x73a   :  { %v5952_v30 = vld [vmem:[#allocation3 + $0x10] ss:$0 sps:$4 sm:$0xff]  }
 0x73b   :  { %5461 = vmatmul.mubr.bf16.vlgmr.msra.gmra.mxu0 %v5952_v30 }
 0x73c   :  { %5496 = vmatprep.mubr.msk.bf16.mxu0 %vm6355_vm1, %v6354_v60  ;;  %5485 = vmatpush3.bf16.msra.mxu0 %v4922_v3 }
 0x73d   :  { %5486 = vmatprep.subr.bf16.mxu0 %v6354_v60 }
 0x740   :  { %5487 = vmatpush3.bf16.msra.mxu0 %v5962_v2 }
 0x741   :  { %5488 = vmatprep.subr.bf16.mxu0 %v6354_v60 }
 0x742   :  { %v5391_v16 = vpop.f32.mrf.mxu0 }
 0x743   :  { %v5413_v57 = vpop.f32.mrf.mxu1 }
 0x744   :  { %v5392_v18 = vpop.f32.mrf.mxu0  ;;  %5489 = vmatpush3.bf16.msra.mxu0 %v5963_v59 }
 0x745   :  { %v5393_v7 = vadd.f32 %v5392_v18, %v5391_v16  ;;  %v5414_v43 = vpop.f32.mrf.mxu1  ;;  %5490 = vmatprep.subr.bf16.mxu0 %v6354_v60 }
 0x746   :  { %v5415_v32 = vadd.f32 %v5414_v43, %v5413_v57  ;;  %v5394_v53 = vpop.f32.mrf.mxu0 }
 0x747   :  { %v4661_v4 = vadd.f32 %v5393_v7, %v5311_v49  ;;  %v5416_v6 = vpop.f32.mrf.mxu1 }
 0x748   :  { %v5395_v31 = vpop.f32.mrf.mxu0  ;;  %5491 = vmatpush3.bf16.msra.mxu0 %v5964_v42 }
 0x749   :  { %v5417_v21 = vpop.f32.mrf.mxu1  ;;  %v4701_v47 = vadd.f32 %v5415_v32, %v4661_v4  ;;  %5492 = vmatprep.subr.bf16.mxu0 %v6354_v60 }
 0x74c   :  { %5493 = vmatpush3.bf16.msra.mxu0 %v5965_v25 }
 0x74d   :  { %5494 = vmatprep.subr.bf16.mxu0 %v6354_v60 }
 0x750   :  { %5495 = vmatpush3.bf16.msra.mxu0 %v5966_v62 }
 0x7fb   :  { %v4740_v15 = vpop.f32.mrf.mxu0 }
 0x7fc   :  { %v4741_v13 = vadd.f32 %v4740_v15, %v4701_v47 }
 0x7fd   :  { %v5462_v52 = vpop.f32.mrf.mxu0 }
 0x7fe   :  { %v4746_v22 = vmax.f32 %v4741_v13, 0.0 }
 0x7ff   :  { %v4743_v9 = vpop.f32.mrf.mxu0 }
 0x800   :  { %v4747_v23 = vpack.c.bf16 %v4746_v22, %v4746_v22 }
 0x801   :  { %v5463_v24 = vpop.f32.mrf.mxu0 }
 0x802   :  { %5481 = vmatmul.mubr.msk.bf16.vlgmr.msra.gmra.mxu1 %vm4815_vm4, %v4747_v23 }
 0x8c2   :  { %v4857_v20 = vpop.f32.mrf.mxu1 }
 0x8c3   :  { %v4858_v8 = vadd.f32 %v5357_v28, %v4857_v20 }
 0x8c4   :  { %v5482_v26 = vpop.f32.mrf.mxu1 }
 0x8c5   :  { %v4863_v34 = vmax.f32 %v4858_v8, 0.0 }
 0x8c6   :  { %v4860_v0 = vpop.f32.mrf.mxu1 }
 0x8c7   :  { %v4864_v29 = vpack.c.bf16 %v4863_v34, %v4863_v34 }
 0x8c8   :  { %v5483_v14 = vpop.f32.mrf.mxu1 }
 0x8c9   :  { %5497 = vmatmul.mubr.msk.bf16.vlgmr.msra.gmra.mxu0 %vm4916_vm5, %v4864_v29 }
 0x989   :  { %v4958_v38 = vpop.f32.mrf.mxu0 }
 0x98a   :  { %v4959_v60 = vadd.f32 %v5367_v58, %v4958_v38 }
 0x98b   :  { %v5498_v36 = vpop.f32.mrf.mxu0 }
 0x98c   :  { %4965 = vst.msk [vmem:[%s11357_s11] sm:$0xff] %vm4964_vm6, %v4959_v60 }
 0x98d   :  { %v4961_v19 = vpop.f32.mrf.mxu0 }
 0x98f   :  { %v5499_v10 = vpop.f32.mrf.mxu0 }

</bundles_post_ra>
